<compile_context>
chip_gen: v6e
topology: v6e:2x2x1
jax: 0.10.0
libtpu: 0.0.40
codegen_flags: <defaults>
</compile_context>

<pallas_src>
import math

import jax
import jax.numpy as jnp
from jax.experimental import pallas as pl
from jax.experimental.pallas import tpu as pltpu


def _fusion_kernel(f1_ref, f2_ref, ca1w1t_ref, ca1w2_ref, ca2w1t_ref, ca2w2_ref,
                   tsa_ref, fw1_ref, fw2_ref, out_ref, pm_ref, sig_ref):
    M = f1_ref.shape[1]
    KD, _, HW = tsa_ref.shape          # (7, 2*HW, HW)
    P = (KD - 1) // 2                  # depth padding (3)
    D = M // HW
    S = D + 2 * P                      # padded depth rows per feature in pm scratch

    f1 = f1_ref[...]                   # (C1, M) channels on sublanes, voxels on lanes
    f2 = f2_ref[...]                   # (C2, M)

    # ---- ChannelAttention: global avg pool -> Linear/ReLU/Linear -> sigmoid ----
    def channel_scale(x, w1t, w2):
        # x: (C, M); w1t: (C, Cr) (fc1 weight pre-transposed); w2: (C, Cr)
        s = jnp.mean(x, axis=1, keepdims=True)            # (C, 1)   lane reduce
        h = jnp.sum(w1t * s, axis=0, keepdims=True)       # (1, Cr)  sublane reduce
        h = jnp.maximum(h, 0.0)
        a = jnp.sum(w2 * h, axis=1, keepdims=True)        # (C, 1)   lane reduce
        return jax.nn.sigmoid(a)

    f1c = f1 * channel_scale(f1, ca1w1t_ref[...], ca1w2_ref[...])
    f2c = f2 * channel_scale(f2, ca2w1t_ref[...], ca2w2_ref[...])

    # ---- SpatialAttention maps (channel mean / max) into the D-padded scratch.
    #      pm rows [0,S) = feature1, [S,2S) = feature2; lanes [0,HW)=avg, [HW,2HW)=max.
    #      Only the halo rows are zeroed (interior fully overwritten each step). ----
    halo = jnp.zeros((P, 2 * HW), jnp.float32)
    for base, fc in ((0, f1c), (S, f2c)):
        pm_ref[base:base + P, :] = halo
        pm_ref[base + P + D:base + S, :] = halo
        avg = jnp.mean(fc, axis=0, keepdims=True)          # (1, M)  sublane reduce
        mx = jnp.max(fc, axis=0, keepdims=True)            # (1, M)
        for d in range(D):
            r = base + P + d
            pm_ref[r:r + 1, 0:HW] = avg[:, d * HW:(d + 1) * HW]
            pm_ref[r:r + 1, HW:2 * HW] = mx[:, d * HW:(d + 1) * HW]

    # ---- shared 7x7x7 conv: H/W taps folded into (2*HW, HW) Toeplitz blocks with the
    #      "same" padding baked in; only the kd shift remains (leading-sublane slices).
    #      Both features batched along the M dim -> 7 lane-dense MXU dots total. ----
    acc = jnp.zeros((2 * D, HW), jnp.float32)
    for kd in range(KD):
        lhs = jnp.concatenate([pm_ref[kd:kd + D, :],
                               pm_ref[S + kd:S + kd + D, :]], axis=0)    # (2D, 2HW)
        acc = acc + jnp.dot(lhs, tsa_ref[kd], preferred_element_type=jnp.float32)
    sig = jax.nn.sigmoid(acc)                                            # (2D, HW)

    # lay the per-voxel sigmoid maps back out as lane-dense (1, M) rows
    for d in range(D):
        sig_ref[0:1, d * HW:(d + 1) * HW] = sig[d:d + 1, :]
        sig_ref[1:2, d * HW:(d + 1) * HW] = sig[D + d:D + d + 1, :]
    f1s = f1c * sig_ref[0:1, :]                                          # (C1, M)
    f2s = f2c * sig_ref[1:2, :]                                          # (C2, M)

    # ---- AdaptiveFusion: 1x1x1 conv -> InstanceNorm3d -> ReLU -> 1x1x1 conv ----
    fcat = jnp.concatenate([f1s, f2s], axis=0)                           # (C1+C2, M)
    h = jnp.dot(fw1_ref[...], fcat, preferred_element_type=jnp.float32)  # (Cmid, M)
    mu = jnp.mean(h, axis=1, keepdims=True)
    ex2 = jnp.mean(h * h, axis=1, keepdims=True)
    var = jnp.maximum(ex2 - mu * mu, 0.0)                                # one-pass stats
    hn = jnp.maximum((h - mu) * jax.lax.rsqrt(var + 1e-5), 0.0)
    out_ref[...] = jnp.dot(fw2_ref[...], hn, preferred_element_type=jnp.float32)


def _sa_toeplitz_hw(sa_w, H, W):
    """Fold the H- and W-direction taps of the shared SpatialAttention conv into
    per-kd Toeplitz blocks with the 'same' zero padding baked in:
        T[kd][c*H*W + h'*W + w', h*W + w] = k[c, kd, h'-h+P, w'-w+P]  (0 outside)."""
    k = sa_w[0].astype(jnp.float32)                                   # (2, KD, KH, KW)
    C, KD, KH, KW = k.shape
    ph, pw = (KH - 1) // 2, (KW - 1) // 2
    dh = jnp.arange(H)[:, None] - jnp.arange(H)[None, :] + ph         # (H', H)
    dw = jnp.arange(W)[:, None] - jnp.arange(W)[None, :] + pw         # (W', W)
    mh = ((dh >= 0) & (dh < KH)).astype(k.dtype)
    mw = ((dw >= 0) & (dw < KW)).astype(k.dtype)
    t = k[:, :, jnp.clip(dh, 0, KH - 1), :] * mh[None, None, :, :, None]   # (C,KD,H',H,KW)
    t = t[:, :, :, :, jnp.clip(dw, 0, KW - 1)] * mw[None, None, None, None, :, :]
    t = jnp.transpose(t, (1, 0, 2, 4, 3, 5))                          # (KD, C, H', W', H, W)
    return t.reshape(KD, C * H * W, H * W)


def feature_fusion_3d(feature1, feature2, params):
    """feature1: (B,C1,D,H,W); feature2: (B,C2,D,H,W) -> fused (B,Cout,D,H,W)."""
    ca1_w1, ca1_w2, ca2_w1, ca2_w2, sa_w, fuse_w1, fuse_w2 = params
    B, C1, D, H, W = feature1.shape
    C2 = feature2.shape[1]
    Cmid = fuse_w1.shape[0]
    Cout = fuse_w2.shape[0]
    KD = sa_w.shape[2]
    HW = H * W
    M = D * HW

    # NCDHW consumed natively: free reshapes only, no HBM transposes.
    f1 = feature1.reshape(B, C1, M).astype(jnp.float32)
    f2 = feature2.reshape(B, C2, M).astype(jnp.float32)

    # one-time weight preprocessing (plain JAX)
    ca1_w1t = jnp.transpose(ca1_w1).astype(jnp.float32)   # (C1, C1r)
    ca2_w1t = jnp.transpose(ca2_w1).astype(jnp.float32)   # (C2, C2r)
    ca1_w2f = ca1_w2.astype(jnp.float32)                  # (C1, C1r)
    ca2_w2f = ca2_w2.astype(jnp.float32)                  # (C2, C2r)
    tsa = _sa_toeplitz_hw(sa_w, H, W)                     # (KD, 2*HW, HW)
    fw1 = fuse_w1[:, :, 0, 0, 0].astype(jnp.float32)      # (Cmid, C1+C2)
    fw2 = fuse_w2[:, :, 0, 0, 0].astype(jnp.float32)      # (Cout, Cmid)

    flops = B * (2 * KD * (2 * D) * (2 * HW) * HW         # SA Toeplitz conv (incl. pad)
                 + 2 * M * (C1 + C2) * Cmid                # fusion 1x1x1 conv #1
                 + 2 * M * Cmid * Cout                     # fusion 1x1x1 conv #2
                 + 8 * M * (C1 + C2))                      # CA/SA elementwise + reductions
    transcendentals = B * (2 * M + C1 + C2 + Cmid)
    bytes_accessed = 4 * (f1.size + f2.size + B * Cout * M
                          + tsa.size + fw1.size + fw2.size)

    grid_spec = pltpu.PrefetchScalarGridSpec(
        num_scalar_prefetch=0,
        grid=(B,),
        in_specs=[
            pl.BlockSpec((None, C1, M), lambda b: (b, 0, 0)),
            pl.BlockSpec((None, C2, M), lambda b: (b, 0, 0)),
            pl.BlockSpec(ca1_w1t.shape, lambda b: (0, 0)),
            pl.BlockSpec(ca1_w2f.shape, lambda b: (0, 0)),
            pl.BlockSpec(ca2_w1t.shape, lambda b: (0, 0)),
            pl.BlockSpec(ca2_w2f.shape, lambda b: (0, 0)),
            pl.BlockSpec(tsa.shape, lambda b: (0, 0, 0)),
            pl.BlockSpec(fw1.shape, lambda b: (0, 0)),
            pl.BlockSpec(fw2.shape, lambda b: (0, 0)),
        ],
        out_specs=pl.BlockSpec((None, Cout, M), lambda b: (b, 0, 0)),
        scratch_shapes=[
            pltpu.VMEM((2 * (D + KD - 1), 2 * HW), jnp.float32),   # D-padded avg|max maps
            pltpu.VMEM((2, M), jnp.float32),                       # per-voxel sigmoid maps
        ],
    )

    out = pl.pallas_call(
        _fusion_kernel,
        grid_spec=grid_spec,
        out_shape=jax.ShapeDtypeStruct((B, Cout, M), jnp.float32),
        compiler_params=pltpu.CompilerParams(
            dimension_semantics=("parallel",),
            vmem_limit_bytes=32 * 1024 * 1024),
        cost_estimate=pl.CostEstimate(
            flops=flops,
            transcendentals=transcendentals,
            bytes_accessed=bytes_accessed),
    )(f1, f2, ca1_w1t, ca1_w2f, ca2_w1t, ca2_w2f, tsa, fw1, fw2)

    return out.reshape(B, Cout, D, H, W)   # free reshape, no transpose


def _reference(feature1, feature2, params):
    """Pure-JAX reference mirroring the PyTorch FeatureFusion3d forward."""
    ca1_w1, ca1_w2, ca2_w1, ca2_w2, sa_w, fuse_w1, fuse_w2 = params
    hi = jax.lax.Precision.HIGHEST

    def channel_attention(x, w1, w2):
        s = jnp.mean(x, axis=(2, 3, 4))                                    # (B, C)
        h = jax.nn.relu(jnp.einsum('bc,rc->br', s, w1, precision=hi))
        a = jax.nn.sigmoid(jnp.einsum('br,cr->bc', h, w2, precision=hi))
        return x * a[:, :, None, None, None]

    def spatial_attention(x, w):
        avg = jnp.mean(x, axis=1, keepdims=True)
        mx = jnp.max(x, axis=1, keepdims=True)
        y = jnp.concatenate([avg, mx], axis=1)
        y = jax.lax.conv_general_dilated(
            y, w, (1, 1, 1), [(3, 3), (3, 3), (3, 3)],
            dimension_numbers=('NCDHW', 'OIDHW', 'NCDHW'), precision=hi)
        return x * jax.nn.sigmoid(y)

    f1 = spatial_attention(channel_attention(feature1, ca1_w1, ca1_w2), sa_w)
    f2 = spatial_attention(channel_attention(feature2, ca2_w1, ca2_w2), sa_w)
    fused = jnp.concatenate([f1, f2], axis=1)
    h = jnp.einsum('bcdhw,oc->bodhw', fused, fuse_w1[:, :, 0, 0, 0], precision=hi)
    mu = jnp.mean(h, axis=(2, 3, 4), keepdims=True)
    var = jnp.mean((h - mu) ** 2, axis=(2, 3, 4), keepdims=True)
    h = jax.nn.relu((h - mu) * jax.lax.rsqrt(var + 1e-5))
    return jnp.einsum('bcdhw,oc->bodhw', h, fuse_w2[:, :, 0, 0, 0], precision=hi)


if __name__ == "__main__":
    key = jax.random.PRNGKey(0)
    ks = jax.random.split(key, 9)

    B, C1, C2, Cout = 2, 32, 32, 16
    D, H, W = 8, 16, 16
    reduction = 16
    Cmid = (C1 + C2) // 2

    def u(k, shape, fan_in):
        bound = 1.0 / math.sqrt(fan_in)
        return jax.random.uniform(k, shape, jnp.float32, -bound, bound)

    ca1_w1 = u(ks[0], (C1 // reduction, C1), C1)                  # Linear(C1, C1/16)
    ca1_w2 = u(ks[1], (C1, C1 // reduction), C1 // reduction)     # Linear(C1/16, C1)
    ca2_w1 = u(ks[2], (C2 // reduction, C2), C2)
    ca2_w2 = u(ks[3], (C2, C2 // reduction), C2 // reduction)
    sa_w = u(ks[4], (1, 2, 7, 7, 7), 2 * 7 * 7 * 7)               # Conv3d(2,1,7,p=3)
    fuse_w1 = u(ks[5], (Cmid, C1 + C2, 1, 1, 1), C1 + C2)         # Conv3d(64,32,1)
    fuse_w2 = u(ks[6], (Cout, Cmid, 1, 1, 1), Cmid)               # Conv3d(32,16,1)
    params = (ca1_w1, ca1_w2, ca2_w1, ca2_w2, sa_w, fuse_w1, fuse_w2)

    feature1 = jax.random.normal(ks[7], (B, C1, D, H, W), jnp.float32)
    feature2 = jax.random.normal(ks[8], (B, C2, D, H, W), jnp.float32)

    out = feature_fusion_3d(feature1, feature2, params)
    out = jax.block_until_ready(out)
    assert out.shape == (B, Cout, D, H, W)

    ref = _reference(feature1, feature2, params)
    if not jnp.allclose(out, ref, rtol=1e-3, atol=1e-3):
        max_err = float(jnp.max(jnp.abs(out - ref)))
        raise AssertionError(f"mismatch vs JAX reference, max abs err = {max_err}")

    print("KERNEL_OK")
</pallas_src>

<mosaic_0001>
module attributes {stable_mosaic.version = 11 : i64} {
  func.func @_fusion_kernel(%arg0: i32, %arg1: memref<1x32x2048xf32, #tpu.memory_space<vmem>>, %arg2: memref<1x32x2048xf32, #tpu.memory_space<vmem>>, %arg3: memref<32x2xf32, #tpu.memory_space<vmem>>, %arg4: memref<32x2xf32, #tpu.memory_space<vmem>>, %arg5: memref<32x2xf32, #tpu.memory_space<vmem>>, %arg6: memref<32x2xf32, #tpu.memory_space<vmem>>, %arg7: memref<7x512x256xf32, #tpu.memory_space<vmem>>, %arg8: memref<32x64xf32, #tpu.memory_space<vmem>>, %arg9: memref<16x32xf32, #tpu.memory_space<vmem>>, %arg10: memref<1x16x2048xf32, #tpu.memory_space<vmem>>, %arg11: memref<28x512xf32, #tpu.memory_space<vmem>>, %arg12: memref<2x2048xf32, #tpu.memory_space<vmem>>) attributes {dimension_semantics = [#tpu.dimension_semantics<parallel>], iteration_bounds = array<i64: 2>, scalar_prefetch = 0 : i64, scratch_operands = 2 : i64, tpu.core_type = #tpu.core_type<tc>, window_params = [{transform_indices = @transform_0, window_bounds = array<i64: 1, 32, 2048>}, {transform_indices = @transform_1, window_bounds = array<i64: 1, 32, 2048>}, {pipeline_mode = #tpu.pipeline_mode<synchronous>, transform_indices = @transform_2, window_bounds = array<i64: 32, 2>}, {pipeline_mode = #tpu.pipeline_mode<synchronous>, transform_indices = @transform_3, window_bounds = array<i64: 32, 2>}, {pipeline_mode = #tpu.pipeline_mode<synchronous>, transform_indices = @transform_4, window_bounds = array<i64: 32, 2>}, {pipeline_mode = #tpu.pipeline_mode<synchronous>, transform_indices = @transform_5, window_bounds = array<i64: 32, 2>}, {pipeline_mode = #tpu.pipeline_mode<synchronous>, transform_indices = @transform_6, window_bounds = array<i64: 7, 512, 256>}, {pipeline_mode = #tpu.pipeline_mode<synchronous>, transform_indices = @transform_7, window_bounds = array<i64: 32, 64>}, {pipeline_mode = #tpu.pipeline_mode<synchronous>, transform_indices = @transform_8, window_bounds = array<i64: 16, 32>}, {transform_indices = @transform_9, window_bounds = array<i64: 1, 16, 2048>}]} {
    %c0 = arith.constant 0 : index
    %c0_0 = arith.constant 0 : index
    %c0_1 = arith.constant 0 : index
    %0 = vector.load %arg1[%c0, %c0_0, %c0_1] : memref<1x32x2048xf32, #tpu.memory_space<vmem>>, vector<1x32x2048xf32>
    %1 = vector.shape_cast %0 : vector<1x32x2048xf32> to vector<32x2048xf32>
    %c0_2 = arith.constant 0 : index
    %c0_3 = arith.constant 0 : index
    %c0_4 = arith.constant 0 : index
    %2 = vector.load %arg2[%c0_2, %c0_3, %c0_4] : memref<1x32x2048xf32, #tpu.memory_space<vmem>>, vector<1x32x2048xf32>
    %3 = vector.shape_cast %2 : vector<1x32x2048xf32> to vector<32x2048xf32>
    %c0_5 = arith.constant 0 : index
    %c0_6 = arith.constant 0 : index
    %4 = vector.load %arg3[%c0_5, %c0_6] : memref<32x2xf32, #tpu.memory_space<vmem>>, vector<32x2xf32>
    %c0_7 = arith.constant 0 : index
    %c0_8 = arith.constant 0 : index
    %5 = vector.load %arg4[%c0_7, %c0_8] : memref<32x2xf32, #tpu.memory_space<vmem>>, vector<32x2xf32>
    %cst = arith.constant dense<0.000000e+00> : vector<32xf32>
    %6 = vector.multi_reduction <add>, %1, %cst [1] : vector<32x2048xf32> to vector<32xf32>
    %7 = vector.shape_cast %6 : vector<32xf32> to vector<32x1xf32>
    %cst_9 = arith.constant 2.048000e+03 : f32
    %8 = vector.broadcast %cst_9 : f32 to vector<32x1xf32>
    %9 = arith.divf %7, %8 : vector<32x1xf32>
    %10 = vector.broadcast %9 : vector<32x1xf32> to vector<32x2xf32>
    %11 = arith.mulf %4, %10 : vector<32x2xf32>
    %cst_10 = arith.constant dense<0.000000e+00> : vector<2xf32>
    %12 = vector.multi_reduction <add>, %11, %cst_10 [0] : vector<32x2xf32> to vector<2xf32>
    %13 = vector.shape_cast %12 : vector<2xf32> to vector<1x2xf32>
    %cst_11 = arith.constant 0.000000e+00 : f32
    %14 = vector.broadcast %cst_11 : f32 to vector<1x2xf32>
    %15 = arith.maximumf %13, %14 : vector<1x2xf32>
    %16 = vector.broadcast %15 : vector<1x2xf32> to vector<32x2xf32>
    %17 = arith.mulf %5, %16 : vector<32x2xf32>
    %cst_12 = arith.constant dense<0.000000e+00> : vector<32xf32>
    %18 = vector.multi_reduction <add>, %17, %cst_12 [1] : vector<32x2xf32> to vector<32xf32>
    %19 = vector.shape_cast %18 : vector<32xf32> to vector<32x1xf32>
    %20 = arith.negf %19 : vector<32x1xf32>
    %21 = math.exp %20 : vector<32x1xf32>
    %cst_13 = arith.constant 1.000000e+00 : f32
    %22 = vector.broadcast %cst_13 : f32 to vector<32x1xf32>
    %23 = arith.addf %22, %21 : vector<32x1xf32>
    %24 = arith.divf %22, %23 : vector<32x1xf32>
    %25 = vector.broadcast %24 : vector<32x1xf32> to vector<32x2048xf32>
    %26 = arith.mulf %1, %25 : vector<32x2048xf32>
    %c0_14 = arith.constant 0 : index
    %c0_15 = arith.constant 0 : index
    %27 = vector.load %arg5[%c0_14, %c0_15] : memref<32x2xf32, #tpu.memory_space<vmem>>, vector<32x2xf32>
    %c0_16 = arith.constant 0 : index
    %c0_17 = arith.constant 0 : index
    %28 = vector.load %arg6[%c0_16, %c0_17] : memref<32x2xf32, #tpu.memory_space<vmem>>, vector<32x2xf32>
    %cst_18 = arith.constant dense<0.000000e+00> : vector<32xf32>
    %29 = vector.multi_reduction <add>, %3, %cst_18 [1] : vector<32x2048xf32> to vector<32xf32>
    %30 = vector.shape_cast %29 : vector<32xf32> to vector<32x1xf32>
    %cst_19 = arith.constant 2.048000e+03 : f32
    %31 = vector.broadcast %cst_19 : f32 to vector<32x1xf32>
    %32 = arith.divf %30, %31 : vector<32x1xf32>
    %33 = vector.broadcast %32 : vector<32x1xf32> to vector<32x2xf32>
    %34 = arith.mulf %27, %33 : vector<32x2xf32>
    %cst_20 = arith.constant dense<0.000000e+00> : vector<2xf32>
    %35 = vector.multi_reduction <add>, %34, %cst_20 [0] : vector<32x2xf32> to vector<2xf32>
    %36 = vector.shape_cast %35 : vector<2xf32> to vector<1x2xf32>
    %cst_21 = arith.constant 0.000000e+00 : f32
    %37 = vector.broadcast %cst_21 : f32 to vector<1x2xf32>
    %38 = arith.maximumf %36, %37 : vector<1x2xf32>
    %39 = vector.broadcast %38 : vector<1x2xf32> to vector<32x2xf32>
    %40 = arith.mulf %28, %39 : vector<32x2xf32>
    %cst_22 = arith.constant dense<0.000000e+00> : vector<32xf32>
    %41 = vector.multi_reduction <add>, %40, %cst_22 [1] : vector<32x2xf32> to vector<32xf32>
    %42 = vector.shape_cast %41 : vector<32xf32> to vector<32x1xf32>
    %43 = arith.negf %42 : vector<32x1xf32>
    %44 = math.exp %43 : vector<32x1xf32>
    %cst_23 = arith.constant 1.000000e+00 : f32
    %45 = vector.broadcast %cst_23 : f32 to vector<32x1xf32>
    %46 = arith.addf %45, %44 : vector<32x1xf32>
    %47 = arith.divf %45, %46 : vector<32x1xf32>
    %48 = vector.broadcast %47 : vector<32x1xf32> to vector<32x2048xf32>
    %49 = arith.mulf %3, %48 : vector<32x2048xf32>
    %cst_24 = arith.constant 0.000000e+00 : f32
    %50 = vector.broadcast %cst_24 : f32 to vector<3x512xf32>
    %c0_25 = arith.constant 0 : index
    %c0_26 = arith.constant 0 : index
    %51 = vector.load %arg11[%c0_25, %c0_26] : memref<28x512xf32, #tpu.memory_space<vmem>>, vector<3x512xf32>
    tpu.vector_store %arg11[%c0_25, %c0_26], %50 {strides = array<i32>} : memref<28x512xf32, #tpu.memory_space<vmem>>, vector<3x512xf32>,
    %c11 = arith.constant 11 : index
    %c0_27 = arith.constant 0 : index
    %52 = vector.load %arg11[%c11, %c0_27] : memref<28x512xf32, #tpu.memory_space<vmem>>, vector<3x512xf32>
    tpu.vector_store %arg11[%c11, %c0_27], %50 {strides = array<i32>} : memref<28x512xf32, #tpu.memory_space<vmem>>, vector<3x512xf32>,
    %cst_28 = arith.constant dense<0.000000e+00> : vector<2048xf32>
    %53 = vector.multi_reduction <add>, %26, %cst_28 [0] : vector<32x2048xf32> to vector<2048xf32>
    %54 = vector.shape_cast %53 : vector<2048xf32> to vector<1x2048xf32>
    %cst_29 = arith.constant 3.200000e+01 : f32
    %55 = vector.broadcast %cst_29 : f32 to vector<1x2048xf32>
    %56 = arith.divf %54, %55 : vector<1x2048xf32>
    %cst_30 = arith.constant dense<0xFF800000> : vector<2048xf32>
    %57 = vector.multi_reduction <maximumf>, %26, %cst_30 [0] : vector<32x2048xf32> to vector<2048xf32>
    %58 = vector.shape_cast %57 : vector<2048xf32> to vector<1x2048xf32>
    %59 = vector.extract_strided_slice %56 {offsets = [0, 0], sizes = [1, 256], strides = [1, 1]} : vector<1x2048xf32> to vector<1x256xf32>
    %c3 = arith.constant 3 : index
    %c0_31 = arith.constant 0 : index
    %60 = vector.load %arg11[%c3, %c0_31] : memref<28x512xf32, #tpu.memory_space<vmem>>, vector<1x256xf32>
    tpu.vector_store %arg11[%c3, %c0_31], %59 {strides = array<i32>} : memref<28x512xf32, #tpu.memory_space<vmem>>, vector<1x256xf32>,
    %61 = vector.extract_strided_slice %58 {offsets = [0, 0], sizes = [1, 256], strides = [1, 1]} : vector<1x2048xf32> to vector<1x256xf32>
    %c3_32 = arith.constant 3 : index
    %c256 = arith.constant 256 : index
    %62 = vector.load %arg11[%c3_32, %c256] : memref<28x512xf32, #tpu.memory_space<vmem>>, vector<1x256xf32>
    tpu.vector_store %arg11[%c3_32, %c256], %61 {strides = array<i32>} : memref<28x512xf32, #tpu.memory_space<vmem>>, vector<1x256xf32>,
    %63 = vector.extract_strided_slice %56 {offsets = [0, 256], sizes = [1, 256], strides = [1, 1]} : vector<1x2048xf32> to vector<1x256xf32>
    %c4 = arith.constant 4 : index
    %c0_33 = arith.constant 0 : index
    %64 = vector.load %arg11[%c4, %c0_33] : memref<28x512xf32, #tpu.memory_space<vmem>>, vector<1x256xf32>
    tpu.vector_store %arg11[%c4, %c0_33], %63 {strides = array<i32>} : memref<28x512xf32, #tpu.memory_space<vmem>>, vector<1x256xf32>,
    %65 = vector.extract_strided_slice %58 {offsets = [0, 256], sizes = [1, 256], strides = [1, 1]} : vector<1x2048xf32> to vector<1x256xf32>
    %c4_34 = arith.constant 4 : index
    %c256_35 = arith.constant 256 : index
    %66 = vector.load %arg11[%c4_34, %c256_35] : memref<28x512xf32, #tpu.memory_space<vmem>>, vector<1x256xf32>
    tpu.vector_store %arg11[%c4_34, %c256_35], %65 {strides = array<i32>} : memref<28x512xf32, #tpu.memory_space<vmem>>, vector<1x256xf32>,
    %67 = vector.extract_strided_slice %56 {offsets = [0, 512], sizes = [1, 256], strides = [1, 1]} : vector<1x2048xf32> to vector<1x256xf32>
    %c5 = arith.constant 5 : index
    %c0_36 = arith.constant 0 : index
    %68 = vector.load %arg11[%c5, %c0_36] : memref<28x512xf32, #tpu.memory_space<vmem>>, vector<1x256xf32>
    tpu.vector_store %arg11[%c5, %c0_36], %67 {strides = array<i32>} : memref<28x512xf32, #tpu.memory_space<vmem>>, vector<1x256xf32>,
    %69 = vector.extract_strided_slice %58 {offsets = [0, 512], sizes = [1, 256], strides = [1, 1]} : vector<1x2048xf32> to vector<1x256xf32>
    %c5_37 = arith.constant 5 : index
    %c256_38 = arith.constant 256 : index
    %70 = vector.load %arg11[%c5_37, %c256_38] : memref<28x512xf32, #tpu.memory_space<vmem>>, vector<1x256xf32>
    tpu.vector_store %arg11[%c5_37, %c256_38], %69 {strides = array<i32>} : memref<28x512xf32, #tpu.memory_space<vmem>>, vector<1x256xf32>,
    %71 = vector.extract_strided_slice %56 {offsets = [0, 768], sizes = [1, 256], strides = [1, 1]} : vector<1x2048xf32> to vector<1x256xf32>
    %c6 = arith.constant 6 : index
    %c0_39 = arith.constant 0 : index
    %72 = vector.load %arg11[%c6, %c0_39] : memref<28x512xf32, #tpu.memory_space<vmem>>, vector<1x256xf32>
    tpu.vector_store %arg11[%c6, %c0_39], %71 {strides = array<i32>} : memref<28x512xf32, #tpu.memory_space<vmem>>, vector<1x256xf32>,
    %73 = vector.extract_strided_slice %58 {offsets = [0, 768], sizes = [1, 256], strides = [1, 1]} : vector<1x2048xf32> to vector<1x256xf32>
    %c6_40 = arith.constant 6 : index
    %c256_41 = arith.constant 256 : index
    %74 = vector.load %arg11[%c6_40, %c256_41] : memref<28x512xf32, #tpu.memory_space<vmem>>, vector<1x256xf32>
    tpu.vector_store %arg11[%c6_40, %c256_41], %73 {strides = array<i32>} : memref<28x512xf32, #tpu.memory_space<vmem>>, vector<1x256xf32>,
    %75 = vector.extract_strided_slice %56 {offsets = [0, 1024], sizes = [1, 256], strides = [1, 1]} : vector<1x2048xf32> to vector<1x256xf32>
    %c7 = arith.constant 7 : index
    %c0_42 = arith.constant 0 : index
    %76 = vector.load %arg11[%c7, %c0_42] : memref<28x512xf32, #tpu.memory_space<vmem>>, vector<1x256xf32>
    tpu.vector_store %arg11[%c7, %c0_42], %75 {strides = array<i32>} : memref<28x512xf32, #tpu.memory_space<vmem>>, vector<1x256xf32>,
    %77 = vector.extract_strided_slice %58 {offsets = [0, 1024], sizes = [1, 256], strides = [1, 1]} : vector<1x2048xf32> to vector<1x256xf32>
    %c7_43 = arith.constant 7 : index
    %c256_44 = arith.constant 256 : index
    %78 = vector.load %arg11[%c7_43, %c256_44] : memref<28x512xf32, #tpu.memory_space<vmem>>, vector<1x256xf32>
    tpu.vector_store %arg11[%c7_43, %c256_44], %77 {strides = array<i32>} : memref<28x512xf32, #tpu.memory_space<vmem>>, vector<1x256xf32>,
    %79 = vector.extract_strided_slice %56 {offsets = [0, 1280], sizes = [1, 256], strides = [1, 1]} : vector<1x2048xf32> to vector<1x256xf32>
    %c8 = arith.constant 8 : index
    %c0_45 = arith.constant 0 : index
    %80 = vector.load %arg11[%c8, %c0_45] : memref<28x512xf32, #tpu.memory_space<vmem>>, vector<1x256xf32>
    tpu.vector_store %arg11[%c8, %c0_45], %79 {strides = array<i32>} : memref<28x512xf32, #tpu.memory_space<vmem>>, vector<1x256xf32>,
    %81 = vector.extract_strided_slice %58 {offsets = [0, 1280], sizes = [1, 256], strides = [1, 1]} : vector<1x2048xf32> to vector<1x256xf32>
    %c8_46 = arith.constant 8 : index
    %c256_47 = arith.constant 256 : index
    %82 = vector.load %arg11[%c8_46, %c256_47] : memref<28x512xf32, #tpu.memory_space<vmem>>, vector<1x256xf32>
    tpu.vector_store %arg11[%c8_46, %c256_47], %81 {strides = array<i32>} : memref<28x512xf32, #tpu.memory_space<vmem>>, vector<1x256xf32>,
    %83 = vector.extract_strided_slice %56 {offsets = [0, 1536], sizes = [1, 256], strides = [1, 1]} : vector<1x2048xf32> to vector<1x256xf32>
    %c9 = arith.constant 9 : index
    %c0_48 = arith.constant 0 : index
    %84 = vector.load %arg11[%c9, %c0_48] : memref<28x512xf32, #tpu.memory_space<vmem>>, vector<1x256xf32>
    tpu.vector_store %arg11[%c9, %c0_48], %83 {strides = array<i32>} : memref<28x512xf32, #tpu.memory_space<vmem>>, vector<1x256xf32>,
    %85 = vector.extract_strided_slice %58 {offsets = [0, 1536], sizes = [1, 256], strides = [1, 1]} : vector<1x2048xf32> to vector<1x256xf32>
    %c9_49 = arith.constant 9 : index
    %c256_50 = arith.constant 256 : index
    %86 = vector.load %arg11[%c9_49, %c256_50] : memref<28x512xf32, #tpu.memory_space<vmem>>, vector<1x256xf32>
    tpu.vector_store %arg11[%c9_49, %c256_50], %85 {strides = array<i32>} : memref<28x512xf32, #tpu.memory_space<vmem>>, vector<1x256xf32>,
    %87 = vector.extract_strided_slice %56 {offsets = [0, 1792], sizes = [1, 256], strides = [1, 1]} : vector<1x2048xf32> to vector<1x256xf32>
    %c10 = arith.constant 10 : index
    %c0_51 = arith.constant 0 : index
    %88 = vector.load %arg11[%c10, %c0_51] : memref<28x512xf32, #tpu.memory_space<vmem>>, vector<1x256xf32>
    tpu.vector_store %arg11[%c10, %c0_51], %87 {strides = array<i32>} : memref<28x512xf32, #tpu.memory_space<vmem>>, vector<1x256xf32>,
    %89 = vector.extract_strided_slice %58 {offsets = [0, 1792], sizes = [1, 256], strides = [1, 1]} : vector<1x2048xf32> to vector<1x256xf32>
    %c10_52 = arith.constant 10 : index
    %c256_53 = arith.constant 256 : index
    %90 = vector.load %arg11[%c10_52, %c256_53] : memref<28x512xf32, #tpu.memory_space<vmem>>, vector<1x256xf32>
    tpu.vector_store %arg11[%c10_52, %c256_53], %89 {strides = array<i32>} : memref<28x512xf32, #tpu.memory_space<vmem>>, vector<1x256xf32>,
    %c14 = arith.constant 14 : index
    %c0_54 = arith.constant 0 : index
    %91 = vector.load %arg11[%c14, %c0_54] : memref<28x512xf32, #tpu.memory_space<vmem>>, vector<3x512xf32>
    tpu.vector_store %arg11[%c14, %c0_54], %50 {strides = array<i32>} : memref<28x512xf32, #tpu.memory_space<vmem>>, vector<3x512xf32>,
    %c25 = arith.constant 25 : index
    %c0_55 = arith.constant 0 : index
    %92 = vector.load %arg11[%c25, %c0_55] : memref<28x512xf32, #tpu.memory_space<vmem>>, vector<3x512xf32>
    tpu.vector_store %arg11[%c25, %c0_55], %50 {strides = array<i32>} : memref<28x512xf32, #tpu.memory_space<vmem>>, vector<3x512xf32>,
    %cst_56 = arith.constant dense<0.000000e+00> : vector<2048xf32>
    %93 = vector.multi_reduction <add>, %49, %cst_56 [0] : vector<32x2048xf32> to vector<2048xf32>
    %94 = vector.shape_cast %93 : vector<2048xf32> to vector<1x2048xf32>
    %cst_57 = arith.constant 3.200000e+01 : f32
    %95 = vector.broadcast %cst_57 : f32 to vector<1x2048xf32>
    %96 = arith.divf %94, %95 : vector<1x2048xf32>
    %cst_58 = arith.constant dense<0xFF800000> : vector<2048xf32>
    %97 = vector.multi_reduction <maximumf>, %49, %cst_58 [0] : vector<32x2048xf32> to vector<2048xf32>
    %98 = vector.shape_cast %97 : vector<2048xf32> to vector<1x2048xf32>
    %99 = vector.extract_strided_slice %96 {offsets = [0, 0], sizes = [1, 256], strides = [1, 1]} : vector<1x2048xf32> to vector<1x256xf32>
    %c17 = arith.constant 17 : index
    %c0_59 = arith.constant 0 : index
    %100 = vector.load %arg11[%c17, %c0_59] : memref<28x512xf32, #tpu.memory_space<vmem>>, vector<1x256xf32>
    tpu.vector_store %arg11[%c17, %c0_59], %99 {strides = array<i32>} : memref<28x512xf32, #tpu.memory_space<vmem>>, vector<1x256xf32>,
    %101 = vector.extract_strided_slice %98 {offsets = [0, 0], sizes = [1, 256], strides = [1, 1]} : vector<1x2048xf32> to vector<1x256xf32>
    %c17_60 = arith.constant 17 : index
    %c256_61 = arith.constant 256 : index
    %102 = vector.load %arg11[%c17_60, %c256_61] : memref<28x512xf32, #tpu.memory_space<vmem>>, vector<1x256xf32>
    tpu.vector_store %arg11[%c17_60, %c256_61], %101 {strides = array<i32>} : memref<28x512xf32, #tpu.memory_space<vmem>>, vector<1x256xf32>,
    %103 = vector.extract_strided_slice %96 {offsets = [0, 256], sizes = [1, 256], strides = [1, 1]} : vector<1x2048xf32> to vector<1x256xf32>
    %c18 = arith.constant 18 : index
    %c0_62 = arith.constant 0 : index
    %104 = vector.load %arg11[%c18, %c0_62] : memref<28x512xf32, #tpu.memory_space<vmem>>, vector<1x256xf32>
    tpu.vector_store %arg11[%c18, %c0_62], %103 {strides = array<i32>} : memref<28x512xf32, #tpu.memory_space<vmem>>, vector<1x256xf32>,
    %105 = vector.extract_strided_slice %98 {offsets = [0, 256], sizes = [1, 256], strides = [1, 1]} : vector<1x2048xf32> to vector<1x256xf32>
    %c18_63 = arith.constant 18 : index
    %c256_64 = arith.constant 256 : index
    %106 = vector.load %arg11[%c18_63, %c256_64] : memref<28x512xf32, #tpu.memory_space<vmem>>, vector<1x256xf32>
    tpu.vector_store %arg11[%c18_63, %c256_64], %105 {strides = array<i32>} : memref<28x512xf32, #tpu.memory_space<vmem>>, vector<1x256xf32>,
    %107 = vector.extract_strided_slice %96 {offsets = [0, 512], sizes = [1, 256], strides = [1, 1]} : vector<1x2048xf32> to vector<1x256xf32>
    %c19 = arith.constant 19 : index
    %c0_65 = arith.constant 0 : index
    %108 = vector.load %arg11[%c19, %c0_65] : memref<28x512xf32, #tpu.memory_space<vmem>>, vector<1x256xf32>
    tpu.vector_store %arg11[%c19, %c0_65], %107 {strides = array<i32>} : memref<28x512xf32, #tpu.memory_space<vmem>>, vector<1x256xf32>,
    %109 = vector.extract_strided_slice %98 {offsets = [0, 512], sizes = [1, 256], strides = [1, 1]} : vector<1x2048xf32> to vector<1x256xf32>
    %c19_66 = arith.constant 19 : index
    %c256_67 = arith.constant 256 : index
    %110 = vector.load %arg11[%c19_66, %c256_67] : memref<28x512xf32, #tpu.memory_space<vmem>>, vector<1x256xf32>
    tpu.vector_store %arg11[%c19_66, %c256_67], %109 {strides = array<i32>} : memref<28x512xf32, #tpu.memory_space<vmem>>, vector<1x256xf32>,
    %111 = vector.extract_strided_slice %96 {offsets = [0, 768], sizes = [1, 256], strides = [1, 1]} : vector<1x2048xf32> to vector<1x256xf32>
    %c20 = arith.constant 20 : index
    %c0_68 = arith.constant 0 : index
    %112 = vector.load %arg11[%c20, %c0_68] : memref<28x512xf32, #tpu.memory_space<vmem>>, vector<1x256xf32>
    tpu.vector_store %arg11[%c20, %c0_68], %111 {strides = array<i32>} : memref<28x512xf32, #tpu.memory_space<vmem>>, vector<1x256xf32>,
    %113 = vector.extract_strided_slice %98 {offsets = [0, 768], sizes = [1, 256], strides = [1, 1]} : vector<1x2048xf32> to vector<1x256xf32>
    %c20_69 = arith.constant 20 : index
    %c256_70 = arith.constant 256 : index
    %114 = vector.load %arg11[%c20_69, %c256_70] : memref<28x512xf32, #tpu.memory_space<vmem>>, vector<1x256xf32>
    tpu.vector_store %arg11[%c20_69, %c256_70], %113 {strides = array<i32>} : memref<28x512xf32, #tpu.memory_space<vmem>>, vector<1x256xf32>,
    %115 = vector.extract_strided_slice %96 {offsets = [0, 1024], sizes = [1, 256], strides = [1, 1]} : vector<1x2048xf32> to vector<1x256xf32>
    %c21 = arith.constant 21 : index
    %c0_71 = arith.constant 0 : index
    %116 = vector.load %arg11[%c21, %c0_71] : memref<28x512xf32, #tpu.memory_space<vmem>>, vector<1x256xf32>
    tpu.vector_store %arg11[%c21, %c0_71], %115 {strides = array<i32>} : memref<28x512xf32, #tpu.memory_space<vmem>>, vector<1x256xf32>,
    %117 = vector.extract_strided_slice %98 {offsets = [0, 1024], sizes = [1, 256], strides = [1, 1]} : vector<1x2048xf32> to vector<1x256xf32>
    %c21_72 = arith.constant 21 : index
    %c256_73 = arith.constant 256 : index
    %118 = vector.load %arg11[%c21_72, %c256_73] : memref<28x512xf32, #tpu.memory_space<vmem>>, vector<1x256xf32>
    tpu.vector_store %arg11[%c21_72, %c256_73], %117 {strides = array<i32>} : memref<28x512xf32, #tpu.memory_space<vmem>>, vector<1x256xf32>,
    %119 = vector.extract_strided_slice %96 {offsets = [0, 1280], sizes = [1, 256], strides = [1, 1]} : vector<1x2048xf32> to vector<1x256xf32>
    %c22 = arith.constant 22 : index
    %c0_74 = arith.constant 0 : index
    %120 = vector.load %arg11[%c22, %c0_74] : memref<28x512xf32, #tpu.memory_space<vmem>>, vector<1x256xf32>
    tpu.vector_store %arg11[%c22, %c0_74], %119 {strides = array<i32>} : memref<28x512xf32, #tpu.memory_space<vmem>>, vector<1x256xf32>,
    %121 = vector.extract_strided_slice %98 {offsets = [0, 1280], sizes = [1, 256], strides = [1, 1]} : vector<1x2048xf32> to vector<1x256xf32>
    %c22_75 = arith.constant 22 : index
    %c256_76 = arith.constant 256 : index
    %122 = vector.load %arg11[%c22_75, %c256_76] : memref<28x512xf32, #tpu.memory_space<vmem>>, vector<1x256xf32>
    tpu.vector_store %arg11[%c22_75, %c256_76], %121 {strides = array<i32>} : memref<28x512xf32, #tpu.memory_space<vmem>>, vector<1x256xf32>,
    %123 = vector.extract_strided_slice %96 {offsets = [0, 1536], sizes = [1, 256], strides = [1, 1]} : vector<1x2048xf32> to vector<1x256xf32>
    %c23 = arith.constant 23 : index
    %c0_77 = arith.constant 0 : index
    %124 = vector.load %arg11[%c23, %c0_77] : memref<28x512xf32, #tpu.memory_space<vmem>>, vector<1x256xf32>
    tpu.vector_store %arg11[%c23, %c0_77], %123 {strides = array<i32>} : memref<28x512xf32, #tpu.memory_space<vmem>>, vector<1x256xf32>,
    %125 = vector.extract_strided_slice %98 {offsets = [0, 1536], sizes = [1, 256], strides = [1, 1]} : vector<1x2048xf32> to vector<1x256xf32>
    %c23_78 = arith.constant 23 : index
    %c256_79 = arith.constant 256 : index
    %126 = vector.load %arg11[%c23_78, %c256_79] : memref<28x512xf32, #tpu.memory_space<vmem>>, vector<1x256xf32>
    tpu.vector_store %arg11[%c23_78, %c256_79], %125 {strides = array<i32>} : memref<28x512xf32, #tpu.memory_space<vmem>>, vector<1x256xf32>,
    %127 = vector.extract_strided_slice %96 {offsets = [0, 1792], sizes = [1, 256], strides = [1, 1]} : vector<1x2048xf32> to vector<1x256xf32>
    %c24 = arith.constant 24 : index
    %c0_80 = arith.constant 0 : index
    %128 = vector.load %arg11[%c24, %c0_80] : memref<28x512xf32, #tpu.memory_space<vmem>>, vector<1x256xf32>
    tpu.vector_store %arg11[%c24, %c0_80], %127 {strides = array<i32>} : memref<28x512xf32, #tpu.memory_space<vmem>>, vector<1x256xf32>,
    %129 = vector.extract_strided_slice %98 {offsets = [0, 1792], sizes = [1, 256], strides = [1, 1]} : vector<1x2048xf32> to vector<1x256xf32>
    %c24_81 = arith.constant 24 : index
    %c256_82 = arith.constant 256 : index
    %130 = vector.load %arg11[%c24_81, %c256_82] : memref<28x512xf32, #tpu.memory_space<vmem>>, vector<1x256xf32>
    tpu.vector_store %arg11[%c24_81, %c256_82], %129 {strides = array<i32>} : memref<28x512xf32, #tpu.memory_space<vmem>>, vector<1x256xf32>,
    %cst_83 = arith.constant 0.000000e+00 : f32
    %131 = vector.broadcast %cst_83 : f32 to vector<16x256xf32>
    %c0_84 = arith.constant 0 : index
    %c0_85 = arith.constant 0 : index
    %132 = vector.load %arg11[%c0_84, %c0_85] : memref<28x512xf32, #tpu.memory_space<vmem>>, vector<8x512xf32>
    %c14_86 = arith.constant 14 : index
    %c0_87 = arith.constant 0 : index
    %133 = vector.load %arg11[%c14_86, %c0_87] : memref<28x512xf32, #tpu.memory_space<vmem>>, vector<8x512xf32>
    %134 = tpu.concatenate %132, %133 in 0 : vector<8x512xf32>, vector<8x512xf32> -> vector<16x512xf32>
    %c0_88 = arith.constant 0 : index
    %c0_89 = arith.constant 0 : index
    %c0_90 = arith.constant 0 : index
    %135 = vector.load %arg7[%c0_88, %c0_89, %c0_90] : memref<7x512x256xf32, #tpu.memory_space<vmem>>, vector<1x512x256xf32>
    %136 = vector.shape_cast %135 : vector<1x512x256xf32> to vector<512x256xf32>
    %cst_91 = arith.constant dense<0.000000e+00> : vector<16x256xf32>
    %137 = tpu.matmul %134, %136, %cst_91 {dimension_numbers = #tpu.dot_dimension_numbers<[1], [0], [0], [1], [0, 0, 1, 1], [], []>} : vector<16x512xf32>, vector<512x256xf32>, vector<16x256xf32> -> vector<16x256xf32>
    %138 = arith.addf %131, %137 : vector<16x256xf32>
    %c1 = arith.constant 1 : index
    %c0_92 = arith.constant 0 : index
    %139 = vector.load %arg11[%c1, %c0_92] : memref<28x512xf32, #tpu.memory_space<vmem>>, vector<8x512xf32>
    %c15 = arith.constant 15 : index
    %c0_93 = arith.constant 0 : index
    %140 = vector.load %arg11[%c15, %c0_93] : memref<28x512xf32, #tpu.memory_space<vmem>>, vector<8x512xf32>
    %141 = tpu.concatenate %139, %140 in 0 : vector<8x512xf32>, vector<8x512xf32> -> vector<16x512xf32>
    %c1_94 = arith.constant 1 : index
    %c0_95 = arith.constant 0 : index
    %c0_96 = arith.constant 0 : index
    %142 = vector.load %arg7[%c1_94, %c0_95, %c0_96] : memref<7x512x256xf32, #tpu.memory_space<vmem>>, vector<1x512x256xf32>
    %143 = vector.shape_cast %142 : vector<1x512x256xf32> to vector<512x256xf32>
    %cst_97 = arith.constant dense<0.000000e+00> : vector<16x256xf32>
    %144 = tpu.matmul %141, %143, %cst_97 {dimension_numbers = #tpu.dot_dimension_numbers<[1], [0], [0], [1], [0, 0, 1, 1], [], []>} : vector<16x512xf32>, vector<512x256xf32>, vector<16x256xf32> -> vector<16x256xf32>
    %145 = arith.addf %138, %144 : vector<16x256xf32>
    %c2 = arith.constant 2 : index
    %c0_98 = arith.constant 0 : index
    %146 = vector.load %arg11[%c2, %c0_98] : memref<28x512xf32, #tpu.memory_space<vmem>>, vector<8x512xf32>
    %c16 = arith.constant 16 : index
    %c0_99 = arith.constant 0 : index
    %147 = vector.load %arg11[%c16, %c0_99] : memref<28x512xf32, #tpu.memory_space<vmem>>, vector<8x512xf32>
    %148 = tpu.concatenate %146, %147 in 0 : vector<8x512xf32>, vector<8x512xf32> -> vector<16x512xf32>
    %c2_100 = arith.constant 2 : index
    %c0_101 = arith.constant 0 : index
    %c0_102 = arith.constant 0 : index
    %149 = vector.load %arg7[%c2_100, %c0_101, %c0_102] : memref<7x512x256xf32, #tpu.memory_space<vmem>>, vector<1x512x256xf32>
    %150 = vector.shape_cast %149 : vector<1x512x256xf32> to vector<512x256xf32>
    %cst_103 = arith.constant dense<0.000000e+00> : vector<16x256xf32>
    %151 = tpu.matmul %148, %150, %cst_103 {dimension_numbers = #tpu.dot_dimension_numbers<[1], [0], [0], [1], [0, 0, 1, 1], [], []>} : vector<16x512xf32>, vector<512x256xf32>, vector<16x256xf32> -> vector<16x256xf32>
    %152 = arith.addf %145, %151 : vector<16x256xf32>
    %c3_104 = arith.constant 3 : index
    %c0_105 = arith.constant 0 : index
    %153 = vector.load %arg11[%c3_104, %c0_105] : memref<28x512xf32, #tpu.memory_space<vmem>>, vector<8x512xf32>
    %c17_106 = arith.constant 17 : index
    %c0_107 = arith.constant 0 : index
    %154 = vector.load %arg11[%c17_106, %c0_107] : memref<28x512xf32, #tpu.memory_space<vmem>>, vector<8x512xf32>
    %155 = tpu.concatenate %153, %154 in 0 : vector<8x512xf32>, vector<8x512xf32> -> vector<16x512xf32>
    %c3_108 = arith.constant 3 : index
    %c0_109 = arith.constant 0 : index
    %c0_110 = arith.constant 0 : index
    %156 = vector.load %arg7[%c3_108, %c0_109, %c0_110] : memref<7x512x256xf32, #tpu.memory_space<vmem>>, vector<1x512x256xf32>
    %157 = vector.shape_cast %156 : vector<1x512x256xf32> to vector<512x256xf32>
    %cst_111 = arith.constant dense<0.000000e+00> : vector<16x256xf32>
    %158 = tpu.matmul %155, %157, %cst_111 {dimension_numbers = #tpu.dot_dimension_numbers<[1], [0], [0], [1], [0, 0, 1, 1], [], []>} : vector<16x512xf32>, vector<512x256xf32>, vector<16x256xf32> -> vector<16x256xf32>
    %159 = arith.addf %152, %158 : vector<16x256xf32>
    %c4_112 = arith.constant 4 : index
    %c0_113 = arith.constant 0 : index
    %160 = vector.load %arg11[%c4_112, %c0_113] : memref<28x512xf32, #tpu.memory_space<vmem>>, vector<8x512xf32>
    %c18_114 = arith.constant 18 : index
    %c0_115 = arith.constant 0 : index
    %161 = vector.load %arg11[%c18_114, %c0_115] : memref<28x512xf32, #tpu.memory_space<vmem>>, vector<8x512xf32>
    %162 = tpu.concatenate %160, %161 in 0 : vector<8x512xf32>, vector<8x512xf32> -> vector<16x512xf32>
    %c4_116 = arith.constant 4 : index
    %c0_117 = arith.constant 0 : index
    %c0_118 = arith.constant 0 : index
    %163 = vector.load %arg7[%c4_116, %c0_117, %c0_118] : memref<7x512x256xf32, #tpu.memory_space<vmem>>, vector<1x512x256xf32>
    %164 = vector.shape_cast %163 : vector<1x512x256xf32> to vector<512x256xf32>
    %cst_119 = arith.constant dense<0.000000e+00> : vector<16x256xf32>
    %165 = tpu.matmul %162, %164, %cst_119 {dimension_numbers = #tpu.dot_dimension_numbers<[1], [0], [0], [1], [0, 0, 1, 1], [], []>} : vector<16x512xf32>, vector<512x256xf32>, vector<16x256xf32> -> vector<16x256xf32>
    %166 = arith.addf %159, %165 : vector<16x256xf32>
    %c5_120 = arith.constant 5 : index
    %c0_121 = arith.constant 0 : index
    %167 = vector.load %arg11[%c5_120, %c0_121] : memref<28x512xf32, #tpu.memory_space<vmem>>, vector<8x512xf32>
    %c19_122 = arith.constant 19 : index
    %c0_123 = arith.constant 0 : index
    %168 = vector.load %arg11[%c19_122, %c0_123] : memref<28x512xf32, #tpu.memory_space<vmem>>, vector<8x512xf32>
    %169 = tpu.concatenate %167, %168 in 0 : vector<8x512xf32>, vector<8x512xf32> -> vector<16x512xf32>
    %c5_124 = arith.constant 5 : index
    %c0_125 = arith.constant 0 : index
    %c0_126 = arith.constant 0 : index
    %170 = vector.load %arg7[%c5_124, %c0_125, %c0_126] : memref<7x512x256xf32, #tpu.memory_space<vmem>>, vector<1x512x256xf32>
    %171 = vector.shape_cast %170 : vector<1x512x256xf32> to vector<512x256xf32>
    %cst_127 = arith.constant dense<0.000000e+00> : vector<16x256xf32>
    %172 = tpu.matmul %169, %171, %cst_127 {dimension_numbers = #tpu.dot_dimension_numbers<[1], [0], [0], [1], [0, 0, 1, 1], [], []>} : vector<16x512xf32>, vector<512x256xf32>, vector<16x256xf32> -> vector<16x256xf32>
    %173 = arith.addf %166, %172 : vector<16x256xf32>
    %c6_128 = arith.constant 6 : index
    %c0_129 = arith.constant 0 : index
    %174 = vector.load %arg11[%c6_128, %c0_129] : memref<28x512xf32, #tpu.memory_space<vmem>>, vector<8x512xf32>
    %c20_130 = arith.constant 20 : index
    %c0_131 = arith.constant 0 : index
    %175 = vector.load %arg11[%c20_130, %c0_131] : memref<28x512xf32, #tpu.memory_space<vmem>>, vector<8x512xf32>
    %176 = tpu.concatenate %174, %175 in 0 : vector<8x512xf32>, vector<8x512xf32> -> vector<16x512xf32>
    %c6_132 = arith.constant 6 : index
    %c0_133 = arith.constant 0 : index
    %c0_134 = arith.constant 0 : index
    %177 = vector.load %arg7[%c6_132, %c0_133, %c0_134] : memref<7x512x256xf32, #tpu.memory_space<vmem>>, vector<1x512x256xf32>
    %178 = vector.shape_cast %177 : vector<1x512x256xf32> to vector<512x256xf32>
    %cst_135 = arith.constant dense<0.000000e+00> : vector<16x256xf32>
    %179 = tpu.matmul %176, %178, %cst_135 {dimension_numbers = #tpu.dot_dimension_numbers<[1], [0], [0], [1], [0, 0, 1, 1], [], []>} : vector<16x512xf32>, vector<512x256xf32>, vector<16x256xf32> -> vector<16x256xf32>
    %180 = arith.addf %173, %179 : vector<16x256xf32>
    %181 = arith.negf %180 : vector<16x256xf32>
    %182 = math.exp %181 : vector<16x256xf32>
    %cst_136 = arith.constant 1.000000e+00 : f32
    %183 = vector.broadcast %cst_136 : f32 to vector<16x256xf32>
    %184 = arith.addf %183, %182 : vector<16x256xf32>
    %185 = arith.divf %183, %184 : vector<16x256xf32>
    %186 = vector.extract_strided_slice %185 {offsets = [0, 0], sizes = [1, 256], strides = [1, 1]} : vector<16x256xf32> to vector<1x256xf32>
    %c0_137 = arith.constant 0 : index
    %c0_138 = arith.constant 0 : index
    %187 = vector.load %arg12[%c0_137, %c0_138] : memref<2x2048xf32, #tpu.memory_space<vmem>>, vector<1x256xf32>
    tpu.vector_store %arg12[%c0_137, %c0_138], %186 {strides = array<i32>} : memref<2x2048xf32, #tpu.memory_space<vmem>>, vector<1x256xf32>,
    %188 = vector.extract_strided_slice %185 {offsets = [8, 0], sizes = [1, 256], strides = [1, 1]} : vector<16x256xf32> to vector<1x256xf32>
    %c1_139 = arith.constant 1 : index
    %c0_140 = arith.constant 0 : index
    %189 = vector.load %arg12[%c1_139, %c0_140] : memref<2x2048xf32, #tpu.memory_space<vmem>>, vector<1x256xf32>
    tpu.vector_store %arg12[%c1_139, %c0_140], %188 {strides = array<i32>} : memref<2x2048xf32, #tpu.memory_space<vmem>>, vector<1x256xf32>,
    %190 = vector.extract_strided_slice %185 {offsets = [1, 0], sizes = [1, 256], strides = [1, 1]} : vector<16x256xf32> to vector<1x256xf32>
    %c0_141 = arith.constant 0 : index
    %c256_142 = arith.constant 256 : index
    %191 = vector.load %arg12[%c0_141, %c256_142] : memref<2x2048xf32, #tpu.memory_space<vmem>>, vector<1x256xf32>
    tpu.vector_store %arg12[%c0_141, %c256_142], %190 {strides = array<i32>} : memref<2x2048xf32, #tpu.memory_space<vmem>>, vector<1x256xf32>,
    %192 = vector.extract_strided_slice %185 {offsets = [9, 0], sizes = [1, 256], strides = [1, 1]} : vector<16x256xf32> to vector<1x256xf32>
    %c1_143 = arith.constant 1 : index
    %c256_144 = arith.constant 256 : index
    %193 = vector.load %arg12[%c1_143, %c256_144] : memref<2x2048xf32, #tpu.memory_space<vmem>>, vector<1x256xf32>
    tpu.vector_store %arg12[%c1_143, %c256_144], %192 {strides = array<i32>} : memref<2x2048xf32, #tpu.memory_space<vmem>>, vector<1x256xf32>,
    %194 = vector.extract_strided_slice %185 {offsets = [2, 0], sizes = [1, 256], strides = [1, 1]} : vector<16x256xf32> to vector<1x256xf32>
    %c0_145 = arith.constant 0 : index
    %c512 = arith.constant 512 : index
    %195 = vector.load %arg12[%c0_145, %c512] : memref<2x2048xf32, #tpu.memory_space<vmem>>, vector<1x256xf32>
    tpu.vector_store %arg12[%c0_145, %c512], %194 {strides = array<i32>} : memref<2x2048xf32, #tpu.memory_space<vmem>>, vector<1x256xf32>,
    %196 = vector.extract_strided_slice %185 {offsets = [10, 0], sizes = [1, 256], strides = [1, 1]} : vector<16x256xf32> to vector<1x256xf32>
    %c1_146 = arith.constant 1 : index
    %c512_147 = arith.constant 512 : index
    %197 = vector.load %arg12[%c1_146, %c512_147] : memref<2x2048xf32, #tpu.memory_space<vmem>>, vector<1x256xf32>
    tpu.vector_store %arg12[%c1_146, %c512_147], %196 {strides = array<i32>} : memref<2x2048xf32, #tpu.memory_space<vmem>>, vector<1x256xf32>,
    %198 = vector.extract_strided_slice %185 {offsets = [3, 0], sizes = [1, 256], strides = [1, 1]} : vector<16x256xf32> to vector<1x256xf32>
    %c0_148 = arith.constant 0 : index
    %c768 = arith.constant 768 : index
    %199 = vector.load %arg12[%c0_148, %c768] : memref<2x2048xf32, #tpu.memory_space<vmem>>, vector<1x256xf32>
    tpu.vector_store %arg12[%c0_148, %c768], %198 {strides = array<i32>} : memref<2x2048xf32, #tpu.memory_space<vmem>>, vector<1x256xf32>,
    %200 = vector.extract_strided_slice %185 {offsets = [11, 0], sizes = [1, 256], strides = [1, 1]} : vector<16x256xf32> to vector<1x256xf32>
    %c1_149 = arith.constant 1 : index
    %c768_150 = arith.constant 768 : index
    %201 = vector.load %arg12[%c1_149, %c768_150] : memref<2x2048xf32, #tpu.memory_space<vmem>>, vector<1x256xf32>
    tpu.vector_store %arg12[%c1_149, %c768_150], %200 {strides = array<i32>} : memref<2x2048xf32, #tpu.memory_space<vmem>>, vector<1x256xf32>,
    %202 = vector.extract_strided_slice %185 {offsets = [4, 0], sizes = [1, 256], strides = [1, 1]} : vector<16x256xf32> to vector<1x256xf32>
    %c0_151 = arith.constant 0 : index
    %c1024 = arith.constant 1024 : index
    %203 = vector.load %arg12[%c0_151, %c1024] : memref<2x2048xf32, #tpu.memory_space<vmem>>, vector<1x256xf32>
    tpu.vector_store %arg12[%c0_151, %c1024], %202 {strides = array<i32>} : memref<2x2048xf32, #tpu.memory_space<vmem>>, vector<1x256xf32>,
    %204 = vector.extract_strided_slice %185 {offsets = [12, 0], sizes = [1, 256], strides = [1, 1]} : vector<16x256xf32> to vector<1x256xf32>
    %c1_152 = arith.constant 1 : index
    %c1024_153 = arith.constant 1024 : index
    %205 = vector.load %arg12[%c1_152, %c1024_153] : memref<2x2048xf32, #tpu.memory_space<vmem>>, vector<1x256xf32>
    tpu.vector_store %arg12[%c1_152, %c1024_153], %204 {strides = array<i32>} : memref<2x2048xf32, #tpu.memory_space<vmem>>, vector<1x256xf32>,
    %206 = vector.extract_strided_slice %185 {offsets = [5, 0], sizes = [1, 256], strides = [1, 1]} : vector<16x256xf32> to vector<1x256xf32>
    %c0_154 = arith.constant 0 : index
    %c1280 = arith.constant 1280 : index
    %207 = vector.load %arg12[%c0_154, %c1280] : memref<2x2048xf32, #tpu.memory_space<vmem>>, vector<1x256xf32>
    tpu.vector_store %arg12[%c0_154, %c1280], %206 {strides = array<i32>} : memref<2x2048xf32, #tpu.memory_space<vmem>>, vector<1x256xf32>,
    %208 = vector.extract_strided_slice %185 {offsets = [13, 0], sizes = [1, 256], strides = [1, 1]} : vector<16x256xf32> to vector<1x256xf32>
    %c1_155 = arith.constant 1 : index
    %c1280_156 = arith.constant 1280 : index
    %209 = vector.load %arg12[%c1_155, %c1280_156] : memref<2x2048xf32, #tpu.memory_space<vmem>>, vector<1x256xf32>
    tpu.vector_store %arg12[%c1_155, %c1280_156], %208 {strides = array<i32>} : memref<2x2048xf32, #tpu.memory_space<vmem>>, vector<1x256xf32>,
    %210 = vector.extract_strided_slice %185 {offsets = [6, 0], sizes = [1, 256], strides = [1, 1]} : vector<16x256xf32> to vector<1x256xf32>
    %c0_157 = arith.constant 0 : index
    %c1536 = arith.constant 1536 : index
    %211 = vector.load %arg12[%c0_157, %c1536] : memref<2x2048xf32, #tpu.memory_space<vmem>>, vector<1x256xf32>
    tpu.vector_store %arg12[%c0_157, %c1536], %210 {strides = array<i32>} : memref<2x2048xf32, #tpu.memory_space<vmem>>, vector<1x256xf32>,
    %212 = vector.extract_strided_slice %185 {offsets = [14, 0], sizes = [1, 256], strides = [1, 1]} : vector<16x256xf32> to vector<1x256xf32>
    %c1_158 = arith.constant 1 : index
    %c1536_159 = arith.constant 1536 : index
    %213 = vector.load %arg12[%c1_158, %c1536_159] : memref<2x2048xf32, #tpu.memory_space<vmem>>, vector<1x256xf32>
    tpu.vector_store %arg12[%c1_158, %c1536_159], %212 {strides = array<i32>} : memref<2x2048xf32, #tpu.memory_space<vmem>>, vector<1x256xf32>,
    %214 = vector.extract_strided_slice %185 {offsets = [7, 0], sizes = [1, 256], strides = [1, 1]} : vector<16x256xf32> to vector<1x256xf32>
    %c0_160 = arith.constant 0 : index
    %c1792 = arith.constant 1792 : index
    %215 = vector.load %arg12[%c0_160, %c1792] : memref<2x2048xf32, #tpu.memory_space<vmem>>, vector<1x256xf32>
    tpu.vector_store %arg12[%c0_160, %c1792], %214 {strides = array<i32>} : memref<2x2048xf32, #tpu.memory_space<vmem>>, vector<1x256xf32>,
    %216 = vector.extract_strided_slice %185 {offsets = [15, 0], sizes = [1, 256], strides = [1, 1]} : vector<16x256xf32> to vector<1x256xf32>
    %c1_161 = arith.constant 1 : index
    %c1792_162 = arith.constant 1792 : index
    %217 = vector.load %arg12[%c1_161, %c1792_162] : memref<2x2048xf32, #tpu.memory_space<vmem>>, vector<1x256xf32>
    tpu.vector_store %arg12[%c1_161, %c1792_162], %216 {strides = array<i32>} : memref<2x2048xf32, #tpu.memory_space<vmem>>, vector<1x256xf32>,
    %c0_163 = arith.constant 0 : index
    %c0_164 = arith.constant 0 : index
    %218 = vector.load %arg12[%c0_163, %c0_164] : memref<2x2048xf32, #tpu.memory_space<vmem>>, vector<1x2048xf32>
    %219 = vector.broadcast %218 : vector<1x2048xf32> to vector<32x2048xf32>
    %220 = arith.mulf %26, %219 : vector<32x2048xf32>
    %c1_165 = arith.constant 1 : index
    %c0_166 = arith.constant 0 : index
    %221 = vector.load %arg12[%c1_165, %c0_166] : memref<2x2048xf32, #tpu.memory_space<vmem>>, vector<1x2048xf32>
    %222 = vector.broadcast %221 : vector<1x2048xf32> to vector<32x2048xf32>
    %223 = arith.mulf %49, %222 : vector<32x2048xf32>
    %224 = tpu.concatenate %220, %223 in 0 : vector<32x2048xf32>, vector<32x2048xf32> -> vector<64x2048xf32>
    %c0_167 = arith.constant 0 : index
    %c0_168 = arith.constant 0 : index
    %225 = vector.load %arg8[%c0_167, %c0_168] : memref<32x64xf32, #tpu.memory_space<vmem>>, vector<32x64xf32>
    %cst_169 = arith.constant dense<0.000000e+00> : vector<32x2048xf32>
    %226 = tpu.matmul %225, %224, %cst_169 {dimension_numbers = #tpu.dot_dimension_numbers<[1], [0], [0], [1], [0, 0, 1, 1], [], []>} : vector<32x64xf32>, vector<64x2048xf32>, vector<32x2048xf32> -> vector<32x2048xf32>
    %cst_170 = arith.constant dense<0.000000e+00> : vector<32xf32>
    %227 = vector.multi_reduction <add>, %226, %cst_170 [1] : vector<32x2048xf32> to vector<32xf32>
    %228 = vector.shape_cast %227 : vector<32xf32> to vector<32x1xf32>
    %cst_171 = arith.constant 2.048000e+03 : f32
    %229 = vector.broadcast %cst_171 : f32 to vector<32x1xf32>
    %230 = arith.divf %228, %229 : vector<32x1xf32>
    %231 = arith.mulf %226, %226 : vector<32x2048xf32>
    %cst_172 = arith.constant dense<0.000000e+00> : vector<32xf32>
    %232 = vector.multi_reduction <add>, %231, %cst_172 [1] : vector<32x2048xf32> to vector<32xf32>
    %233 = vector.shape_cast %232 : vector<32xf32> to vector<32x1xf32>
    %cst_173 = arith.constant 2.048000e+03 : f32
    %234 = vector.broadcast %cst_173 : f32 to vector<32x1xf32>
    %235 = arith.divf %233, %234 : vector<32x1xf32>
    %236 = arith.mulf %230, %230 : vector<32x1xf32>
    %237 = arith.subf %235, %236 : vector<32x1xf32>
    %cst_174 = arith.constant 0.000000e+00 : f32
    %238 = vector.broadcast %cst_174 : f32 to vector<32x1xf32>
    %239 = arith.maximumf %237, %238 : vector<32x1xf32>
    %240 = vector.broadcast %230 : vector<32x1xf32> to vector<32x2048xf32>
    %241 = arith.subf %226, %240 : vector<32x2048xf32>
    %cst_175 = arith.constant 9.99999974E-6 : f32
    %242 = vector.broadcast %cst_175 : f32 to vector<32x1xf32>
    %243 = arith.addf %239, %242 : vector<32x1xf32>
    %244 = math.rsqrt %243 : vector<32x1xf32>
    %245 = vector.broadcast %244 : vector<32x1xf32> to vector<32x2048xf32>
    %246 = arith.mulf %241, %245 : vector<32x2048xf32>
    %cst_176 = arith.constant 0.000000e+00 : f32
    %247 = vector.broadcast %cst_176 : f32 to vector<32x2048xf32>
    %248 = arith.maximumf %246, %247 : vector<32x2048xf32>
    %c0_177 = arith.constant 0 : index
    %c0_178 = arith.constant 0 : index
    %249 = vector.load %arg9[%c0_177, %c0_178] : memref<16x32xf32, #tpu.memory_space<vmem>>, vector<16x32xf32>
    %cst_179 = arith.constant dense<0.000000e+00> : vector<16x2048xf32>
    %250 = tpu.matmul %249, %248, %cst_179 {dimension_numbers = #tpu.dot_dimension_numbers<[1], [0], [0], [1], [0, 0, 1, 1], [], []>} : vector<16x32xf32>, vector<32x2048xf32>, vector<16x2048xf32> -> vector<16x2048xf32>
    %c0_180 = arith.constant 0 : index
    %c0_181 = arith.constant 0 : index
    %c0_182 = arith.constant 0 : index
    %251 = vector.load %arg10[%c0_180, %c0_181, %c0_182] : memref<1x16x2048xf32, #tpu.memory_space<vmem>>, vector<1x16x2048xf32>
    %252 = vector.shape_cast %251 : vector<1x16x2048xf32> to vector<16x2048xf32>
    %253 = vector.shape_cast %250 : vector<16x2048xf32> to vector<1x16x2048xf32>
    tpu.vector_store %arg10[%c0_180, %c0_181, %c0_182], %253 {strides = array<i32>} : memref<1x16x2048xf32, #tpu.memory_space<vmem>>, vector<1x16x2048xf32>,
    return
  }
  func.func @transform_0(%arg0: i32) -> (i32, i32, i32) {
    %c0_i32 = arith.constant 0 : i32
    %c0_i32_0 = arith.constant 0 : i32
    %c0_i32_1 = arith.constant 0 : i32
    return %arg0, %c0_i32, %c0_i32_0 : i32, i32, i32
  }
  func.func @transform_1(%arg0: i32) -> (i32, i32, i32) {
    %c0_i32 = arith.constant 0 : i32
    %c0_i32_0 = arith.constant 0 : i32
    %c0_i32_1 = arith.constant 0 : i32
    return %arg0, %c0_i32, %c0_i32_0 : i32, i32, i32
  }
  func.func @transform_2(%arg0: i32) -> (i32, i32) {
    %c0_i32 = arith.constant 0 : i32
    %c0_i32_0 = arith.constant 0 : i32
    %c0_i32_1 = arith.constant 0 : i32
    return %c0_i32, %c0_i32_0 : i32, i32
  }
  func.func @transform_3(%arg0: i32) -> (i32, i32) {
    %c0_i32 = arith.constant 0 : i32
    %c0_i32_0 = arith.constant 0 : i32
    %c0_i32_1 = arith.constant 0 : i32
    return %c0_i32, %c0_i32_0 : i32, i32
  }
  func.func @transform_4(%arg0: i32) -> (i32, i32) {
    %c0_i32 = arith.constant 0 : i32
    %c0_i32_0 = arith.constant 0 : i32
    %c0_i32_1 = arith.constant 0 : i32
    return %c0_i32, %c0_i32_0 : i32, i32
  }
  func.func @transform_5(%arg0: i32) -> (i32, i32) {
    %c0_i32 = arith.constant 0 : i32
    %c0_i32_0 = arith.constant 0 : i32
    %c0_i32_1 = arith.constant 0 : i32
    return %c0_i32, %c0_i32_0 : i32, i32
  }
  func.func @transform_6(%arg0: i32) -> (i32, i32, i32) {
    %c0_i32 = arith.constant 0 : i32
    %c0_i32_0 = arith.constant 0 : i32
    %c0_i32_1 = arith.constant 0 : i32
    %c0_i32_2 = arith.constant 0 : i32
    return %c0_i32, %c0_i32_0, %c0_i32_1 : i32, i32, i32
  }
  func.func @transform_7(%arg0: i32) -> (i32, i32) {
    %c0_i32 = arith.constant 0 : i32
    %c0_i32_0 = arith.constant 0 : i32
    %c0_i32_1 = arith.constant 0 : i32
    return %c0_i32, %c0_i32_0 : i32, i32
  }
  func.func @transform_8(%arg0: i32) -> (i32, i32) {
    %c0_i32 = arith.constant 0 : i32
    %c0_i32_0 = arith.constant 0 : i32
    %c0_i32_1 = arith.constant 0 : i32
    return %c0_i32, %c0_i32_0 : i32, i32
  }
  func.func @transform_9(%arg0: i32) -> (i32, i32, i32) {
    %c0_i32 = arith.constant 0 : i32
    %c0_i32_0 = arith.constant 0 : i32
    %c0_i32_1 = arith.constant 0 : i32
    return %arg0, %c0_i32, %c0_i32_0 : i32, i32, i32
  }
}

</mosaic_0001>

<bundles_post_ra>
// kernel: tpu_custom_call.1
= control target key start
LH: loop header
LB: loop body
LE: loop exit
PB: predicated region body
PF: predicated region fallthrough
CT: control target
= control target key end

     0   :  { %s10295_s0 = inlined_call_operand.hbm [shape: f32[2,32,2048], index: 0, kind: input, shape index: {}]   ;;  %s10296_s1 = inlined_call_operand.hbm [shape: f32[2,32,2048], index: 1, kind: input, shape index: {}]   ;;  %s10297_s2 = inlined_call_operand.vmem [shape: f32[32,2], index: 2, kind: input, shape index: {}]   ;;  %s10298_s3 = inlined_call_operand.vmem [shape: f32[32,2], index: 3, kind: input, shape index: {}]   ;;  %s10299_s4 = inlined_call_operand.vmem [shape: f32[32,2], index: 4, kind: input, shape index: {}]   ;;  %s10300_s5 = inlined_call_operand.vmem [shape: f32[32,2], index: 5, kind: input, shape index: {}]   ;;  %s10301_s6 = inlined_call_operand.hbm [shape: f32[7,512,256], index: 6, kind: input, shape index: {}]   ;;  %s10302_s7 = inlined_call_operand.hbm [shape: f32[32,64], index: 7, kind: input, shape index: {}]   ;;  %s10303_s8 = inlined_call_operand.hbm [shape: f32[16,32], index: 8, kind: input, shape index: {}]   ;;  %s10304_s9 = inlined_call_operand.hbm [shape: f32[2,16,2048], index: 9, kind: output, shape index: {}]  }
   0x1   :  { %10528 = sst [smem:[#allocation150_spill]] %s10295_s0 }
   0x2   :  { %10529 = sst [smem:[#allocation151_spill]] %s10301_s6 }
   0x3   :  { %10530 = sst [smem:[#allocation152_spill]] %s10302_s7 }
   0x4   :  { %10531 = sst [smem:[#allocation153_spill]] %s10303_s8 }
   0x5   :  { %14 = vsyncpa [#allocation5], 0 }
   0x6   :  { %16 = vsyncpa [#allocation5 + $0x1], 0 }
   0x7   :  { %17 = vsyncpa [#allocation8], 0 }
   0x8   :  { %19 = vsyncpa [#allocation8 + $0x1], 0 }
   0x9   :  { %20 = vsyncpa [#allocation11], 0 }
   0xa   :  { %21 = vsyncpa [#allocation6], 0 }
   0xb   :  { %23 = vsyncpa [#allocation6 + $0x1], 0  ;;  %s7729_s30 = smov 0   ;;  %s7731_s10 = smov 0  }
   0xc   :  { %s7733_s11 = smov 0   ;;  %s7735_s12 = smov 0  }
   0xd LB: > { %10532 = sst [smem:[#allocation19_spill]] %s7658_s11  ;;  %s7750_s13 = sadd.s32 4294967295, %s7662_s12   ;;  %s7662_s12 = sphi %s7735_s12, %s10947_s12   ;;  %s7658_s11 = sphi %s7733_s11, %s10944_s11   ;;  %s7654_s10 = sphi %s7731_s10, %s10946_s10   ;;  %s7650_s30 = sphi %s7729_s30, %s10945_s30  }
   0xe   : > { %s7090_s14 = sadd.s32 4294967294, %s7662_s12   ;;  %p49_p0 = scmp.ne.s32.totalorder %s7654_s10, %s7650_s30 }
   0xf   : > { %p10305_p1 = scmp.eq.s32.totalorder %s7750_s13, 0  ;;  %p252_p3 = scmp.eq.s32.totalorder %s7090_s14, 1 }
  0x10   : > { %p7091_p5 = scmp.ge.s32.totalorder %s7662_s12, 1  ;;  %p259_p7 = scmp.lt.s32.totalorder %s7662_s12, 3 }
  0x11   : > { %p7759_p4 = por %p10305_p1, %p49_p0  ;;  %p7764_p6 = por %p252_p3, %p49_p0 }
  0x12   : > { %p7769_p8 = pnand %p7091_p5, %p259_p7  ;;  %s7664_s18 = smov [#allocation9]  }
  0x13   : > { %s10533_s15 = scalar_select %p7759_p4, 1, 0 }
  0x14   : > { %s10534_s16 = scalar_select %p7764_p6, 1, 0 }
  0x15   : > { %s283_s19 = sshll.u32 %s7664_s18, 4  ;;  %p7195_p9 = pneg %p7769_p8  ;;  %s284_s19 = int_to_ptr.vmem [resolvable:$true] %s283_s19 }
  0x16   : > { %s7665_s21 = smov [#allocation10]   ;;  %s7463_s23 = scalar_lea.vmem %s284_s19, 114688 }
  0x17   : > { %p7778_p11 = pnand %p7195_p9, %p10305_p1  ;;  %s296_s22 = sshll.u32 %s7665_s21, 4  ;;  %s297_s22 = int_to_ptr.vmem [resolvable:$true] %s296_s22 }
  0x18   : > { %p7464_p13 = scmp.ne.s32.totalorder %s284_s19, %s7463_s23  ;;  %p7471_p5 = scmp.lt.s32.totalorder %s284_s19, %s284_s19 }
  0x19   : > { %p7454_p12 = pneg %p7778_p11  ;;  %p7472_p7 = scmp.lt.s32.totalorder %s7463_s23, %s7463_s23 }
  0x1b   : > { %p7466_p0 = pnand %p7464_p13, %p7454_p12  ;;  %p7473_p10 = por %p7472_p7, %p7471_p5 }
  0x1d   : > { %p7467_p3 = pneg %p7466_p0 }
  0x1f   : > { %p7474_p9 = pnand %p7473_p10, %p7467_p3 }
  0x21   : > { %7477 = shalt.err (!%p7474_p9)
}
  0x22   : > { %s7666_s24 = smov 256   ;;  %s7667_s25 = smov 16  }
  0x23   : > { %s10537_s6 = sld [smem:[#allocation151_spill]]  ;;  %s7489_s28 = scalar_lea.vmem %s297_s22, 512 }
  0x24   : > { %p7490_p1 = scmp.ne.s32.totalorder %s297_s22, %s7489_s28  ;;  %p7497_p2 = scmp.lt.s32.totalorder %s297_s22, %s297_s22 }
  0x25   : > { %p7498_p6 = scmp.lt.s32.totalorder %s7489_s28, %s7489_s28 }
  0x26   : > { %p7492_p13 = pnand %p7490_p1, %p7454_p12 }
  0x27   : > { %p7499_p5 = por %p7498_p6, %p7497_p2 }
  0x28   : > { %p7493_p0 = pneg %p7492_p13 }
  0x29   : > { %7198 = dma.hbm_to_vmem [thread:$0]  (!%p7778_p11), %s10537_s6, 114688, %s284_s19, [#allocation8], %s7666_s24, %s7666_s24, %s7667_s25  }
  0x2a   : > { %p7500_p10 = pnand %p7499_p5, %p7493_p0 }
  0x2c   : > { %7503 = shalt.err (!%p7500_p10)
}
  0x2d   : > { %s10306_s29 = smov 128   ;;  %s7669_s14 = smov 8  }
  0x2e   : > { %s10538_s7 = sld [smem:[#allocation152_spill]]  ;;  %s7670_s21 = smov [#allocation12]  }
  0x2f   : > { %s309_s23 = sshll.u32 %s7670_s21, 4  ;;  %s7803_s24 = sadd.s32 1, %s7662_s12   ;;  %s310_s23 = int_to_ptr.vmem [resolvable:$true] %s309_s23 }
  0x30   : > { %s7515_s25 = scalar_lea.vmem %s310_s23, 256  ;;  %p7523_p3 = scmp.lt.s32.totalorder %s310_s23, %s310_s23 }
  0x31   : > { %p7516_p1 = scmp.ne.s32.totalorder %s310_s23, %s7515_s25  ;;  %p7524_p7 = scmp.lt.s32.totalorder %s7515_s25, %s7515_s25 }
  0x33   : > { %p7518_p2 = pnand %p7516_p1, %p7454_p12  ;;  %p7525_p9 = por %p7524_p7, %p7523_p3 }
  0x34   : > { %7201 = dma.hbm_to_vmem [thread:$0]  (!%p7778_p11), %s10538_s7, 512, %s297_s22, [#allocation11], %s10306_s29, %s10306_s29, %s7669_s14  }
  0x35   : > { %p7519_p6 = pneg %p7518_p2 }
  0x37   : > { %p7526_p13 = pnand %p7525_p9, %p7519_p6 }
  0x39   : > { %7529 = shalt.err (!%p7526_p13)
}
  0x3a   : > { %s10539_s8 = sld [smem:[#allocation153_spill]]  ;;  %s33_s27 = ssub.s32 %s7662_s12, %s7803_s24 }
  0x3b   : > { %s36_s20 = sadd.s32 1, %s7658_s11  ;;  %p34_p12 = scmp.eq.s32.totalorder %s33_s27, 0 }
  0x3c   : > { %p43_p0 = scmp.ne.s32.totalorder %s7658_s11, %s7654_s10  ;;  %p44_p5 = scmp.eq.s32.totalorder %s7662_s12, 0 }
  0x3d   : > { %p7219_p10 = scmp.lt.s32.totalorder %s7662_s12, 2  ;;  %p10541_p2 = scmp.eq.s32.totalorder %s7750_s13, 1 }
  0x3e   : > { %s7823_s28 = scalar_select %p34_p12, %s7658_s11, %s36_s20  }
  0x3f   : > { %p45_p1 = por %p44_p5, %p43_p0  ;;  %p7827_p6 = por %p10541_p2, %p43_p0 }
  0x40   : > { %7204 = dma.hbm_to_vmem [thread:$0]  (!%p7778_p11), %s10539_s8, 256, %s310_s23, [#allocation11], %s10306_s29, %s10306_s29, %s7669_s14  }
  0x41   : > { %10540 = sst [smem:[#allocation20_spill]] %s7823_s28  ;;  %s323_s19 = sand.u32 1, %s7658_s11  }
  0x42   : > { %s10542_s18 = scalar_select %p7827_p6, 1, 0 }
  0x43   : > { %s10308_s21 = sshll.u32 %s7662_s12, 13  ;;  %s7833_s25 = sshll.u32 %s323_s19, 9 }
  0x44   : > { %s10543_s0 = sld [smem:[#allocation150_spill]]  ;;  %s327_s26 = scalar_lea.vmem [#allocation4], %s7833_s25 }
  0x45   : > { %s334_s27 = sshll.u32 %s327_s26, 4  ;;  %p7843_p11 = pnand %p7219_p10, %p45_p1  ;;  %s7847_s27 = int_to_ptr.vmem [resolvable:$true] %s334_s27 }
  0x46   : > { %s7849_s29 = scalar_lea.sflag [#allocation5], %s323_s19 }
  0x47   : > { %p7532_p7 = pneg %p7843_p11 }
  0x4a   : > { %s7840_s22 = scalar_lea.hbm %s10543_s0, %s10308_s21  ;;  %s7535_s26 = scalar_lea.hbm %s10543_s0, 16384 }
  0x4b   : > { %s7530_s6 = scalar_lea.hbm %s7840_s22, 8192  ;;  %p7536_p12 = scmp.lt.s32.totalorder %s7840_s22, %s10543_s0 }
  0x4c   : > { %p7531_p3 = scmp.ne.s32.totalorder %s7840_s22, %s7530_s6  ;;  %p7537_p0 = scmp.lt.s32.totalorder %s7535_s26, %s7530_s6 }
  0x4e   : > { %p7533_p9 = pnand %p7532_p7, %p7531_p3  ;;  %p7538_p5 = por %p7537_p0, %p7536_p12 }
  0x50   : > { %p7534_p13 = pneg %p7533_p9 }
  0x52   : > { %p7539_p10 = pnand %p7538_p5, %p7534_p13 }
  0x54   : > { %7542 = shalt.err (!%p7539_p10)
}
  0x55   : > { %s7543_s19 = scalar_lea.vmem %s7847_s27, 8192  ;;  %s7671_s14 = smov [#allocation4]  }
  0x56   : > { %p7544_p1 = scmp.ne.s32.totalorder %s7847_s27, %s7543_s19  ;;  %s7548_s23 = sshll.u32 %s7671_s14, 4  ;;  %s7549_s23 = int_to_ptr.vmem [resolvable:$false] %s7548_s23 }
  0x57   : > { %s7550_s8 = scalar_lea.vmem %s7549_s23, 16384  ;;  %p7551_p9 = scmp.lt.s32.totalorder %s7847_s27, %s7549_s23 }
  0x58   : > { %p7546_p2 = pnand %p7544_p1, %p7532_p7  ;;  %p7552_p6 = scmp.lt.s32.totalorder %s7550_s8, %s7543_s19 }
  0x5a   : > { %p7547_p3 = pneg %p7546_p2  ;;  %p7553_p4 = por %p7552_p6, %p7551_p9 }
  0x5c   : > { %p7554_p12 = pnand %p7553_p4, %p7547_p3 }
  0x5e   : > { %7557 = shalt.err (!%p7554_p12)
}
  0x5f   : > { %s7672_s6 = smov 2048   ;;  %s10545_s7 = smov 128  }
  0x60   : > { %7208 = dma.hbm_to_vmem [thread:$0]  (!%p7843_p11), %s7840_s22, 8192, %s7847_s27, %s7849_s29, %s7672_s6, %s7672_s6, %s10545_s7  }
  0x61   : > { %s10546_s21 = sshll.u32 %s7662_s12, 13  ;;  %s348_s14 = scalar_lea.vmem [#allocation7], %s7833_s25 }
  0x62   : > { %s7884_s19 = scalar_lea.hbm %s10296_s1, %s10546_s21  ;;  %s355_s23 = sshll.u32 %s348_s14, 4  ;;  %s7887_s23 = int_to_ptr.vmem [resolvable:$true] %s355_s23 }
  0x63   : > { %s344_s0 = sand.u32 1, %s7662_s12   ;;  %s7558_s11 = scalar_lea.hbm %s7884_s19, 8192 }
  0x64   : > { %s345_s28 = scalar_lea.sflag [#allocation8], %s344_s0  ;;  %p7559_p4 = scmp.ne.s32.totalorder %s7884_s19, %s7558_s11 }
  0x65   : > { %s7563_s27 = scalar_lea.hbm %s10296_s1, 16384  ;;  %p7564_p0 = scmp.lt.s32.totalorder %s7884_s19, %s10296_s1 }
  0x66   : > { %p7561_p6 = pnand %p7559_p4, %p7532_p7  ;;  %p7565_p5 = scmp.lt.s32.totalorder %s7563_s27, %s7558_s11 }
  0x68   : > { %p7562_p13 = pneg %p7561_p6  ;;  %p7566_p10 = por %p7565_p5, %p7564_p0 }
  0x6a   : > { %p7567_p1 = pnand %p7566_p10, %p7562_p13 }
  0x6c   : > { %7570 = shalt.err (!%p7567_p1)
}
  0x6d   : > { %s7571_s0 = scalar_lea.vmem %s7887_s23, 8192  ;;  %s7673_s25 = smov [#allocation7]  }
  0x6e   : > { %p7572_p2 = scmp.ne.s32.totalorder %s7887_s23, %s7571_s0  ;;  %s7576_s8 = sshll.u32 %s7673_s25, 4  ;;  %s7577_s8 = int_to_ptr.vmem [resolvable:$false] %s7576_s8 }
  0x6f   : > { %s7578_s14 = scalar_lea.vmem %s7577_s8, 16384  ;;  %p7579_p12 = scmp.lt.s32.totalorder %s7887_s23, %s7577_s8 }
  0x70   : > { %p7574_p3 = pnand %p7572_p2, %p7532_p7  ;;  %p7580_p4 = scmp.lt.s32.totalorder %s7578_s14, %s7571_s0 }
  0x72   : > { %p7575_p9 = pneg %p7574_p3  ;;  %p7581_p6 = por %p7580_p4, %p7579_p12 }
  0x74   : > { %p7582_p0 = pnand %p7581_p6, %p7575_p9 }
  0x76   : > { %7585 = shalt.err (!%p7582_p0)
}
  0x77   : > { %7211 = dma.hbm_to_vmem [thread:$0]  (!%p7843_p11), %s7884_s19, 8192, %s7887_s23, %s345_s28, %s7672_s6, %s7672_s6, %s10545_s7  }
  0x78   : > { %367 = sbr.rel (%p7769_p8) target bundleno = 2027 (0x7eb), region = 56 }
  0x7d   : > { %s7918_s11 = sand.u32 1, %s7654_s10   ;;  %p10547_p7 = scmp.ne.s32.totalorder %s10533_s15, 0 }
  0x7e   : > { %s7103_s29 = sshll.u32 %s7918_s11, 9  ;;  %s370_s22 = scalar_lea.sflag [#allocation5], %s7918_s11 }
  0x7f   : > { %s7922_s27 = scalar_lea.vmem [#allocation4], %s7103_s29 }
  0x80   : > { %7629 = dma.done.wait (%p10547_p7), %s370_s22, 8192  }
  0x81   : > { %7631 = vsyncadd (%p10547_p7), %s370_s22, 4294959104  ;;  %s378_s28 = sand.u32 1, %s7750_s13   ;;  %s7929_s20 = scalar_lea.vmem [#allocation7], %s7103_s29 }
  0x82   : > { %s379_s17 = scalar_lea.sflag [#allocation8], %s378_s28 }
  0x83   : > { %7633 = dma.done.wait (%p10547_p7), %s379_s17, 8192  }
  0x84   : > { %7635 = vsyncadd (%p10547_p7), %s379_s17, 4294959104  ;;  %p10548_p8 = scmp.eq.s32.totalorder %s7750_s13, 0 }
  0x86   : > { %7637 = dma.done.wait (%p10548_p8), [#allocation8], 114688   ;;  %p10549_p11 = pmov %p10548_p8 }
  0x87   : > { %p10550_p13 = pmov %p10548_p8 }
  0x88   : > { %7639 = vsyncadd (%p10549_p11), [#allocation8], 4294852608 }
  0x89   : > { %7641 = dma.done.wait (%p10550_p13), [#allocation11], 768   ;;  %p10551_p5 = pmov %p10548_p8 }
  0x8a   : > { %v434_v0 = vld [vmem:[%s7922_s27] sm:$0xff]  ;;  %v435_v1 = vld [vmem:[%s7922_s27 + $0x8] sm:$0xff]  ;;  %v436_v2 = vld [vmem:[%s7922_s27 + $0x10] sm:$0xff]  ;;  %vm647_vm0 = vcmask 15360   ;;  %vm2462_vm2 = vcmask 1046528   ;;  %vm2487_vm3 = vcmask 1040384  }
  0x8b   : > { %7643 = vsyncadd (%p10551_p5), [#allocation11], 4294966528  ;;  %v570_v3 = vadd.f32 %v435_v1, %v434_v0  ;;  %v437_v4 = vld [vmem:[%s7922_s27 + $0x18] sm:$0xff]  ;;  %v438_v6 = vld [vmem:[%s7922_s27 + $0x20] sm:$0xff]  ;;  %vm2293_vm4 = vcmask 1041408   ;;  %vm2961_vm5 = vcmask 1045504  }
  0x8c   : > { %v466_v8 = vld [vmem:[%s7922_s27 + $0x100] sm:$0xff]  ;;  %v467_v9 = vld [vmem:[%s7922_s27 + $0x108] sm:$0xff]  ;;  %v468_v11 = vld [vmem:[%s7922_s27 + $0x110] sm:$0xff]  ;;  %vm3289_vm6 = vcmask 1044480   ;;  %vm3641_vm7 = vcmask 1043456   ;;  %vm3993_vm8 = vcmask 1042432  }
  0x8d   : > { %v571_v5 = vadd.f32 %v570_v3, %v436_v2  ;;  %v439_v10 = vld [vmem:[%s7922_s27 + $0x28] sm:$0xff]  ;;  %v604_v12 = vadd.f32 %v467_v9, %v466_v8  ;;  %v469_v14 = vld [vmem:[%s7922_s27 + $0x118] sm:$0xff]  ;;  %v440_v15 = vld [vmem:[%s7922_s27 + $0x30] sm:$0xff]  ;;  %vm5150_vm9 = vcmask 523264   ;;  %vm6297_vm10 = vcmask 261120   ;;  %s7176_s7 = sshll.u32 %s7750_s13, 12 }
  0x8e   : > { %v470_v18 = vld [vmem:[%s7922_s27 + $0x120] sm:$0xff]  ;;  %v441_v19 = vld [vmem:[%s7922_s27 + $0x38] sm:$0xff]  ;;  %v471_v23 = vld [vmem:[%s7922_s27 + $0x128] sm:$0xff]  ;;  %s10246_s26 = scalar_lea.hbm %s10304_s9, %s7176_s7  ;;  %s6953_s13 = scalar_lea.sflag [#allocation6], %s7918_s11 }
  0x8f   : > { %v572_v7 = vadd.f32 %v571_v5, %v437_v4  ;;  %v605_v16 = vadd.f32 %v604_v12, %v468_v11  ;;  %v450_v21 = vld [vmem:[%s7922_s27 + $0x80] sm:$0xff]  ;;  %v451_v24 = vld [vmem:[%s7922_s27 + $0x88] sm:$0xff]  ;;  %v452_v25 = vld [vmem:[%s7922_s27 + $0x90] sm:$0xff]  ;;  %p10940_p1 = scmp.ne.s32.totalorder %s10542_s18, 0  ;;  %s7676_s25 = smov [#allocation13]  }
  0x90   : > { %v442_v26 = vld [vmem:[%s7922_s27 + $0x40] sm:$0xff]  ;;  %v587_v28 = vadd.f32 %v451_v24, %v450_v21  ;;  %v472_v30 = vld [vmem:[%s7922_s27 + $0x130] sm:$0xff]  ;;  %v453_v31 = vld [vmem:[%s7922_s27 + $0x98] sm:$0xff]  ;;  %s7590_s8 = sshll.u32 %s7676_s25, 4  ;;  %s7591_s8 = int_to_ptr.vmem [resolvable:$false] %s7590_s8 }
  0x91   : > { %v573_v13 = vadd.f32 %v572_v7, %v438_v6  ;;  %v606_v20 = vadd.f32 %v605_v16, %v469_v14  ;;  %v443_v32 = vld [vmem:[%s7922_s27 + $0x48] sm:$0xff]  ;;  %v444_v35 = vld [vmem:[%s7922_s27 + $0x50] sm:$0xff]  ;;  %v473_v37 = vld [vmem:[%s7922_s27 + $0x138] sm:$0xff]  ;;  %s7592_s14 = scalar_lea.vmem %s7591_s8, 8192 }
  0x92   : > { %v588_v34 = vadd.f32 %v587_v28, %v452_v25  ;;  %v454_v38 = vld [vmem:[%s7922_s27 + $0xa0] sm:$0xff]  ;;  %v483_v42 = vld [vmem:[%s7922_s27 + $0x188] sm:$0xff]  ;;  %v484_v43 = vld [vmem:[%s7922_s27 + $0x190] sm:$0xff] }
  0x93   : > { %v574_v17 = vadd.f32 %v573_v13, %v439_v10  ;;  %v607_v27 = vadd.f32 %v606_v20, %v470_v18  ;;  %v482_v41 = vld [vmem:[%s7922_s27 + $0x180] sm:$0xff]  ;;  %v455_v46 = vld [vmem:[%s7922_s27 + $0xa8] sm:$0xff]  ;;  %v445_v48 = vld [vmem:[%s7922_s27 + $0x58] sm:$0xff] }
  0x94   : > { %v589_v40 = vadd.f32 %v588_v34, %v453_v31  ;;  %v474_v45 = vld [vmem:[%s7922_s27 + $0x140] sm:$0xff]  ;;  %v621_v47 = vadd.f32 %v483_v42, %v482_v41  ;;  %v485_v51 = vld [vmem:[%s7922_s27 + $0x198] sm:$0xff]  ;;  %v475_v54 = vld [vmem:[%s7922_s27 + $0x148] sm:$0xff] }
  0x95   : > { %v575_v22 = vadd.f32 %v574_v17, %v440_v15  ;;  %v608_v33 = vadd.f32 %v607_v27, %v471_v23  ;;  %v446_v52 = vld [vmem:[%s7922_s27 + $0x60] sm:$0xff]  ;;  %v456_v55 = vld [vmem:[%s7922_s27 + $0xb0] sm:$0xff]  ;;  %v447_v57 = vld [vmem:[%s7922_s27 + $0x68] sm:$0xff] }
  0x96   : > { %v590_v50 = vadd.f32 %v589_v40, %v454_v38  ;;  %v622_v56 = vadd.f32 %v621_v47, %v484_v43  ;;  %v476_v58 = vld [vmem:[%s7922_s27 + $0x150] sm:$0xff]  ;;  %v486_v61 = vld [vmem:[%s7922_s27 + $0x1a0] sm:$0xff]  ;;  %v457_v63 = vld [vmem:[%s7922_s27 + $0xb8] sm:$0xff] }
  0x97   : > { %v576_v29 = vadd.f32 %v575_v22, %v441_v19  ;;  %v609_v39 = vadd.f32 %v608_v33, %v472_v30  ;;  %v498_v1 = vld [vmem:[%s7929_s20] sm:$0xff]  ;;  %v499_v2 = vld [vmem:[%s7929_s20 + $0x8] sm:$0xff]  ;;  %v448_v3 = vld [vmem:[%s7922_s27 + $0x70] sm:$0xff] }
  0x98   : > { %v591_v60 = vadd.f32 %v590_v50, %v455_v46  ;;  %v623_v0 = vadd.f32 %v622_v56, %v485_v51  ;;  %v487_v6 = vld [vmem:[%s7922_s27 + $0x1a8] sm:$0xff]  ;;  %v500_v7 = vld [vmem:[%s7929_s20 + $0x10] sm:$0xff]  ;;  %v774_v8 = vadd.f32 %v499_v2, %v498_v1  ;;  %v477_v10 = vld [vmem:[%s7922_s27 + $0x158] sm:$0xff] }
  0x99   : > { %v577_v36 = vadd.f32 %v576_v29, %v442_v26  ;;  %v610_v49 = vadd.f32 %v609_v39, %v473_v37  ;;  %v458_v11 = vld [vmem:[%s7922_s27 + $0xc0] sm:$0xff]  ;;  %v501_v13 = vld [vmem:[%s7929_s20 + $0x18] sm:$0xff]  ;;  %v488_v18 = vld [vmem:[%s7922_s27 + $0x1b0] sm:$0xff] }
  0x9a   : > { %v592_v5 = vadd.f32 %v591_v60, %v456_v55  ;;  %v624_v12 = vadd.f32 %v623_v0, %v486_v61  ;;  %v449_v14 = vld [vmem:[%s7922_s27 + $0x78] sm:$0xff]  ;;  %v478_v15 = vld [vmem:[%s7922_s27 + $0x160] sm:$0xff]  ;;  %v775_v19 = vadd.f32 %v774_v8, %v500_v7  ;;  %v479_v21 = vld [vmem:[%s7922_s27 + $0x168] sm:$0xff] }
  0x9b   : > { %v578_v44 = vadd.f32 %v577_v36, %v443_v32  ;;  %v611_v59 = vadd.f32 %v610_v49, %v474_v45  ;;  %v459_v22 = vld [vmem:[%s7922_s27 + $0xc8] sm:$0xff]  ;;  %v502_v24 = vld [vmem:[%s7929_s20 + $0x20] sm:$0xff]  ;;  %v460_v26 = vld [vmem:[%s7922_s27 + $0xd0] sm:$0xff] }
  0x9c   : > { %v593_v17 = vadd.f32 %v592_v5, %v457_v63  ;;  %v625_v23 = vadd.f32 %v624_v12, %v487_v6  ;;  %v489_v28 = vld [vmem:[%s7922_s27 + $0x1b8] sm:$0xff]  ;;  %v776_v29 = vadd.f32 %v775_v19, %v501_v13  ;;  %v514_v30 = vld [vmem:[%s7929_s20 + $0x80] sm:$0xff]  ;;  %v503_v33 = vld [vmem:[%s7929_s20 + $0x28] sm:$0xff] }
  0x9d   : > { %v579_v53 = vadd.f32 %v578_v44, %v444_v35  ;;  %v612_v4 = vadd.f32 %v611_v59, %v475_v54  ;;  %v515_v34 = vld [vmem:[%s7929_s20 + $0x88] sm:$0xff]  ;;  %v516_v35 = vld [vmem:[%s7929_s20 + $0x90] sm:$0xff]  ;;  %v490_v39 = vld [vmem:[%s7922_s27 + $0x1c0] sm:$0xff] }
  0x9e   : > { %v594_v27 = vadd.f32 %v593_v17, %v458_v11  ;;  %v626_v32 = vadd.f32 %v625_v23, %v488_v18  ;;  %v480_v36 = vld [vmem:[%s7922_s27 + $0x170] sm:$0xff]  ;;  %v777_v40 = vadd.f32 %v776_v29, %v502_v24  ;;  %v791_v41 = vadd.f32 %v515_v34, %v514_v30  ;;  %v461_v43 = vld [vmem:[%s7922_s27 + $0xd8] sm:$0xff]  ;;  %v462_v49 = vld [vmem:[%s7922_s27 + $0xe0] sm:$0xff] }
  0x9f   : > { %v580_v62 = vadd.f32 %v579_v53, %v445_v48  ;;  %v613_v16 = vadd.f32 %v612_v4, %v476_v58  ;;  %v504_v45 = vld [vmem:[%s7929_s20 + $0x30] sm:$0xff]  ;;  %v517_v46 = vld [vmem:[%s7929_s20 + $0x98] sm:$0xff]  ;;  %v491_v51 = vld [vmem:[%s7922_s27 + $0x1c8] sm:$0xff] }
  0xa0   : > { %v595_v38 = vadd.f32 %v594_v27, %v459_v22  ;;  %v627_v44 = vadd.f32 %v626_v32, %v489_v28  ;;  %v481_v47 = vld [vmem:[%s7922_s27 + $0x178] sm:$0xff]  ;;  %v792_v53 = vadd.f32 %v791_v41, %v516_v35  ;;  %v492_v54 = vld [vmem:[%s7922_s27 + $0x1d0] sm:$0xff]  ;;  %v531_v63 = vld [vmem:[%s7929_s20 + $0x108] sm:$0xff] }
  0xa1   : > { %v581_v9 = vadd.f32 %v580_v62, %v446_v52  ;;  %v614_v25 = vadd.f32 %v613_v16, %v477_v10  ;;  %v778_v52 = vadd.f32 %v777_v40, %v503_v33  ;;  %v505_v56 = vld [vmem:[%s7929_s20 + $0x38] sm:$0xff]  ;;  %v530_v62 = vld [vmem:[%s7929_s20 + $0x100] sm:$0xff]  ;;  %v532_v0 = vld [vmem:[%s7929_s20 + $0x110] sm:$0xff] }
  0xa2   : > { %v596_v50 = vadd.f32 %v595_v38, %v460_v26  ;;  %v628_v55 = vadd.f32 %v627_v44, %v490_v39  ;;  %v793_v61 = vadd.f32 %v792_v53, %v517_v46  ;;  %v463_v1 = vld [vmem:[%s7922_s27 + $0xe8] sm:$0xff]  ;;  %v808_v5 = vadd.f32 %v531_v63, %v530_v62  ;;  %v464_v7 = vld [vmem:[%s7922_s27 + $0xf0] sm:$0xff]  ;;  %v533_v12 = vld [vmem:[%s7929_s20 + $0x118] sm:$0xff] }
  0xa3   : > { %v582_v20 = vadd.f32 %v581_v9, %v447_v57  ;;  %v615_v37 = vadd.f32 %v614_v25, %v478_v15  ;;  %v518_v57 = vld [vmem:[%s7929_s20 + $0xa0] sm:$0xff]  ;;  %v779_v60 = vadd.f32 %v778_v52, %v504_v45  ;;  %v519_v4 = vld [vmem:[%s7929_s20 + $0xa8] sm:$0xff]  ;;  %v493_v9 = vld [vmem:[%s7922_s27 + $0x1d8] sm:$0xff] }
  0xa4   : > { %v597_v59 = vadd.f32 %v596_v50, %v461_v43  ;;  %v629_v2 = vadd.f32 %v628_v55, %v491_v51  ;;  %v794_v11 = vadd.f32 %v793_v61, %v518_v57  ;;  %v465_v13 = vld [vmem:[%s7922_s27 + $0xf8] sm:$0xff]  ;;  %v507_v15 = vld [vmem:[%s7929_s20 + $0x48] sm:$0xff]  ;;  %v520_v16 = vld [vmem:[%s7929_s20 + $0xb0] sm:$0xff]  ;;  %v809_v17 = vadd.f32 %v808_v5, %v532_v0 }
  0xa5   : > { %v583_v31 = vadd.f32 %v582_v20, %v448_v3  ;;  %v616_v48 = vadd.f32 %v615_v37, %v479_v21  ;;  %v506_v3 = vld [vmem:[%s7929_s20 + $0x40] sm:$0xff]  ;;  %v780_v10 = vadd.f32 %v779_v60, %v505_v56  ;;  %v508_v20 = vld [vmem:[%s7929_s20 + $0x50] sm:$0xff]  ;;  %v521_v25 = vld [vmem:[%s7929_s20 + $0xb8] sm:$0xff] }
  0xa6   : > { %v598_v8 = vadd.f32 %v597_v59, %v462_v49  ;;  %v494_v19 = vld [vmem:[%s7922_s27 + $0x1e0] sm:$0xff]  ;;  %v795_v22 = vadd.f32 %v794_v11, %v519_v4  ;;  %v810_v26 = vadd.f32 %v809_v17, %v533_v12  ;;  %v547_v28 = vld [vmem:[%s7929_s20 + $0x188] sm:$0xff]  ;;  %v548_v34 = vld [vmem:[%s7929_s20 + $0x190] sm:$0xff] }
  0xa7   : > { %v584_v42 = vadd.f32 %v583_v31, %v449_v14  ;;  %v617_v58 = vadd.f32 %v616_v48, %v480_v36  ;;  %v630_v14 = vadd.f32 %v629_v2, %v492_v54  ;;  %v781_v21 = vadd.f32 %v780_v10, %v506_v3  ;;  %v534_v23 = vld [vmem:[%s7929_s20 + $0x120] sm:$0xff]  ;;  %v495_v30 = vld [vmem:[%s7922_s27 + $0x1e8] sm:$0xff]  ;;  %v509_v37 = vld [vmem:[%s7929_s20 + $0x58] sm:$0xff] }
  0xa8   : > { %v599_v18 = vadd.f32 %v598_v8, %v463_v1  ;;  %v546_v27 = vld [vmem:[%s7929_s20 + $0x180] sm:$0xff]  ;;  %v796_v32 = vadd.f32 %v795_v22, %v520_v16  ;;  %v535_v33 = vld [vmem:[%s7929_s20 + $0x128] sm:$0xff]  ;;  %v811_v39 = vadd.f32 %v810_v26, %v534_v23  ;;  %v549_v40 = vld [vmem:[%s7929_s20 + $0x198] sm:$0xff] }
  0xa9   : > { %585 = vadd.xlane.f32.xlu0 %v584_v42  ;;  %v618_v6 = vadd.f32 %v617_v58, %v481_v47  ;;  %v631_v24 = vadd.f32 %v630_v14, %v493_v9  ;;  %v782_v31 = vadd.f32 %v781_v21, %v507_v15  ;;  %v825_v35 = vadd.f32 %v547_v28, %v546_v27  ;;  %v522_v38 = vld [vmem:[%s7929_s20 + $0xc0] sm:$0xff]  ;;  %v496_v42 = vld [vmem:[%s7922_s27 + $0x1f0] sm:$0xff]  ;;  %v523_v49 = vld [vmem:[%s7929_s20 + $0xc8] sm:$0xff] }
  0xaa   : > { %v600_v29 = vadd.f32 %v599_v18, %v464_v7  ;;  %v797_v44 = vadd.f32 %v796_v32, %v521_v25  ;;  %v536_v45 = vld [vmem:[%s7929_s20 + $0x130] sm:$0xff]  ;;  %v510_v48 = vld [vmem:[%s7929_s20 + $0x60] sm:$0xff]  ;;  %v812_v50 = vadd.f32 %v811_v39, %v535_v33  ;;  %v497_v52 = vld [vmem:[%s7922_s27 + $0x1f8] sm:$0xff] }
  0xab   : > { %619 = vadd.xlane.f32.xlu1 %v618_v6  ;;  %v632_v36 = vadd.f32 %v631_v24, %v494_v19  ;;  %v783_v43 = vadd.f32 %v782_v31, %v508_v20  ;;  %v826_v46 = vadd.f32 %v825_v35, %v548_v34  ;;  %v550_v51 = vld [vmem:[%s7929_s20 + $0x1a0] sm:$0xff]  ;;  %v537_v55 = vld [vmem:[%s7929_s20 + $0x138] sm:$0xff]  ;;  %v511_v58 = vld [vmem:[%s7929_s20 + $0x68] sm:$0xff] }
  0xac   : > { %v601_v41 = vadd.f32 %v600_v29, %v465_v13  ;;  %v798_v54 = vadd.f32 %v797_v44, %v522_v38  ;;  %v524_v59 = vld [vmem:[%s7929_s20 + $0xd0] sm:$0xff]  ;;  %v813_v60 = vadd.f32 %v812_v50, %v536_v45  ;;  %v551_v61 = vld [vmem:[%s7929_s20 + $0x1a8] sm:$0xff]  ;;  %v538_v0 = vld [vmem:[%s7929_s20 + $0x140] sm:$0xff] }
  0xad   : > { %v633_v47 = vadd.f32 %v632_v36, %v495_v30  ;;  %v784_v53 = vadd.f32 %v783_v43, %v509_v37  ;;  %v827_v56 = vadd.f32 %v826_v46, %v549_v40  ;;  %v512_v3 = vld [vmem:[%s7929_s20 + $0x70] sm:$0xff]  ;;  %v525_v4 = vld [vmem:[%s7929_s20 + $0xd8] sm:$0xff]  ;;  %v539_v9 = vld [vmem:[%s7929_s20 + $0x148] sm:$0xff] }
  0xae   : > { %602 = vadd.xlane.f32.xlu0 %v601_v41  ;;  %v799_v63 = vadd.f32 %v798_v54, %v523_v49  ;;  %v814_v5 = vadd.f32 %v813_v60, %v537_v55  ;;  %v552_v6 = vld [vmem:[%s7929_s20 + $0x1b0] sm:$0xff]  ;;  %v513_v11 = vld [vmem:[%s7929_s20 + $0x78] sm:$0xff]  ;;  %v526_v12 = vld [vmem:[%s7929_s20 + $0xe0] sm:$0xff] }
  0xaf   : > { %v634_v57 = vadd.f32 %v633_v47, %v496_v42  ;;  %v785_v62 = vadd.f32 %v784_v53, %v510_v48  ;;  %v828_v1 = vadd.f32 %v827_v56, %v550_v51  ;;  %v553_v14 = vld [vmem:[%s7929_s20 + $0x1b8] sm:$0xff]  ;;  %v540_v17 = vld [vmem:[%s7929_s20 + $0x150] sm:$0xff]  ;;  %v527_v19 = vld [vmem:[%s7929_s20 + $0xe8] sm:$0xff] }
  0xb0   : > { %v800_v8 = vadd.f32 %v799_v63, %v524_v59  ;;  %v815_v13 = vadd.f32 %v814_v5, %v538_v0  ;;  %v554_v21 = vld [vmem:[%s7929_s20 + $0x1c0] sm:$0xff]  ;;  %v541_v24 = vld [vmem:[%s7929_s20 + $0x158] sm:$0xff]  ;;  %v528_v26 = vld [vmem:[%s7929_s20 + $0xf0] sm:$0xff] }
  0xb1   : > { %v635_v2 = vadd.f32 %v634_v57, %v497_v52  ;;  %v786_v7 = vadd.f32 %v785_v62, %v511_v58  ;;  %v829_v10 = vadd.f32 %v828_v1, %v551_v61  ;;  %v555_v28 = vld [vmem:[%s7929_s20 + $0x1c8] sm:$0xff]  ;;  %v542_v30 = vld [vmem:[%s7929_s20 + $0x160] sm:$0xff]  ;;  %v529_v32 = vld [vmem:[%s7929_s20 + $0xf8] sm:$0xff] }
  0xb2   : > { %v801_v16 = vadd.f32 %v800_v8, %v525_v4  ;;  %v816_v20 = vadd.f32 %v815_v13, %v539_v9  ;;  %v556_v34 = vld [vmem:[%s7929_s20 + $0x1d0] sm:$0xff]  ;;  %v543_v36 = vld [vmem:[%s7929_s20 + $0x168] sm:$0xff]  ;;  %v557_v39 = vld [vmem:[%s7929_s20 + $0x1d8] sm:$0xff] }
  0xb3   : > { %636 = vadd.xlane.f32.xlu1 %v635_v2  ;;  %v787_v15 = vadd.f32 %v786_v7, %v512_v3  ;;  %v830_v18 = vadd.f32 %v829_v10, %v552_v6  ;;  %v544_v41 = vld [vmem:[%s7929_s20 + $0x170] sm:$0xff]  ;;  %v558_v44 = vld [vmem:[%s7929_s20 + $0x1e0] sm:$0xff]  ;;  %v545_v45 = vld [vmem:[%s7929_s20 + $0x178] sm:$0xff] }
  0xb4   : > { %v802_v23 = vadd.f32 %v801_v16, %v526_v12  ;;  %v817_v27 = vadd.f32 %v816_v20, %v540_v17  ;;  %v559_v48 = vld [vmem:[%s7929_s20 + $0x1e8] sm:$0xff]  ;;  %v560_v51 = vld [vmem:[%s7929_s20 + $0x1f0] sm:$0xff]  ;;  %v561_v53 = vld [vmem:[%s7929_s20 + $0x1f8] sm:$0xff] }
  0xb5   : > { %v788_v22 = vadd.f32 %v787_v15, %v513_v11  ;;  %v831_v25 = vadd.f32 %v830_v18, %v553_v14  ;;  %v562_v59 = vld [vmem:[%s10297_s2] sm:$0xff]  ;;  %v564_v61 = vld [vmem:[%s10297_s2 + $0x10] sm:$0xff]  ;;  %v563_v62 = vld [vmem:[%s10297_s2 + $0x8] sm:$0xff] }
  0xb6   : > { %v803_v29 = vadd.f32 %v802_v23, %v527_v19  ;;  %v818_v33 = vadd.f32 %v817_v27, %v541_v24  ;;  %v565_v6 = vld [vmem:[%s10297_s2 + $0x18] sm:$0xff]  ;;  %v766_v18 = vld [vmem:[%s10299_s4] sm:$0xff]  ;;  %v767_v20 = vld [vmem:[%s10299_s4 + $0x8] sm:$0xff] }
  0xb7   : > { %789 = vadd.xlane.f32.xlu0 %v788_v22  ;;  %v832_v31 = vadd.f32 %v831_v25, %v554_v21 }
  0xb8   : > { %v804_v35 = vadd.f32 %v803_v29, %v528_v26  ;;  %v819_v38 = vadd.f32 %v818_v33, %v542_v30  ;;  %v768_v30 = vld [vmem:[%s10299_s4 + $0x10] sm:$0xff] }
  0xb9   : > { %v833_v37 = vadd.f32 %v832_v31, %v555_v28 }
  0xba   : > { %v805_v40 = vadd.f32 %v804_v35, %v529_v32  ;;  %v820_v43 = vadd.f32 %v819_v38, %v543_v36  ;;  %v567_v36 = vld [vmem:[%s10298_s3 + $0x8] sm:$0xff] }
  0xbb   : > { %v834_v42 = vadd.f32 %v833_v37, %v556_v34  ;;  %v566_v37 = vld [vmem:[%s10298_s3] sm:$0xff] }
  0xbc   : > { %806 = vadd.xlane.f32.xlu1 %v805_v40  ;;  %v821_v47 = vadd.f32 %v820_v43, %v544_v41  ;;  %v769_v41 = vld [vmem:[%s10299_s4 + $0x18] sm:$0xff]  ;;  %v568_v43 = vld [vmem:[%s10298_s3 + $0x10] sm:$0xff] }
  0xbd   : > { %v835_v46 = vadd.f32 %v834_v42, %v557_v39  ;;  %v569_v39 = vld [vmem:[%s10298_s3 + $0x18] sm:$0xff] }
  0xbe   : > { %v822_v50 = vadd.f32 %v821_v47, %v545_v45 }
  0xbf   : > { %v836_v49 = vadd.f32 %v835_v46, %v558_v44 }
  0xc0   : > { %823 = vadd.xlane.f32.xlu0 %v822_v50 }
  0xc1   : > { %v837_v52 = vadd.f32 %v836_v49, %v559_v48 }
  0xc3   : > { %v838_v54 = vadd.f32 %v837_v52, %v560_v51 }
  0xc5   : > { %v839_v55 = vadd.f32 %v838_v54, %v561_v53 }
  0xc7   : > { %840 = vadd.xlane.f32.xlu1 %v839_v55 }
 0x132   : > { %v586_v56 = vpop.xlane.xlu0 %585 }
 0x133   : > { %v639_v58 = vmul.f32 0.00048828125, %v586_v56 }
 0x134   : > { %v620_v57 = vpop.xlane.xlu1 %619 }
 0x135   : > { %v641_v60 = vmul.f32 0.00048828125, %v620_v57  ;;  %v643_v0 = vmul.f32 %v639_v58, %v562_v59 }
 0x137   : > { %v603_v63 = vpop.xlane.xlu0 %602  ;;  %v645_v2 = vmul.f32 %v641_v60, %v564_v61  ;;  %v648_v4 = vsel %vm647_vm0, %v643_v0, 0.0  ;;  %v771_v0 = vld [vmem:[%s10300_s5 + $0x8] sm:$0xff] }
 0x138   : > { %v640_v1 = vmul.f32 0.00048828125, %v603_v63 }
 0x139   : > { %v651_v10 = vsel %vm647_vm0, %v645_v2, 0.0  ;;  %v773_v2 = vld [vmem:[%s10300_s5 + $0x18] sm:$0xff] }
 0x13a   : > { %v644_v3 = vmul.f32 %v640_v1, %v563_v62  ;;  %v770_v62 = vld [vmem:[%s10300_s5] sm:$0xff]  ;;  %v772_v1 = vld [vmem:[%s10300_s5 + $0x10] sm:$0xff] }
 0x13c   : > { %v649_v5 = vsel %vm647_vm0, %v644_v3, 0.0  ;;  %v637_v7 = vpop.xlane.xlu1 %636 }
 0x13d   : > { %v650_v8 = vadd.f32 %v649_v5, %v648_v4  ;;  %v642_v9 = vmul.f32 0.00048828125, %v637_v7 }
 0x13f   : > { %v646_v11 = vmul.f32 %v642_v9, %v565_v6  ;;  %v652_v12 = vadd.f32 %v651_v10, %v650_v8 }
 0x140   : > { %v790_v15 = vpop.xlane.xlu0 %789 }
 0x141   : > { %v653_v13 = vsel %vm647_vm0, %v646_v11, 0.0  ;;  %v842_v17 = vmul.f32 0.00048828125, %v790_v15  ;;  %v2598_v15 = vld [vmem:[#allocation9 + $0x6e8] sm:$0xff] }
 0x142   : > { %v654_v14 = vadd.f32 %v653_v13, %v652_v12  ;;  %v2600_v12 = vld [vmem:[#allocation9 + $0x6f8] sm:$0xff]  ;;  %v2599_v13 = vld [vmem:[#allocation9 + $0x6f0] sm:$0xff] }
 0x143   : > { %v846_v23 = vmul.f32 %v842_v17, %v766_v18  ;;  %2710 = vmatprep.subr.mxu1 %v2600_v12  ;;  %v2597_v17 = vld [vmem:[#allocation9 + $0x6e0] sm:$0xff]  ;;  %v2534_v18 = vld [vmem:[#allocation9 + $0x4e8] sm:$0xff]  ;;  %v2632_v12 = vld [vmem:[#allocation9 + $0x7f8] sm:$0xff] }
 0x144   : > { %v655_v16 = vrot.slane %v654_v14, 4  ;;  %2711 = vmatpush1.msra.mxu1 %v2599_v13  ;;  %v2505_v13 = vld [vmem:[#allocation9 + $0x400] sm:$0xff] }
 0x145   : > { %v807_v21 = vpop.xlane.xlu1 %806  ;;  %v850_v28 = vsel %vm647_vm0, %v846_v23, 0.0  ;;  %2712 = vmatprep.subr.mxu1 %v2598_v15  ;;  %v2594_v23 = vld [vmem:[#allocation9 + $0x6c8] sm:$0xff]  ;;  %v2568_v15 = vld [vmem:[#allocation9 + $0x5f8] sm:$0xff] }
 0x146   : > { %v656_v19 = vadd.f32 %v655_v16, %v654_v14  ;;  %v843_v24 = vmul.f32 0.00048828125, %v807_v21  ;;  %v2536_v14 = vld [vmem:[#allocation9 + $0x4f8] sm:$0xff]  ;;  %v2535_v16 = vld [vmem:[#allocation9 + $0x4f0] sm:$0xff]  ;;  %2713 = vmatpush1.msra.mxu1 %v2597_v17 }
 0x147   : > { %2633 = vmatprep.subr.mxu0 %v2536_v14  ;;  %v2595_v21 = vld [vmem:[#allocation9 + $0x6d0] sm:$0xff] }
 0x148   : > { %v657_v22 = vrot.slane %v656_v19, 2  ;;  %v847_v26 = vmul.f32 %v843_v24, %v767_v20  ;;  %2634 = vmatpush1.msra.mxu0 %v2535_v16  ;;  %v2533_v20 = vld [vmem:[#allocation9 + $0x4e0] sm:$0xff]  ;;  %v2531_v24 = vld [vmem:[#allocation9 + $0x4d0] sm:$0xff]  ;;  %v2630_v16 = vld [vmem:[#allocation9 + $0x7e8] sm:$0xff] }
 0x149   : > { %v824_v31 = vpop.xlane.xlu0 %823  ;;  %2635 = vmatprep.subr.mxu0 %v2534_v18  ;;  %v2631_v14 = vld [vmem:[#allocation9 + $0x7f0] sm:$0xff]  ;;  %v2629_v18 = vld [vmem:[#allocation9 + $0x7e0] sm:$0xff] }
 0x14a   : > { %v658_v25 = vadd.f32 %v657_v22, %v656_v19  ;;  %v851_v29 = vsel %vm647_vm0, %v847_v26, 0.0  ;;  %v844_v32 = vmul.f32 0.00048828125, %v824_v31  ;;  %v2596_v19 = vld [vmem:[#allocation9 + $0x6d8] sm:$0xff]  ;;  %2636 = vmatpush1.msra.mxu0 %v2533_v20  ;;  %v2530_v26 = vld [vmem:[#allocation9 + $0x4c8] sm:$0xff]  ;;  %v2567_v17 = vld [vmem:[#allocation9 + $0x5f0] sm:$0xff] }
 0x14b   : > { %v852_v34 = vadd.f32 %v851_v29, %v850_v28  ;;  %2714 = vmatprep.subr.mxu1 %v2596_v19  ;;  %v2532_v22 = vld [vmem:[#allocation9 + $0x4d8] sm:$0xff]  ;;  %v2529_v28 = vld [vmem:[#allocation9 + $0x4c0] sm:$0xff]  ;;  %v2591_v29 = vld [vmem:[#allocation9 + $0x6b0] sm:$0xff] }
 0x14c   : > { %v659_v27 = vrot.slane %v658_v25, 1  ;;  %v848_v35 = vmul.f32 %v844_v32, %v768_v30  ;;  %2715 = vmatpush1.msra.mxu1 %v2595_v21  ;;  %2637 = vmatprep.subr.mxu0 %v2532_v22  ;;  %v2528_v30 = vld [vmem:[#allocation9 + $0x4b8] sm:$0xff]  ;;  %v2590_v31 = vld [vmem:[#allocation9 + $0x6a8] sm:$0xff]  ;;  %v2527_v32 = vld [vmem:[#allocation9 + $0x4b0] sm:$0xff] }
 0x14d   : > { %2716 = vmatprep.subr.mxu1 %v2594_v23  ;;  %2638 = vmatpush1.msra.mxu0 %v2531_v24  ;;  %v2566_v19 = vld [vmem:[#allocation9 + $0x5e8] sm:$0xff]  ;;  %v2628_v20 = vld [vmem:[#allocation9 + $0x7d8] sm:$0xff]  ;;  %v2565_v21 = vld [vmem:[#allocation9 + $0x5e0] sm:$0xff] }
 0x14e   : > { %v660_v33 = vadd.f32 %v659_v27, %v658_v25  ;;  %v853_v40 = vsel %vm647_vm0, %v848_v35, 0.0  ;;  %v2593_v25 = vld [vmem:[#allocation9 + $0x6c0] sm:$0xff]  ;;  %v2592_v27 = vld [vmem:[#allocation9 + $0x6b8] sm:$0xff]  ;;  %2639 = vmatprep.subr.mxu0 %v2530_v26  ;;  %v2627_v22 = vld [vmem:[#allocation9 + $0x7d0] sm:$0xff] }
 0x14f   : > { %v854_v47 = vadd.f32 %v853_v40, %v852_v34  ;;  %2717 = vmatpush1.msra.mxu1 %v2593_v25  ;;  %2640 = vmatpush1.msra.mxu0 %v2529_v28  ;;  %v2526_v34 = vld [vmem:[#allocation9 + $0x4a8] sm:$0xff]  ;;  %v2588_v35 = vld [vmem:[#allocation9 + $0x698] sm:$0xff]  ;;  %v2523_v40 = vld [vmem:[#allocation9 + $0x490] sm:$0xff] }
 0x150   : > { %v661_v38 = vmax.f32 %v660_v33, 0.0  ;;  %v841_v42 = vpop.xlane.xlu1 %840  ;;  %2718 = vmatprep.subr.mxu1 %v2592_v27  ;;  %2641 = vmatprep.subr.mxu0 %v2528_v30  ;;  %v2589_v33 = vld [vmem:[#allocation9 + $0x6a0] sm:$0xff]  ;;  %v2564_v23 = vld [vmem:[#allocation9 + $0x5d8] sm:$0xff]  ;;  %v2626_v24 = vld [vmem:[#allocation9 + $0x7c8] sm:$0xff] }
 0x151   : > { %v845_v44 = vmul.f32 0.00048828125, %v841_v42  ;;  %2719 = vmatpush1.msra.mxu1 %v2591_v29  ;;  %2642 = vmatpush1.msra.mxu0 %v2527_v32  ;;  %v2522_v42 = vld [vmem:[#allocation9 + $0x488] sm:$0xff]  ;;  %v2563_v25 = vld [vmem:[#allocation9 + $0x5d0] sm:$0xff]  ;;  %v2625_v26 = vld [vmem:[#allocation9 + $0x7c0] sm:$0xff] }
 0x152   : > { %v663_v45 = vmul.f32 %v661_v38, %v567_v36  ;;  %v662_v46 = vmul.f32 %v661_v38, %v566_v37  ;;  %v665_v48 = vmul.f32 %v661_v38, %v569_v39  ;;  %v664_v52 = vmul.f32 %v661_v38, %v568_v43  ;;  %2720 = vmatprep.subr.mxu1 %v2590_v31  ;;  %v2525_v36 = vld [vmem:[#allocation9 + $0x4a0] sm:$0xff]  ;;  %v2587_v37 = vld [vmem:[#allocation9 + $0x690] sm:$0xff]  ;;  %v2524_v38 = vld [vmem:[#allocation9 + $0x498] sm:$0xff] }
 0x153   : > { %v849_v49 = vmul.f32 %v845_v44, %v769_v41  ;;  %2721 = vmatpush1.msra.mxu1 %v2589_v33  ;;  %2643 = vmatprep.subr.mxu0 %v2526_v34  ;;  %v2586_v39 = vld [vmem:[#allocation9 + $0x688] sm:$0xff]  ;;  %v2585_v41 = vld [vmem:[#allocation9 + $0x680] sm:$0xff]  ;;  %v2584_v43 = vld [vmem:[#allocation9 + $0x678] sm:$0xff] }
 0x154   : > { %v669_v50 = vsel %vm647_vm0, %v663_v45, 0.0  ;;  %v666_v51 = vsel %vm647_vm0, %v662_v46, 0.0  ;;  %v675_v55 = vsel %vm647_vm0, %v665_v48, 0.0  ;;  %v672_v56 = vsel %vm647_vm0, %v664_v52, 0.0  ;;  %2722 = vmatprep.subr.mxu1 %v2588_v35  ;;  %2644 = vmatpush1.msra.mxu0 %v2525_v36  ;;  %v2521_v44 = vld [vmem:[#allocation9 + $0x480] sm:$0xff]  ;;  %v2583_v45 = vld [vmem:[#allocation9 + $0x670] sm:$0xff] }
 0x155   : > { %670 = vadd.xlane.f32.xlu1 %v669_v50  ;;  %667 = vadd.xlane.f32.xlu0 %v666_v51  ;;  %v855_v53 = vsel %vm647_vm0, %v849_v49, 0.0  ;;  %v2520_v46 = vld [vmem:[#allocation9 + $0x478] sm:$0xff]  ;;  %v2519_v48 = vld [vmem:[#allocation9 + $0x470] sm:$0xff]  ;;  %v2581_v49 = vld [vmem:[#allocation9 + $0x660] sm:$0xff] }
 0x156   : > { %v856_v54 = vadd.f32 %v855_v53, %v854_v47  ;;  %2723 = vmatpush1.msra.mxu1 %v2587_v37  ;;  %2645 = vmatprep.subr.mxu0 %v2524_v38  ;;  %v2582_v47 = vld [vmem:[#allocation9 + $0x668] sm:$0xff]  ;;  %v2580_v51 = vld [vmem:[#allocation9 + $0x658] sm:$0xff]  ;;  %v2517_v52 = vld [vmem:[#allocation9 + $0x460] sm:$0xff] }
 0x157   : > { %2724 = vmatprep.subr.mxu1 %v2586_v39  ;;  %2646 = vmatpush1.msra.mxu0 %v2523_v40  ;;  %v2518_v50 = vld [vmem:[#allocation9 + $0x468] sm:$0xff]  ;;  %v2579_v53 = vld [vmem:[#allocation9 + $0x650] sm:$0xff]  ;;  %v2624_v28 = vld [vmem:[#allocation9 + $0x7b8] sm:$0xff] }
 0x158   : > { %v857_v57 = vrot.slane %v856_v54, 4  ;;  %2725 = vmatpush1.msra.mxu1 %v2585_v41  ;;  %2647 = vmatprep.subr.mxu0 %v2522_v42  ;;  %v2562_v27 = vld [vmem:[#allocation9 + $0x5c8] sm:$0xff]  ;;  %v2561_v29 = vld [vmem:[#allocation9 + $0x5c0] sm:$0xff]  ;;  %v2623_v30 = vld [vmem:[#allocation9 + $0x7b0] sm:$0xff] }
 0x159   : > { %676 = vadd.xlane.f32.xlu1 %v675_v55  ;;  %673 = vadd.xlane.f32.xlu0 %v672_v56  ;;  %v2578_v55 = vld [vmem:[#allocation9 + $0x648] sm:$0xff]  ;;  %v2515_v56 = vld [vmem:[#allocation9 + $0x450] sm:$0xff]  ;;  %v2560_v31 = vld [vmem:[#allocation9 + $0x5b8] sm:$0xff] }
 0x15a   : > { %v858_v58 = vadd.f32 %v857_v57, %v856_v54  ;;  %2726 = vmatprep.subr.mxu1 %v2584_v43  ;;  %2648 = vmatpush1.msra.mxu0 %v2521_v44  ;;  %v2516_v54 = vld [vmem:[#allocation9 + $0x458] sm:$0xff]  ;;  %v2577_v57 = vld [vmem:[#allocation9 + $0x640] sm:$0xff]  ;;  %v2622_v32 = vld [vmem:[#allocation9 + $0x7a8] sm:$0xff] }
 0x15b   : > { %2727 = vmatpush1.msra.mxu1 %v2583_v45  ;;  %2649 = vmatprep.subr.mxu0 %v2520_v46  ;;  %v2559_v33 = vld [vmem:[#allocation9 + $0x5b0] sm:$0xff]  ;;  %v2621_v34 = vld [vmem:[#allocation9 + $0x7a0] sm:$0xff]  ;;  %v2558_v35 = vld [vmem:[#allocation9 + $0x5a8] sm:$0xff] }
 0x15c   : > { %v859_v59 = vrot.slane %v858_v58, 2  ;;  %2728 = vmatprep.subr.mxu1 %v2582_v47  ;;  %2650 = vmatpush1.msra.mxu0 %v2519_v48  ;;  %v2620_v36 = vld [vmem:[#allocation9 + $0x798] sm:$0xff]  ;;  %v2557_v37 = vld [vmem:[#allocation9 + $0x5a0] sm:$0xff]  ;;  %v2619_v38 = vld [vmem:[#allocation9 + $0x790] sm:$0xff] }
 0x15d   : > { %2729 = vmatpush1.msra.mxu1 %v2581_v49  ;;  %2651 = vmatprep.subr.mxu0 %v2518_v50  ;;  %v2556_v39 = vld [vmem:[#allocation9 + $0x598] sm:$0xff]  ;;  %v2618_v40 = vld [vmem:[#allocation9 + $0x788] sm:$0xff]  ;;  %v2555_v41 = vld [vmem:[#allocation9 + $0x590] sm:$0xff] }
 0x15e   : > { %v860_v60 = vadd.f32 %v859_v59, %v858_v58  ;;  %2730 = vmatprep.subr.mxu1 %v2580_v51  ;;  %2652 = vmatpush1.msra.mxu0 %v2517_v52  ;;  %v2514_v58 = vld [vmem:[#allocation9 + $0x448] sm:$0xff]  ;;  %v2576_v59 = vld [vmem:[#allocation9 + $0x638] sm:$0xff]  ;;  %v2617_v42 = vld [vmem:[#allocation9 + $0x780] sm:$0xff] }
 0x15f   : > { %2731 = vmatpush1.msra.mxu1 %v2579_v53  ;;  %2653 = vmatprep.subr.mxu0 %v2516_v54  ;;  %v2554_v43 = vld [vmem:[#allocation9 + $0x588] sm:$0xff]  ;;  %v2616_v44 = vld [vmem:[#allocation9 + $0x778] sm:$0xff]  ;;  %v2553_v45 = vld [vmem:[#allocation9 + $0x580] sm:$0xff] }
 0x160   : > { %v861_v61 = vrot.slane %v860_v60, 1  ;;  %2732 = vmatprep.subr.mxu1 %v2578_v55  ;;  %2654 = vmatpush1.msra.mxu0 %v2515_v56  ;;  %v2615_v46 = vld [vmem:[#allocation9 + $0x770] sm:$0xff]  ;;  %v2552_v47 = vld [vmem:[#allocation9 + $0x578] sm:$0xff]  ;;  %v2614_v48 = vld [vmem:[#allocation9 + $0x768] sm:$0xff] }
 0x161   : > { %2733 = vmatpush1.msra.mxu1 %v2577_v57  ;;  %2655 = vmatprep.subr.mxu0 %v2514_v58  ;;  %v2551_v49 = vld [vmem:[#allocation9 + $0x570] sm:$0xff]  ;;  %v2613_v50 = vld [vmem:[#allocation9 + $0x760] sm:$0xff]  ;;  %v2550_v51 = vld [vmem:[#allocation9 + $0x568] sm:$0xff] }
 0x162   : > { %v862_v63 = vadd.f32 %v861_v61, %v860_v60  ;;  %2734 = vmatprep.subr.mxu1 %v2576_v59  ;;  %v2513_v60 = vld [vmem:[#allocation9 + $0x440] sm:$0xff]  ;;  %v2575_v61 = vld [vmem:[#allocation9 + $0x630] sm:$0xff]  ;;  %v2612_v52 = vld [vmem:[#allocation9 + $0x758] sm:$0xff] }
 0x163   : > { %2656 = vmatpush1.msra.mxu0 %v2513_v60  ;;  %2735 = vmatpush1.msra.mxu1 %v2575_v61  ;;  %v2549_v53 = vld [vmem:[#allocation9 + $0x560] sm:$0xff]  ;;  %v2611_v54 = vld [vmem:[#allocation9 + $0x750] sm:$0xff]  ;;  %v2548_v55 = vld [vmem:[#allocation9 + $0x558] sm:$0xff] }
 0x164   : > { %v863_v3 = vmax.f32 %v862_v63, 0.0  ;;  %v2574_v63 = vld [vmem:[#allocation9 + $0x628] sm:$0xff]  ;;  %v2547_v57 = vld [vmem:[#allocation9 + $0x550] sm:$0xff]  ;;  %v2609_v58 = vld [vmem:[#allocation9 + $0x740] sm:$0xff] }
 0x165   : > { %2736 = vmatprep.subr.mxu1 %v2574_v63  ;;  %v2610_v56 = vld [vmem:[#allocation9 + $0x748] sm:$0xff]  ;;  %v2608_v60 = vld [vmem:[#allocation9 + $0x738] sm:$0xff]  ;;  %v2545_v61 = vld [vmem:[#allocation9 + $0x540] sm:$0xff] }
 0x166   : > { %v864_v4 = vmul.f32 %v863_v3, %v770_v62  ;;  %v865_v5 = vmul.f32 %v863_v3, %v771_v0  ;;  %v866_v6 = vmul.f32 %v863_v3, %v772_v1  ;;  %v867_v7 = vmul.f32 %v863_v3, %v773_v2  ;;  %v2512_v62 = vld [vmem:[#allocation9 + $0x438] sm:$0xff]  ;;  %v2511_v0 = vld [vmem:[#allocation9 + $0x430] sm:$0xff]  ;;  %v2573_v1 = vld [vmem:[#allocation9 + $0x620] sm:$0xff] }
 0x167   : > { %2657 = vmatprep.subr.mxu0 %v2512_v62  ;;  %v2510_v2 = vld [vmem:[#allocation9 + $0x428] sm:$0xff]  ;;  %v2572_v3 = vld [vmem:[#allocation9 + $0x618] sm:$0xff]  ;;  %2737 = vmatpush1.msra.mxu1 %v2573_v1  ;;  %v2607_v62 = vld [vmem:[#allocation9 + $0x730] sm:$0xff] }
 0x168   : > { %v868_v8 = vsel %vm647_vm0, %v864_v4, 0.0  ;;  %v871_v9 = vsel %vm647_vm0, %v865_v5, 0.0  ;;  %v874_v10 = vsel %vm647_vm0, %v866_v6, 0.0  ;;  %v877_v11 = vsel %vm647_vm0, %v867_v7, 0.0  ;;  %v2509_v4 = vld [vmem:[#allocation9 + $0x420] sm:$0xff]  ;;  %2658 = vmatpush1.msra.mxu0 %v2511_v0  ;;  %v2571_v6 = vld [vmem:[#allocation9 + $0x610] sm:$0xff]  ;;  %2738 = vmatprep.subr.mxu1 %v2572_v3 }
 0x169   : > { %869 = vadd.xlane.f32.xlu0 %v868_v8  ;;  %872 = vadd.xlane.f32.xlu1 %v871_v9  ;;  %v10312_v5 = vmov 0.0   ;;  %v2508_v7 = vld [vmem:[#allocation9 + $0x418] sm:$0xff]  ;;  %v2570_v8 = vld [vmem:[#allocation9 + $0x608] sm:$0xff]  ;;  %v2507_v9 = vld [vmem:[#allocation9 + $0x410] sm:$0xff] }
 0x16a   : > { %971 = vst [vmem:[#allocation2 + $0x18] sm:$0x7] %v10312_v5  ;;  %968 = vst [vmem:[#allocation2] sm:$0x7] %v10312_v5  ;;  %2659 = vmatprep.subr.mxu0 %v2510_v2  ;;  %2739 = vmatpush1.msra.mxu1 %v2571_v6  ;;  %v2546_v59 = vld [vmem:[#allocation9 + $0x548] sm:$0xff]  ;;  %v2544_v63 = vld [vmem:[#allocation9 + $0x538] sm:$0xff] }
 0x16b   : > { %969 = vst [vmem:[#allocation2 + $0x8] sm:$0x7] %v10312_v5  ;;  %970 = vst [vmem:[#allocation2 + $0x10] sm:$0x7] %v10312_v5  ;;  %2660 = vmatpush1.msra.mxu0 %v2509_v4  ;;  %2740 = vmatprep.subr.mxu1 %v2570_v8  ;;  %v2606_v0 = vld [vmem:[#allocation9 + $0x728] sm:$0xff]  ;;  %v2543_v1 = vld [vmem:[#allocation9 + $0x530] sm:$0xff] }
 0x16c   : > { %972 = vst [vmem:[#allocation2 + $0x20] sm:$0x38] %v10312_v5  ;;  %973 = vst [vmem:[#allocation2 + $0x28] sm:$0x38] %v10312_v5  ;;  %2661 = vmatprep.subr.mxu0 %v2508_v7  ;;  %v2605_v2 = vld [vmem:[#allocation9 + $0x720] sm:$0xff]  ;;  %v2542_v3 = vld [vmem:[#allocation9 + $0x528] sm:$0xff] }
 0x16d   : > { %875 = vadd.xlane.f32.xlu0 %v874_v10  ;;  %878 = vadd.xlane.f32.xlu1 %v877_v11  ;;  %974 = vst [vmem:[#allocation2 + $0x30] sm:$0x38] %v10312_v5  ;;  %975 = vst [vmem:[#allocation2 + $0x38] sm:$0x38] %v10312_v5  ;;  %v2569_v10 = vld [vmem:[#allocation9 + $0x600] sm:$0xff]  ;;  %v2506_v11 = vld [vmem:[#allocation9 + $0x408] sm:$0xff] }
 0x16e   : > { %1621 = vst [vmem:[#allocation2 + $0x20] sm:$0xc0] %v10312_v5  ;;  %1622 = vst [vmem:[#allocation2 + $0x28] sm:$0xc0] %v10312_v5  ;;  %2662 = vmatpush1.msra.mxu0 %v2507_v9  ;;  %2741 = vmatpush1.msra.mxu1 %v2569_v10  ;;  %v2604_v4 = vld [vmem:[#allocation9 + $0x718] sm:$0xff]  ;;  %v2541_v6 = vld [vmem:[#allocation9 + $0x520] sm:$0xff] }
 0x16f   : > { %1623 = vst [vmem:[#allocation2 + $0x30] sm:$0xc0] %v10312_v5  ;;  %1624 = vst [vmem:[#allocation2 + $0x38] sm:$0xc0] %v10312_v5  ;;  %2663 = vmatprep.subr.mxu0 %v2506_v11  ;;  %2742 = vmatprep.subr.mxu1 %v2632_v12  ;;  %v2603_v7 = vld [vmem:[#allocation9 + $0x710] sm:$0xff]  ;;  %v2540_v8 = vld [vmem:[#allocation9 + $0x518] sm:$0xff] }
 0x170   : > { %1625 = vst [vmem:[#allocation2 + $0x40] sm:$0x1] %v10312_v5  ;;  %1626 = vst [vmem:[#allocation2 + $0x48] sm:$0x1] %v10312_v5  ;;  %2664 = vmatpush1.msra.mxu0 %v2505_v13  ;;  %2743 = vmatpush2.msra.mxu1 %v2631_v14  ;;  %v2602_v9 = vld [vmem:[#allocation9 + $0x708] sm:$0xff]  ;;  %v2539_v10 = vld [vmem:[#allocation9 + $0x510] sm:$0xff] }
 0x171   : > { %1627 = vst [vmem:[#allocation2 + $0x50] sm:$0x1] %v10312_v5  ;;  %1628 = vst [vmem:[#allocation2 + $0x58] sm:$0x1] %v10312_v5  ;;  %2665 = vmatprep.subr.mxu0 %v2568_v15  ;;  %2744 = vmatprep.subr.mxu1 %v2630_v16  ;;  %v2601_v11 = vld [vmem:[#allocation9 + $0x700] sm:$0xff]  ;;  %v2538_v12 = vld [vmem:[#allocation9 + $0x508] sm:$0xff] }
 0x172   : > { %1629 = vst [vmem:[#allocation2 + $0x60] sm:$0xe] %v10312_v5  ;;  %1630 = vst [vmem:[#allocation2 + $0x68] sm:$0xe] %v10312_v5  ;;  %2666 = vmatpush2.msra.mxu0 %v2567_v17  ;;  %2745 = vmatpush2.msra.mxu1 %v2629_v18  ;;  %v2405_v13 = vld [vmem:[#allocation9 + $0x2f8] sm:$0xff]  ;;  %v2537_v14 = vld [vmem:[#allocation9 + $0x500] sm:$0xff] }
 0x173   : > { %1631 = vst [vmem:[#allocation2 + $0x70] sm:$0xe] %v10312_v5  ;;  %1632 = vst [vmem:[#allocation2 + $0x78] sm:$0xe] %v10312_v5  ;;  %2667 = vmatprep.subr.mxu0 %v2566_v19  ;;  %2746 = vmatprep.subr.mxu1 %v2628_v20  ;;  %v2341_v19 = vld [vmem:[#allocation9 + $0xf8] sm:$0xff] }
 0x174   : > { %2668 = vmatpush2.msra.mxu0 %v2565_v21  ;;  %2747 = vmatpush2.msra.mxu1 %v2627_v22 }
 0x175   : > { %2669 = vmatprep.subr.mxu0 %v2564_v23  ;;  %2748 = vmatprep.subr.mxu1 %v2626_v24 }
 0x176   : > { %2670 = vmatpush2.msra.mxu0 %v2563_v25  ;;  %2749 = vmatpush2.msra.mxu1 %v2625_v26 }
 0x177   : > { %2671 = vmatprep.subr.mxu0 %v2562_v27  ;;  %2750 = vmatprep.subr.mxu1 %v2624_v28 }
 0x178   : > { %2672 = vmatpush2.msra.mxu0 %v2561_v29  ;;  %2751 = vmatpush2.msra.mxu1 %v2623_v30 }
 0x179   : > { %2673 = vmatprep.subr.mxu0 %v2560_v31  ;;  %2752 = vmatprep.subr.mxu1 %v2622_v32 }
 0x17a   : > { %2674 = vmatpush2.msra.mxu0 %v2559_v33  ;;  %2753 = vmatpush2.msra.mxu1 %v2621_v34 }
 0x17b   : > { %2675 = vmatprep.subr.mxu0 %v2558_v35  ;;  %2754 = vmatprep.subr.mxu1 %v2620_v36  ;;  %v7675_v36 = vmov 1966171168  }
 0x17c   : > { %2676 = vmatpush2.msra.mxu0 %v2557_v37  ;;  %2755 = vmatpush2.msra.mxu1 %v2619_v38  ;;  %v1285_v37 = vunpack.c.l.s4 %v7675_v36  ;;  %v10314_v38 = vlaneseq }
 0x17d   : > { %2677 = vmatprep.subr.mxu0 %v2556_v39  ;;  %2756 = vmatprep.subr.mxu1 %v2618_v40 }
 0x17e   : > { %2678 = vmatpush2.msra.mxu0 %v2555_v41  ;;  %2757 = vmatpush2.msra.mxu1 %v2617_v42 }
 0x17f   : > { %2679 = vmatprep.subr.mxu0 %v2554_v43  ;;  %2758 = vmatprep.subr.mxu1 %v2616_v44  ;;  %v1286_v43 = vunpack.c.0.s8 %v1285_v37  ;;  %v8156_v44 = vshrl.u32 %v10314_v38, 7  ;;  %v7348_v37 = vld [vmem:[%s7922_s27 + $0x100] sm:$0xff] }
 0x180   : > { %2680 = vmatpush2.msra.mxu0 %v2553_v45  ;;  %2759 = vmatpush2.msra.mxu1 %v2615_v46 }
 0x181   : > { %2681 = vmatprep.subr.mxu0 %v2552_v47  ;;  %2760 = vmatprep.subr.mxu1 %v2614_v48  ;;  %10552 = vst [vmem:[#allocation21_spill] sm:$0xff] %v8156_v44  ;;  %v8161_v46 = vsub.s32 %v1286_v43, %v8156_v44  ;;  %v7324_v48 = vld [vmem:[%s7922_s27 + $0x80] sm:$0xff] }
 0x182   : > { %2682 = vmatpush2.msra.mxu0 %v2551_v49  ;;  %2761 = vmatpush2.msra.mxu1 %v2613_v50  ;;  %v7325_v50 = vld [vmem:[%s7922_s27 + $0x88] sm:$0xff] }
 0x183   : > { %2683 = vmatprep.subr.mxu0 %v2550_v51  ;;  %2762 = vmatprep.subr.mxu1 %v2612_v52  ;;  %v7326_v52 = vld [vmem:[%s7922_s27 + $0x90] sm:$0xff] }
 0x184   : > { %2684 = vmatpush2.msra.mxu0 %v2549_v53  ;;  %2763 = vmatpush2.msra.mxu1 %v2611_v54  ;;  %v7327_v54 = vld [vmem:[%s7922_s27 + $0x98] sm:$0xff] }
 0x185   : > { %2685 = vmatprep.subr.mxu0 %v2548_v55  ;;  %2764 = vmatprep.subr.mxu1 %v2610_v56  ;;  %v7328_v56 = vld [vmem:[%s7922_s27] sm:$0xff] }
 0x186   : > { %2686 = vmatpush2.msra.mxu0 %v2547_v57  ;;  %2765 = vmatpush2.msra.mxu1 %v2609_v58  ;;  %v7329_v58 = vld [vmem:[%s7922_s27 + $0x8] sm:$0xff] }
 0x187   : > { %2687 = vmatprep.subr.mxu0 %v2546_v59  ;;  %2766 = vmatprep.subr.mxu1 %v2608_v60  ;;  %v7330_v60 = vld [vmem:[%s7922_s27 + $0x10] sm:$0xff] }
 0x188   : > { %2688 = vmatpush2.msra.mxu0 %v2545_v61  ;;  %2767 = vmatpush2.msra.mxu1 %v2607_v62  ;;  %v7331_v62 = vld [vmem:[%s7922_s27 + $0x18] sm:$0xff] }
 0x189   : > { %2689 = vmatprep.subr.mxu0 %v2544_v63  ;;  %2768 = vmatprep.subr.mxu1 %v2606_v0  ;;  %v7332_v0 = vld [vmem:[%s7922_s27 + $0x20] sm:$0xff] }
 0x18a   : > { %2690 = vmatpush2.msra.mxu0 %v2543_v1  ;;  %2769 = vmatpush2.msra.mxu1 %v2605_v2  ;;  %v7333_v2 = vld [vmem:[%s7922_s27 + $0x28] sm:$0xff] }
 0x18b   : > { %2691 = vmatprep.subr.mxu0 %v2542_v3  ;;  %2770 = vmatprep.subr.mxu1 %v2604_v4  ;;  %v7334_v4 = vld [vmem:[%s7922_s27 + $0x30] sm:$0xff] }
 0x18c   : > { %2692 = vmatpush2.msra.mxu0 %v2541_v6  ;;  %2771 = vmatpush2.msra.mxu1 %v2603_v7  ;;  %v7335_v7 = vld [vmem:[%s7922_s27 + $0x38] sm:$0xff] }
 0x18d   : > { %2693 = vmatprep.subr.mxu0 %v2540_v8  ;;  %2772 = vmatprep.subr.mxu1 %v2602_v9  ;;  %v7336_v9 = vld [vmem:[%s7922_s27 + $0x40] sm:$0xff] }
 0x18e   : > { %2694 = vmatpush2.msra.mxu0 %v2539_v10  ;;  %2773 = vmatpush2.msra.mxu1 %v2601_v11  ;;  %v7337_v11 = vld [vmem:[%s7922_s27 + $0x48] sm:$0xff] }
 0x18f   : > { %2695 = vmatprep.subr.mxu0 %v2538_v12  ;;  %2864 = vmatprep.subr.mxu1 %v2405_v13  ;;  %v7338_v13 = vld [vmem:[%s7922_s27 + $0x50] sm:$0xff] }
 0x190   : > { %2696 = vmatpush2.msra.mxu0 %v2537_v14 }
 0x191   : > { %2787 = vmatprep.subr.mxu0 %v2341_v19 }
 0x1de   : > { %v671_v15 = vpop.xlane.xlu1 %670  ;;  %v668_v16 = vpop.xlane.xlu0 %667 }
 0x1df   : > { %v7110_v17 = vmul.f32 -1.442695, %v671_v15  ;;  %v7109_v18 = vmul.f32 -1.442695, %v668_v16  ;;  %v7339_v15 = vld [vmem:[%s7922_s27 + $0x58] sm:$0xff] }
 0x1e1   : > { %7268 = vpow2.f32 %v7110_v17 }
 0x1e2   : > { %7270 = vpow2.f32 %v7109_v18  ;;  %v677_v20 = vpop.xlane.xlu1 %676  ;;  %v674_v21 = vpop.xlane.xlu0 %673  ;;  %v7340_v18 = vld [vmem:[%s7922_s27 + $0xa0] sm:$0xff] }
 0x1e3   : > { %v7112_v22 = vmul.f32 -1.442695, %v677_v20  ;;  %v7111_v23 = vmul.f32 -1.442695, %v674_v21  ;;  %v7341_v20 = vld [vmem:[%s7922_s27 + $0xa8] sm:$0xff] }
 0x1e5   : > { %7272 = vpow2.f32 %v7112_v22  ;;  %v7342_v22 = vld [vmem:[%s7922_s27 + $0xb0] sm:$0xff] }
 0x1e6   : > { %7274 = vpow2.f32 %v7111_v23 }
 0x1ee   : > { %v7269_v24 = vpop.eup %7268 }
 0x1ef   : > { %v7271_v25 = vpop.eup %7270  ;;  %v691_v26 = vadd.f32 1.0, %v7269_v24  ;;  %v7343_v24 = vld [vmem:[%s7922_s27 + $0xb8] sm:$0xff] }
 0x1f0   : > { %v690_v27 = vadd.f32 1.0, %v7271_v25 }
 0x1f1   : > { %7276 = vrcp.f32 %v691_v26 }
 0x1f2   : > { %v7273_v28 = vpop.eup %7272  ;;  %7278 = vrcp.f32 %v690_v27  ;;  %v870_v30 = vpop.xlane.xlu0 %869  ;;  %v7344_v27 = vld [vmem:[%s7922_s27 + $0xc0] sm:$0xff] }
 0x1f3   : > { %v7275_v29 = vpop.eup %7274  ;;  %v873_v31 = vpop.xlane.xlu1 %872  ;;  %v7113_v33 = vmul.f32 -1.442695, %v870_v30  ;;  %v693_v35 = vadd.f32 1.0, %v7273_v28 }
 0x1f4   : > { %v692_v32 = vadd.f32 1.0, %v7275_v29  ;;  %v7114_v34 = vmul.f32 -1.442695, %v873_v31  ;;  %v7345_v29 = vld [vmem:[%s7922_s27 + $0xc8] sm:$0xff]  ;;  %v7346_v31 = vld [vmem:[%s7922_s27 + $0xd0] sm:$0xff] }
 0x1f6   : > { %7280 = vrcp.f32 %v692_v32  ;;  %v876_v39 = vpop.xlane.xlu0 %875 }
 0x1f7   : > { %7282 = vpow2.f32 %v7113_v33  ;;  %v879_v40 = vpop.xlane.xlu1 %878  ;;  %v7115_v41 = vmul.f32 -1.442695, %v876_v39  ;;  %v7347_v33 = vld [vmem:[%s7922_s27 + $0xd8] sm:$0xff] }
 0x1f8   : > { %7284 = vpow2.f32 %v7114_v34  ;;  %v7116_v42 = vmul.f32 -1.442695, %v879_v40  ;;  %v7349_v40 = vld [vmem:[%s7922_s27 + $0x108] sm:$0xff] }
 0x1f9   : > { %7286 = vrcp.f32 %v693_v35 }
 0x1fa   : > { %7288 = vpow2.f32 %v7115_v41 }
 0x1fb   : > { %7290 = vpow2.f32 %v7116_v42  ;;  %v7350_v42 = vld [vmem:[%s7922_s27 + $0x110] sm:$0xff] }
 0x1fe   : > { %v8158_v45 = vpop.eup %7276 }
 0x1ff   : > { %10553 = vst [vmem:[#allocation22_spill] sm:$0xff] %v8158_v45  ;;  %v8163_v47 = vpop.eup %7278  ;;  %v8167_v49 = vmul.f32 %v7324_v48, %v8158_v45  ;;  %v8171_v51 = vmul.f32 %v7325_v50, %v8158_v45  ;;  %v8175_v53 = vmul.f32 %v7326_v52, %v8158_v45  ;;  %v8179_v55 = vmul.f32 %v7327_v54, %v8158_v45  ;;  %v7351_v52 = vld [vmem:[%s7922_s27 + $0x118] sm:$0xff] }
 0x200   : > { %10554 = vst [vmem:[#allocation23_spill] sm:$0xff] %v8163_v47  ;;  %v8183_v57 = vmul.f32 %v7328_v56, %v8163_v47  ;;  %v8187_v59 = vmul.f32 %v7329_v58, %v8163_v47  ;;  %v8191_v61 = vmul.f32 %v7330_v60, %v8163_v47  ;;  %v8195_v63 = vmul.f32 %v7331_v62, %v8163_v47  ;;  %v7352_v56 = vld [vmem:[%s7922_s27 + $0x120] sm:$0xff]  ;;  %v7353_v60 = vld [vmem:[%s7922_s27 + $0x128] sm:$0xff] }
 0x201   : > { %10555 = vst [vmem:[#allocation24_spill] sm:$0xff] %v8167_v49  ;;  %10556 = vst [vmem:[#allocation25_spill] sm:$0xff] %v8171_v51  ;;  %v8199_v1 = vmul.f32 %v7332_v0, %v8163_v47  ;;  %v8203_v3 = vmul.f32 %v7333_v2, %v8163_v47  ;;  %v8207_v6 = vmul.f32 %v7334_v4, %v8163_v47  ;;  %v7354_v2 = vld [vmem:[%s7922_s27 + $0x130] sm:$0xff] }
 0x202   : > { %10557 = vst [vmem:[#allocation26_spill] sm:$0xff] %v8175_v53  ;;  %10558 = vst [vmem:[#allocation27_spill] sm:$0xff] %v8179_v55  ;;  %v8211_v8 = vmul.f32 %v7335_v7, %v8163_v47  ;;  %v8215_v10 = vmul.f32 %v7336_v9, %v8163_v47  ;;  %v8219_v12 = vmul.f32 %v7337_v11, %v8163_v47  ;;  %v7355_v7 = vld [vmem:[%s7922_s27 + $0x138] sm:$0xff]  ;;  %v7356_v11 = vld [vmem:[%s7922_s27 + $0x140] sm:$0xff] }
 0x203   : > { %10559 = vst [vmem:[#allocation28_spill] sm:$0xff] %v8183_v57  ;;  %10560 = vst [vmem:[#allocation29_spill] sm:$0xff] %v8187_v59  ;;  %v8223_v14 = vmul.f32 %v7338_v13, %v8163_v47  ;;  %v8227_v16 = vmul.f32 %v7339_v15, %v8163_v47  ;;  %v8229_v17 = vpop.eup %7280  ;;  %v8233_v19 = vmul.f32 %v7340_v18, %v8158_v45 }
 0x204   : > { %10561 = vst [vmem:[#allocation30_spill] sm:$0xff] %v8191_v61  ;;  %10562 = vst [vmem:[#allocation31_spill] sm:$0xff] %v8195_v63  ;;  %v8237_v21 = vmul.f32 %v7341_v20, %v8158_v45  ;;  %v8241_v23 = vmul.f32 %v7342_v22, %v8158_v45  ;;  %v8245_v25 = vmul.f32 %v7343_v24, %v8158_v45  ;;  %v7283_v26 = vpop.eup %7282  ;;  %v7357_v20 = vld [vmem:[%s7922_s27 + $0x148] sm:$0xff]  ;;  %v7358_v24 = vld [vmem:[%s7922_s27 + $0x150] sm:$0xff] }
 0x205   : > { %10563 = vst [vmem:[#allocation32_spill] sm:$0xff] %v8199_v1  ;;  %10564 = vst [vmem:[#allocation33_spill] sm:$0xff] %v8203_v3  ;;  %v8249_v28 = vmul.f32 %v7344_v27, %v8158_v45  ;;  %v8253_v30 = vmul.f32 %v7345_v29, %v8158_v45  ;;  %v8257_v32 = vmul.f32 %v7346_v31, %v8158_v45  ;;  %v7285_v35 = vpop.eup %7284  ;;  %v892_v36 = vadd.f32 1.0, %v7283_v26  ;;  %v7359_v29 = vld [vmem:[%s7922_s27 + $0x158] sm:$0xff] }
 0x206   : > { %10565 = vst [vmem:[#allocation34_spill] sm:$0xff] %v8207_v6  ;;  %10566 = vst [vmem:[#allocation35_spill] sm:$0xff] %v8211_v8  ;;  %v8261_v34 = vmul.f32 %v7347_v33, %v8158_v45  ;;  %v8265_v39 = vmul.f32 %v7348_v37, %v8229_v17  ;;  %v8269_v41 = vmul.f32 %v7349_v40, %v8229_v17  ;;  %v8275_v48 = vpop.eup %7286  ;;  %v893_v50 = vadd.f32 1.0, %v7285_v35  ;;  %v7360_v33 = vld [vmem:[%s7922_s27 + $0x180] sm:$0xff]  ;;  %v7362_v40 = vld [vmem:[%s7922_s27 + $0x190] sm:$0xff] }
 0x207   : > { %10567 = vst [vmem:[#allocation36_spill] sm:$0xff] %v8215_v10  ;;  %10568 = vst [vmem:[#allocation37_spill] sm:$0xff] %v8219_v12  ;;  %v8273_v43 = vmul.f32 %v7350_v42, %v8229_v17  ;;  %v8279_v54 = vmul.f32 %v7351_v52, %v8229_v17  ;;  %v8283_v58 = vmul.f32 %v7352_v56, %v8229_v17  ;;  %v7289_v0 = vpop.eup %7288  ;;  %7292 = vrcp.f32 %v892_v36  ;;  %v7361_v36 = vld [vmem:[%s7922_s27 + $0x188] sm:$0xff]  ;;  %v7364_v56 = vld [vmem:[%s7922_s27 + $0x1a0] sm:$0xff] }
 0x208   : > { %10569 = vst [vmem:[#allocation38_spill] sm:$0xff] %v8223_v14  ;;  %10570 = vst [vmem:[#allocation39_spill] sm:$0xff] %v8227_v16  ;;  %v8287_v62 = vmul.f32 %v7353_v60, %v8229_v17  ;;  %v8291_v4 = vmul.f32 %v7354_v2, %v8229_v17  ;;  %v8295_v9 = vmul.f32 %v7355_v7, %v8229_v17  ;;  %v7291_v15 = vpop.eup %7290  ;;  %7294 = vrcp.f32 %v893_v50  ;;  %v7363_v50 = vld [vmem:[%s7922_s27 + $0x198] sm:$0xff]  ;;  %v7366_v7 = vld [vmem:[%s7922_s27 + $0x1b0] sm:$0xff] }
 0x209   : > { %10571 = vst [vmem:[#allocation40_spill] sm:$0xff] %v8229_v17  ;;  %10572 = vst [vmem:[#allocation41_spill] sm:$0xff] %v8233_v19  ;;  %v8299_v13 = vmul.f32 %v7356_v11, %v8229_v17  ;;  %v894_v18 = vadd.f32 1.0, %v7289_v0  ;;  %v8303_v22 = vmul.f32 %v7357_v20, %v8229_v17  ;;  %v8307_v26 = vmul.f32 %v7358_v24, %v8229_v17  ;;  %v7365_v0 = vld [vmem:[%s7922_s27 + $0x1a8] sm:$0xff]  ;;  %v7368_v20 = vld [vmem:[%s7922_s27 + $0x1c0] sm:$0xff] }
 0x20a   : > { %10573 = vst [vmem:[#allocation42_spill] sm:$0xff] %v8237_v21  ;;  %10574 = vst [vmem:[#allocation43_spill] sm:$0xff] %v8241_v23  ;;  %v895_v27 = vadd.f32 1.0, %v7291_v15  ;;  %v8311_v31 = vmul.f32 %v7359_v29, %v8229_v17  ;;  %v8315_v35 = vmul.f32 %v7360_v33, %v8275_v48  ;;  %v8319_v37 = vmul.f32 %v7361_v36, %v8275_v48  ;;  %v7367_v15 = vld [vmem:[%s7922_s27 + $0x1b8] sm:$0xff]  ;;  %v7369_v29 = vld [vmem:[%s7922_s27 + $0x1c8] sm:$0xff] }
 0x20b   : > { %10575 = vst [vmem:[#allocation44_spill] sm:$0xff] %v8245_v25  ;;  %10576 = vst [vmem:[#allocation45_spill] sm:$0xff] %v8249_v28  ;;  %7296 = vrcp.f32 %v894_v18  ;;  %v8323_v42 = vmul.f32 %v7362_v40, %v8275_v48  ;;  %v8327_v52 = vmul.f32 %v7363_v50, %v8275_v48  ;;  %v8331_v60 = vmul.f32 %v7364_v56, %v8275_v48  ;;  %v7371_v40 = vld [vmem:[%s7922_s27 + $0x1d8] sm:$0xff] }
 0x20c   : > { %10577 = vst [vmem:[#allocation46_spill] sm:$0xff] %v8253_v30  ;;  %10578 = vst [vmem:[#allocation47_spill] sm:$0xff] %v8257_v32  ;;  %7298 = vrcp.f32 %v895_v27  ;;  %v8335_v2 = vmul.f32 %v7365_v0, %v8275_v48  ;;  %v8339_v11 = vmul.f32 %v7366_v7, %v8275_v48  ;;  %v8343_v18 = vmul.f32 %v7367_v15, %v8275_v48  ;;  %v7370_v27 = vld [vmem:[%s7922_s27 + $0x1d0] sm:$0xff] }
 0x20d   : > { %10579 = vst [vmem:[#allocation48_spill] sm:$0xff] %v8261_v34  ;;  %10580 = vst [vmem:[#allocation49_spill] sm:$0xff] %v8265_v39  ;;  %v8347_v24 = vmul.f32 %v7368_v20, %v8275_v48  ;;  %v8351_v33 = vmul.f32 %v7369_v29, %v8275_v48  ;;  %v8355_v36 = vmul.f32 %v7370_v27, %v8275_v48 }
 0x20e   : > { %10581 = vst [vmem:[#allocation50_spill] sm:$0xff] %v8269_v41  ;;  %10582 = vst [vmem:[#allocation51_spill] sm:$0xff] %v8273_v43  ;;  %v8359_v50 = vmul.f32 %v7371_v40, %v8275_v48  ;;  %v1137_v56 = vmax.f32 %v8183_v57, %v8167_v49  ;;  %v1146_v0 = vmax.f32 %v8187_v59, %v8171_v51 }
 0x20f   : > { %10583 = vst [vmem:[#allocation52_spill] sm:$0xff] %v8275_v48  ;;  %10584 = vst [vmem:[#allocation53_spill] sm:$0xff] %v8279_v54  ;;  %v1155_v7 = vmax.f32 %v8191_v61, %v8175_v53  ;;  %v1164_v15 = vmax.f32 %v8195_v63, %v8179_v55  ;;  %v1173_v20 = vmax.f32 %v8199_v1, %v8233_v19 }
 0x210   : > { %10585 = vst [vmem:[#allocation54_spill] sm:$0xff] %v8283_v58  ;;  %10586 = vst [vmem:[#allocation55_spill] sm:$0xff] %v8287_v62  ;;  %v1182_v29 = vmax.f32 %v8203_v3, %v8237_v21  ;;  %v1191_v27 = vmax.f32 %v8207_v6, %v8241_v23  ;;  %v1200_v40 = vmax.f32 %v8211_v8, %v8245_v25 }
 0x211   : > { %10587 = vst [vmem:[#allocation56_spill] sm:$0xff] %v8291_v4  ;;  %10588 = vst [vmem:[#allocation57_spill] sm:$0xff] %v8295_v9  ;;  %v1138_v5 = vmax.f32 %v1137_v56, %v8265_v39  ;;  %v1147_v38 = vmax.f32 %v1146_v0, %v8269_v41  ;;  %v1156_v44 = vmax.f32 %v1155_v7, %v8273_v43 }
 0x212   : > { %10589 = vst [vmem:[#allocation58_spill] sm:$0xff] %v8299_v13  ;;  %10590 = vst [vmem:[#allocation59_spill] sm:$0xff] %v8303_v22  ;;  %v1165_v48 = vmax.f32 %v1164_v15, %v8279_v54  ;;  %v1174_v17 = vmax.f32 %v1173_v20, %v8283_v58  ;;  %v1183_v45 = vmax.f32 %v1182_v29, %v8287_v62 }
 0x213   : > { %10591 = vst [vmem:[#allocation60_spill] sm:$0xff] %v8307_v26  ;;  %10592 = vst [vmem:[#allocation61_spill] sm:$0xff] %v8311_v31  ;;  %v1192_v47 = vmax.f32 %v1191_v27, %v8291_v4  ;;  %v1201_v21 = vmax.f32 %v1200_v40, %v8295_v9  ;;  %v1139_v23 = vmax.f32 %v1138_v5, %v8315_v35 }
 0x214   : > { %10593 = vst [vmem:[#allocation62_spill] sm:$0xff] %v8315_v35  ;;  %10594 = vst [vmem:[#allocation63_spill] sm:$0xff] %v8319_v37  ;;  %v1148_v25 = vmax.f32 %v1147_v38, %v8319_v37  ;;  %v1157_v56 = vmax.f32 %v1156_v44, %v8323_v42  ;;  %v1166_v0 = vmax.f32 %v1165_v48, %v8327_v52  ;;  %v8393_v9 = vpop.eup %7292 }
 0x215   : > { %10595 = vst [vmem:[#allocation64_spill] sm:$0xff] %v8323_v42  ;;  %10596 = vst [vmem:[#allocation65_spill] sm:$0xff] %v8327_v52  ;;  %v1175_v7 = vmax.f32 %v1174_v17, %v8331_v60  ;;  %v1184_v15 = vmax.f32 %v1183_v45, %v8335_v2  ;;  %v1193_v20 = vmax.f32 %v1192_v47, %v8339_v11  ;;  %v1140_v8 = vrot.slane %v1139_v23, 4  ;;  %v8395_v62 = vpop.eup %7294 }
 0x216   : > { %10597 = vst [vmem:[#allocation66_spill] sm:$0xff] %v8331_v60  ;;  %10598 = vst [vmem:[#allocation67_spill] sm:$0xff] %v8335_v2  ;;  %v1202_v29 = vmax.f32 %v1201_v21, %v8343_v18  ;;  %v1149_v27 = vrot.slane %v1148_v25, 4  ;;  %v1158_v4 = vrot.slane %v1157_v56, 4  ;;  %v1167_v40 = vrot.slane %v1166_v0, 4 }
 0x217   : > { %10599 = vst [vmem:[#allocation68_spill] sm:$0xff] %v8339_v11  ;;  %10600 = vst [vmem:[#allocation69_spill] sm:$0xff] %v8343_v18  ;;  %v1176_v5 = vrot.slane %v1175_v7, 4  ;;  %v1185_v38 = vrot.slane %v1184_v15, 4  ;;  %v1194_v6 = vrot.slane %v1193_v20, 4  ;;  %v1141_v48 = vmax.f32 %v1139_v23, %v1140_v8 }
 0x218   : > { %10601 = vst [vmem:[#allocation70_spill] sm:$0xff] %v8347_v24  ;;  %10602 = vst [vmem:[#allocation71_spill] sm:$0xff] %v8351_v33  ;;  %v1203_v44 = vrot.slane %v1202_v29, 4  ;;  %v1150_v17 = vmax.f32 %v1148_v25, %v1149_v27  ;;  %v1159_v60 = vmax.f32 %v1157_v56, %v1158_v4  ;;  %v1168_v45 = vmax.f32 %v1166_v0, %v1167_v40  ;;  %v8397_v18 = vpop.eup %7296 }
 0x219   : > { %10603 = vst [vmem:[#allocation72_spill] sm:$0xff] %v8355_v36  ;;  %10604 = vst [vmem:[#allocation73_spill] sm:$0xff] %v8359_v50  ;;  %v1177_v2 = vmax.f32 %v1175_v7, %v1176_v5  ;;  %v1186_v47 = vmax.f32 %v1184_v15, %v1185_v38  ;;  %v1195_v11 = vmax.f32 %v1193_v20, %v1194_v6  ;;  %v1142_v58 = vrot.slane %v1141_v48, 2  ;;  %v8399_v1 = vpop.eup %7298 }
 0x21a   : > { %10605 = vst [vmem:[#allocation74_spill] sm:$0xff] %v8393_v9  ;;  %10606 = vst [vmem:[#allocation75_spill] sm:$0xff] %v8395_v62  ;;  %v1204_v21 = vmax.f32 %v1202_v29, %v1203_v44  ;;  %v1151_v3 = vrot.slane %v1150_v17, 2  ;;  %v1160_v19 = vrot.slane %v1159_v60, 2  ;;  %v1169_v9 = vrot.slane %v1168_v45, 2 }
 0x21b   : > { %10607 = vst [vmem:[#allocation76_spill] sm:$0xff] %v8397_v18  ;;  %10608 = vst [vmem:[#allocation77_spill] sm:$0xff] %v8399_v1  ;;  %v1178_v52 = vrot.slane %v1177_v2, 2  ;;  %v1187_v42 = vrot.slane %v1186_v47, 2  ;;  %v1196_v37 = vrot.slane %v1195_v11, 2  ;;  %v1143_v8 = vmax.f32 %v1141_v48, %v1142_v58 }
 0x21c   : > { %v1205_v62 = vrot.slane %v1204_v21, 2  ;;  %v1152_v23 = vmax.f32 %v1150_v17, %v1151_v3  ;;  %v1161_v25 = vmax.f32 %v1159_v60, %v1160_v19  ;;  %v1170_v4 = vmax.f32 %v1168_v45, %v1169_v9 }
 0x21d   : > { %v1179_v56 = vmax.f32 %v1177_v2, %v1178_v52  ;;  %v1188_v0 = vmax.f32 %v1186_v47, %v1187_v42  ;;  %v1197_v6 = vmax.f32 %v1195_v11, %v1196_v37  ;;  %v1144_v15 = vrot.slane %v1143_v8, 1 }
 0x21e   : > { %v1206_v7 = vmax.f32 %v1204_v21, %v1205_v62  ;;  %v1153_v20 = vrot.slane %v1152_v23, 1  ;;  %v1162_v29 = vrot.slane %v1161_v25, 1  ;;  %v1171_v27 = vrot.slane %v1170_v4, 1 }
 0x21f   : > { %v10609_v40 = vlaneseq  ;;  %v10610_v5 = vmov 0  ;;  %v1180_v38 = vrot.slane %v1179_v56, 1  ;;  %v1189_v44 = vrot.slane %v1188_v0, 1 }
 0x220   : > { %v1198_v1 = vrot.slane %v1197_v6, 1  ;;  %v1207_v58 = vrot.slane %v1206_v7, 1  ;;  %v1145_v3 = vmax.f32 %v1143_v8, %v1144_v15  ;;  %v1154_v19 = vmax.f32 %v1152_v23, %v1153_v20 }
 0x221   : > { %vm8402_vm1 = vcmp.lt.s32.totalorder %v10609_v40, 256  ;;  %v1163_v9 = vmax.f32 %v1161_v25, %v1162_v29  ;;  %v1172_v52 = vmax.f32 %v1170_v4, %v1171_v27  ;;  %v1181_v42 = vmax.f32 %v1179_v56, %v1180_v38 }
 0x222   : > { %v10611_v5 = vsel %vm8402_vm1, 4294967295, %v10610_v5  ;;  %v1190_v37 = vmax.f32 %v1188_v0, %v1189_v44  ;;  %v1199_v62 = vmax.f32 %v1197_v6, %v1198_v1  ;;  %v1208_v60 = vmax.f32 %v1206_v7, %v1207_v58 }
 0x223   : > { %10612 = vst [vmem:[#allocation78_spill] sm:$0xff] %v10611_v5  ;;  %v1209_v2 = vmax.f32 %v8215_v10, %v8249_v28  ;;  %v1218_v11 = vmax.f32 %v8219_v12, %v8253_v30  ;;  %v1227_v48 = vmax.f32 %v8223_v14, %v8257_v32  ;;  %v1236_v17 = vmax.f32 %v8227_v16, %v8261_v34  ;;  %v2376_v5 = vld [vmem:[#allocation9 + $0x210] sm:$0xff] }
 0x224   : > { %v1308_v45 = vcombine.low %v1145_v3, %v1154_v19  ;;  %v1350_v47 = vcombine.low %v1163_v9, %v1172_v52  ;;  %v1392_v21 = vcombine.low %v1181_v42, %v1190_v37  ;;  %v1434_v8 = vcombine.low %v1199_v62, %v1208_v60 }
 0x225   : > { %v1210_v23 = vmax.f32 %v1209_v2, %v8299_v13  ;;  %v1219_v1 = vmax.f32 %v1218_v11, %v8303_v22  ;;  %v1228_v25 = vmax.f32 %v1227_v48, %v8307_v26  ;;  %v1237_v4 = vmax.f32 %v1236_v17, %v8311_v31 }
 0x226   : > { %v1315_v56 = vrot.slane %v1308_v45, %v8161_v46  ;;  %v1357_v0 = vrot.slane %v1350_v47, %v8161_v46  ;;  %v1399_v6 = vrot.slane %v1392_v21, %v8161_v46  ;;  %v1441_v7 = vrot.slane %v1434_v8, %v8161_v46 }
 0x227   : > { %v1211_v15 = vmax.f32 %v1210_v23, %v8347_v24  ;;  %v1220_v20 = vmax.f32 %v1219_v1, %v8351_v33  ;;  %v1229_v29 = vmax.f32 %v1228_v25, %v8355_v36  ;;  %v1238_v27 = vmax.f32 %v1237_v4, %v8359_v50 }
 0x228   : > { %v1322_v40 = vrot.slane %v1315_v56, %v8161_v46  ;;  %v1364_v38 = vrot.slane %v1357_v0, %v8161_v46  ;;  %v1406_v44 = vrot.slane %v1399_v6, %v8161_v46  ;;  %v1448_v58 = vrot.slane %v1441_v7, %v8161_v46  ;;  %v10613_v0 = vld [vmem:[#allocation63_spill] sm:$0xff]  ;;  %v10614_v7 = vld [vmem:[#allocation64_spill] sm:$0xff] }
 0x229   : > { %v1212_v3 = vrot.slane %v1211_v15, 4  ;;  %v1221_v19 = vrot.slane %v1220_v20, 4  ;;  %v1230_v9 = vrot.slane %v1229_v29, 4  ;;  %v1239_v52 = vrot.slane %v1238_v27, 4 }
 0x22a   : > { %1325 = vst.msk [vmem:[#allocation2 + $0x13] ss:$8 sm:$0x3] %vm8402_vm1, %v1322_v40  ;;  %1367 = vst.msk [vmem:[#allocation2 + $0x14] ss:$8 sm:$0x3] %vm8402_vm1, %v1364_v38  ;;  %v976_v42 = vadd.f32 %v8167_v49, %v8183_v57  ;;  %v985_v37 = vadd.f32 %v8171_v51, %v8187_v59  ;;  %v994_v62 = vadd.f32 %v8175_v53, %v8191_v61 }
 0x22b   : > { %1409 = vst.msk [vmem:[#allocation2 + $0x15] ss:$8 sm:$0x3] %vm8402_vm1, %v1406_v44  ;;  %1451 = vst.msk [vmem:[#allocation2 + $0x16] ss:$8 sm:$0x3] %vm8402_vm1, %v1448_v58  ;;  %v1003_v60 = vadd.f32 %v8179_v55, %v8195_v63  ;;  %v1213_v2 = vmax.f32 %v1211_v15, %v1212_v3  ;;  %v1222_v11 = vmax.f32 %v1220_v20, %v1221_v19 }
 0x22c   : > { %v1231_v48 = vmax.f32 %v1229_v29, %v1230_v9  ;;  %v1240_v17 = vmax.f32 %v1238_v27, %v1239_v52  ;;  %v977_v45 = vadd.f32 %v976_v42, %v8265_v39  ;;  %v986_v47 = vadd.f32 %v985_v37, %v8269_v41  ;;  %v10615_v20 = vld [vmem:[#allocation65_spill] sm:$0xff]  ;;  %v10619_v49 = vld [vmem:[#allocation42_spill] sm:$0xff]  ;;  %v7413_v51 = vld [vmem:[%s7929_s20 + $0x1a8] sm:$0xff] }
 0x22d   : > { %v995_v21 = vadd.f32 %v994_v62, %v8273_v43  ;;  %v1004_v8 = vadd.f32 %v1003_v60, %v8279_v54  ;;  %v1214_v23 = vrot.slane %v1213_v2, 2  ;;  %v1223_v1 = vrot.slane %v1222_v11, 2  ;;  %v10618_v53 = vld [vmem:[#allocation33_spill] sm:$0xff]  ;;  %v7415_v39 = vld [vmem:[%s7929_s20 + $0x1b8] sm:$0xff]  ;;  %v7416_v54 = vld [vmem:[%s7929_s20 + $0x1c0] sm:$0xff] }
 0x22e   : > { %v1232_v25 = vrot.slane %v1231_v48, 2  ;;  %v1241_v4 = vrot.slane %v1240_v17, 2  ;;  %v978_v56 = vadd.f32 %v977_v45, %v8315_v35  ;;  %v987_v6 = vadd.f32 %v986_v47, %v10613_v0  ;;  %v7414_v43 = vld [vmem:[%s7929_s20 + $0x1b0] sm:$0xff]  ;;  %v7417_v41 = vld [vmem:[%s7929_s20 + $0x1c8] sm:$0xff]  ;;  %v7419_v0 = vld [vmem:[%s7929_s20 + $0x1d8] sm:$0xff] }
 0x22f   : > { %v996_v15 = vadd.f32 %v995_v21, %v10614_v7  ;;  %v1005_v29 = vadd.f32 %v1004_v8, %v10615_v20  ;;  %v1215_v27 = vmax.f32 %v1213_v2, %v1214_v23  ;;  %v1224_v40 = vmax.f32 %v1222_v11, %v1223_v1  ;;  %v7418_v20 = vld [vmem:[%s7929_s20 + $0x1d0] sm:$0xff] }
 0x230   : > { %v1233_v38 = vmax.f32 %v1231_v48, %v1232_v25  ;;  %v1242_v44 = vmax.f32 %v1240_v17, %v1241_v4  ;;  %v979_v58 = vrot.slane %v978_v56, 4  ;;  %v988_v3 = vrot.slane %v987_v6, 4  ;;  %v10616_v25 = vld [vmem:[#allocation32_spill] sm:$0xff]  ;;  %v10617_v4 = vld [vmem:[#allocation41_spill] sm:$0xff] }
 0x231   : > { %v997_v19 = vrot.slane %v996_v15, 4  ;;  %v1006_v9 = vrot.slane %v1005_v29, 4  ;;  %v1216_v52 = vrot.slane %v1215_v27, 1  ;;  %v1225_v42 = vrot.slane %v1224_v40, 1 }
 0x232   : > { %v1234_v37 = vrot.slane %v1233_v38, 1  ;;  %v1243_v62 = vrot.slane %v1242_v44, 1  ;;  %v980_v60 = vadd.f32 %v979_v58, %v978_v56  ;;  %v989_v45 = vadd.f32 %v988_v3, %v987_v6  ;;  %v10621_v58 = vld [vmem:[#allocation55_spill] sm:$0xff] }
 0x233   : > { %v998_v61 = vadd.f32 %v997_v19, %v996_v15  ;;  %v1007_v47 = vadd.f32 %v1006_v9, %v1005_v29  ;;  %v1217_v57 = vmax.f32 %v1215_v27, %v1216_v52  ;;  %v1226_v21 = vmax.f32 %v1224_v40, %v1225_v42 }
 0x234   : > { %v1235_v63 = vmax.f32 %v1233_v38, %v1234_v37  ;;  %v1244_v8 = vmax.f32 %v1242_v44, %v1243_v62  ;;  %v981_v2 = vrot.slane %v980_v60, 2  ;;  %v990_v11 = vrot.slane %v989_v45, 2  ;;  %v10620_v38 = vld [vmem:[#allocation54_spill] sm:$0xff] }
 0x235   : > { %v999_v48 = vrot.slane %v998_v61, 2  ;;  %v1008_v17 = vrot.slane %v1007_v47, 2  ;;  %v1476_v23 = vcombine.low %v1217_v57, %v1226_v21  ;;  %v1012_v59 = vadd.f32 %v10617_v4, %v10616_v25  ;;  %v10622_v37 = vld [vmem:[#allocation66_spill] sm:$0xff] }
 0x236   : > { %v1518_v1 = vcombine.low %v1235_v63, %v1244_v8  ;;  %v1021_v55 = vadd.f32 %v10619_v49, %v10618_v53  ;;  %v982_v56 = vadd.f32 %v981_v2, %v980_v60  ;;  %v991_v6 = vadd.f32 %v990_v11, %v989_v45  ;;  %v10624_v2 = vld [vmem:[#allocation34_spill] sm:$0xff]  ;;  %v10625_v11 = vld [vmem:[#allocation43_spill] sm:$0xff]  ;;  %v7405_v49 = vld [vmem:[%s7929_s20 + $0x148] sm:$0xff] }
 0x237   : > { %v1000_v15 = vadd.f32 %v999_v48, %v998_v61  ;;  %v1009_v29 = vadd.f32 %v1008_v17, %v1007_v47  ;;  %v1483_v27 = vrot.slane %v1476_v23, %v8161_v46  ;;  %v1013_v44 = vadd.f32 %v1012_v59, %v10620_v38  ;;  %v10623_v61 = vld [vmem:[#allocation67_spill] sm:$0xff]  ;;  %v10627_v23 = vld [vmem:[#allocation44_spill] sm:$0xff] }
 0x238   : > { %v1525_v40 = vrot.slane %v1518_v1, %v8161_v46  ;;  %v1022_v3 = vadd.f32 %v1021_v55, %v10621_v58  ;;  %v983_v57 = vrot.slane %v982_v56, 1  ;;  %v992_v63 = vrot.slane %v991_v6, 1  ;;  %v10626_v17 = vld [vmem:[#allocation35_spill] sm:$0xff] }
 0x239   : > { %v1001_v19 = vrot.slane %v1000_v15, 1  ;;  %v1010_v9 = vrot.slane %v1009_v29, 1  ;;  %v1490_v52 = vrot.slane %v1483_v27, %v8161_v46  ;;  %v1014_v62 = vadd.f32 %v1013_v44, %v10622_v37  ;;  %v10628_v44 = vld [vmem:[#allocation56_spill] sm:$0xff]  ;;  %v7410_v37 = vld [vmem:[%s7929_s20 + $0x190] sm:$0xff] }
 0x23a   : > { %v1532_v42 = vrot.slane %v1525_v40, %v8161_v46  ;;  %v1023_v60 = vadd.f32 %v1022_v3, %v10623_v61  ;;  %v8466_v45 = vadd.f32 %v983_v57, %v982_v56  ;;  %v8468_v47 = vadd.f32 %v992_v63, %v991_v6  ;;  %v10629_v57 = vld [vmem:[#allocation57_spill] sm:$0xff]  ;;  %v7412_v61 = vld [vmem:[%s7929_s20 + $0x1a0] sm:$0xff] }
 0x23b   : > { %v8470_v59 = vadd.f32 %v1001_v19, %v1000_v15  ;;  %v8472_v55 = vadd.f32 %v1010_v9, %v1009_v29  ;;  %1493 = vst.msk [vmem:[#allocation2 + $0x17] ss:$8 sm:$0x3] %vm8402_vm1, %v1490_v52  ;;  %v1015_v21 = vrot.slane %v1014_v62, 4  ;;  %v1030_v48 = vadd.f32 %v10625_v11, %v10624_v2 }
 0x23c   : > { %1535 = vst.msk [vmem:[#allocation2 + $0x30] ss:$8 sm:$0x3] %vm8402_vm1, %v1532_v42  ;;  %v1024_v8 = vrot.slane %v1023_v60, 4  ;;  %v1039_v1 = vadd.f32 %v10627_v23, %v10626_v17  ;;  %v1048_v56 = vadd.f32 %v8249_v28, %v8215_v10  ;;  %v1057_v6 = vadd.f32 %v8253_v30, %v8219_v12  ;;  %v10630_v12 = vld [vmem:[#allocation68_spill] sm:$0xff]  ;;  %v10632_v30 = vld [vmem:[#allocation74_spill] sm:$0xff] }
 0x23d   : > { %v1066_v15 = vadd.f32 %v8257_v32, %v8223_v14  ;;  %v1075_v29 = vadd.f32 %v8261_v34, %v8227_v16  ;;  %v1016_v27 = vadd.f32 %v1015_v21, %v1014_v62  ;;  %v1031_v3 = vadd.f32 %v1030_v48, %v10628_v44  ;;  %v10631_v62 = vld [vmem:[#allocation69_spill] sm:$0xff]  ;;  %v7404_v23 = vld [vmem:[%s7929_s20 + $0x140] sm:$0xff] }
 0x23e   : > { %v1025_v40 = vadd.f32 %v1024_v8, %v1023_v60  ;;  %v1040_v63 = vadd.f32 %v1039_v1, %v10629_v57  ;;  %v1049_v19 = vadd.f32 %v1048_v56, %v8299_v13  ;;  %v1058_v9 = vadd.f32 %v1057_v6, %v8303_v22  ;;  %v7406_v44 = vld [vmem:[%s7929_s20 + $0x150] sm:$0xff]  ;;  %v7408_v57 = vld [vmem:[%s7929_s20 + $0x180] sm:$0xff] }
 0x23f   : > { %v1067_v52 = vadd.f32 %v1066_v15, %v8307_v26  ;;  %v1076_v42 = vadd.f32 %v1075_v29, %v8311_v31  ;;  %v1017_v10 = vrot.slane %v1016_v27, 2  ;;  %v1032_v16 = vadd.f32 %v1031_v3, %v10630_v12  ;;  %v7372_v3 = vld [vmem:[%s7929_s20] sm:$0xff]  ;;  %v7373_v26 = vld [vmem:[%s7929_s20 + $0x8] sm:$0xff] }
 0x240   : > { %v1026_v14 = vrot.slane %v1025_v40, 2  ;;  %v1041_v60 = vadd.f32 %v1040_v63, %v10631_v62  ;;  %v1050_v21 = vadd.f32 %v1049_v19, %v8347_v24  ;;  %v1059_v8 = vadd.f32 %v1058_v9, %v8351_v33  ;;  %v7374_v9 = vld [vmem:[%s7929_s20 + $0x10] sm:$0xff]  ;;  %v7409_v12 = vld [vmem:[%s7929_s20 + $0x188] sm:$0xff] }
 0x241   : > { %v1068_v48 = vadd.f32 %v1067_v52, %v8355_v36  ;;  %v1077_v1 = vadd.f32 %v1076_v42, %v8359_v50  ;;  %v1018_v56 = vadd.f32 %v1017_v10, %v1016_v27  ;;  %v1033_v15 = vrot.slane %v1032_v16, 4  ;;  %v7375_v42 = vld [vmem:[%s7929_s20 + $0x18] sm:$0xff]  ;;  %v2404_v50 = vld [vmem:[#allocation9 + $0x2f0] sm:$0xff] }
 0x242   : > { %v1027_v6 = vadd.f32 %v1026_v14, %v1025_v40  ;;  %v1042_v29 = vrot.slane %v1041_v60, 4  ;;  %v2441_v32 = vld [vmem:[#allocation2 + $0x18] sm:$0xfe]  ;;  %v2440_v34 = vld [vmem:[#allocation2 + $0x10] sm:$0xfe]  ;;  %v8504_v63 = vmul.f32 %v7372_v3, %v10632_v30  ;;  %v8508_v19 = vmul.f32 %v7373_v26, %v10632_v30 }
 0x243   : > { %v2445_v28 = vld [vmem:[#allocation2 + $0x38] sm:$0x1]  ;;  %v8512_v52 = vmul.f32 %v7374_v9, %v10632_v30  ;;  %v8516_v10 = vmul.f32 %v7375_v42, %v10632_v30  ;;  %v2472_v14 = vrot.slane %v2441_v32, 1  ;;  %v2444_v40 = vld [vmem:[#allocation2 + $0x30] sm:$0x1]  ;;  %v2469_v13 = vrot.slane %v2440_v34, 1 }
 0x244   : > { %10633 = vst [vmem:[#allocation79_spill] sm:$0xff] %v8504_v63  ;;  %10634 = vst [vmem:[#allocation80_spill] sm:$0xff] %v8508_v19  ;;  %v2473_v27 = vrot.slane %v2445_v28, 1  ;;  %v1019_v31 = vrot.slane %v1018_v56, 1  ;;  %v2470_v22 = vrot.slane %v2444_v40, 1  ;;  %v1028_v3 = vrot.slane %v1027_v6, 1 }
 0x245   : > { %10635 = vst [vmem:[#allocation81_spill] sm:$0xff] %v8512_v52  ;;  %10636 = vst [vmem:[#allocation82_spill] sm:$0xff] %v8516_v10  ;;  %v1034_v36 = vadd.f32 %v1033_v15, %v1032_v16  ;;  %v1043_v24 = vadd.f32 %v1042_v29, %v1041_v60  ;;  %v1051_v2 = vrot.slane %v1050_v21, 4  ;;  %v1060_v9 = vrot.slane %v1059_v8, 4  ;;  %v2403_v28 = vld [vmem:[#allocation9 + $0x2e8] sm:$0xff]  ;;  %v2402_v16 = vld [vmem:[#allocation9 + $0x2e0] sm:$0xff] }
 0x246   : > { %v2474_v26 = vsel %vm2462_vm2, %v2472_v14, %v2473_v27  ;;  %v1020_v33 = vadd.f32 %v1019_v31, %v1018_v56  ;;  %v2471_v25 = vsel %vm2462_vm2, %v2469_v13, %v2470_v22  ;;  %v1029_v42 = vadd.f32 %v1028_v3, %v1027_v6  ;;  %v2401_v29 = vld [vmem:[#allocation9 + $0x2d8] sm:$0xff]  ;;  %v2400_v27 = vld [vmem:[#allocation9 + $0x2d0] sm:$0xff] }
 0x247   : > { %2774 = vmatprep.mubr.f32.mxu1 %v2474_v26  ;;  %v1035_v17 = vrot.slane %v1034_v36, 2  ;;  %v1044_v32 = vrot.slane %v1043_v24, 2  ;;  %v1052_v34 = vadd.f32 %v1051_v2, %v1050_v21  ;;  %v1061_v53 = vadd.f32 %v1060_v9, %v1059_v8 }
 0x248   : > { %2775 = vmatmul.mubr.f32.vlgmr.msra.gmra.mxu1 %v2471_v25  ;;  %v1069_v40 = vrot.slane %v1068_v48, 4  ;;  %v1078_v11 = vrot.slane %v1077_v1, 4  ;;  %v1121_v31 = vmul.f32 0.03125, %v8466_v45  ;;  %v1122_v56 = vmul.f32 0.03125, %v8468_v47  ;;  %v2398_v47 = vld [vmem:[#allocation9 + $0x2c0] sm:$0xff] }
 0x249   : > { %2865 = vmatpush1.msra.mxu1 %v2404_v50  ;;  %v1036_v60 = vadd.f32 %v1035_v17, %v1034_v36  ;;  %v1045_v15 = vadd.f32 %v1044_v32, %v1043_v24  ;;  %v1053_v14 = vrot.slane %v1052_v34, 2  ;;  %v1062_v13 = vrot.slane %v1061_v53, 2  ;;  %v2399_v36 = vld [vmem:[#allocation9 + $0x2c8] sm:$0xff] }
 0x24a   : > { %v1070_v22 = vadd.f32 %v1069_v40, %v1068_v48  ;;  %v1079_v6 = vadd.f32 %v1078_v11, %v1077_v1  ;;  %2866 = vmatprep.subr.mxu1 %v2403_v28  ;;  %v1123_v21 = vmul.f32 0.03125, %v8470_v59  ;;  %v1124_v8 = vmul.f32 0.03125, %v8472_v55  ;;  %v2397_v1 = vld [vmem:[#allocation9 + $0x2b8] sm:$0xff]  ;;  %v2396_v55 = vld [vmem:[#allocation9 + $0x2b0] sm:$0xff] }
 0x24b   : > { %v1037_v25 = vrot.slane %v1036_v60, 1  ;;  %v1046_v2 = vrot.slane %v1045_v15, 1  ;;  %2867 = vmatpush1.msra.mxu1 %v2402_v16  ;;  %v1054_v24 = vadd.f32 %v1053_v14, %v1052_v34  ;;  %v1063_v50 = vadd.f32 %v1062_v13, %v1061_v53  ;;  %v2395_v14 = vld [vmem:[#allocation9 + $0x2a8] sm:$0xff] }
 0x24c   : > { %v1071_v45 = vrot.slane %v1070_v22, 2  ;;  %v1080_v17 = vrot.slane %v1079_v6, 2  ;;  %2868 = vmatprep.subr.mxu1 %v2401_v29  ;;  %v1125_v48 = vmul.f32 0.03125, %v1020_v33  ;;  %v1126_v11 = vmul.f32 0.03125, %v1029_v42  ;;  %v2394_v33 = vld [vmem:[#allocation9 + $0x2a0] sm:$0xff] }
 0x24d   : > { %v1038_v3 = vadd.f32 %v1037_v25, %v1036_v60  ;;  %v1047_v26 = vadd.f32 %v1046_v2, %v1045_v15  ;;  %2869 = vmatpush1.msra.mxu1 %v2400_v27  ;;  %v1055_v9 = vrot.slane %v1054_v24, 1  ;;  %v1064_v32 = vrot.slane %v1063_v50, 1  ;;  %v2393_v25 = vld [vmem:[#allocation9 + $0x298] sm:$0xff] }
 0x24e   : > { %v1072_v28 = vadd.f32 %v1071_v45, %v1070_v22  ;;  %v1081_v59 = vadd.f32 %v1080_v17, %v1079_v6  ;;  %2870 = vmatprep.subr.mxu1 %v2399_v36  ;;  %v1283_v34 = vcombine.low %v1121_v31, %v1122_v56  ;;  %v1329_v53 = vcombine.low %v1123_v21, %v1124_v8  ;;  %v2392_v8 = vld [vmem:[#allocation9 + $0x290] sm:$0xff]  ;;  %v2391_v17 = vld [vmem:[#allocation9 + $0x288] sm:$0xff] }
 0x24f   : > { %v1127_v40 = vmul.f32 0.03125, %v1038_v3  ;;  %v1128_v16 = vmul.f32 0.03125, %v1047_v26  ;;  %2871 = vmatpush1.msra.mxu1 %v2398_v47  ;;  %v1056_v29 = vadd.f32 %v1055_v9, %v1054_v24  ;;  %v1065_v13 = vadd.f32 %v1064_v32, %v1063_v50 }
 0x250   : > { %v1073_v60 = vrot.slane %v1072_v28, 1  ;;  %v1082_v15 = vrot.slane %v1081_v59, 1  ;;  %2872 = vmatprep.subr.mxu1 %v2397_v1  ;;  %v1290_v42 = vrot.slane %v1283_v34, %v8161_v46  ;;  %v1336_v27 = vrot.slane %v1329_v53, %v8161_v46  ;;  %v2390_v1 = vld [vmem:[#allocation9 + $0x280] sm:$0xff] }
 0x251   : > { %v1371_v22 = vcombine.low %v1125_v48, %v1126_v11  ;;  %v1413_v6 = vcombine.low %v1127_v40, %v1128_v16  ;;  %2873 = vmatpush1.msra.mxu1 %v2396_v55  ;;  %v1129_v56 = vmul.f32 0.03125, %v1056_v29  ;;  %v1130_v21 = vmul.f32 0.03125, %v1065_v13  ;;  %v7376_v48 = vld [vmem:[%s7929_s20 + $0x20] sm:$0xff]  ;;  %v7378_v55 = vld [vmem:[%s7929_s20 + $0x30] sm:$0xff]  ;;  %v2389_v16 = vld [vmem:[#allocation9 + $0x278] sm:$0xff] }
 0x252   : > { %v1074_v2 = vadd.f32 %v1073_v60, %v1072_v28  ;;  %v1083_v31 = vadd.f32 %v1082_v15, %v1081_v59  ;;  %2874 = vmatprep.subr.mxu1 %v2395_v14  ;;  %v1297_v36 = vrot.slane %v1290_v42, %v8161_v46  ;;  %v1343_v24 = vrot.slane %v1336_v27, %v8161_v46  ;;  %v7377_v28 = vld [vmem:[%s7929_s20 + $0x28] sm:$0xff]  ;;  %v7379_v14 = vld [vmem:[%s7929_s20 + $0x38] sm:$0xff]  ;;  %v7380_v13 = vld [vmem:[%s7929_s20 + $0x40] sm:$0xff] }
 0x253   : > { %v1378_v50 = vrot.slane %v1371_v22, %v8161_v46  ;;  %v1420_v45 = vrot.slane %v1413_v6, %v8161_v46  ;;  %2875 = vmatpush1.msra.mxu1 %v2394_v33  ;;  %v1455_v26 = vcombine.low %v1129_v56, %v1130_v21  ;;  %v8532_v11 = vmul.f32 %v7376_v48, %v10632_v30  ;;  %v2388_v15 = vld [vmem:[#allocation9 + $0x270] sm:$0xff]  ;;  %v7381_v33 = vld [vmem:[%s7929_s20 + $0x48] sm:$0xff]  ;;  %v7383_v6 = vld [vmem:[%s7929_s20 + $0x58] sm:$0xff] }
 0x254   : > { %v1131_v47 = vmul.f32 0.03125, %v1074_v2  ;;  %v1132_v3 = vmul.f32 0.03125, %v1083_v31  ;;  %2876 = vmatprep.subr.mxu1 %v2393_v25  ;;  %1304 = vst.msk [vmem:[#allocation2 + $0x3] ss:$8 sm:$0x3] %vm8402_vm1, %v1297_v36  ;;  %v8542_v59 = vmul.f32 %v7377_v28, %v10632_v30  ;;  %v8546_v40 = vmul.f32 %v7378_v55, %v10632_v30  ;;  %v7382_v27 = vld [vmem:[%s7929_s20 + $0x50] sm:$0xff] }
 0x255   : > { %10637 = vst [vmem:[#allocation83_spill] sm:$0xff] %v8532_v11  ;;  %1346 = vst.msk [vmem:[#allocation2 + $0x4] ss:$8 sm:$0x3] %vm8402_vm1, %v1343_v24  ;;  %v1385_v9 = vrot.slane %v1378_v50, %v8161_v46  ;;  %v1427_v32 = vrot.slane %v1420_v45, %v8161_v46  ;;  %2877 = vmatpush1.msra.mxu1 %v2392_v8  ;;  %v1462_v34 = vrot.slane %v1455_v26, %v8161_v46  ;;  %v7384_v2 = vld [vmem:[%s7929_s20 + $0x80] sm:$0xff]  ;;  %v2387_v21 = vld [vmem:[#allocation9 + $0x268] sm:$0xff] }
 0x256   : > { %10638 = vst [vmem:[#allocation84_spill] sm:$0xff] %v8542_v59  ;;  %10639 = vst [vmem:[#allocation85_spill] sm:$0xff] %v8546_v40  ;;  %v1497_v53 = vcombine.low %v1131_v47, %v1132_v3  ;;  %v8551_v29 = vmul.f32 %v7379_v14, %v10632_v30  ;;  %v8555_v60 = vmul.f32 %v7380_v13, %v10632_v30  ;;  %2878 = vmatprep.subr.mxu1 %v2391_v17  ;;  %v10645_v31 = vld [vmem:[#allocation75_spill] sm:$0xff]  ;;  %v7385_v24 = vld [vmem:[%s7929_s20 + $0x88] sm:$0xff] }
 0x257   : > { %1388 = vst.msk [vmem:[#allocation2 + $0x5] ss:$8 sm:$0x3] %vm8402_vm1, %v1385_v9  ;;  %1430 = vst.msk [vmem:[#allocation2 + $0x6] ss:$8 sm:$0x3] %vm8402_vm1, %v1427_v32  ;;  %v8563_v42 = vmul.f32 %v7381_v33, %v10632_v30  ;;  %v8567_v22 = vmul.f32 %v7382_v27, %v10632_v30  ;;  %v8571_v25 = vmul.f32 %v7383_v6, %v10632_v30  ;;  %2879 = vmatpush1.msra.mxu1 %v2390_v1 }
 0x258   : > { %10640 = vst [vmem:[#allocation86_spill] sm:$0xff] %v8551_v29  ;;  %10641 = vst [vmem:[#allocation87_spill] sm:$0xff] %v8555_v60  ;;  %v8575_v56 = vmul.f32 %v7384_v2, %v10645_v31  ;;  %v1469_v8 = vrot.slane %v1462_v34, %v8161_v46  ;;  %v1504_v36 = vrot.slane %v1497_v53, %v8161_v46  ;;  %v7386_v45 = vld [vmem:[%s7929_s20 + $0x90] sm:$0xff]  ;;  %2880 = vmatprep.subr.mxu1 %v2389_v16  ;;  %v2386_v47 = vld [vmem:[#allocation9 + $0x260] sm:$0xff] }
 0x259   : > { %10642 = vst [vmem:[#allocation88_spill] sm:$0xff] %v8563_v42  ;;  %10643 = vst [vmem:[#allocation89_spill] sm:$0xff] %v8567_v22  ;;  %v8581_v50 = vmul.f32 %v7385_v24, %v10645_v31  ;;  %v8585_v17 = vmul.f32 %v7386_v45, %v10645_v31  ;;  %v7387_v3 = vld [vmem:[%s7929_s20 + $0x98] sm:$0xff]  ;;  %v7388_v48 = vld [vmem:[%s7929_s20 + $0xa0] sm:$0xff]  ;;  %2881 = vmatpush1.msra.mxu1 %v2388_v15 }
 0x25a   : > { %10644 = vst [vmem:[#allocation90_spill] sm:$0xff] %v8571_v25  ;;  %10646 = vst [vmem:[#allocation91_spill] sm:$0xff] %v8575_v56  ;;  %v8589_v26 = vmul.f32 %v7387_v3, %v10645_v31  ;;  %v8593_v1 = vmul.f32 %v7388_v48, %v10645_v31  ;;  %v7389_v9 = vld [vmem:[%s7929_s20 + $0xa8] sm:$0xff]  ;;  %v7390_v28 = vld [vmem:[%s7929_s20 + $0xb0] sm:$0xff]  ;;  %v1511_v34 = vrot.slane %v1504_v36, %v8161_v46  ;;  %2882 = vmatprep.subr.mxu1 %v2387_v21 }
 0x25b   : > { %10647 = vst [vmem:[#allocation92_spill] sm:$0xff] %v8581_v50  ;;  %10648 = vst [vmem:[#allocation93_spill] sm:$0xff] %v8585_v17  ;;  %v8597_v32 = vmul.f32 %v7389_v9, %v10645_v31  ;;  %v8601_v55 = vmul.f32 %v7390_v28, %v10645_v31  ;;  %v2385_v16 = vld [vmem:[#allocation9 + $0x258] sm:$0xff]  ;;  %v7392_v13 = vld [vmem:[%s7929_s20 + $0xc0] sm:$0xff]  ;;  %2883 = vmatpush1.msra.mxu1 %v2386_v47  ;;  %v1811_v30 = vmax.f32 %v8512_v52, %v8585_v17 }
 0x25c   : > { %10649 = vst [vmem:[#allocation94_spill] sm:$0xff] %v8589_v26  ;;  %10650 = vst [vmem:[#allocation95_spill] sm:$0xff] %v8593_v1  ;;  %v7391_v53 = vld [vmem:[%s7929_s20 + $0xb8] sm:$0xff]  ;;  %v8612_v33 = vmul.f32 %v7392_v13, %v10645_v31  ;;  %v7393_v27 = vld [vmem:[%s7929_s20 + $0xc8] sm:$0xff]  ;;  %2884 = vmatprep.subr.mxu1 %v2385_v16  ;;  %v8666_v16 = vmul.f32 %v7405_v49, %v8397_v18 }
 0x25d   : > { %10651 = vst [vmem:[#allocation96_spill] sm:$0xff] %v8597_v32  ;;  %10652 = vst [vmem:[#allocation97_spill] sm:$0xff] %v8601_v55  ;;  %v8608_v14 = vmul.f32 %v7391_v53, %v10645_v31  ;;  %v8616_v15 = vmul.f32 %v7393_v27, %v10645_v31  ;;  %v2384_v6 = vld [vmem:[#allocation9 + $0x250] sm:$0xff]  ;;  %v7395_v36 = vld [vmem:[%s7929_s20 + $0xd8] sm:$0xff] }
 0x25e   : > { %1472 = vst.msk [vmem:[#allocation2 + $0x7] ss:$8 sm:$0x3] %vm8402_vm1, %v1469_v8  ;;  %10654 = vst [vmem:[#allocation99_spill] sm:$0xff] %v8612_v33  ;;  %v7394_v2 = vld [vmem:[%s7929_s20 + $0xd0] sm:$0xff]  ;;  %v8624_v24 = vmul.f32 %v7395_v36, %v10645_v31  ;;  %v7396_v45 = vld [vmem:[%s7929_s20 + $0x100] sm:$0xff]  ;;  %2885 = vmatpush1.msra.mxu1 %v2384_v6 }
 0x25f   : > { %10653 = vst [vmem:[#allocation98_spill] sm:$0xff] %v8608_v14  ;;  %10655 = vst [vmem:[#allocation100_spill] sm:$0xff] %v8616_v15  ;;  %v8620_v8 = vmul.f32 %v7394_v2, %v10645_v31  ;;  %v8628_v3 = vmul.f32 %v7396_v45, %v8397_v18  ;;  %v7397_v48 = vld [vmem:[%s7929_s20 + $0x108] sm:$0xff]  ;;  %v7398_v28 = vld [vmem:[%s7929_s20 + $0x110] sm:$0xff] }
 0x260   : > { %10657 = vst [vmem:[#allocation102_spill] sm:$0xff] %v8624_v24  ;;  %v8632_v9 = vmul.f32 %v7397_v48, %v8397_v18  ;;  %v2383_v21 = vld [vmem:[#allocation9 + $0x248] sm:$0xff]  ;;  %1514 = vst.msk [vmem:[#allocation2 + $0x20] ss:$8 sm:$0x3] %vm8402_vm1, %v1511_v34  ;;  %v8638_v53 = vmul.f32 %v7398_v28, %v8397_v18  ;;  %v7399_v13 = vld [vmem:[%s7929_s20 + $0x118] sm:$0xff] }
 0x261   : > { %10656 = vst [vmem:[#allocation101_spill] sm:$0xff] %v8620_v8  ;;  %10658 = vst [vmem:[#allocation103_spill] sm:$0xff] %v8628_v3  ;;  %v8642_v27 = vmul.f32 %v7399_v13, %v8397_v18  ;;  %v7400_v2 = vld [vmem:[%s7929_s20 + $0x120] sm:$0xff]  ;;  %v7401_v47 = vld [vmem:[%s7929_s20 + $0x128] sm:$0xff]  ;;  %2886 = vmatprep.subr.mxu1 %v2383_v21 }
 0x262   : > { %10659 = vst [vmem:[#allocation104_spill] sm:$0xff] %v8632_v9  ;;  %10660 = vst [vmem:[#allocation105_spill] sm:$0xff] %v8638_v53  ;;  %v8646_v36 = vmul.f32 %v7400_v2, %v8397_v18  ;;  %v8650_v45 = vmul.f32 %v7401_v47, %v8397_v18  ;;  %v2382_v34 = vld [vmem:[#allocation9 + $0x240] sm:$0xff]  ;;  %v7402_v48 = vld [vmem:[%s7929_s20 + $0x130] sm:$0xff]  ;;  %v8662_v2 = vmul.f32 %v7404_v23, %v8397_v18 }
 0x263   : > { %10661 = vst [vmem:[#allocation106_spill] sm:$0xff] %v8642_v27  ;;  %v8654_v28 = vmul.f32 %v7402_v48, %v8397_v18  ;;  %v7403_v13 = vld [vmem:[%s7929_s20 + $0x138] sm:$0xff]  ;;  %10667 = vst [vmem:[#allocation112_spill] sm:$0xff] %v8666_v16  ;;  %v8670_v48 = vmul.f32 %v7406_v44, %v8397_v18  ;;  %v10670_v23 = vld [vmem:[#allocation77_spill] sm:$0xff]  ;;  %2887 = vmatpush1.msra.mxu1 %v2382_v34 }
 0x264   : > { %10662 = vst [vmem:[#allocation107_spill] sm:$0xff] %v8646_v36  ;;  %10663 = vst [vmem:[#allocation108_spill] sm:$0xff] %v8650_v45  ;;  %v8658_v4 = vmul.f32 %v7403_v13, %v8397_v18  ;;  %v2381_v47 = vld [vmem:[#allocation9 + $0x238] sm:$0xff]  ;;  %v8678_v58 = vmul.f32 %v7408_v57, %v10670_v23  ;;  %v8682_v49 = vmul.f32 %v7409_v12, %v10670_v23  ;;  %v2380_v6 = vld [vmem:[#allocation9 + $0x230] sm:$0xff] }
 0x265   : > { %10664 = vst [vmem:[#allocation109_spill] sm:$0xff] %v8654_v28  ;;  %10666 = vst [vmem:[#allocation111_spill] sm:$0xff] %v8662_v2  ;;  %v7407_v13 = vld [vmem:[%s7929_s20 + $0x158] sm:$0xff]  ;;  %v8686_v44 = vmul.f32 %v7410_v37, %v10670_v23  ;;  %v8694_v57 = vmul.f32 %v7412_v61, %v10670_v23  ;;  %v8698_v12 = vmul.f32 %v7413_v51, %v10670_v23  ;;  %v2379_v21 = vld [vmem:[#allocation9 + $0x228] sm:$0xff]  ;;  %2888 = vmatprep.subr.mxu1 %v2381_v47 }
 0x266   : > { %10665 = vst [vmem:[#allocation110_spill] sm:$0xff] %v8658_v4  ;;  %10668 = vst [vmem:[#allocation113_spill] sm:$0xff] %v8670_v48  ;;  %v8674_v38 = vmul.f32 %v7407_v13, %v8397_v18  ;;  %v7411_v13 = vld [vmem:[%s7929_s20 + $0x198] sm:$0xff]  ;;  %v8702_v37 = vmul.f32 %v7414_v43, %v10670_v23  ;;  %v8710_v61 = vmul.f32 %v7416_v54, %v10670_v23  ;;  %v2378_v51 = vld [vmem:[#allocation9 + $0x220] sm:$0xff]  ;;  %2889 = vmatpush1.msra.mxu1 %v2380_v6 }
 0x267   : > { %10671 = vst [vmem:[#allocation115_spill] sm:$0xff] %v8678_v58  ;;  %10672 = vst [vmem:[#allocation116_spill] sm:$0xff] %v8682_v49  ;;  %v8690_v62 = vmul.f32 %v7411_v13, %v10670_v23  ;;  %v8706_v13 = vmul.f32 %v7415_v39, %v10670_v23  ;;  %v8714_v7 = vmul.f32 %v7417_v41, %v10670_v23  ;;  %v2439_v34 = vld [vmem:[#allocation2 + $0x8] sm:$0xfe]  ;;  %v2438_v35 = vld [vmem:[#allocation2] sm:$0xfe]  ;;  %2890 = vmatprep.subr.mxu1 %v2379_v21 }
 0x268   : > { %10669 = vst [vmem:[#allocation114_spill] sm:$0xff] %v8674_v38  ;;  %10673 = vst [vmem:[#allocation117_spill] sm:$0xff] %v8686_v44  ;;  %v8718_v43 = vmul.f32 %v7418_v20, %v10670_v23  ;;  %v8722_v39 = vmul.f32 %v7419_v0, %v10670_v23  ;;  %v1793_v54 = vmax.f32 %v8504_v63, %v8575_v56  ;;  %v2377_v41 = vld [vmem:[#allocation9 + $0x218] sm:$0xff]  ;;  %v2466_v47 = vrot.slane %v2439_v34, 1  ;;  %v2443_v0 = vld [vmem:[#allocation2 + $0x28] sm:$0x1] }
 0x269   : > { %10674 = vst [vmem:[#allocation118_spill] sm:$0xff] %v8690_v62  ;;  %10675 = vst [vmem:[#allocation119_spill] sm:$0xff] %v8694_v57  ;;  %v1802_v18 = vmax.f32 %v8508_v19, %v8581_v50  ;;  %v2463_v31 = vrot.slane %v2438_v35, 1  ;;  %v1820_v20 = vmax.f32 %v8516_v10, %v8589_v26  ;;  %v2442_v23 = vld [vmem:[#allocation2 + $0x20] sm:$0x1]  ;;  %v1829_v6 = vmax.f32 %v8532_v11, %v8593_v1  ;;  %v2375_v34 = vld [vmem:[#allocation9 + $0x208] sm:$0xff] }
 0x26a   : > { %10676 = vst [vmem:[#allocation120_spill] sm:$0xff] %v8698_v12  ;;  %10677 = vst [vmem:[#allocation121_spill] sm:$0xff] %v8702_v37  ;;  %v1838_v35 = vmax.f32 %v8542_v59, %v8597_v32  ;;  %2891 = vmatpush1.msra.mxu1 %v2378_v51  ;;  %v2467_v17 = vrot.slane %v2443_v0, 1  ;;  %v2464_v52 = vrot.slane %v2442_v23, 1  ;;  %v1812_v26 = vmax.f32 %v1811_v30, %v8638_v53  ;;  %v2374_v10 = vld [vmem:[#allocation9 + $0x200] sm:$0xff]  ;;  %v2437_v32 = vld [vmem:[#allocation9 + $0x3f8] sm:$0xff] }
 0x26b   : > { %10678 = vst [vmem:[#allocation122_spill] sm:$0xff] %v8706_v13  ;;  %10679 = vst [vmem:[#allocation123_spill] sm:$0xff] %v8710_v61  ;;  %v1803_v56 = vmax.f32 %v1802_v18, %v8632_v9  ;;  %v1821_v21 = vmax.f32 %v1820_v20, %v8642_v27  ;;  %2892 = vmatprep.subr.mxu1 %v2377_v41  ;;  %v1830_v9 = vmax.f32 %v1829_v6, %v8646_v36  ;;  %v2340_v0 = vld [vmem:[#allocation9 + $0xf0] sm:$0xff] }
 0x26c   : > { %10680 = vst [vmem:[#allocation124_spill] sm:$0xff] %v8714_v7  ;;  %10681 = vst [vmem:[#allocation125_spill] sm:$0xff] %v8718_v43  ;;  %v1839_v1 = vmax.f32 %v1838_v35, %v8650_v45  ;;  %2893 = vmatpush1.msra.mxu1 %v2376_v5  ;;  %v2468_v51 = vsel %vm2462_vm2, %v2466_v47, %v2467_v17  ;;  %v2465_v23 = vsel %vm2462_vm2, %v2463_v31, %v2464_v52  ;;  %v2436_v20 = vld [vmem:[#allocation9 + $0x3f0] sm:$0xff]  ;;  %v2338_v17 = vld [vmem:[#allocation9 + $0xe0] sm:$0xff] }
 0x26d   : > { %10682 = vst [vmem:[#allocation126_spill] sm:$0xff] %v8722_v39  ;;  %v1794_v39 = vmax.f32 %v1793_v54, %v8628_v3  ;;  %v1804_v18 = vmax.f32 %v1803_v56, %v8682_v49  ;;  %v1813_v30 = vmax.f32 %v1812_v26, %v8686_v44  ;;  %v1822_v41 = vmax.f32 %v1821_v21, %v8690_v62  ;;  %v2435_v35 = vld [vmem:[#allocation9 + $0x3e8] sm:$0xff] }
 0x26e   : > { %2894 = vmatprep.subr.mxu1 %v2375_v34  ;;  %2697 = vmatprep.mubr.f32.mxu0 %v2468_v51  ;;  %v1831_v6 = vmax.f32 %v1830_v9, %v8694_v57  ;;  %v1840_v5 = vmax.f32 %v1839_v1, %v8698_v12  ;;  %v1847_v31 = vmax.f32 %v8546_v40, %v8601_v55  ;;  %v2337_v34 = vld [vmem:[#allocation9 + $0xd8] sm:$0xff]  ;;  %v2336_v1 = vld [vmem:[#allocation9 + $0xd0] sm:$0xff] }
 0x26f   : > { %v1795_v54 = vmax.f32 %v1794_v39, %v8678_v58  ;;  %v2339_v39 = vld [vmem:[#allocation9 + $0xe8] sm:$0xff]  ;;  %v1805_v59 = vrot.slane %v1804_v18, 4  ;;  %2895 = vmatpush1.msra.mxu1 %v2374_v10  ;;  %2698 = vmatmul.mubr.f32.vlgmr.msra.gmra.mxu0 %v2465_v23  ;;  %v1814_v47 = vrot.slane %v1813_v30, 4  ;;  %v1823_v52 = vrot.slane %v1822_v41, 4  ;;  %v2434_v10 = vld [vmem:[#allocation9 + $0x3e0] sm:$0xff]  ;;  %v2433_v40 = vld [vmem:[#allocation9 + $0x3d8] sm:$0xff] }
 0x270   : > { %v1856_v26 = vmax.f32 %v8551_v29, %v8608_v14  ;;  %2896 = vmatprep.subr.mxu1 %v2437_v32  ;;  %2788 = vmatpush1.msra.mxu0 %v2340_v0  ;;  %v1832_v9 = vrot.slane %v1831_v6, 4  ;;  %v1841_v57 = vrot.slane %v1840_v5, 4  ;;  %v1848_v45 = vmax.f32 %v1847_v31, %v8654_v28 }
 0x271   : > { %v1796_v56 = vrot.slane %v1795_v54, 4  ;;  %v1806_v51 = vmax.f32 %v1804_v18, %v1805_v59  ;;  %2897 = vmatpush2.msra.mxu1 %v2436_v20  ;;  %2789 = vmatprep.subr.mxu0 %v2339_v39  ;;  %v1815_v23 = vmax.f32 %v1813_v30, %v1814_v47  ;;  %v1824_v12 = vmax.f32 %v1822_v41, %v1823_v52  ;;  %v2432_v59 = vld [vmem:[#allocation9 + $0x3d0] sm:$0xff]  ;;  %v2334_v41 = vld [vmem:[#allocation9 + $0xc0] sm:$0xff] }
 0x272   : > { %v1857_v55 = vmax.f32 %v1856_v26, %v8658_v4  ;;  %2790 = vmatpush1.msra.mxu0 %v2338_v17  ;;  %v1833_v0 = vmax.f32 %v1831_v6, %v1832_v9  ;;  %v1842_v29 = vmax.f32 %v1840_v5, %v1841_v57  ;;  %2898 = vmatprep.subr.mxu1 %v2435_v35  ;;  %v2333_v6 = vld [vmem:[#allocation9 + $0xb8] sm:$0xff]  ;;  %v2430_v57 = vld [vmem:[#allocation9 + $0x3c0] sm:$0xff]  ;;  %v2332_v9 = vld [vmem:[#allocation9 + $0xb0] sm:$0xff] }
 0x273   : > { %v1797_v21 = vmax.f32 %v1795_v54, %v1796_v56  ;;  %v1807_v14 = vrot.slane %v1806_v51, 2  ;;  %v2335_v54 = vld [vmem:[#allocation9 + $0xc8] sm:$0xff]  ;;  %2791 = vmatprep.subr.mxu0 %v2337_v34  ;;  %v1816_v18 = vrot.slane %v1815_v23, 2  ;;  %v1825_v20 = vrot.slane %v1824_v12, 2  ;;  %2899 = vmatpush2.msra.mxu1 %v2434_v10 }
 0x274   : > { %v1849_v39 = vmax.f32 %v1848_v45, %v8702_v37  ;;  %v1858_v30 = vmax.f32 %v1857_v55, %v8706_v13  ;;  %v2431_v56 = vld [vmem:[#allocation9 + $0x3c8] sm:$0xff]  ;;  %2792 = vmatpush1.msra.mxu0 %v2336_v1  ;;  %v1834_v52 = vrot.slane %v1833_v0, 2  ;;  %v1843_v31 = vrot.slane %v1842_v29, 2  ;;  %2900 = vmatprep.subr.mxu1 %v2433_v40  ;;  %v2429_v45 = vld [vmem:[#allocation9 + $0x3b8] sm:$0xff] }
 0x275   : > { %v1798_v32 = vrot.slane %v1797_v21, 2  ;;  %v1808_v17 = vmax.f32 %v1806_v51, %v1807_v14  ;;  %v1817_v5 = vmax.f32 %v1815_v23, %v1816_v18  ;;  %v1826_v26 = vmax.f32 %v1824_v12, %v1825_v20  ;;  %2793 = vmatprep.subr.mxu0 %v2335_v54  ;;  %2901 = vmatpush2.msra.mxu1 %v2432_v59  ;;  %v2428_v14 = vld [vmem:[#allocation9 + $0x3b0] sm:$0xff]  ;;  %v2330_v12 = vld [vmem:[#allocation9 + $0xa0] sm:$0xff]  ;;  %v2329_v20 = vld [vmem:[#allocation9 + $0x98] sm:$0xff] }
 0x276   : > { %v1850_v35 = vrot.slane %v1849_v39, 4  ;;  %v1859_v34 = vrot.slane %v1858_v30, 4  ;;  %v1835_v10 = vmax.f32 %v1833_v0, %v1834_v52  ;;  %v1844_v37 = vmax.f32 %v1842_v29, %v1843_v31  ;;  %2794 = vmatpush1.msra.mxu0 %v2334_v41  ;;  %2902 = vmatprep.subr.mxu1 %v2431_v56  ;;  %v2328_v56 = vld [vmem:[#allocation9 + $0x90] sm:$0xff] }
 0x277   : > { %v1799_v47 = vmax.f32 %v1797_v21, %v1798_v32  ;;  %v1809_v13 = vrot.slane %v1808_v17, 1  ;;  %v2331_v21 = vld [vmem:[#allocation9 + $0xa8] sm:$0xff]  ;;  %v1818_v51 = vrot.slane %v1817_v5, 1  ;;  %v1827_v1 = vrot.slane %v1826_v26, 1  ;;  %2795 = vmatprep.subr.mxu0 %v2333_v6  ;;  %2903 = vmatpush2.msra.mxu1 %v2430_v57 }
 0x278   : > { %v1851_v40 = vmax.f32 %v1849_v39, %v1850_v35  ;;  %v1860_v32 = vmax.f32 %v1858_v30, %v1859_v34  ;;  %v1836_v18 = vrot.slane %v1835_v10, 1  ;;  %v1845_v59 = vrot.slane %v1844_v37, 1  ;;  %2796 = vmatpush1.msra.mxu0 %v2332_v9  ;;  %2904 = vmatprep.subr.mxu1 %v2429_v45 }
 0x279   : > { %v1800_v55 = vrot.slane %v1799_v47, 1  ;;  %v1810_v54 = vmax.f32 %v1808_v17, %v1809_v13  ;;  %v1819_v0 = vmax.f32 %v1817_v5, %v1818_v51  ;;  %v1828_v29 = vmax.f32 %v1826_v26, %v1827_v1  ;;  %2797 = vmatprep.subr.mxu0 %v2331_v21  ;;  %2905 = vmatpush2.msra.mxu1 %v2428_v14  ;;  %v2427_v17 = vld [vmem:[#allocation9 + $0x3a8] sm:$0xff]  ;;  %v2324_v1 = vld [vmem:[#allocation9 + $0x70] sm:$0xff] }
 0x27a   : > { %v1852_v41 = vrot.slane %v1851_v40, 2  ;;  %v1861_v52 = vrot.slane %v1860_v32, 2  ;;  %v8758_v31 = vmax.f32 %v1835_v10, %v1836_v18  ;;  %v8760_v39 = vmax.f32 %v1844_v37, %v1845_v59  ;;  %2798 = vmatpush1.msra.mxu0 %v2330_v12  ;;  %v2326_v37 = vld [vmem:[#allocation9 + $0x80] sm:$0xff]  ;;  %2906 = vmatprep.subr.mxu1 %v2427_v17  ;;  %v2425_v59 = vld [vmem:[#allocation9 + $0x398] sm:$0xff] }
 0x27b   : > { %v1801_v23 = vmax.f32 %v1799_v47, %v1800_v55  ;;  %v1865_v30 = vmax.f32 %v8555_v60, %v8612_v33  ;;  %v1874_v13 = vmax.f32 %v8563_v42, %v8616_v15  ;;  %v2327_v47 = vld [vmem:[#allocation9 + $0x88] sm:$0xff]  ;;  %v1883_v5 = vmax.f32 %v8567_v22, %v8620_v8  ;;  %2799 = vmatprep.subr.mxu0 %v2329_v20  ;;  %v2325_v55 = vld [vmem:[#allocation9 + $0x78] sm:$0xff] }
 0x27c   : > { %v1853_v6 = vmax.f32 %v1851_v40, %v1852_v41  ;;  %v1862_v57 = vmax.f32 %v1860_v32, %v1861_v52  ;;  %v1892_v26 = vmax.f32 %v8571_v25, %v8624_v24  ;;  %v2002_v45 = vcombine.low %v1819_v0, %v1828_v29  ;;  %2800 = vmatpush1.msra.mxu0 %v2328_v56  ;;  %v2426_v40 = vld [vmem:[#allocation9 + $0x3a0] sm:$0xff]  ;;  %v10683_v41 = vld [vmem:[#allocation126_spill] sm:$0xff] }
 0x27d   : > { %v1866_v35 = vmax.f32 %v1865_v30, %v8662_v2  ;;  %v1875_v34 = vmax.f32 %v1874_v13, %v8666_v16  ;;  %v1960_v9 = vcombine.low %v1801_v23, %v1810_v54  ;;  %v1884_v14 = vmax.f32 %v1883_v5, %v8670_v48  ;;  %2801 = vmatprep.subr.mxu0 %v2327_v47  ;;  %v2323_v54 = vld [vmem:[#allocation9 + $0x68] sm:$0xff]  ;;  %v8780_v56 = vld [vmem:[#allocation2 + $0x38] sm:$0x80]  ;;  %v2322_v30 = vld [vmem:[#allocation9 + $0x60] sm:$0xff] }
 0x27e   : > { %v1854_v10 = vrot.slane %v1853_v6, 1  ;;  %v1863_v21 = vrot.slane %v1862_v57, 1  ;;  %v1893_v51 = vmax.f32 %v1892_v26, %v8674_v38  ;;  %v2009_v23 = vrot.slane %v2002_v45, %v8161_v46  ;;  %2802 = vmatpush1.msra.mxu0 %v2326_v37  ;;  %v2424_v13 = vld [vmem:[#allocation9 + $0x390] sm:$0xff]  ;;  %v2321_v37 = vld [vmem:[#allocation9 + $0x58] sm:$0xff]  ;;  %2907 = vmatpush2.msra.mxu1 %v2426_v40 }
 0x27f   : > { %v1867_v32 = vmax.f32 %v1866_v35, %v8710_v61  ;;  %v1876_v12 = vmax.f32 %v1875_v34, %v8714_v7  ;;  %v1967_v18 = vrot.slane %v1960_v9, %v8161_v46  ;;  %v1885_v29 = vmax.f32 %v1884_v14, %v8718_v43  ;;  %2803 = vmatprep.subr.mxu0 %v2325_v55  ;;  %v8786_v9 = vld [vmem:[#allocation2 + $0x30] sm:$0x80]  ;;  %v2423_v55 = vld [vmem:[#allocation9 + $0x388] sm:$0xff] }
 0x280   : > { %v1855_v20 = vmax.f32 %v1853_v6, %v1854_v10  ;;  %v1864_v0 = vmax.f32 %v1862_v57, %v1863_v21  ;;  %v1894_v52 = vmax.f32 %v1893_v51, %v10683_v41  ;;  %v2016_v26 = vrot.slane %v2009_v23, %v8161_v46  ;;  %2804 = vmatpush1.msra.mxu0 %v2324_v1  ;;  %v2320_v45 = vld [vmem:[#allocation9 + $0x50] sm:$0xff]  ;;  %v2319_v1 = vld [vmem:[#allocation9 + $0x48] sm:$0xff] }
 0x281   : > { %v1868_v47 = vrot.slane %v1867_v32, 4  ;;  %v1877_v17 = vrot.slane %v1876_v12, 4  ;;  %v1974_v5 = vrot.slane %v1967_v18, %v8161_v46  ;;  %v1886_v6 = vrot.slane %v1885_v29, 4  ;;  %2805 = vmatprep.subr.mxu0 %v2323_v54  ;;  %2908 = vmatprep.subr.mxu1 %v2425_v59 }
 0x282   : > { %v1895_v57 = vrot.slane %v1894_v52, 4  ;;  %v2044_v35 = vcombine.low %v8758_v31, %v8760_v39  ;;  %v2086_v34 = vcombine.low %v1855_v20, %v1864_v0  ;;  %2019 = vst.msk [vmem:[#allocation2 + $0x52] ss:$8 sm:$0x3] %vm8402_vm1, %v2016_v26  ;;  %2806 = vmatpush1.msra.mxu0 %v2322_v30  ;;  %2909 = vmatpush2.msra.mxu1 %v2424_v13  ;;  %v2422_v31 = vld [vmem:[#allocation9 + $0x380] sm:$0xff]  ;;  %v2317_v30 = vld [vmem:[#allocation9 + $0x38] sm:$0xff] }
 0x283   : > { %v1869_v10 = vmax.f32 %v1867_v32, %v1868_v47  ;;  %v1878_v21 = vmax.f32 %v1876_v12, %v1877_v17  ;;  %1977 = vst.msk [vmem:[#allocation2 + $0x51] ss:$8 sm:$0x3] %vm8402_vm1, %v1974_v5  ;;  %v1887_v39 = vmax.f32 %v1885_v29, %v1886_v6  ;;  %2807 = vmatprep.subr.mxu0 %v2321_v37  ;;  %v2318_v32 = vld [vmem:[#allocation9 + $0x40] sm:$0xff]  ;;  %v2316_v17 = vld [vmem:[#allocation9 + $0x30] sm:$0xff]  ;;  %v2421_v5 = vld [vmem:[#allocation9 + $0x378] sm:$0xff] }
 0x284   : > { %v1896_v40 = vmax.f32 %v1894_v52, %v1895_v57  ;;  %v2051_v18 = vrot.slane %v2044_v35, %v8161_v46  ;;  %v2093_v23 = vrot.slane %v2086_v34, %v8161_v46  ;;  %v10685_v20 = vld [vmem:[#allocation91_spill] sm:$0xff]  ;;  %2808 = vmatpush1.msra.mxu0 %v2320_v45  ;;  %2910 = vmatprep.subr.mxu1 %v2423_v55  ;;  %v2315_v35 = vld [vmem:[#allocation9 + $0x28] sm:$0xff]  ;;  %v2420_v34 = vld [vmem:[#allocation9 + $0x370] sm:$0xff] }
 0x285   : > { %v1870_v12 = vrot.slane %v1869_v10, 2  ;;  %v1879_v54 = vrot.slane %v1878_v21, 2  ;;  %v1633_v0 = vadd.f32 %v10685_v20, %v8504_v63  ;;  %v1888_v13 = vrot.slane %v1887_v39, 2  ;;  %2809 = vmatprep.subr.mxu0 %v2319_v1  ;;  %2911 = vmatpush2.msra.mxu1 %v2422_v31  ;;  %v10686_v1 = vld [vmem:[#allocation81_spill] sm:$0xff] }
 0x286   : > { %v1897_v47 = vrot.slane %v1896_v40, 2  ;;  %v2058_v29 = vrot.slane %v2051_v18, %v8161_v46  ;;  %v2100_v52 = vrot.slane %v2093_v23, %v8161_v46  ;;  %v1642_v57 = vadd.f32 %v8581_v50, %v8508_v19  ;;  %2810 = vmatpush1.msra.mxu0 %v2318_v32  ;;  %v10687_v31 = vld [vmem:[#allocation93_spill] sm:$0xff]  ;;  %v10689_v18 = vld [vmem:[#allocation94_spill] sm:$0xff]  ;;  %2912 = vmatprep.subr.mxu1 %v2421_v5 }
 0x287   : > { %v1871_v26 = vmax.f32 %v1869_v10, %v1870_v12  ;;  %v1880_v37 = vmax.f32 %v1878_v21, %v1879_v54  ;;  %v1634_v6 = vadd.f32 %v1633_v0, %v8628_v3  ;;  %v1889_v45 = vmax.f32 %v1887_v39, %v1888_v13  ;;  %v10688_v21 = vld [vmem:[#allocation82_spill] sm:$0xff]  ;;  %2811 = vmatprep.subr.mxu0 %v2317_v30  ;;  %v2314_v12 = vld [vmem:[#allocation9 + $0x20] sm:$0xff]  ;;  %v2419_v54 = vld [vmem:[#allocation9 + $0x368] sm:$0xff] }
 0x288   : > { %v1898_v55 = vmax.f32 %v1896_v40, %v1897_v47  ;;  %2061 = vst.msk [vmem:[#allocation2 + $0x53] ss:$8 sm:$0x3] %vm8402_vm1, %v2058_v29  ;;  %2103 = vst.msk [vmem:[#allocation2 + $0x54] ss:$8 sm:$0x3] %vm8402_vm1, %v2100_v52  ;;  %v1651_v10 = vadd.f32 %v10687_v31, %v10686_v1  ;;  %v1660_v23 = vadd.f32 %v10689_v18, %v10688_v21  ;;  %2812 = vmatpush1.msra.mxu0 %v2316_v17 }
 0x289   : > { %v1872_v32 = vrot.slane %v1871_v26, 1  ;;  %v1881_v0 = vrot.slane %v1880_v37, 1  ;;  %v1635_v39 = vadd.f32 %v1634_v6, %v8678_v58  ;;  %v10690_v40 = vld [vmem:[#allocation104_spill] sm:$0xff]  ;;  %v2313_v47 = vld [vmem:[#allocation9 + $0x18] sm:$0xff]  ;;  %v1890_v29 = vrot.slane %v1889_v45, 1  ;;  %2813 = vmatprep.subr.mxu0 %v2315_v35  ;;  %v2312_v1 = vld [vmem:[#allocation9 + $0x10] sm:$0xff]  ;;  %2913 = vmatpush2.msra.mxu1 %v2420_v34 }
 0x28a   : > { %v1643_v13 = vadd.f32 %v1642_v57, %v10690_v40  ;;  %v1899_v52 = vrot.slane %v1898_v55, 1  ;;  %v1652_v59 = vadd.f32 %v1651_v10, %v8638_v53  ;;  %v1661_v51 = vadd.f32 %v1660_v23, %v8642_v27  ;;  %v2418_v30 = vld [vmem:[#allocation9 + $0x360] sm:$0xff]  ;;  %2814 = vmatpush1.msra.mxu0 %v2314_v12  ;;  %v2311_v57 = vld [vmem:[#allocation9 + $0x8] sm:$0xff]  ;;  %2914 = vmatprep.subr.mxu1 %v2419_v54  ;;  %v2417_v17 = vld [vmem:[#allocation9 + $0x358] sm:$0xff] }
 0x28b   : > { %v1873_v63 = vmax.f32 %v1871_v26, %v1872_v32  ;;  %v1882_v21 = vmax.f32 %v1880_v37, %v1881_v0  ;;  %v1636_v19 = vrot.slane %v1635_v39, 4  ;;  %v1891_v5 = vmax.f32 %v1889_v45, %v1890_v29  ;;  %2815 = vmatprep.subr.mxu0 %v2313_v47  ;;  %v2310_v35 = vld [vmem:[#allocation9] sm:$0xff]  ;;  %v2416_v23 = vld [vmem:[#allocation9 + $0x350] sm:$0xff]  ;;  %v2373_v12 = vld [vmem:[#allocation9 + $0x1f8] sm:$0xff]  ;;  %2915 = vmatpush2.msra.mxu1 %v2418_v30 }
 0x28c   : > { %v1644_v6 = vadd.f32 %v1643_v13, %v8682_v49  ;;  %v1900_v31 = vmax.f32 %v1898_v55, %v1899_v52  ;;  %v1653_v20 = vadd.f32 %v1652_v59, %v8686_v44  ;;  %v1662_v10 = vadd.f32 %v1661_v51, %v8690_v62  ;;  %v10691_v37 = vld [vmem:[#allocation95_spill] sm:$0xff]  ;;  %2816 = vmatpush1.msra.mxu0 %v2312_v1  ;;  %v10692_v55 = vld [vmem:[#allocation84_spill] sm:$0xff]  ;;  %v2372_v51 = vld [vmem:[#allocation9 + $0x1f0] sm:$0xff] }
 0x28d   : > { %v2128_v34 = vcombine.low %v1873_v63, %v1882_v21  ;;  %v1637_v18 = vadd.f32 %v1636_v19, %v1635_v39  ;;  %v1669_v32 = vadd.f32 %v10691_v37, %v8532_v11  ;;  %v10693_v13 = vld [vmem:[#allocation96_spill] sm:$0xff]  ;;  %2817 = vmatprep.subr.mxu0 %v2311_v57  ;;  %2916 = vmatprep.subr.mxu1 %v2417_v17  ;;  %v2414_v29 = vld [vmem:[#allocation9 + $0x340] sm:$0xff]  ;;  %v2413_v17 = vld [vmem:[#allocation9 + $0x338] sm:$0xff] }
 0x28e   : > { %v1645_v26 = vrot.slane %v1644_v6, 4  ;;  %v2170_v54 = vcombine.low %v1891_v5, %v1900_v31  ;;  %v1654_v0 = vrot.slane %v1653_v20, 4  ;;  %v1663_v45 = vrot.slane %v1662_v10, 4  ;;  %v2415_v47 = vld [vmem:[#allocation9 + $0x348] sm:$0xff]  ;;  %2818 = vmatpush1.msra.mxu0 %v2310_v35  ;;  %2917 = vmatpush2.msra.mxu1 %v2416_v23  ;;  %v2370_v57 = vld [vmem:[#allocation9 + $0x1e0] sm:$0xff]  ;;  %v2369_v35 = vld [vmem:[#allocation9 + $0x1d8] sm:$0xff] }
 0x28f   : > { %v1678_v59 = vadd.f32 %v10693_v13, %v10692_v55  ;;  %v2135_v63 = vrot.slane %v2128_v34, %v8161_v46  ;;  %v1638_v19 = vrot.slane %v1637_v18, 2  ;;  %v1670_v39 = vadd.f32 %v1669_v32, %v8646_v36  ;;  %v2371_v1 = vld [vmem:[#allocation9 + $0x1e8] sm:$0xff]  ;;  %2819 = vmatprep.subr.mxu0 %v2373_v12  ;;  %2918 = vmatprep.subr.mxu1 %v2415_v47  ;;  %v2412_v23 = vld [vmem:[#allocation9 + $0x330] sm:$0xff]  ;;  %v10699_v13 = vld [vmem:[#allocation86_spill] sm:$0xff] }
 0x290   : > { %v1646_v21 = vadd.f32 %v1645_v26, %v1644_v6  ;;  %v2177_v31 = vrot.slane %v2170_v54, %v8161_v46  ;;  %v1655_v52 = vadd.f32 %v1654_v0, %v1653_v20  ;;  %v1664_v30 = vadd.f32 %v1663_v45, %v1662_v10  ;;  %v10694_v5 = vld [vmem:[#allocation108_spill] sm:$0xff]  ;;  %v10695_v6 = vld [vmem:[#allocation119_spill] sm:$0xff]  ;;  %2820 = vmatpush2.msra.mxu0 %v2372_v51  ;;  %v2368_v12 = vld [vmem:[#allocation9 + $0x1d0] sm:$0xff] }
 0x291   : > { %v1679_v11 = vadd.f32 %v1678_v59, %v10694_v5  ;;  %v2142_v55 = vrot.slane %v2135_v63, %v8161_v46  ;;  %v1639_v34 = vadd.f32 %v1638_v19, %v1637_v18  ;;  %v1671_v26 = vadd.f32 %v1670_v39, %v10695_v6  ;;  %v10696_v10 = vld [vmem:[#allocation120_spill] sm:$0xff]  ;;  %2821 = vmatprep.subr.mxu0 %v2371_v1  ;;  %v10697_v63 = vld [vmem:[#allocation85_spill] sm:$0xff]  ;;  %v10700_v36 = vld [vmem:[#allocation98_spill] sm:$0xff] }
 0x292   : > { %v1647_v37 = vrot.slane %v1646_v21, 2  ;;  %v2184_v32 = vrot.slane %v2177_v31, %v8161_v46  ;;  %v1656_v54 = vrot.slane %v1655_v52, 2  ;;  %v1665_v20 = vrot.slane %v1664_v30, 2  ;;  %2919 = vmatpush2.msra.mxu1 %v2414_v29  ;;  %v2411_v45 = vld [vmem:[#allocation9 + $0x328] sm:$0xff]  ;;  %v10698_v47 = vld [vmem:[#allocation97_spill] sm:$0xff]  ;;  %2822 = vmatpush2.msra.mxu0 %v2370_v57  ;;  %v2410_v31 = vld [vmem:[#allocation9 + $0x320] sm:$0xff] }
 0x293   : > { %v1680_v0 = vadd.f32 %v1679_v11, %v10696_v10  ;;  %2145 = vst.msk [vmem:[#allocation2 + $0x55] ss:$8 sm:$0x3] %vm8402_vm1, %v2142_v55  ;;  %v1640_v18 = vrot.slane %v1639_v34, 1  ;;  %v1672_v51 = vrot.slane %v1671_v26, 4  ;;  %v1687_v19 = vadd.f32 %v10698_v47, %v10697_v63  ;;  %v2367_v39 = vld [vmem:[#allocation9 + $0x1c8] sm:$0xff]  ;;  %2920 = vmatprep.subr.mxu1 %v2413_v17  ;;  %2823 = vmatprep.subr.mxu0 %v2369_v35 }
 0x294   : > { %v1648_v59 = vadd.f32 %v1647_v37, %v1646_v21  ;;  %2187 = vst.msk [vmem:[#allocation2 + $0x56] ss:$8 sm:$0x3] %vm8402_vm1, %v2184_v32  ;;  %v1657_v11 = vadd.f32 %v1656_v54, %v1655_v52  ;;  %v1666_v1 = vadd.f32 %v1665_v20, %v1664_v30  ;;  %v1696_v55 = vadd.f32 %v10700_v36, %v10699_v13  ;;  %v2366_v5 = vld [vmem:[#allocation9 + $0x1c0] sm:$0xff]  ;;  %v2409_v37 = vld [vmem:[#allocation9 + $0x318] sm:$0xff]  ;;  %v2408_v32 = vld [vmem:[#allocation9 + $0x310] sm:$0xff] }
 0x295   : > { %v1681_v29 = vrot.slane %v1680_v0, 4  ;;  %2921 = vmatpush2.msra.mxu1 %v2412_v23  ;;  %v8838_v21 = vadd.f32 %v1640_v18, %v1639_v34  ;;  %v1673_v57 = vadd.f32 %v1672_v51, %v1671_v26  ;;  %v1688_v17 = vadd.f32 %v1687_v19, %v8654_v28  ;;  %2824 = vmatpush2.msra.mxu0 %v2368_v12  ;;  %v2365_v47 = vld [vmem:[#allocation9 + $0x1b8] sm:$0xff]  ;;  %v2364_v35 = vld [vmem:[#allocation9 + $0x1b0] sm:$0xff]  ;;  %v2407_v23 = vld [vmem:[#allocation9 + $0x308] sm:$0xff] }
 0x296   : > { %v1649_v63 = vrot.slane %v1648_v59, 1  ;;  %2922 = vmatprep.subr.mxu1 %v2411_v45  ;;  %v1658_v52 = vrot.slane %v1657_v11, 1  ;;  %v1667_v30 = vrot.slane %v1666_v1, 1  ;;  %v1697_v20 = vadd.f32 %v1696_v55, %v8658_v4  ;;  %2825 = vmatprep.subr.mxu0 %v2367_v39  ;;  %v10701_v18 = vld [vmem:[#allocation121_spill] sm:$0xff]  ;;  %v2363_v45 = vld [vmem:[#allocation9 + $0x1a8] sm:$0xff]  ;;  %v2406_v51 = vld [vmem:[#allocation9 + $0x300] sm:$0xff] }
 0x297   : > { %v1682_v54 = vadd.f32 %v1681_v29, %v1680_v0  ;;  %2923 = vmatpush2.msra.mxu1 %v2410_v31  ;;  %v1674_v34 = vrot.slane %v1673_v57, 2  ;;  %v1689_v26 = vadd.f32 %v1688_v17, %v10701_v18  ;;  %v1705_v12 = vadd.f32 %v8612_v33, %v8555_v60  ;;  %2826 = vmatpush2.msra.mxu0 %v2366_v5  ;;  %v10702_v29 = vld [vmem:[#allocation122_spill] sm:$0xff] }
 0x298   : > { %v8842_v13 = vadd.f32 %v1649_v63, %v1648_v59  ;;  %2924 = vmatprep.subr.mxu1 %v2409_v37  ;;  %v8847_v19 = vadd.f32 %v1658_v52, %v1657_v11  ;;  %v8849_v0 = vadd.f32 %v1667_v30, %v1666_v1  ;;  %v1698_v31 = vadd.f32 %v1697_v20, %v10702_v29  ;;  %v2362_v59 = vld [vmem:[#allocation9 + $0x1a0] sm:$0xff]  ;;  %v3074_v63 = vld [vmem:[#allocation9 + $0xaf8] sm:$0xff] }
 0x299   : > { %v1683_v39 = vrot.slane %v1682_v54, 2  ;;  %2827 = vmatprep.subr.mxu0 %v2365_v47  ;;  %2925 = vmatpush2.msra.mxu1 %v2408_v32  ;;  %v1675_v55 = vadd.f32 %v1674_v34, %v1673_v57  ;;  %v1690_v17 = vrot.slane %v1689_v26, 4  ;;  %v1706_v36 = vadd.f32 %v1705_v12, %v8662_v2  ;;  %v2361_v37 = vld [vmem:[#allocation9 + $0x198] sm:$0xff]  ;;  %v2360_v32 = vld [vmem:[#allocation9 + $0x190] sm:$0xff] }
 0x29a   : > { %v1714_v5 = vadd.f32 %v8616_v15, %v8563_v42  ;;  %2828 = vmatpush2.msra.mxu0 %v2364_v35  ;;  %2926 = vmatprep.subr.mxu1 %v2407_v23  ;;  %v1699_v1 = vrot.slane %v1698_v31, 4  ;;  %v1723_v52 = vadd.f32 %v8620_v8, %v8567_v22  ;;  %v1732_v47 = vadd.f32 %v8624_v24, %v8571_v25  ;;  %v2358_v25 = vld [vmem:[#allocation9 + $0x180] sm:$0xff] }
 0x29b   : > { %v1684_v11 = vadd.f32 %v1683_v39, %v1682_v54  ;;  %2829 = vmatprep.subr.mxu0 %v2363_v45  ;;  %2927 = vmatpush2.msra.mxu1 %v2406_v51  ;;  %v2453_v57 = vld [vmem:[#allocation2 + $0x58] sm:$0x7f]  ;;  %v2452_v30 = vld [vmem:[#allocation2 + $0x50] sm:$0x7f]  ;;  %v1676_v20 = vrot.slane %v1675_v55, 1  ;;  %v1691_v34 = vadd.f32 %v1690_v17, %v1689_v26  ;;  %v1707_v12 = vadd.f32 %v1706_v36, %v8710_v61  ;;  %v2359_v54 = vld [vmem:[#allocation9 + $0x188] sm:$0xff] }
 0x29c   : > { %v1715_v35 = vadd.f32 %v1714_v5, %v8666_v16  ;;  %2830 = vmatpush2.msra.mxu0 %v2362_v59  ;;  %3184 = vmatprep.subr.mxu1 %v3074_v63  ;;  %v2498_v23 = vrot.slane %v2453_v57, 7  ;;  %v2495_v39 = vrot.slane %v2452_v30, 7  ;;  %v1700_v60 = vadd.f32 %v1699_v1, %v1698_v31  ;;  %v2357_v26 = vld [vmem:[#allocation9 + $0x178] sm:$0xff]  ;;  %v2356_v31 = vld [vmem:[#allocation9 + $0x170] sm:$0xff] }
 0x29d   : > { %v1685_v22 = vrot.slane %v1684_v11, 1  ;;  %2831 = vmatprep.subr.mxu0 %v2361_v37  ;;  %v1677_v45 = vadd.f32 %v1676_v20, %v1675_v55  ;;  %v1692_v42 = vrot.slane %v1691_v34, 2  ;;  %v1708_v51 = vrot.slane %v1707_v12, 4 }
 0x29e   : > { %v1716_v8 = vadd.f32 %v1715_v35, %v8714_v7  ;;  %2832 = vmatpush2.msra.mxu0 %v2360_v32  ;;  %v10703_v36 = vrot.slane %v8780_v56, 7  ;;  %v10704_v59 = vrot.slane %v8786_v9, 7  ;;  %v1701_v57 = vrot.slane %v1700_v60, 2  ;;  %v2355_v32 = vld [vmem:[#allocation9 + $0x168] sm:$0xff] }
 0x29f   : > { %v1686_v5 = vadd.f32 %v1685_v22, %v1684_v11  ;;  %2833 = vmatprep.subr.mxu0 %v2359_v54  ;;  %v1693_v55 = vadd.f32 %v1692_v42, %v1691_v34  ;;  %v1709_v37 = vadd.f32 %v1708_v51, %v1707_v12  ;;  %v1724_v30 = vadd.f32 %v1723_v52, %v8670_v48  ;;  %v2276_v22 = vld [vmem:[#allocation2 + $0x18] sm:$0xff]  ;;  %v2354_v11 = vld [vmem:[#allocation9 + $0x160] sm:$0xff]  ;;  %v3073_v12 = vld [vmem:[#allocation9 + $0xaf0] sm:$0xff] }
 0x2a0   : > { %v2499_v17 = vsel %vm2487_vm3, %v10703_v36, %v2498_v23  ;;  %v2496_v63 = vsel %vm2487_vm3, %v10704_v59, %v2495_v39  ;;  %v1717_v1 = vrot.slane %v1716_v8, 4  ;;  %2834 = vmatpush2.msra.mxu0 %v2358_v25  ;;  %v1702_v56 = vadd.f32 %v1701_v57, %v1700_v60  ;;  %v2353_v25 = vld [vmem:[#allocation9 + $0x158] sm:$0xff]  ;;  %v3072_v59 = vld [vmem:[#allocation9 + $0xae8] sm:$0xff] }
 0x2a1   : > { %2780 = vmatprep.mubr.f32.mxu1 %v2499_v17  ;;  %v1733_v20 = vadd.f32 %v1732_v47, %v8674_v38  ;;  %v1777_v9 = vmul.f32 0.03125, %v8838_v21  ;;  %v1778_v35 = vmul.f32 0.03125, %v8842_v13  ;;  %2835 = vmatprep.subr.mxu0 %v2357_v26  ;;  %v1694_v54 = vrot.slane %v1693_v55, 1  ;;  %v2352_v13 = vld [vmem:[#allocation9 + $0x150] sm:$0xff]  ;;  %v3051_v38 = vld [vmem:[#allocation9 + $0xa40] sm:$0xff] }
 0x2a2   : > { %2781 = vmatmul.mubr.f32.gmra.mxu1 %v2496_v63  ;;  %v1710_v23 = vrot.slane %v1709_v37, 2  ;;  %v1718_v42 = vadd.f32 %v1717_v1, %v1716_v8  ;;  %v1725_v34 = vadd.f32 %v1724_v30, %v8718_v43  ;;  %2836 = vmatpush2.msra.mxu0 %v2356_v31  ;;  %v1703_v52 = vrot.slane %v1702_v56, 1  ;;  %v2351_v8 = vld [vmem:[#allocation9 + $0x148] sm:$0xff]  ;;  %v2275_v17 = vld [vmem:[#allocation2 + $0x10] sm:$0xff]  ;;  %v2350_v30 = vld [vmem:[#allocation9 + $0x140] sm:$0xff] }
 0x2a3   : > { %2928 = vmatprep.mubr.f32.mxu1 %v2276_v22  ;;  %v1734_v60 = vadd.f32 %v1733_v20, %v10683_v41  ;;  %v1779_v47 = vmul.f32 0.03125, %v8847_v19  ;;  %v1780_v21 = vmul.f32 0.03125, %v8849_v0  ;;  %2837 = vmatprep.subr.mxu0 %v2355_v32  ;;  %v1695_v39 = vadd.f32 %v1694_v54, %v1693_v55  ;;  %v3071_v19 = vld [vmem:[#allocation9 + $0xae0] sm:$0xff]  ;;  %v2349_v55 = vld [vmem:[#allocation9 + $0x138] sm:$0xff] }
 0x2a4   : > { %v1711_v51 = vadd.f32 %v1710_v23, %v1709_v37  ;;  %v1719_v26 = vrot.slane %v1718_v42, 2  ;;  %v1726_v36 = vrot.slane %v1725_v34, 4  ;;  %2838 = vmatpush2.msra.mxu0 %v2354_v11  ;;  %v1704_v63 = vadd.f32 %v1703_v52, %v1702_v56  ;;  %v3070_v37 = vld [vmem:[#allocation9 + $0xad8] sm:$0xff]  ;;  %v2348_v56 = vld [vmem:[#allocation9 + $0x130] sm:$0xff] }
 0x2a5   : > { %v1735_v57 = vrot.slane %v1734_v60, 4  ;;  %v1781_v31 = vmul.f32 0.03125, %v1677_v45  ;;  %v1782_v1 = vmul.f32 0.03125, %v1686_v5  ;;  %2839 = vmatprep.subr.mxu0 %v2353_v25  ;;  %v1783_v22 = vmul.f32 0.03125, %v1695_v39  ;;  %v3069_v45 = vld [vmem:[#allocation9 + $0xad0] sm:$0xff] }
 0x2a6   : > { %2929 = vmatmul.mubr.f32.vlgmr.msra.gmra.mxu1 %v2275_v17  ;;  %v1712_v0 = vrot.slane %v1711_v51, 1  ;;  %v1720_v32 = vadd.f32 %v1719_v26, %v1718_v42  ;;  %v1727_v20 = vadd.f32 %v1726_v36, %v1725_v34  ;;  %2840 = vmatpush2.msra.mxu0 %v2352_v13  ;;  %v1784_v54 = vmul.f32 0.03125, %v1704_v63  ;;  %v2347_v42 = vld [vmem:[#allocation9 + $0x128] sm:$0xff]  ;;  %v2344_v36 = vld [vmem:[#allocation9 + $0x110] sm:$0xff] }
 0x2a7   : > { %3185 = vmatpush1.msra.mxu1 %v3073_v12  ;;  %v1736_v11 = vadd.f32 %v1735_v57, %v1734_v60  ;;  %v1939_v23 = vcombine.low %v1777_v9, %v1778_v35  ;;  %v1981_v33 = vcombine.low %v1779_v47, %v1780_v21  ;;  %2841 = vmatprep.subr.mxu0 %v2351_v8  ;;  %v2346_v9 = vld [vmem:[#allocation9 + $0x120] sm:$0xff]  ;;  %v2345_v35 = vld [vmem:[#allocation9 + $0x118] sm:$0xff]  ;;  %v3068_v47 = vld [vmem:[#allocation9 + $0xac8] sm:$0xff] }
 0x2a8   : > { %3186 = vmatprep.subr.mxu1 %v3072_v59  ;;  %v1713_v5 = vadd.f32 %v1712_v0, %v1711_v51  ;;  %v1721_v25 = vrot.slane %v1720_v32, 1  ;;  %v1728_v52 = vrot.slane %v1727_v20, 2  ;;  %v2023_v17 = vcombine.low %v1781_v31, %v1782_v1  ;;  %2842 = vmatpush2.msra.mxu0 %v2350_v30  ;;  %v2280_v8 = vld [vmem:[#allocation2 + $0x38] sm:$0xc0]  ;;  %v3067_v59 = vld [vmem:[#allocation9 + $0xac0] sm:$0xff] }
 0x2a9   : > { %3187 = vmatpush1.msra.mxu1 %v3071_v19  ;;  %v1737_v34 = vrot.slane %v1736_v11, 2  ;;  %v1946_v13 = vrot.slane %v1939_v23, %v8161_v46  ;;  %v1988_v12 = vrot.slane %v1981_v33, %v8161_v46  ;;  %v2065_v60 = vcombine.low %v1783_v22, %v1784_v54  ;;  %2843 = vmatprep.subr.mxu0 %v2349_v55  ;;  %v2284_v1 = vld [vmem:[#allocation2 + $0x58] sm:$0x3f]  ;;  %v2279_v30 = vld [vmem:[#allocation2 + $0x30] sm:$0xc0]  ;;  %v2343_v22 = vld [vmem:[#allocation9 + $0x108] sm:$0xff] }
 0x2aa   : > { %3188 = vmatprep.subr.mxu1 %v3070_v37  ;;  %v1722_v21 = vadd.f32 %v1721_v25, %v1720_v32  ;;  %v1729_v39 = vadd.f32 %v1728_v52, %v1727_v20  ;;  %v1785_v51 = vmul.f32 0.03125, %v1713_v5  ;;  %v2030_v26 = vrot.slane %v2023_v17, %v8161_v46  ;;  %2844 = vmatpush2.msra.mxu0 %v2348_v56  ;;  %v3066_v19 = vld [vmem:[#allocation9 + $0xab8] sm:$0xff]  ;;  %v2283_v55 = vld [vmem:[#allocation2 + $0x50] sm:$0x3f]  ;;  %v2342_v23 = vld [vmem:[#allocation9 + $0x100] sm:$0xff] }
 0x2ab   : > { %3189 = vmatpush1.msra.mxu1 %v3069_v45  ;;  %v1738_v63 = vadd.f32 %v1737_v34, %v1736_v11  ;;  %v1953_v57 = vrot.slane %v1946_v13, %v8161_v46  ;;  %v1995_v33 = vrot.slane %v1988_v12, %v8161_v46  ;;  %v2072_v31 = vrot.slane %v2065_v60, %v8161_v46  ;;  %v3065_v37 = vld [vmem:[#allocation9 + $0xab0] sm:$0xff]  ;;  %v3064_v56 = vld [vmem:[#allocation9 + $0xaa8] sm:$0xff]  ;;  %v3010_v17 = vld [vmem:[#allocation9 + $0x8f8] sm:$0xff] }
 0x2ac   : > { %2845 = vmatprep.subr.mxu0 %v2347_v42  ;;  %v1730_v0 = vrot.slane %v1729_v39, 1  ;;  %v1786_v32 = vmul.f32 0.03125, %v1722_v21  ;;  %v2037_v20 = vrot.slane %v2030_v26, %v8161_v46  ;;  %3190 = vmatprep.subr.mxu1 %v3068_v47  ;;  %v2303_v25 = vrot.slane %v2280_v8, 6  ;;  %v10705_v47 = vld [vmem:[#allocation23_spill] sm:$0xff]  ;;  %v8898_v26 = vld [vmem:[#allocation2 + $0x28] sm:$0x80] }
 0x2ad   : > { %2846 = vmatpush2.msra.mxu0 %v2346_v9  ;;  %v1739_v11 = vrot.slane %v1738_v63, 1  ;;  %1956 = vst.msk [vmem:[#allocation2 + $0x41] ss:$8 sm:$0x3] %vm8402_vm1, %v1953_v57  ;;  %v2079_v54 = vrot.slane %v2072_v31, %v8161_v46  ;;  %3191 = vmatpush1.msra.mxu1 %v3067_v59  ;;  %v2304_v52 = vrot.slane %v2284_v1, 6  ;;  %v2300_v34 = vrot.slane %v2279_v30, 6 }
 0x2ae   : > { %1998 = vst.msk [vmem:[#allocation2 + $0x42] ss:$8 sm:$0x3] %vm8402_vm1, %v1995_v33  ;;  %2847 = vmatprep.subr.mxu0 %v2345_v35  ;;  %v1731_v45 = vadd.f32 %v1730_v0, %v1729_v39  ;;  %2040 = vst.msk [vmem:[#allocation2 + $0x43] ss:$8 sm:$0x3] %vm8402_vm1, %v2037_v20  ;;  %v2107_v5 = vcombine.low %v1785_v51, %v1786_v32  ;;  %3192 = vmatprep.subr.mxu1 %v3066_v19 }
 0x2af   : > { %2848 = vmatpush2.msra.mxu0 %v2344_v36  ;;  %v1740_v42 = vadd.f32 %v1739_v11, %v1738_v63  ;;  %2082 = vst.msk [vmem:[#allocation2 + $0x44] ss:$8 sm:$0x3] %vm8402_vm1, %v2079_v54  ;;  %v2301_v13 = vrot.slane %v2283_v55, 6  ;;  %3193 = vmatpush1.msra.mxu1 %v3065_v37  ;;  %v2305_v9 = vsel %vm2293_vm4, %v2303_v25, %v2304_v52  ;;  %v7420_v35 = vld [vmem:[%s7922_s27 + $0x60] sm:$0xff]  ;;  %v7421_v59 = vld [vmem:[%s7922_s27 + $0x68] sm:$0xff] }
 0x2b0   : > { %2849 = vmatprep.subr.mxu0 %v2343_v22  ;;  %v1787_v12 = vmul.f32 0.03125, %v1731_v45  ;;  %v2114_v60 = vrot.slane %v2107_v5, %v8161_v46  ;;  %v8896_v21 = vmul.f32 %v7420_v35, %v10705_v47  ;;  %3194 = vmatprep.subr.mxu1 %v3064_v56  ;;  %v3063_v39 = vld [vmem:[#allocation9 + $0xaa0] sm:$0xff]  ;;  %v8900_v36 = vld [vmem:[#allocation2 + $0x28] sm:$0xc0]  ;;  %v8905_v63 = vmul.f32 %v7421_v59, %v10705_v47  ;;  %v10708_v33 = vld [vmem:[#allocation22_spill] sm:$0xff] }
 0x2b1   : > { %2850 = vmatpush2.msra.mxu0 %v2342_v23  ;;  %v1788_v51 = vmul.f32 0.03125, %v1740_v42  ;;  %2934 = vmatprep.mubr.f32.mxu1 %v2305_v9  ;;  %v2302_v8 = vsel %vm2293_vm4, %v2300_v34, %v2301_v13  ;;  %v7422_v57 = vld [vmem:[%s7922_s27 + $0xe0] sm:$0xff]  ;;  %v3062_v1 = vld [vmem:[#allocation9 + $0xa98] sm:$0xff]  ;;  %v7423_v19 = vld [vmem:[%s7922_s27 + $0xe8] sm:$0xff]  ;;  %v10729_v61 = vrot.slane %v8900_v36, 6 }
 0x2b2   : > { %10706 = vst [vmem:[#allocation78_spill] sm:$0xff] %v8896_v21  ;;  %3107 = vmatprep.subr.mxu0 %v3010_v17  ;;  %10707 = vst [vmem:[#allocation23_spill] sm:$0xff] %v8905_v63  ;;  %v8909_v31 = vmul.f32 %v7422_v57, %v10708_v33  ;;  %v2121_v30 = vrot.slane %v2114_v60, %v8161_v46  ;;  %2935 = vmatmul.mubr.f32.gmra.mxu1 %v2302_v8  ;;  %v7424_v32 = vld [vmem:[%s7922_s27 + $0x160] sm:$0xff]  ;;  %v10711_v20 = vld [vmem:[#allocation40_spill] sm:$0xff] }
 0x2b3   : > { %v8914_v0 = vmul.f32 %v7423_v19, %v10708_v33  ;;  %v8918_v22 = vmul.f32 %v7424_v32, %v10711_v20  ;;  %v7425_v55 = vld [vmem:[%s7922_s27 + $0x168] sm:$0xff]  ;;  %v3061_v11 = vld [vmem:[#allocation9 + $0xa90] sm:$0xff]  ;;  %v2149_v54 = vcombine.low %v1787_v12, %v1788_v51  ;;  %v8926_v56 = vld [vmem:[#allocation2 + $0x20] sm:$0xc0]  ;;  %3195 = vmatpush1.msra.mxu1 %v3063_v39 }
 0x2b4   : > { %10709 = vst [vmem:[#allocation22_spill] sm:$0xff] %v8909_v31  ;;  %v8922_v37 = vmul.f32 %v7425_v55, %v10711_v20  ;;  %v1245_v23 = vmax.f32 %v8896_v21, %v8909_v31  ;;  %v3060_v45 = vld [vmem:[#allocation9 + $0xa88] sm:$0xff]  ;;  %2124 = vst.msk [vmem:[#allocation2 + $0x45] ss:$8 sm:$0x3] %vm8402_vm1, %v2121_v30  ;;  %v7426_v52 = vld [vmem:[%s7922_s27 + $0x1e0] sm:$0xff]  ;;  %3196 = vmatprep.subr.mxu1 %v3062_v1  ;;  %v1084_v9 = vadd.f32 %v8909_v31, %v8896_v21 }
 0x2b5   : > { %10710 = vst [vmem:[#allocation127_spill] sm:$0xff] %v8914_v0  ;;  %10712 = vst [vmem:[#allocation40_spill] sm:$0xff] %v8918_v22  ;;  %v10714_v17 = vld [vmem:[#allocation52_spill] sm:$0xff]  ;;  %v1254_v34 = vmax.f32 %v8905_v63, %v8914_v0  ;;  %v3059_v13 = vld [vmem:[#allocation9 + $0xa80] sm:$0xff]  ;;  %v2156_v12 = vrot.slane %v2149_v54, %v8161_v46  ;;  %v1093_v35 = vadd.f32 %v8914_v0, %v8905_v63  ;;  %3197 = vmatpush1.msra.mxu1 %v3061_v11 }
 0x2b6   : > { %10713 = vst [vmem:[#allocation128_spill] sm:$0xff] %v8922_v37  ;;  %v8934_v42 = vmul.f32 %v7426_v52, %v10714_v17  ;;  %v1246_v60 = vmax.f32 %v1245_v23, %v8918_v22  ;;  %v3058_v39 = vld [vmem:[#allocation9 + $0xa78] sm:$0xff]  ;;  %v7427_v51 = vld [vmem:[%s7922_s27 + $0x1e8] sm:$0xff]  ;;  %3198 = vmatprep.subr.mxu1 %v3060_v45  ;;  %v3057_v1 = vld [vmem:[#allocation9 + $0xa70] sm:$0xff]  ;;  %v1085_v54 = vadd.f32 %v1084_v9, %v8918_v22  ;;  %v10730_v36 = vrot.slane %v8926_v56, 6 }
 0x2b7   : > { %v8946_v8 = vmul.f32 %v7427_v51, %v10714_v17  ;;  %v1255_v59 = vmax.f32 %v1254_v34, %v8922_v37  ;;  %v7428_v30 = vld [vmem:[%s7929_s20 + $0x60] sm:$0xff]  ;;  %v10717_v19 = vld [vmem:[#allocation74_spill] sm:$0xff]  ;;  %v2163_v55 = vrot.slane %v2156_v12, %v8161_v46  ;;  %v1094_v23 = vadd.f32 %v1093_v35, %v8922_v37  ;;  %3199 = vmatpush1.msra.mxu1 %v3059_v13  ;;  %v3056_v52 = vld [vmem:[#allocation9 + $0xa68] sm:$0xff] }
 0x2b8   : > { %10715 = vst [vmem:[#allocation52_spill] sm:$0xff] %v8934_v42  ;;  %v8952_v32 = vmul.f32 %v7428_v30, %v10717_v19  ;;  %v1247_v11 = vmax.f32 %v1246_v60, %v8934_v42  ;;  %3200 = vmatprep.subr.mxu1 %v3058_v39  ;;  %v3055_v45 = vld [vmem:[#allocation9 + $0xa60] sm:$0xff]  ;;  %v7429_v51 = vld [vmem:[%s7929_s20 + $0x68] sm:$0xff]  ;;  %v1086_v35 = vadd.f32 %v1085_v54, %v8934_v42  ;;  %v3053_v63 = vld [vmem:[#allocation9 + $0xa50] sm:$0xff] }
 0x2b9   : > { %10716 = vst [vmem:[#allocation129_spill] sm:$0xff] %v8946_v8  ;;  %v1256_v34 = vmax.f32 %v1255_v59, %v8946_v8  ;;  %v8961_v5 = vmul.f32 %v7429_v51, %v10717_v19  ;;  %v7430_v30 = vld [vmem:[%s7929_s20 + $0xe0] sm:$0xff]  ;;  %v7431_v60 = vld [vmem:[%s7929_s20 + $0xe8] sm:$0xff]  ;;  %2166 = vst.msk [vmem:[#allocation2 + $0x46] ss:$8 sm:$0x3] %vm8402_vm1, %v2163_v55  ;;  %v1095_v39 = vadd.f32 %v1094_v23, %v8946_v8  ;;  %3201 = vmatpush1.msra.mxu1 %v3057_v1 }
 0x2ba   : > { %10718 = vst [vmem:[#allocation74_spill] sm:$0xff] %v8952_v32  ;;  %v10720_v57 = vld [vmem:[#allocation75_spill] sm:$0xff]  ;;  %v1248_v13 = vrot.slane %v1247_v11, 4  ;;  %v3054_v59 = vld [vmem:[#allocation9 + $0xa58] sm:$0xff]  ;;  %3202 = vmatprep.subr.mxu1 %v3056_v52  ;;  %v3052_v31 = vld [vmem:[#allocation9 + $0xa48] sm:$0xff]  ;;  %v1087_v24 = vrot.slane %v1086_v35, 4 }
 0x2bb   : > { %10719 = vst [vmem:[#allocation130_spill] sm:$0xff] %v8961_v5  ;;  %v8965_v12 = vmul.f32 %v7430_v30, %v10720_v57  ;;  %v8969_v9 = vmul.f32 %v7431_v60, %v10720_v57  ;;  %v7432_v51 = vld [vmem:[%s7929_s20 + $0x160] sm:$0xff]  ;;  %v10723_v30 = vld [vmem:[#allocation76_spill] sm:$0xff]  ;;  %v1257_v60 = vrot.slane %v1256_v34, 4  ;;  %v10726_v54 = vld [vmem:[#allocation77_spill] sm:$0xff]  ;;  %v1096_v15 = vrot.slane %v1095_v39, 4  ;;  %3203 = vmatpush1.msra.mxu1 %v3055_v45 }
 0x2bc   : > { %v8977_v25 = vmul.f32 %v7432_v51, %v10723_v30  ;;  %v8979_v21 = vld [vmem:[#allocation2 + $0x20] sm:$0x80]  ;;  %v7433_v0 = vld [vmem:[%s7929_s20 + $0x168] sm:$0xff]  ;;  %v1249_v42 = vmax.f32 %v1247_v11, %v1248_v13  ;;  %v2281_v8 = vld [vmem:[#allocation2 + $0x40] sm:$0x3f]  ;;  %3204 = vmatprep.subr.mxu1 %v3054_v59 }
 0x2bd   : > { %10721 = vst [vmem:[#allocation75_spill] sm:$0xff] %v8965_v12  ;;  %10722 = vst [vmem:[#allocation131_spill] sm:$0xff] %v8969_v9  ;;  %v8983_v55 = vmul.f32 %v7433_v0, %v10723_v30  ;;  %v7434_v22 = vld [vmem:[%s7929_s20 + $0x1e0] sm:$0xff]  ;;  %v7435_v1 = vld [vmem:[%s7929_s20 + $0x1e8] sm:$0xff]  ;;  %v1901_v52 = vmax.f32 %v8952_v32, %v8965_v12  ;;  %v1258_v0 = vmax.f32 %v1256_v34, %v1257_v60  ;;  %v2295_v2 = vrot.slane %v2281_v8, 6 }
 0x2be   : > { %10724 = vst [vmem:[#allocation76_spill] sm:$0xff] %v8977_v25  ;;  %v8987_v37 = vmul.f32 %v7434_v22, %v10726_v54  ;;  %v8991_v23 = vmul.f32 %v7435_v1, %v10726_v54  ;;  %v2282_v51 = vld [vmem:[#allocation2 + $0x48] sm:$0x3f]  ;;  %v1910_v22 = vmax.f32 %v8961_v5, %v8969_v9  ;;  %v1250_v16 = vrot.slane %v1249_v42, 2  ;;  %3205 = vmatpush1.msra.mxu1 %v3053_v63  ;;  %v3050_v11 = vld [vmem:[#allocation9 + $0xa38] sm:$0xff]  ;;  %v3049_v34 = vld [vmem:[#allocation9 + $0xa30] sm:$0xff] }
 0x2bf   : > { %10725 = vst [vmem:[#allocation132_spill] sm:$0xff] %v8983_v55  ;;  %v2298_v48 = vrot.slane %v2282_v51, 6  ;;  %v1088_v1 = vadd.f32 %v1087_v24, %v1086_v35  ;;  %v1097_v43 = vadd.f32 %v1096_v15, %v1095_v39  ;;  %v1902_v13 = vmax.f32 %v1901_v52, %v8977_v25  ;;  %3206 = vmatprep.subr.mxu1 %v3052_v31  ;;  %v3048_v15 = vld [vmem:[#allocation9 + $0xa28] sm:$0xff]  ;;  %v3045_v56 = vld [vmem:[#allocation9 + $0xa10] sm:$0xff] }
 0x2c0   : > { %10727 = vst [vmem:[#allocation77_spill] sm:$0xff] %v8987_v37  ;;  %10728 = vst [vmem:[#allocation133_spill] sm:$0xff] %v8991_v23  ;;  %v2488_v45 = vrot.slane %v8979_v21, 7  ;;  %v1259_v8 = vrot.slane %v1258_v0, 2  ;;  %v1911_v59 = vmax.f32 %v1910_v22, %v8983_v55  ;;  %v1251_v60 = vmax.f32 %v1249_v42, %v1250_v16  ;;  %3207 = vmatpush1.msra.mxu1 %v3051_v38  ;;  %v2451_v35 = vld [vmem:[#allocation2 + $0x48] sm:$0x7f] }
 0x2c1   : > { %v9002_v51 = vsel %vm2293_vm4, %v10729_v61, %v2298_v48  ;;  %v1089_v41 = vrot.slane %v1088_v1, 2  ;;  %v1098_v24 = vrot.slane %v1097_v43, 2  ;;  %v1903_v63 = vmax.f32 %v1902_v13, %v8987_v37  ;;  %v2450_v39 = vld [vmem:[#allocation2 + $0x40] sm:$0x7f]  ;;  %3208 = vmatprep.subr.mxu1 %v3050_v11  ;;  %v3046_v13 = vld [vmem:[#allocation9 + $0xa18] sm:$0xff] }
 0x2c2   : > { %v1260_v21 = vmax.f32 %v1258_v0, %v1259_v8  ;;  %v9009_v48 = vsel %vm2293_vm4, %v10730_v36, %v2295_v2  ;;  %v3047_v61 = vld [vmem:[#allocation9 + $0xa20] sm:$0xff]  ;;  %v1912_v31 = vmax.f32 %v1911_v59, %v8991_v23  ;;  %v1741_v16 = vadd.f32 %v8965_v12, %v8952_v32  ;;  %3209 = vmatpush1.msra.mxu1 %v3049_v34 }
 0x2c3   : > { %v2492_v42 = vrot.slane %v2451_v35, 7  ;;  %v2489_v38 = vrot.slane %v2450_v39, 7  ;;  %v1252_v52 = vrot.slane %v1251_v60, 1  ;;  %v1090_v22 = vadd.f32 %v1089_v41, %v1088_v1  ;;  %3210 = vmatprep.subr.mxu1 %v3048_v15  ;;  %v3044_v35 = vld [vmem:[#allocation9 + $0xa08] sm:$0xff]  ;;  %v3043_v34 = vld [vmem:[#allocation9 + $0xa00] sm:$0xff] }
 0x2c4   : > { %v1261_v7 = vrot.slane %v1260_v21, 1  ;;  %v1099_v0 = vadd.f32 %v1098_v24, %v1097_v43  ;;  %v1904_v8 = vrot.slane %v1903_v63, 4  ;;  %v1913_v2 = vrot.slane %v1912_v31, 4  ;;  %3211 = vmatpush1.msra.mxu1 %v3047_v61  ;;  %v2274_v15 = vld [vmem:[#allocation2 + $0x8] sm:$0xff] }
 0x2c5   : > { %v10731_v11 = vrot.slane %v8898_v26, 7  ;;  %v2490_v59 = vsel %vm2487_vm3, %v2488_v45, %v2489_v38  ;;  %v1253_v28 = vmax.f32 %v1251_v60, %v1252_v52  ;;  %v1091_v32 = vrot.slane %v1090_v22, 1  ;;  %3212 = vmatprep.subr.mxu1 %v3046_v13  ;;  %v3106_v26 = vld [vmem:[#allocation9 + $0xbf8] sm:$0xff]  ;;  %v2273_v13 = vld [vmem:[#allocation2] sm:$0xff] }
 0x2c6   : > { %v1262_v41 = vmax.f32 %v1260_v21, %v1261_v7  ;;  %v1100_v1 = vrot.slane %v1099_v0, 1  ;;  %v1905_v43 = vmax.f32 %v1903_v63, %v1904_v8  ;;  %v1914_v24 = vmax.f32 %v1912_v31, %v1913_v2  ;;  %3213 = vmatpush1.msra.mxu1 %v3045_v56  ;;  %v3105_v7 = vld [vmem:[#allocation9 + $0xbf0] sm:$0xff]  ;;  %v3104_v8 = vld [vmem:[#allocation9 + $0xbe8] sm:$0xff] }
 0x2c7   : > { %v2493_v36 = vsel %vm2487_vm3, %v10731_v11, %v2492_v42  ;;  %v1092_v39 = vadd.f32 %v1091_v32, %v1090_v22  ;;  %v1742_v42 = vadd.f32 %v1741_v16, %v8977_v25  ;;  %v1750_v45 = vadd.f32 %v8969_v9, %v8961_v5  ;;  %3214 = vmatprep.subr.mxu1 %v3044_v35  ;;  %v3009_v63 = vld [vmem:[#allocation9 + $0x8f0] sm:$0xff] }
 0x2c8   : > { %2703 = vmatprep.mubr.f32.mxu0 %v2493_v36  ;;  %v1560_v60 = vcombine.low %v1253_v28, %v1262_v41  ;;  %v1101_v61 = vadd.f32 %v1100_v1, %v1099_v0  ;;  %v1906_v21 = vrot.slane %v1905_v43, 2  ;;  %v1915_v38 = vrot.slane %v1914_v24, 2  ;;  %3215 = vmatpush1.msra.mxu1 %v3043_v34  ;;  %v7436_v22 = vld [vmem:[%s7922_s27 + $0x70] sm:$0xff]  ;;  %v3008_v28 = vld [vmem:[#allocation9 + $0x8e8] sm:$0xff]  ;;  %v3007_v36 = vld [vmem:[#allocation9 + $0x8e0] sm:$0xff] }
 0x2c9   : > { %2704 = vmatmul.mubr.f32.gmra.mxu0 %v2490_v59  ;;  %v1133_v31 = vmul.f32 0.03125, %v1092_v39  ;;  %v1743_v32 = vadd.f32 %v1742_v42, %v8987_v37  ;;  %v1751_v52 = vadd.f32 %v1750_v45, %v8983_v55  ;;  %v9025_v16 = vmul.f32 %v7436_v22, %v10705_v47  ;;  %3216 = vmatprep.subr.mxu1 %v3106_v26  ;;  %v3103_v59 = vld [vmem:[#allocation9 + $0xbe0] sm:$0xff]  ;;  %v7437_v1 = vld [vmem:[%s7922_s27 + $0x78] sm:$0xff] }
 0x2ca   : > { %2851 = vmatprep.mubr.f32.mxu0 %v2274_v15  ;;  %v1567_v0 = vrot.slane %v1560_v60, %v8161_v46  ;;  %v1134_v56 = vmul.f32 0.03125, %v1101_v61  ;;  %v1907_v2 = vmax.f32 %v1905_v43, %v1906_v21  ;;  %v1916_v11 = vmax.f32 %v1914_v24, %v1915_v38  ;;  %3217 = vmatpush2.msra.mxu1 %v3105_v7  ;;  %v7438_v15 = vld [vmem:[%s7922_s27 + $0xf0] sm:$0xff]  ;;  %v3006_v24 = vld [vmem:[#allocation9 + $0x8d8] sm:$0xff] }
 0x2cb   : > { %10732 = vst [vmem:[#allocation134_spill] sm:$0xff] %v9025_v16  ;;  %v1744_v35 = vrot.slane %v1743_v32, 4  ;;  %v1752_v41 = vadd.f32 %v1751_v52, %v8991_v23  ;;  %v9031_v34 = vmul.f32 %v7437_v1, %v10705_v47  ;;  %v9035_v39 = vmul.f32 %v7438_v15, %v10708_v33  ;;  %v3005_v60 = vld [vmem:[#allocation9 + $0x8d0] sm:$0xff]  ;;  %3218 = vmatprep.subr.mxu1 %v3104_v8  ;;  %v3102_v47 = vld [vmem:[#allocation9 + $0xbd8] sm:$0xff] }
 0x2cc   : > { %v1574_v43 = vrot.slane %v1567_v0, %v8161_v46  ;;  %v1539_v26 = vcombine.low %v1133_v31, %v1134_v56  ;;  %v1908_v42 = vrot.slane %v1907_v2, 1  ;;  %v1917_v45 = vrot.slane %v1916_v11, 1  ;;  %v7439_v21 = vld [vmem:[%s7922_s27 + $0xf8] sm:$0xff]  ;;  %v7440_v52 = vld [vmem:[%s7922_s27 + $0x170] sm:$0xff]  ;;  %v3004_v31 = vld [vmem:[#allocation9 + $0x8c8] sm:$0xff]  ;;  %3219 = vmatpush2.msra.mxu1 %v3103_v59 }
 0x2cd   : > { %2852 = vmatmul.mubr.f32.vlgmr.msra.gmra.mxu0 %v2273_v13  ;;  %10733 = vst [vmem:[#allocation135_spill] sm:$0xff] %v9031_v34  ;;  %10734 = vst [vmem:[#allocation136_spill] sm:$0xff] %v9035_v39  ;;  %v1745_v61 = vadd.f32 %v1744_v35, %v1743_v32  ;;  %v1753_v7 = vrot.slane %v1752_v41, 4  ;;  %v9041_v38 = vmul.f32 %v7439_v21, %v10708_v33  ;;  %v3101_v32 = vld [vmem:[#allocation9 + $0xbd0] sm:$0xff]  ;;  %v3003_v33 = vld [vmem:[#allocation9 + $0x8c0] sm:$0xff]  ;;  %3220 = vmatprep.subr.mxu1 %v3102_v47 }
 0x2ce   : > { %2857 = vmatprep.mubr.f32.mxu0 %v9002_v51  ;;  %3108 = vmatpush1.msra.mxu0 %v3009_v63  ;;  %v9045_v51 = vmul.f32 %v7440_v52, %v10711_v20  ;;  %1577 = vst.msk [vmem:[#allocation2 + $0x31] ss:$8 sm:$0x3] %vm8402_vm1, %v1574_v43  ;;  %v1546_v63 = vrot.slane %v1539_v26, %v8161_v46  ;;  %v7441_v8 = vld [vmem:[%s7922_s27 + $0x178] sm:$0xff]  ;;  %v7442_v35 = vld [vmem:[%s7922_s27 + $0x1f0] sm:$0xff]  ;;  %v2999_v52 = vld [vmem:[#allocation9 + $0x8a0] sm:$0xff] }
 0x2cf   : > { %3109 = vmatprep.subr.mxu0 %v3008_v28  ;;  %10735 = vst [vmem:[#allocation137_spill] sm:$0xff] %v9041_v38  ;;  %v1909_v22 = vmax.f32 %v1907_v2, %v1908_v42  ;;  %v1918_v13 = vmax.f32 %v1916_v11, %v1917_v45  ;;  %v3100_v28 = vld [vmem:[#allocation9 + $0xbc8] sm:$0xff]  ;;  %v1746_v0 = vrot.slane %v1745_v61, 2  ;;  %v1754_v56 = vadd.f32 %v1753_v7, %v1752_v41  ;;  %v3002_v11 = vld [vmem:[#allocation9 + $0x8b8] sm:$0xff]  ;;  %v3097_v47 = vld [vmem:[#allocation9 + $0xbb0] sm:$0xff] }
 0x2d0   : > { %10736 = vst [vmem:[#allocation138_spill] sm:$0xff] %v9045_v51  ;;  %3110 = vmatpush1.msra.mxu0 %v3007_v36  ;;  %v9053_v36 = vmul.f32 %v7441_v8, %v10711_v20  ;;  %v9057_v1 = vmul.f32 %v7442_v35, %v10714_v17  ;;  %v1553_v2 = vrot.slane %v1546_v63, %v8161_v46  ;;  %v7443_v15 = vld [vmem:[%s7922_s27 + $0x1f8] sm:$0xff]  ;;  %v3096_v63 = vld [vmem:[#allocation9 + $0xba8] sm:$0xff]  ;;  %v3095_v8 = vld [vmem:[#allocation9 + $0xba0] sm:$0xff]  ;;  %s7108_s27 = sshll.u32 %s7918_s11, 8 }
 0x2d1   : > { %2858 = vmatmul.mubr.f32.gmra.mxu0 %v9009_v48  ;;  %3111 = vmatprep.subr.mxu0 %v3006_v24  ;;  %v3099_v48 = vld [vmem:[#allocation9 + $0xbc0] sm:$0xff]  ;;  %v2212_v59 = vcombine.low %v1909_v22, %v1918_v13  ;;  %v9062_v43 = vmul.f32 %v7443_v15, %v10714_v17  ;;  %v2944_v41 = vld [vmem:[#allocation2 + $0x18] sm:$0xfc]  ;;  %v3001_v24 = vld [vmem:[#allocation9 + $0x8b0] sm:$0xff]  ;;  %v1747_v26 = vadd.f32 %v1746_v0, %v1745_v61  ;;  %v1755_v42 = vrot.slane %v1754_v56, 2 }
 0x2d2   : > { %10737 = vst [vmem:[#allocation139_spill] sm:$0xff] %v9053_v36  ;;  %10738 = vst [vmem:[#allocation140_spill] sm:$0xff] %v9057_v1  ;;  %3112 = vmatpush1.msra.mxu0 %v3005_v60  ;;  %3221 = vmatpush2.msra.mxu1 %v3101_v32  ;;  %v3098_v20 = vld [vmem:[#allocation9 + $0xbb8] sm:$0xff]  ;;  %v1263_v45 = vmax.f32 %v9025_v16, %v9035_v39  ;;  %v1272_v60 = vmax.f32 %v9031_v34, %v9041_v38  ;;  %v3000_v17 = vld [vmem:[#allocation9 + $0x8a8] sm:$0xff] }
 0x2d3   : > { %10739 = vst [vmem:[#allocation141_spill] sm:$0xff] %v9062_v43  ;;  %3113 = vmatprep.subr.mxu0 %v3004_v31  ;;  %1556 = vst.msk [vmem:[#allocation2 + $0x21] ss:$8 sm:$0x3] %vm8402_vm1, %v1553_v2  ;;  %3222 = vmatprep.subr.mxu1 %v3100_v28  ;;  %v2219_v7 = vrot.slane %v2212_v59, %v8161_v46  ;;  %v1102_v61 = vadd.f32 %v9035_v39, %v9025_v16  ;;  %v1748_v31 = vrot.slane %v1747_v26, 1  ;;  %v2998_v0 = vld [vmem:[#allocation9 + $0x898] sm:$0xff] }
 0x2d4   : > { %3114 = vmatpush1.msra.mxu0 %v3003_v33  ;;  %v1111_v21 = vadd.f32 %v9041_v38, %v9031_v34  ;;  %3223 = vmatpush2.msra.mxu1 %v3099_v48  ;;  %v1756_v32 = vadd.f32 %v1755_v42, %v1754_v56  ;;  %v1264_v22 = vmax.f32 %v1263_v45, %v9045_v51  ;;  %v2971_v33 = vrot.slane %v2944_v41, 2  ;;  %v9077_v28 = vld [vmem:[#allocation2 + $0x8] sm:$0xfc]  ;;  %v2997_v56 = vld [vmem:[#allocation9 + $0x890] sm:$0xff]  ;;  %v3094_v59 = vld [vmem:[#allocation9 + $0xb98] sm:$0xff] }
 0x2d5   : > { %3115 = vmatprep.subr.mxu0 %v3002_v11  ;;  %v1273_v13 = vmax.f32 %v1272_v60, %v9053_v36  ;;  %3224 = vmatprep.subr.mxu1 %v3098_v20  ;;  %v2226_v35 = vrot.slane %v2219_v7, %v8161_v46  ;;  %v1103_v2 = vadd.f32 %v1102_v61, %v9045_v51  ;;  %v2948_v48 = vld [vmem:[#allocation2 + $0x38] sm:$0x3]  ;;  %v2996_v20 = vld [vmem:[#allocation9 + $0x888] sm:$0xff]  ;;  %v7444_v34 = vld [vmem:[%s7929_s20 + $0x70] sm:$0xff] }
 0x2d6   : > { %3116 = vmatpush1.msra.mxu0 %v3001_v24  ;;  %v1112_v11 = vadd.f32 %v1111_v21, %v9053_v36  ;;  %3225 = vmatpush2.msra.mxu1 %v3097_v47  ;;  %v1749_v15 = vadd.f32 %v1748_v31, %v1747_v26  ;;  %v1757_v42 = vrot.slane %v1756_v32, 1  ;;  %v1265_v41 = vmax.f32 %v1264_v22, %v9057_v1  ;;  %v2995_v47 = vld [vmem:[#allocation9 + $0x880] sm:$0xff]  ;;  %v3093_v26 = vld [vmem:[#allocation9 + $0xb90] sm:$0xff] }
 0x2d7   : > { %3117 = vmatprep.subr.mxu0 %v3000_v17  ;;  %v1274_v24 = vmax.f32 %v1273_v13, %v9062_v43  ;;  %v2972_v45 = vrot.slane %v2948_v48, 2  ;;  %3226 = vmatprep.subr.mxu1 %v3096_v63  ;;  %2229 = vst.msk [vmem:[#allocation2 + $0x57] ss:$8 sm:$0x3] %vm8402_vm1, %v2226_v35  ;;  %v1104_v60 = vadd.f32 %v1103_v2, %v9057_v1  ;;  %v2994_v63 = vld [vmem:[#allocation9 + $0x878] sm:$0xff]  ;;  %v3092_v13 = vld [vmem:[#allocation9 + $0xb88] sm:$0xff] }
 0x2d8   : > { %3118 = vmatpush1.msra.mxu0 %v2999_v52  ;;  %v1113_v17 = vadd.f32 %v1112_v11, %v9062_v43  ;;  %3227 = vmatpush2.msra.mxu1 %v3095_v8  ;;  %v1758_v7 = vadd.f32 %v1757_v42, %v1756_v32  ;;  %v1789_v61 = vmul.f32 0.03125, %v1749_v15  ;;  %v1266_v21 = vrot.slane %v1265_v41, 4  ;;  %v3091_v8 = vld [vmem:[#allocation9 + $0xb80] sm:$0xff] }
 0x2d9   : > { %3119 = vmatprep.subr.mxu0 %v2998_v0  ;;  %v1275_v31 = vrot.slane %v1274_v24, 4  ;;  %v2973_v22 = vsel %vm2961_vm5, %v2971_v33, %v2972_v45  ;;  %v2965_v52 = vrot.slane %v9077_v28, 2  ;;  %3228 = vmatprep.subr.mxu1 %v3094_v59  ;;  %v1105_v35 = vrot.slane %v1104_v60, 4  ;;  %v2993_v0 = vld [vmem:[#allocation9 + $0x870] sm:$0xff]  ;;  %v2992_v33 = vld [vmem:[#allocation9 + $0x868] sm:$0xff]  ;;  %v2991_v59 = vld [vmem:[#allocation9 + $0x860] sm:$0xff] }
 0x2da   : > { %3120 = vmatpush1.msra.mxu0 %v2997_v56  ;;  %v1114_v2 = vrot.slane %v1113_v17, 4  ;;  %3248 = vmatprep.mubr.f32.mxu1 %v2973_v22  ;;  %v2946_v11 = vld [vmem:[#allocation2 + $0x28] sm:$0x3]  ;;  %v1790_v48 = vmul.f32 0.03125, %v1758_v7  ;;  %v1267_v32 = vmax.f32 %v1265_v41, %v1266_v21  ;;  %v3090_v45 = vld [vmem:[#allocation9 + $0xb78] sm:$0xff]  ;;  %v9092_v7 = vmul.f32 %v7444_v34, %v10717_v19 }
 0x2db   : > { %3121 = vmatprep.subr.mxu0 %v2996_v20  ;;  %v1276_v15 = vmax.f32 %v1274_v24, %v1275_v31  ;;  %v2966_v42 = vrot.slane %v2946_v11, 2  ;;  %3229 = vmatpush2.msra.mxu1 %v3093_v26  ;;  %v1106_v28 = vadd.f32 %v1105_v35, %v1104_v60  ;;  %v2990_v24 = vld [vmem:[#allocation9 + $0x858] sm:$0xff]  ;;  %v3088_v31 = vld [vmem:[#allocation9 + $0xb68] sm:$0xff]  ;;  %v3087_v35 = vld [vmem:[#allocation9 + $0xb60] sm:$0xff] }
 0x2dc   : > { %3122 = vmatpush1.msra.mxu0 %v2995_v47  ;;  %v1115_v56 = vadd.f32 %v1114_v2, %v1113_v17  ;;  %3230 = vmatprep.subr.mxu1 %v3092_v13  ;;  %v2191_v22 = vcombine.low %v1789_v61, %v1790_v48  ;;  %v1268_v16 = vrot.slane %v1267_v32, 2  ;;  %10740 = vst [vmem:[#allocation142_spill] sm:$0xff] %v9092_v7  ;;  %v3089_v47 = vld [vmem:[#allocation9 + $0xb70] sm:$0xff]  ;;  %v7445_v26 = vld [vmem:[%s7929_s20 + $0x78] sm:$0xff] }
 0x2dd   : > { %3123 = vmatprep.subr.mxu0 %v2994_v63  ;;  %v1277_v20 = vrot.slane %v1276_v15, 2  ;;  %v2967_v41 = vsel %vm2961_vm5, %v2965_v52, %v2966_v42  ;;  %3231 = vmatpush2.msra.mxu1 %v3091_v8  ;;  %v1107_v60 = vrot.slane %v1106_v28, 2  ;;  %v9097_v21 = vmul.f32 %v7445_v26, %v10717_v19  ;;  %v2989_v61 = vld [vmem:[#allocation9 + $0x850] sm:$0xff]  ;;  %v2988_v52 = vld [vmem:[#allocation9 + $0x848] sm:$0xff]  ;;  %v2987_v19 = vld [vmem:[#allocation9 + $0x840] sm:$0xff] }
 0x2de   : > { %3124 = vmatpush1.msra.mxu0 %v2993_v0  ;;  %v1116_v17 = vrot.slane %v1115_v56, 2  ;;  %3171 = vmatprep.mubr.f32.mxu0 %v2967_v41  ;;  %v2198_v34 = vrot.slane %v2191_v22, %v8161_v46  ;;  %v1269_v63 = vmax.f32 %v1267_v32, %v1268_v16  ;;  %v7446_v0 = vld [vmem:[%s7929_s20 + $0xf0] sm:$0xff]  ;;  %v3086_v48 = vld [vmem:[#allocation9 + $0xb58] sm:$0xff] }
 0x2df   : > { %10741 = vst [vmem:[#allocation143_spill] sm:$0xff] %v9097_v21  ;;  %3125 = vmatprep.subr.mxu0 %v2992_v33  ;;  %v1278_v13 = vmax.f32 %v1276_v15, %v1277_v20  ;;  %3232 = vmatprep.subr.mxu1 %v3090_v45  ;;  %v1108_v2 = vadd.f32 %v1107_v60, %v1106_v28  ;;  %v7447_v42 = vld [vmem:[%s7929_s20 + $0xf8] sm:$0xff]  ;;  %v7448_v22 = vld [vmem:[%s7929_s20 + $0x170] sm:$0xff] }
 0x2e0   : > { %3126 = vmatpush1.msra.mxu0 %v2991_v59  ;;  %v1117_v11 = vadd.f32 %v1116_v17, %v1115_v56  ;;  %v9102_v8 = vmul.f32 %v7446_v0, %v10720_v57  ;;  %3233 = vmatpush2.msra.mxu1 %v3089_v47  ;;  %v2205_v16 = vrot.slane %v2198_v34, %v8161_v46  ;;  %v1270_v32 = vrot.slane %v1269_v63, 1  ;;  %v2986_v28 = vld [vmem:[#allocation9 + $0x838] sm:$0xff]  ;;  %v3085_v56 = vld [vmem:[#allocation9 + $0xb50] sm:$0xff]  ;;  %v3083_v34 = vld [vmem:[#allocation9 + $0xb40] sm:$0xff] }
 0x2e1   : > { %3127 = vmatprep.subr.mxu0 %v2990_v24  ;;  %v1279_v15 = vrot.slane %v1278_v13, 1  ;;  %v9107_v33 = vmul.f32 %v7447_v42, %v10720_v57  ;;  %3234 = vmatprep.subr.mxu1 %v3088_v31  ;;  %v1109_v59 = vrot.slane %v1108_v2, 1  ;;  %v9111_v20 = vmul.f32 %v7448_v22, %v10723_v30  ;;  %v7449_v41 = vld [vmem:[%s7929_s20 + $0x178] sm:$0xff]  ;;  %v2985_v47 = vld [vmem:[#allocation9 + $0x830] sm:$0xff]  ;;  %v3084_v57 = vld [vmem:[#allocation9 + $0xb48] sm:$0xff] }
 0x2e2   : > { %10742 = vst [vmem:[#allocation144_spill] sm:$0xff] %v9102_v8  ;;  %3128 = vmatpush1.msra.mxu0 %v2989_v61  ;;  %v1118_v45 = vrot.slane %v1117_v11, 1  ;;  %v9115_v24 = vmul.f32 %v7449_v41, %v10723_v30  ;;  %3235 = vmatpush2.msra.mxu1 %v3087_v35  ;;  %2208 = vst.msk [vmem:[#allocation2 + $0x47] ss:$8 sm:$0x3] %vm8402_vm1, %v2205_v16  ;;  %v1271_v60 = vmax.f32 %v1269_v63, %v1270_v32  ;;  %v7450_v26 = vld [vmem:[%s7929_s20 + $0x1f0] sm:$0xff] }
 0x2e3   : > { %10743 = vst [vmem:[#allocation145_spill] sm:$0xff] %v9107_v33  ;;  %10744 = vst [vmem:[#allocation146_spill] sm:$0xff] %v9111_v20  ;;  %3129 = vmatprep.subr.mxu0 %v2988_v52  ;;  %v1280_v17 = vmax.f32 %v1278_v13, %v1279_v15  ;;  %v9121_v61 = vmul.f32 %v7450_v26, %v10726_v54  ;;  %v2984_v31 = vld [vmem:[#allocation9 + $0x828] sm:$0xff]  ;;  %3236 = vmatprep.subr.mxu1 %v3086_v48  ;;  %v7451_v42 = vld [vmem:[%s7929_s20 + $0x1f8] sm:$0xff]  ;;  %s10211_s20 = scalar_lea.vmem [#allocation13], %s7108_s27 }
 0x2e4   : > { %10745 = vst [vmem:[#allocation147_spill] sm:$0xff] %v9115_v24  ;;  %3130 = vmatpush1.msra.mxu0 %v2987_v19  ;;  %v1110_v30 = vadd.f32 %v1109_v59, %v1108_v2  ;;  %v1119_v0 = vadd.f32 %v1118_v45, %v1117_v11  ;;  %v9125_v52 = vmul.f32 %v7451_v42, %v10726_v54  ;;  %v2983_v35 = vld [vmem:[#allocation9 + $0x820] sm:$0xff]  ;;  %v3082_v16 = vld [vmem:[#allocation9 + $0xb38] sm:$0xff]  ;;  %v3081_v2 = vld [vmem:[#allocation9 + $0xb30] sm:$0xff]  ;;  %s6966_s19 = sshll.u32 %s10211_s20, 4  ;;  %s10248_s19 = int_to_ptr.vmem [resolvable:$true] %s6966_s19 }
 0x2e5   : > { %10746 = vst [vmem:[#allocation148_spill] sm:$0xff] %v9121_v61  ;;  %3131 = vmatprep.subr.mxu0 %v2986_v28  ;;  %3237 = vmatpush2.msra.mxu1 %v3085_v56  ;;  %v1602_v63 = vcombine.low %v1271_v60, %v1280_v17  ;;  %v1919_v13 = vmax.f32 %v9092_v7, %v9102_v8  ;;  %v2982_v48 = vld [vmem:[#allocation9 + $0x818] sm:$0xff]  ;;  %v2981_v28 = vld [vmem:[#allocation9 + $0x810] sm:$0xff]  ;;  %v2980_v56 = vld [vmem:[#allocation9 + $0x808] sm:$0xff]  ;;  %s7586_s0 = scalar_lea.vmem %s10248_s19, 4096  ;;  %p7593_p9 = scmp.lt.s32.totalorder %s10248_s19, %s7591_s8 }
 0x2e6   : > { %10747 = vst [vmem:[#allocation149_spill] sm:$0xff] %v9125_v52  ;;  %v1928_v19 = vmax.f32 %v9097_v21, %v9107_v33  ;;  %3132 = vmatpush1.msra.mxu0 %v2985_v47  ;;  %3238 = vmatprep.subr.mxu1 %v3084_v57  ;;  %v1135_v11 = vmul.f32 0.03125, %v1110_v30  ;;  %v1136_v32 = vmul.f32 0.03125, %v1119_v0  ;;  %v1759_v54 = vadd.f32 %v9102_v8, %v9092_v7  ;;  %v3080_v59 = vld [vmem:[#allocation9 + $0xb28] sm:$0xff]  ;;  %v3079_v47 = vld [vmem:[#allocation9 + $0xb20] sm:$0xff]  ;;  %p7587_p10 = scmp.ne.s32.totalorder %s10248_s19, %s7586_s0  ;;  %p7594_p12 = scmp.lt.s32.totalorder %s7592_s14, %s7586_s0 }
 0x2e7   : > { %v1768_v15 = vadd.f32 %v9107_v33, %v9097_v21  ;;  %3133 = vmatprep.subr.mxu0 %v2984_v31  ;;  %3239 = vmatpush2.msra.mxu1 %v3083_v34  ;;  %v1609_v45 = vrot.slane %v1602_v63, %v8161_v46  ;;  %v1920_v22 = vmax.f32 %v1919_v13, %v9111_v20  ;;  %v2943_v57 = vld [vmem:[#allocation2 + $0x10] sm:$0xfc]  ;;  %v2947_v60 = vld [vmem:[#allocation2 + $0x30] sm:$0x3]  ;;  %v2979_v30 = vld [vmem:[#allocation9 + $0x800] sm:$0xff] }
 0x2e8   : > { %v1929_v41 = vmax.f32 %v1928_v19, %v9115_v24  ;;  %3134 = vmatpush1.msra.mxu0 %v2983_v35  ;;  %3240 = vmatprep.subr.mxu1 %v3082_v16  ;;  %v1581_v17 = vcombine.low %v1135_v11, %v1136_v32  ;;  %v1760_v26 = vadd.f32 %v1759_v54, %v9111_v20  ;;  %v3078_v34 = vld [vmem:[#allocation9 + $0xb18] sm:$0xff]  ;;  %v3077_v16 = vld [vmem:[#allocation9 + $0xb10] sm:$0xff]  ;;  %v2968_v32 = vrot.slane %v2943_v57, 2  ;;  %p7588_p2 = pnand %p7587_p10, %p10940_p1  ;;  %p7595_p4 = por %p7594_p12, %p7593_p9 }
 0x2e9   : > { %v1769_v31 = vadd.f32 %v1768_v15, %v9115_v24  ;;  %3135 = vmatprep.subr.mxu0 %v2982_v48  ;;  %3241 = vmatpush2.msra.mxu1 %v3081_v2  ;;  %v1616_v0 = vrot.slane %v1609_v45, %v8161_v46  ;;  %v1921_v42 = vmax.f32 %v1920_v22, %v9121_v61  ;;  %v3042_v35 = vld [vmem:[#allocation9 + $0x9f8] sm:$0xff]  ;;  %v3041_v48 = vld [vmem:[#allocation9 + $0x9f0] sm:$0xff]  ;;  %v3076_v2 = vld [vmem:[#allocation9 + $0xb08] sm:$0xff]  ;;  %v2969_v54 = vrot.slane %v2947_v60, 2 }
 0x2ea   : > { %v1930_v63 = vmax.f32 %v1929_v41, %v9125_v52  ;;  %3136 = vmatpush1.msra.mxu0 %v2981_v28  ;;  %3242 = vmatprep.subr.mxu1 %v3080_v59  ;;  %v1588_v13 = vrot.slane %v1581_v17, %v8161_v46  ;;  %v1761_v19 = vadd.f32 %v1760_v26, %v9121_v61  ;;  %v3040_v59 = vld [vmem:[#allocation9 + $0x9e8] sm:$0xff]  ;;  %v3075_v45 = vld [vmem:[#allocation9 + $0xb00] sm:$0xff]  ;;  %v3038_v57 = vld [vmem:[#allocation9 + $0x9d8] sm:$0xff]  ;;  %p7589_p3 = pneg %p7588_p2 }
 0x2eb   : > { %v1770_v11 = vadd.f32 %v1769_v31, %v9125_v52  ;;  %3137 = vmatprep.subr.mxu0 %v2980_v56  ;;  %3243 = vmatpush2.msra.mxu1 %v3079_v47  ;;  %1619 = vst.msk [vmem:[#allocation2 + $0x32] ss:$8 sm:$0x3] %vm8402_vm1, %v1616_v0  ;;  %v1922_v15 = vrot.slane %v1921_v42, 4  ;;  %v3039_v56 = vld [vmem:[#allocation9 + $0x9e0] sm:$0xff]  ;;  %v3426_v60 = vld [vmem:[#allocation9 + $0xef8] sm:$0xff]  ;;  %v2970_v0 = vsel %vm2961_vm5, %v2968_v32, %v2969_v54 }
 0x2ec   : > { %v1931_v28 = vrot.slane %v1930_v63, 4  ;;  %3138 = vmatpush1.msra.mxu0 %v2979_v30  ;;  %3244 = vmatprep.subr.mxu1 %v3078_v34  ;;  %v1595_v22 = vrot.slane %v1588_v13, %v8161_v46  ;;  %v1762_v41 = vrot.slane %v1761_v19, 4  ;;  %v3037_v34 = vld [vmem:[#allocation9 + $0x9d0] sm:$0xff]  ;;  %v3423_v32 = vld [vmem:[#allocation9 + $0xee0] sm:$0xff]  ;;  %p7596_p6 = pnand %p7595_p4, %p7589_p3 }
 0x2ed   : > { %v1771_v17 = vrot.slane %v1770_v11, 4  ;;  %3139 = vmatprep.subr.mxu0 %v3042_v35  ;;  %3245 = vmatpush2.msra.mxu1 %v3077_v16  ;;  %v1923_v47 = vmax.f32 %v1921_v42, %v1922_v15  ;;  %v3036_v16 = vld [vmem:[#allocation9 + $0x9c8] sm:$0xff]  ;;  %v3035_v42 = vld [vmem:[#allocation9 + $0x9c0] sm:$0xff]  ;;  %v2952_v15 = vld [vmem:[#allocation2 + $0x58] sm:$0xff] }
 0x2ee   : > { %v1932_v26 = vmax.f32 %v1930_v63, %v1931_v28  ;;  %3140 = vmatpush2.msra.mxu0 %v3041_v48  ;;  %3246 = vmatprep.subr.mxu1 %v3076_v2  ;;  %1598 = vst.msk [vmem:[#allocation2 + $0x22] ss:$8 sm:$0x3] %vm8402_vm1, %v1595_v22  ;;  %v1763_v31 = vadd.f32 %v1762_v41, %v1761_v19  ;;  %v3425_v63 = vld [vmem:[#allocation9 + $0xef0] sm:$0xff]  ;;  %v3424_v28 = vld [vmem:[#allocation9 + $0xee8] sm:$0xff] }
 0x2ef   : > { %v1772_v30 = vadd.f32 %v1771_v17, %v1770_v11  ;;  %3141 = vmatprep.subr.mxu0 %v3040_v59  ;;  %3247 = vmatpush2.msra.mxu1 %v3075_v45  ;;  %v1924_v13 = vrot.slane %v1923_v47, 2  ;;  %v3268_v19 = vld [vmem:[#allocation2 + $0x18] sm:$0xf8]  ;;  %v3033_v17 = vld [vmem:[#allocation9 + $0x9b0] sm:$0xff] }
 0x2f0   : > { %v1933_v35 = vrot.slane %v1932_v26, 2  ;;  %3142 = vmatpush2.msra.mxu0 %v3039_v56  ;;  %3249 = vmatmul.mubr.f32.vlgmr.msra.gmra.mxu1 %v2970_v0  ;;  %v1764_v48 = vrot.slane %v1763_v31, 2  ;;  %v3034_v45 = vld [vmem:[#allocation9 + $0x9b8] sm:$0xff]  ;;  %v3299_v39 = vrot.slane %v3268_v19, 3  ;;  %v3419_v19 = vld [vmem:[#allocation9 + $0xec0] sm:$0xff] }
 0x2f1   : > { %v1773_v2 = vrot.slane %v1772_v30, 2  ;;  %3143 = vmatprep.subr.mxu0 %v3038_v57  ;;  %3536 = vmatprep.subr.mxu1 %v3426_v60  ;;  %v1925_v11 = vmax.f32 %v1923_v47, %v1924_v13  ;;  %v3032_v57 = vld [vmem:[#allocation9 + $0x9a8] sm:$0xff]  ;;  %v3422_v60 = vld [vmem:[#allocation9 + $0xed8] sm:$0xff]  ;;  %v2951_v13 = vld [vmem:[#allocation2 + $0x50] sm:$0xff] }
 0x2f2   : > { %v1934_v59 = vmax.f32 %v1932_v26, %v1933_v35  ;;  %3144 = vmatpush2.msra.mxu0 %v3037_v34  ;;  %3254 = vmatprep.mubr.f32.mxu1 %v2952_v15  ;;  %v3272_v54 = vld [vmem:[#allocation2 + $0x38] sm:$0x7]  ;;  %v1765_v22 = vadd.f32 %v1764_v48, %v1763_v31  ;;  %v3031_v34 = vld [vmem:[#allocation9 + $0x9a0] sm:$0xff]  ;;  %v3421_v35 = vld [vmem:[#allocation9 + $0xed0] sm:$0xff] }
 0x2f3   : > { %v1774_v41 = vadd.f32 %v1773_v2, %v1772_v30  ;;  %3145 = vmatprep.subr.mxu0 %v3036_v16  ;;  %3537 = vmatpush1.msra.mxu1 %v3425_v63  ;;  %v1926_v56 = vrot.slane %v1925_v11, 1  ;;  %v3300_v38 = vrot.slane %v3272_v54, 3  ;;  %v3030_v30 = vld [vmem:[#allocation9 + $0x998] sm:$0xff]  ;;  %v3420_v48 = vld [vmem:[#allocation9 + $0xec8] sm:$0xff] }
 0x2f4   : > { %v1935_v0 = vrot.slane %v1934_v59, 1  ;;  %3146 = vmatpush2.msra.mxu0 %v3035_v42  ;;  %3538 = vmatprep.subr.mxu1 %v3424_v28  ;;  %v1766_v47 = vrot.slane %v1765_v22, 1  ;;  %v3029_v42 = vld [vmem:[#allocation9 + $0x990] sm:$0xff]  ;;  %v3028_v15 = vld [vmem:[#allocation9 + $0x988] sm:$0xff]  ;;  %v3418_v54 = vld [vmem:[#allocation9 + $0xeb8] sm:$0xff] }
 0x2f5   : > { %v1775_v26 = vrot.slane %v1774_v41, 1  ;;  %3147 = vmatprep.subr.mxu0 %v3034_v45  ;;  %3539 = vmatpush1.msra.mxu1 %v3423_v32  ;;  %v1927_v31 = vmax.f32 %v1925_v11, %v1926_v56  ;;  %v3301_v28 = vsel %vm3289_vm6, %v3299_v39, %v3300_v38  ;;  %v3027_v11 = vld [vmem:[#allocation9 + $0x980] sm:$0xff]  ;;  %v3024_v39 = vld [vmem:[#allocation9 + $0x968] sm:$0xff] }
 0x2f6   : > { %3148 = vmatpush2.msra.mxu0 %v3033_v17  ;;  %3255 = vmatmul.mubr.f32.gmra.mxu1 %v2951_v13  ;;  %v1936_v16 = vmax.f32 %v1934_v59, %v1935_v0  ;;  %v1767_v63 = vadd.f32 %v1766_v47, %v1765_v22  ;;  %v3026_v59 = vld [vmem:[#allocation9 + $0x978] sm:$0xff]  ;;  %v3417_v22 = vld [vmem:[#allocation9 + $0xeb0] sm:$0xff]  ;;  %v3416_v0 = vld [vmem:[#allocation9 + $0xea8] sm:$0xff] }
 0x2f7   : > { %3149 = vmatprep.subr.mxu0 %v3032_v57  ;;  %3540 = vmatprep.subr.mxu1 %v3422_v60  ;;  %v1776_v2 = vadd.f32 %v1775_v26, %v1774_v41  ;;  %v3025_v41 = vld [vmem:[#allocation9 + $0x970] sm:$0xff]  ;;  %v3415_v38 = vld [vmem:[#allocation9 + $0xea0] sm:$0xff]  ;;  %v3414_v26 = vld [vmem:[#allocation9 + $0xe98] sm:$0xff] }
 0x2f8   : > { %3150 = vmatpush2.msra.mxu0 %v3031_v34  ;;  %3541 = vmatpush1.msra.mxu1 %v3421_v35  ;;  %v2254_v45 = vcombine.low %v1927_v31, %v1936_v16  ;;  %v1791_v32 = vmul.f32 0.03125, %v1767_v63  ;;  %v3023_v47 = vld [vmem:[#allocation9 + $0x960] sm:$0xff]  ;;  %v3022_v13 = vld [vmem:[#allocation9 + $0x958] sm:$0xff]  ;;  %v3413_v35 = vld [vmem:[#allocation9 + $0xe90] sm:$0xff] }
 0x2f9   : > { %3151 = vmatprep.subr.mxu0 %v3030_v30  ;;  %3600 = vmatprep.mubr.f32.mxu1 %v3301_v28  ;;  %v1792_v17 = vmul.f32 0.03125, %v1776_v2  ;;  %v3021_v31 = vld [vmem:[#allocation9 + $0x950] sm:$0xff]  ;;  %v3412_v30 = vld [vmem:[#allocation9 + $0xe88] sm:$0xff]  ;;  %v3410_v2 = vld [vmem:[#allocation9 + $0xe78] sm:$0xff] }
 0x2fa   : > { %3152 = vmatpush2.msra.mxu0 %v3029_v42  ;;  %3542 = vmatprep.subr.mxu1 %v3420_v48  ;;  %v2261_v56 = vrot.slane %v2254_v45, %v8161_v46  ;;  %v3020_v63 = vld [vmem:[#allocation9 + $0x948] sm:$0xff]  ;;  %v3411_v42 = vld [vmem:[#allocation9 + $0xe80] sm:$0xff]  ;;  %v3409_v28 = vld [vmem:[#allocation9 + $0xe70] sm:$0xff] }
 0x2fb   : > { %3153 = vmatprep.subr.mxu0 %v3028_v15  ;;  %3543 = vmatpush1.msra.mxu1 %v3419_v19  ;;  %v2233_v57 = vcombine.low %v1791_v32, %v1792_v17  ;;  %v3019_v48 = vld [vmem:[#allocation9 + $0x940] sm:$0xff]  ;;  %v3018_v15 = vld [vmem:[#allocation9 + $0x938] sm:$0xff]  ;;  %v3017_v19 = vld [vmem:[#allocation9 + $0x930] sm:$0xff] }
 0x2fc   : > { %3154 = vmatpush2.msra.mxu0 %v3027_v11  ;;  %3544 = vmatprep.subr.mxu1 %v3418_v54  ;;  %v2268_v60 = vrot.slane %v2261_v56, %v8161_v46  ;;  %v3408_v45 = vld [vmem:[#allocation9 + $0xe68] sm:$0xff]  ;;  %v3015_v11 = vld [vmem:[#allocation9 + $0x920] sm:$0xff]  ;;  %v3014_v56 = vld [vmem:[#allocation9 + $0x918] sm:$0xff] }
 0x2fd   : > { %3155 = vmatprep.subr.mxu0 %v3026_v59  ;;  %3545 = vmatpush1.msra.mxu1 %v3417_v22  ;;  %v2240_v34 = vrot.slane %v2233_v57, %v8161_v46  ;;  %v3016_v32 = vld [vmem:[#allocation9 + $0x928] sm:$0xff]  ;;  %v3407_v54 = vld [vmem:[#allocation9 + $0xe60] sm:$0xff]  ;;  %v3406_v22 = vld [vmem:[#allocation9 + $0xe58] sm:$0xff] }
 0x2fe   : > { %3156 = vmatpush2.msra.mxu0 %v3025_v41  ;;  %3546 = vmatprep.subr.mxu1 %v3416_v0  ;;  %2271 = vst.msk [vmem:[#allocation2 + $0x70] ss:$8 sm:$0x3] %vm8402_vm1, %v2268_v60  ;;  %v2941_v17 = vld [vmem:[#allocation2] sm:$0xfc]  ;;  %v3405_v41 = vld [vmem:[#allocation9 + $0xe50] sm:$0xff] }
 0x2ff   : > { %3157 = vmatprep.subr.mxu0 %v3024_v39  ;;  %3547 = vmatpush1.msra.mxu1 %v3415_v38  ;;  %v2247_v16 = vrot.slane %v2240_v34, %v8161_v46  ;;  %v2945_v59 = vld [vmem:[#allocation2 + $0x20] sm:$0x3]  ;;  %v3013_v0 = vld [vmem:[#allocation9 + $0x910] sm:$0xff]  ;;  %v3404_v57 = vld [vmem:[#allocation9 + $0xe48] sm:$0xff]  ;;  %v2962_v38 = vrot.slane %v2941_v17, 2 }
 0x300   : > { %3158 = vmatpush2.msra.mxu0 %v3023_v47  ;;  %3548 = vmatprep.subr.mxu1 %v3414_v26  ;;  %v3012_v39 = vld [vmem:[#allocation9 + $0x908] sm:$0xff]  ;;  %v2963_v60 = vrot.slane %v2945_v59, 2  ;;  %v3403_v47 = vld [vmem:[#allocation9 + $0xe40] sm:$0xff]  ;;  %v3402_v34 = vld [vmem:[#allocation9 + $0xe38] sm:$0xff] }
 0x301   : > { %3159 = vmatprep.subr.mxu0 %v3022_v13  ;;  %3549 = vmatpush1.msra.mxu1 %v3413_v35  ;;  %2250 = vst.msk [vmem:[#allocation2 + $0x60] ss:$8 sm:$0x3] %vm8402_vm1, %v2247_v16  ;;  %v3011_v26 = vld [vmem:[#allocation9 + $0x900] sm:$0xff]  ;;  %v3362_v13 = vld [vmem:[#allocation9 + $0xcf8] sm:$0xff] }
 0x302   : > { %3160 = vmatpush2.msra.mxu0 %v3021_v31  ;;  %3550 = vmatprep.subr.mxu1 %v3412_v30  ;;  %v3266_v35 = vld [vmem:[#allocation2 + $0x8] sm:$0xf8]  ;;  %v3270_v31 = vld [vmem:[#allocation2 + $0x28] sm:$0x7]  ;;  %v3361_v30 = vld [vmem:[#allocation9 + $0xcf0] sm:$0xff]  ;;  %v2964_v16 = vsel %vm2961_vm5, %v2962_v38, %v2963_v60 }
 0x303   : > { %3161 = vmatprep.subr.mxu0 %v3020_v63  ;;  %3551 = vmatpush1.msra.mxu1 %v3411_v42  ;;  %v3360_v63 = vld [vmem:[#allocation9 + $0xce8] sm:$0xff]  ;;  %v3401_v42 = vld [vmem:[#allocation9 + $0xe30] sm:$0xff]  ;;  %v3399_v17 = vld [vmem:[#allocation9 + $0xe20] sm:$0xff] }
 0x304   : > { %3162 = vmatpush2.msra.mxu0 %v3019_v48  ;;  %3552 = vmatprep.subr.mxu1 %v3410_v2  ;;  %v2950_v48 = vld [vmem:[#allocation2 + $0x48] sm:$0xff]  ;;  %v3359_v2 = vld [vmem:[#allocation9 + $0xce0] sm:$0xff] }
 0x305   : > { %3163 = vmatprep.subr.mxu0 %v3018_v15  ;;  %3553 = vmatpush1.msra.mxu1 %v3409_v28  ;;  %v3293_v15 = vrot.slane %v3266_v35, 3  ;;  %v3294_v28 = vrot.slane %v3270_v31, 3  ;;  %v3352_v38 = vld [vmem:[#allocation9 + $0xca8] sm:$0xff]  ;;  %v3395_v60 = vld [vmem:[#allocation9 + $0xe00] sm:$0xff]  ;;  %v3349_v35 = vld [vmem:[#allocation9 + $0xc90] sm:$0xff] }
 0x306   : > { %3164 = vmatpush2.msra.mxu0 %v3017_v19  ;;  %3554 = vmatprep.subr.mxu1 %v3408_v45  ;;  %v3400_v19 = vld [vmem:[#allocation9 + $0xe28] sm:$0xff]  ;;  %v3358_v45 = vld [vmem:[#allocation9 + $0xcd8] sm:$0xff] }
 0x307   : > { %3165 = vmatprep.subr.mxu0 %v3016_v32  ;;  %3555 = vmatpush1.msra.mxu1 %v3407_v54  ;;  %v3357_v32 = vld [vmem:[#allocation9 + $0xcd0] sm:$0xff]  ;;  %v3356_v54 = vld [vmem:[#allocation9 + $0xcc8] sm:$0xff]  ;;  %v3295_v59 = vsel %vm3289_vm6, %v3293_v15, %v3294_v28 }
 0x308   : > { %3166 = vmatpush2.msra.mxu0 %v3015_v11  ;;  %3556 = vmatprep.subr.mxu1 %v3406_v22  ;;  %v2949_v11 = vld [vmem:[#allocation2 + $0x40] sm:$0xff]  ;;  %v3456_v31 = vld [vmem:[#allocation9 + $0xfe8] sm:$0xff]  ;;  %v3345_v15 = vld [vmem:[#allocation9 + $0xc70] sm:$0xff] }
 0x309   : > { %3167 = vmatprep.subr.mxu0 %v3014_v56  ;;  %3557 = vmatpush1.msra.mxu1 %v3405_v41  ;;  %v3355_v22 = vld [vmem:[#allocation9 + $0xcc0] sm:$0xff]  ;;  %v3398_v56 = vld [vmem:[#allocation9 + $0xe18] sm:$0xff]  ;;  %v3452_v28 = vld [vmem:[#allocation9 + $0xfc8] sm:$0xff] }
 0x30a   : > { %3168 = vmatpush2.msra.mxu0 %v3013_v0  ;;  %3558 = vmatprep.subr.mxu1 %v3404_v57  ;;  %v3354_v41 = vld [vmem:[#allocation9 + $0xcb8] sm:$0xff]  ;;  %v3397_v0 = vld [vmem:[#allocation9 + $0xe10] sm:$0xff] }
 0x30b   : > { %3169 = vmatprep.subr.mxu0 %v3012_v39  ;;  %3559 = vmatpush1.msra.mxu1 %v3403_v47  ;;  %v3353_v57 = vld [vmem:[#allocation9 + $0xcb0] sm:$0xff]  ;;  %v3396_v39 = vld [vmem:[#allocation9 + $0xe08] sm:$0xff]  ;;  %v3351_v47 = vld [vmem:[#allocation9 + $0xca0] sm:$0xff] }
 0x30c   : > { %3170 = vmatpush2.msra.mxu0 %v3011_v26  ;;  %3560 = vmatprep.subr.mxu1 %v3402_v34  ;;  %v3458_v26 = vld [vmem:[#allocation9 + $0xff8] sm:$0xff] }
 0x30d   : > { %3172 = vmatmul.mubr.f32.vlgmr.msra.gmra.mxu0 %v2964_v16  ;;  %3459 = vmatprep.subr.mxu0 %v3362_v13  ;;  %v3350_v34 = vld [vmem:[#allocation9 + $0xc98] sm:$0xff]  ;;  %v3457_v13 = vld [vmem:[#allocation9 + $0xff0] sm:$0xff]  ;;  %v3455_v16 = vld [vmem:[#allocation9 + $0xfe0] sm:$0xff] }
 0x30e   : > { %3177 = vmatprep.mubr.f32.mxu0 %v2950_v48  ;;  %3460 = vmatpush1.msra.mxu0 %v3361_v30  ;;  %v3348_v30 = vld [vmem:[#allocation9 + $0xc88] sm:$0xff]  ;;  %v3346_v48 = vld [vmem:[#allocation9 + $0xc78] sm:$0xff] }
 0x30f   : > { %3461 = vmatprep.subr.mxu0 %v3360_v63  ;;  %3561 = vmatpush1.msra.mxu1 %v3401_v42  ;;  %v3347_v63 = vld [vmem:[#allocation9 + $0xc80] sm:$0xff]  ;;  %v3454_v42 = vld [vmem:[#allocation9 + $0xfd8] sm:$0xff] }
 0x310   : > { %3462 = vmatpush1.msra.mxu0 %v3359_v2  ;;  %3562 = vmatprep.subr.mxu1 %v3400_v19  ;;  %v3453_v2 = vld [vmem:[#allocation9 + $0xfd0] sm:$0xff]  ;;  %v3344_v19 = vld [vmem:[#allocation9 + $0xc68] sm:$0xff] }
 0x311   : > { %3178 = vmatmul.mubr.f32.gmra.mxu0 %v2949_v11  ;;  %3463 = vmatprep.subr.mxu0 %v3358_v45  ;;  %v3451_v45 = vld [vmem:[#allocation9 + $0xfc0] sm:$0xff]  ;;  %v3450_v11 = vld [vmem:[#allocation9 + $0xfb8] sm:$0xff] }
 0x312   : > { %3464 = vmatpush1.msra.mxu0 %v3357_v32  ;;  %3523 = vmatprep.mubr.f32.mxu0 %v3295_v59  ;;  %v3343_v32 = vld [vmem:[#allocation9 + $0xc60] sm:$0xff]  ;;  %v3341_v59 = vld [vmem:[#allocation9 + $0xc50] sm:$0xff] }
 0x313   : > { %3465 = vmatprep.subr.mxu0 %v3356_v54  ;;  %3563 = vmatpush1.msra.mxu1 %v3399_v17  ;;  %v3342_v54 = vld [vmem:[#allocation9 + $0xc58] sm:$0xff]  ;;  %v3449_v17 = vld [vmem:[#allocation9 + $0xfb0] sm:$0xff] }
 0x314   : > { %3466 = vmatpush1.msra.mxu0 %v3355_v22  ;;  %3564 = vmatprep.subr.mxu1 %v3398_v56  ;;  %v3448_v22 = vld [vmem:[#allocation9 + $0xfa8] sm:$0xff] }
 0x315   : > { %3467 = vmatprep.subr.mxu0 %v3354_v41  ;;  %3565 = vmatpush1.msra.mxu1 %v3397_v0  ;;  %v3340_v56 = vld [vmem:[#allocation9 + $0xc48] sm:$0xff]  ;;  %v3447_v41 = vld [vmem:[#allocation9 + $0xfa0] sm:$0xff] }
 0x316   : > { %3468 = vmatpush1.msra.mxu0 %v3353_v57  ;;  %3566 = vmatprep.subr.mxu1 %v3396_v39  ;;  %v3339_v0 = vld [vmem:[#allocation9 + $0xc40] sm:$0xff]  ;;  %v3446_v57 = vld [vmem:[#allocation9 + $0xf98] sm:$0xff] }
 0x317   : > { %3469 = vmatprep.subr.mxu0 %v3352_v38  ;;  %3567 = vmatpush1.msra.mxu1 %v3395_v60  ;;  %v3338_v39 = vld [vmem:[#allocation9 + $0xc38] sm:$0xff]  ;;  %v3445_v38 = vld [vmem:[#allocation9 + $0xf90] sm:$0xff] }
 0x318   : > { %3470 = vmatpush1.msra.mxu0 %v3351_v47  ;;  %3568 = vmatprep.subr.mxu1 %v3458_v26  ;;  %v3337_v60 = vld [vmem:[#allocation9 + $0xc30] sm:$0xff]  ;;  %v3444_v47 = vld [vmem:[#allocation9 + $0xf88] sm:$0xff] }
 0x319   : > { %3471 = vmatprep.subr.mxu0 %v3350_v34  ;;  %3569 = vmatpush2.msra.mxu1 %v3457_v13  ;;  %v3336_v26 = vld [vmem:[#allocation9 + $0xc28] sm:$0xff]  ;;  %v3443_v34 = vld [vmem:[#allocation9 + $0xf80] sm:$0xff] }
 0x31a   : > { %3472 = vmatpush1.msra.mxu0 %v3349_v35  ;;  %3570 = vmatprep.subr.mxu1 %v3456_v31  ;;  %v3335_v13 = vld [vmem:[#allocation9 + $0xc20] sm:$0xff]  ;;  %v3442_v35 = vld [vmem:[#allocation9 + $0xf78] sm:$0xff] }
 0x31b   : > { %3473 = vmatprep.subr.mxu0 %v3348_v30  ;;  %3571 = vmatpush2.msra.mxu1 %v3455_v16  ;;  %v3334_v31 = vld [vmem:[#allocation9 + $0xc18] sm:$0xff]  ;;  %v3441_v30 = vld [vmem:[#allocation9 + $0xf70] sm:$0xff] }
 0x31c   : > { %3474 = vmatpush1.msra.mxu0 %v3347_v63  ;;  %3572 = vmatprep.subr.mxu1 %v3454_v42  ;;  %v3333_v16 = vld [vmem:[#allocation9 + $0xc10] sm:$0xff]  ;;  %v3440_v63 = vld [vmem:[#allocation9 + $0xf68] sm:$0xff] }
 0x31d   : > { %3475 = vmatprep.subr.mxu0 %v3346_v48  ;;  %3573 = vmatpush2.msra.mxu1 %v3453_v2  ;;  %v3332_v42 = vld [vmem:[#allocation9 + $0xc08] sm:$0xff]  ;;  %v3439_v48 = vld [vmem:[#allocation9 + $0xf60] sm:$0xff] }
 0x31e   : > { %3476 = vmatpush1.msra.mxu0 %v3345_v15  ;;  %3574 = vmatprep.subr.mxu1 %v3452_v28  ;;  %v3331_v2 = vld [vmem:[#allocation9 + $0xc00] sm:$0xff]  ;;  %v3438_v15 = vld [vmem:[#allocation9 + $0xf58] sm:$0xff] }
 0x31f   : > { %3477 = vmatprep.subr.mxu0 %v3344_v19  ;;  %3575 = vmatpush2.msra.mxu1 %v3451_v45  ;;  %v3394_v28 = vld [vmem:[#allocation9 + $0xdf8] sm:$0xff]  ;;  %v3437_v19 = vld [vmem:[#allocation9 + $0xf50] sm:$0xff] }
 0x320   : > { %3478 = vmatpush1.msra.mxu0 %v3343_v32  ;;  %3576 = vmatprep.subr.mxu1 %v3450_v11  ;;  %v3393_v45 = vld [vmem:[#allocation9 + $0xdf0] sm:$0xff]  ;;  %v3436_v32 = vld [vmem:[#allocation9 + $0xf48] sm:$0xff] }
 0x321   : > { %3479 = vmatprep.subr.mxu0 %v3342_v54  ;;  %3577 = vmatpush2.msra.mxu1 %v3449_v17  ;;  %v3392_v11 = vld [vmem:[#allocation9 + $0xde8] sm:$0xff]  ;;  %v3435_v54 = vld [vmem:[#allocation9 + $0xf40] sm:$0xff] }
 0x322   : > { %3480 = vmatpush1.msra.mxu0 %v3341_v59  ;;  %3578 = vmatprep.subr.mxu1 %v3448_v22  ;;  %v3391_v17 = vld [vmem:[#allocation9 + $0xde0] sm:$0xff]  ;;  %v3434_v59 = vld [vmem:[#allocation9 + $0xf38] sm:$0xff] }
 0x323   : > { %3481 = vmatprep.subr.mxu0 %v3340_v56  ;;  %3579 = vmatpush2.msra.mxu1 %v3447_v41  ;;  %v3390_v22 = vld [vmem:[#allocation9 + $0xdd8] sm:$0xff]  ;;  %v3433_v56 = vld [vmem:[#allocation9 + $0xf30] sm:$0xff] }
 0x324   : > { %3482 = vmatpush1.msra.mxu0 %v3339_v0  ;;  %3580 = vmatprep.subr.mxu1 %v3446_v57  ;;  %v3389_v41 = vld [vmem:[#allocation9 + $0xdd0] sm:$0xff]  ;;  %v3388_v0 = vld [vmem:[#allocation9 + $0xdc8] sm:$0xff] }
 0x325   : > { %3483 = vmatprep.subr.mxu0 %v3338_v39  ;;  %3581 = vmatpush2.msra.mxu1 %v3445_v38  ;;  %v3432_v57 = vld [vmem:[#allocation9 + $0xf28] sm:$0xff]  ;;  %v3431_v39 = vld [vmem:[#allocation9 + $0xf20] sm:$0xff]  ;;  %v3267_v38 = vld [vmem:[#allocation2 + $0x10] sm:$0xf8] }
 0x326   : > { %3484 = vmatpush1.msra.mxu0 %v3337_v60  ;;  %3582 = vmatprep.subr.mxu1 %v3444_v47  ;;  %v3271_v60 = vld [vmem:[#allocation2 + $0x30] sm:$0x7]  ;;  %v3387_v47 = vld [vmem:[#allocation9 + $0xdc0] sm:$0xff] }
 0x327   : > { %3485 = vmatprep.subr.mxu0 %v3336_v26  ;;  %3583 = vmatpush2.msra.mxu1 %v3443_v34  ;;  %v3386_v26 = vld [vmem:[#allocation9 + $0xdb8] sm:$0xff] }
 0x328   : > { %3486 = vmatpush1.msra.mxu0 %v3335_v13  ;;  %3584 = vmatprep.subr.mxu1 %v3442_v35  ;;  %v3430_v34 = vld [vmem:[#allocation9 + $0xf18] sm:$0xff]  ;;  %v3429_v13 = vld [vmem:[#allocation9 + $0xf10] sm:$0xff] }
 0x329   : > { %3487 = vmatprep.subr.mxu0 %v3334_v31  ;;  %3585 = vmatpush2.msra.mxu1 %v3441_v30  ;;  %v3276_v35 = vld [vmem:[#allocation2 + $0x58] sm:$0xfe]  ;;  %v3280_v31 = vld [vmem:[#allocation2 + $0x78] sm:$0x1]  ;;  %v3385_v30 = vld [vmem:[#allocation9 + $0xdb0] sm:$0xff] }
 0x32a   : > { %3488 = vmatpush1.msra.mxu0 %v3333_v16  ;;  %3586 = vmatprep.subr.mxu1 %v3440_v63  ;;  %v3428_v16 = vld [vmem:[#allocation9 + $0xf08] sm:$0xff]  ;;  %v3296_v63 = vrot.slane %v3267_v38, 3 }
 0x32b   : > { %3489 = vmatprep.subr.mxu0 %v3332_v42  ;;  %3587 = vmatpush2.msra.mxu1 %v3439_v48  ;;  %v3297_v42 = vrot.slane %v3271_v60, 3  ;;  %v3384_v48 = vld [vmem:[#allocation9 + $0xda8] sm:$0xff]  ;;  %v3620_v60 = vld [vmem:[#allocation2 + $0x18] sm:$0xf0] }
 0x32c   : > { %3490 = vmatpush1.msra.mxu0 %v3331_v2  ;;  %3588 = vmatprep.subr.mxu1 %v3438_v15  ;;  %v3427_v2 = vld [vmem:[#allocation9 + $0xf00] sm:$0xff] }
 0x32d   : > { %3491 = vmatprep.subr.mxu0 %v3394_v28  ;;  %3589 = vmatpush2.msra.mxu1 %v3437_v19  ;;  %v3383_v15 = vld [vmem:[#allocation9 + $0xda0] sm:$0xff]  ;;  %v3382_v28 = vld [vmem:[#allocation9 + $0xd98] sm:$0xff]  ;;  %v3323_v19 = vrot.slane %v3276_v35, 1  ;;  %v3376_v35 = vld [vmem:[#allocation9 + $0xd68] sm:$0xff] }
 0x32e   : > { %3492 = vmatpush2.msra.mxu0 %v3393_v45  ;;  %3590 = vmatprep.subr.mxu1 %v3436_v32  ;;  %v3324_v45 = vrot.slane %v3280_v31, 1  ;;  %v3778_v32 = vld [vmem:[#allocation9 + $0x12f8] sm:$0xff] }
 0x32f   : > { %3493 = vmatprep.subr.mxu0 %v3392_v11  ;;  %3591 = vmatpush2.msra.mxu1 %v3435_v54  ;;  %v3275_v11 = vld [vmem:[#allocation2 + $0x50] sm:$0xfe]  ;;  %v3279_v54 = vld [vmem:[#allocation2 + $0x70] sm:$0x1]  ;;  %v3774_v31 = vld [vmem:[#allocation9 + $0x12d8] sm:$0xff] }
 0x330   : > { %3494 = vmatpush2.msra.mxu0 %v3391_v17  ;;  %3592 = vmatprep.subr.mxu1 %v3434_v59  ;;  %v3381_v17 = vld [vmem:[#allocation9 + $0xd90] sm:$0xff]  ;;  %v3380_v59 = vld [vmem:[#allocation9 + $0xd88] sm:$0xff]  ;;  %v3321_v38 = vrot.slane %v3279_v54, 1  ;;  %v3770_v54 = vld [vmem:[#allocation9 + $0x12b8] sm:$0xff] }
 0x331   : > { %3495 = vmatprep.subr.mxu0 %v3390_v22  ;;  %3593 = vmatpush2.msra.mxu1 %v3433_v56  ;;  %v3298_v22 = vsel %vm3289_vm6, %v3296_v63, %v3297_v42  ;;  %v3379_v56 = vld [vmem:[#allocation9 + $0xd80] sm:$0xff] }
 0x332   : > { %3496 = vmatpush2.msra.mxu0 %v3389_v41  ;;  %3594 = vmatprep.subr.mxu1 %v3432_v57  ;;  %v3777_v41 = vld [vmem:[#allocation9 + $0x12f0] sm:$0xff]  ;;  %v3325_v57 = vsel %vm2462_vm2, %v3323_v19, %v3324_v45  ;;  %v3375_v63 = vld [vmem:[#allocation9 + $0xd60] sm:$0xff]  ;;  %v3372_v19 = vld [vmem:[#allocation9 + $0xd48] sm:$0xff] }
 0x333   : > { %3497 = vmatprep.subr.mxu0 %v3388_v0  ;;  %3595 = vmatpush2.msra.mxu1 %v3431_v39  ;;  %v3776_v0 = vld [vmem:[#allocation9 + $0x12e8] sm:$0xff]  ;;  %v3320_v39 = vrot.slane %v3275_v11, 1  ;;  %v3371_v11 = vld [vmem:[#allocation9 + $0xd40] sm:$0xff] }
 0x334   : > { %3498 = vmatpush2.msra.mxu0 %v3387_v47  ;;  %3596 = vmatprep.subr.mxu1 %v3430_v34  ;;  %v3624_v47 = vld [vmem:[#allocation2 + $0x38] sm:$0xf]  ;;  %v3775_v34 = vld [vmem:[#allocation9 + $0x12e0] sm:$0xff] }
 0x335   : > { %3499 = vmatprep.subr.mxu0 %v3386_v26  ;;  %3597 = vmatpush2.msra.mxu1 %v3429_v13  ;;  %v3378_v26 = vld [vmem:[#allocation9 + $0xd78] sm:$0xff]  ;;  %v3377_v13 = vld [vmem:[#allocation9 + $0xd70] sm:$0xff]  ;;  %v3322_v42 = vsel %vm2462_vm2, %v3320_v39, %v3321_v38  ;;  %v3767_v39 = vld [vmem:[#allocation9 + $0x12a0] sm:$0xff] }
 0x336   : > { %3500 = vmatpush2.msra.mxu0 %v3385_v30  ;;  %3598 = vmatprep.subr.mxu1 %v3428_v16  ;;  %v3651_v30 = vrot.slane %v3620_v60, 4  ;;  %v3652_v16 = vrot.slane %v3624_v47, 4  ;;  %v3265_v38 = vld [vmem:[#allocation2] sm:$0xf8]  ;;  %v3269_v60 = vld [vmem:[#allocation2 + $0x20] sm:$0x7] }
 0x337   : > { %3501 = vmatprep.subr.mxu0 %v3384_v48  ;;  %3599 = vmatpush2.msra.mxu1 %v3427_v2  ;;  %v3773_v48 = vld [vmem:[#allocation9 + $0x12d0] sm:$0xff]  ;;  %v3374_v2 = vld [vmem:[#allocation9 + $0xd58] sm:$0xff] }
 0x338   : > { %3502 = vmatpush2.msra.mxu0 %v3383_v15  ;;  %3601 = vmatmul.mubr.f32.vlgmr.msra.gmra.mxu1 %v3298_v22  ;;  %v3373_v15 = vld [vmem:[#allocation9 + $0xd50] sm:$0xff]  ;;  %v3653_v45 = vsel %vm3641_vm7, %v3651_v30, %v3652_v16  ;;  %v3766_v47 = vld [vmem:[#allocation9 + $0x1298] sm:$0xff]  ;;  %v3764_v30 = vld [vmem:[#allocation9 + $0x1288] sm:$0xff] }
 0x339   : > { %3503 = vmatprep.subr.mxu0 %v3382_v28  ;;  %3888 = vmatprep.subr.mxu1 %v3778_v32  ;;  %v3772_v28 = vld [vmem:[#allocation9 + $0x12c8] sm:$0xff]  ;;  %v3771_v32 = vld [vmem:[#allocation9 + $0x12c0] sm:$0xff]  ;;  %v3369_v22 = vld [vmem:[#allocation9 + $0xd30] sm:$0xff] }
 0x33a   : > { %3504 = vmatpush2.msra.mxu0 %v3381_v17  ;;  %3606 = vmatprep.mubr.f32.mxu1 %v3325_v57  ;;  %v3370_v17 = vld [vmem:[#allocation9 + $0xd38] sm:$0xff]  ;;  %v3363_v16 = vld [vmem:[#allocation9 + $0xd00] sm:$0xff] }
 0x33b   : > { %3505 = vmatprep.subr.mxu0 %v3380_v59  ;;  %3889 = vmatpush1.msra.mxu1 %v3777_v41  ;;  %v3769_v59 = vld [vmem:[#allocation9 + $0x12b0] sm:$0xff]  ;;  %v3768_v41 = vld [vmem:[#allocation9 + $0x12a8] sm:$0xff]  ;;  %v3366_v57 = vld [vmem:[#allocation9 + $0xd18] sm:$0xff] }
 0x33c   : > { %3506 = vmatpush2.msra.mxu0 %v3379_v56  ;;  %3890 = vmatprep.subr.mxu1 %v3776_v0  ;;  %v3368_v56 = vld [vmem:[#allocation9 + $0xd28] sm:$0xff]  ;;  %v3367_v0 = vld [vmem:[#allocation9 + $0xd20] sm:$0xff] }
 0x33d   : > { %3507 = vmatprep.subr.mxu0 %v3378_v26  ;;  %3891 = vmatpush1.msra.mxu1 %v3775_v34  ;;  %v3274_v26 = vld [vmem:[#allocation2 + $0x48] sm:$0xfe]  ;;  %v3278_v34 = vld [vmem:[#allocation2 + $0x68] sm:$0x1] }
 0x33e   : > { %3508 = vmatpush2.msra.mxu0 %v3377_v13  ;;  %3607 = vmatmul.mubr.f32.gmra.mxu1 %v3322_v42  ;;  %v3765_v13 = vld [vmem:[#allocation9 + $0x1290] sm:$0xff]  ;;  %v3291_v42 = vrot.slane %v3269_v60, 3 }
 0x33f   : > { %3509 = vmatprep.subr.mxu0 %v3376_v35  ;;  %3892 = vmatprep.subr.mxu1 %v3774_v31  ;;  %v3365_v35 = vld [vmem:[#allocation9 + $0xd10] sm:$0xff]  ;;  %v3364_v31 = vld [vmem:[#allocation9 + $0xd08] sm:$0xff] }
 0x340   : > { %3510 = vmatpush2.msra.mxu0 %v3375_v63  ;;  %3893 = vmatpush1.msra.mxu1 %v3773_v48  ;;  %v3290_v63 = vrot.slane %v3265_v38, 3  ;;  %v3763_v48 = vld [vmem:[#allocation9 + $0x1280] sm:$0xff] }
 0x341   : > { %3511 = vmatprep.subr.mxu0 %v3374_v2  ;;  %3952 = vmatprep.mubr.f32.mxu1 %v3653_v45  ;;  %v3762_v2 = vld [vmem:[#allocation9 + $0x1278] sm:$0xff]  ;;  %v3277_v45 = vld [vmem:[#allocation2 + $0x60] sm:$0x1] }
 0x342   : > { %3512 = vmatpush2.msra.mxu0 %v3373_v15  ;;  %3894 = vmatprep.subr.mxu1 %v3772_v28  ;;  %v3317_v15 = vrot.slane %v3274_v26, 1  ;;  %v3318_v28 = vrot.slane %v3278_v34, 1  ;;  %v3710_v26 = vld [vmem:[#allocation9 + $0x10d8] sm:$0xff]  ;;  %v3709_v34 = vld [vmem:[#allocation9 + $0x10d0] sm:$0xff] }
 0x343   : > { %3513 = vmatprep.subr.mxu0 %v3372_v19  ;;  %3895 = vmatpush1.msra.mxu1 %v3771_v32  ;;  %v3273_v19 = vld [vmem:[#allocation2 + $0x40] sm:$0xfe]  ;;  %v3714_v32 = vld [vmem:[#allocation9 + $0x10f8] sm:$0xff] }
 0x344   : > { %3514 = vmatpush2.msra.mxu0 %v3371_v11  ;;  %3896 = vmatprep.subr.mxu1 %v3770_v54  ;;  %v3618_v11 = vld [vmem:[#allocation2 + $0x8] sm:$0xf0]  ;;  %v3622_v54 = vld [vmem:[#allocation2 + $0x28] sm:$0xf] }
 0x345   : > { %3515 = vmatprep.subr.mxu0 %v3370_v17  ;;  %3897 = vmatpush1.msra.mxu1 %v3769_v59  ;;  %v3713_v17 = vld [vmem:[#allocation9 + $0x10f0] sm:$0xff]  ;;  %v3292_v59 = vsel %vm3289_vm6, %v3290_v63, %v3291_v42  ;;  %v3645_v38 = vrot.slane %v3618_v11, 4  ;;  %v3646_v60 = vrot.slane %v3622_v54, 4  ;;  %v3758_v63 = vld [vmem:[#allocation9 + $0x1258] sm:$0xff] }
 0x346   : > { %3516 = vmatpush2.msra.mxu0 %v3369_v22  ;;  %3898 = vmatprep.subr.mxu1 %v3768_v41  ;;  %v3712_v22 = vld [vmem:[#allocation9 + $0x10e8] sm:$0xff]  ;;  %v3315_v41 = vrot.slane %v3277_v45, 1  ;;  %v3706_v42 = vld [vmem:[#allocation9 + $0x10b8] sm:$0xff]  ;;  %v3703_v45 = vld [vmem:[#allocation9 + $0x10a0] sm:$0xff] }
 0x347   : > { %3517 = vmatprep.subr.mxu0 %v3368_v56  ;;  %3899 = vmatpush1.msra.mxu1 %v3767_v39  ;;  %v3314_v56 = vrot.slane %v3273_v19, 1  ;;  %v3711_v39 = vld [vmem:[#allocation9 + $0x10e0] sm:$0xff]  ;;  %v3702_v11 = vld [vmem:[#allocation9 + $0x1098] sm:$0xff]  ;;  %v3753_v54 = vld [vmem:[#allocation9 + $0x1230] sm:$0xff] }
 0x348   : > { %3518 = vmatpush2.msra.mxu0 %v3367_v0  ;;  %3900 = vmatprep.subr.mxu1 %v3766_v47  ;;  %v3761_v0 = vld [vmem:[#allocation9 + $0x1270] sm:$0xff]  ;;  %v3760_v47 = vld [vmem:[#allocation9 + $0x1268] sm:$0xff]  ;;  %v3755_v19 = vld [vmem:[#allocation9 + $0x1240] sm:$0xff] }
 0x349   : > { %3519 = vmatprep.subr.mxu0 %v3366_v57  ;;  %3901 = vmatpush1.msra.mxu1 %v3765_v13  ;;  %v3319_v57 = vsel %vm2462_vm2, %v3317_v15, %v3318_v28  ;;  %v3316_v13 = vsel %vm2462_vm2, %v3314_v56, %v3315_v41  ;;  %v3756_v15 = vld [vmem:[#allocation9 + $0x1248] sm:$0xff]  ;;  %v3751_v56 = vld [vmem:[#allocation9 + $0x1220] sm:$0xff] }
 0x34a   : > { %3520 = vmatpush2.msra.mxu0 %v3365_v35  ;;  %3902 = vmatprep.subr.mxu1 %v3764_v30  ;;  %v3708_v35 = vld [vmem:[#allocation9 + $0x10c8] sm:$0xff]  ;;  %v3647_v30 = vsel %vm3641_vm7, %v3645_v38, %v3646_v60  ;;  %v3699_v41 = vld [vmem:[#allocation9 + $0x1080] sm:$0xff]  ;;  %v3697_v38 = vld [vmem:[#allocation9 + $0x1070] sm:$0xff] }
 0x34b   : > { %3521 = vmatprep.subr.mxu0 %v3364_v31  ;;  %3903 = vmatpush1.msra.mxu1 %v3763_v48  ;;  %v3759_v31 = vld [vmem:[#allocation9 + $0x1260] sm:$0xff]  ;;  %v3757_v48 = vld [vmem:[#allocation9 + $0x1250] sm:$0xff]  ;;  %v3704_v28 = vld [vmem:[#allocation9 + $0x10a8] sm:$0xff] }
 0x34c   : > { %3522 = vmatpush2.msra.mxu0 %v3363_v16  ;;  %3904 = vmatprep.subr.mxu1 %v3762_v2  ;;  %v3707_v16 = vld [vmem:[#allocation9 + $0x10c0] sm:$0xff]  ;;  %v3705_v2 = vld [vmem:[#allocation9 + $0x10b0] sm:$0xff]  ;;  %v3748_v60 = vld [vmem:[#allocation9 + $0x1208] sm:$0xff] }
 0x34d   : > { %3524 = vmatmul.mubr.f32.vlgmr.msra.gmra.mxu0 %v3292_v59  ;;  %3811 = vmatprep.subr.mxu0 %v3714_v32  ;;  %v3754_v32 = vld [vmem:[#allocation9 + $0x1238] sm:$0xff]  ;;  %v3752_v59 = vld [vmem:[#allocation9 + $0x1228] sm:$0xff] }
 0x34e   : > { %3529 = vmatprep.mubr.f32.mxu0 %v3319_v57  ;;  %3812 = vmatpush1.msra.mxu0 %v3713_v17  ;;  %v3701_v17 = vld [vmem:[#allocation9 + $0x1090] sm:$0xff]  ;;  %v3698_v57 = vld [vmem:[#allocation9 + $0x1078] sm:$0xff] }
 0x34f   : > { %3813 = vmatprep.subr.mxu0 %v3712_v22  ;;  %3905 = vmatpush1.msra.mxu1 %v3761_v0  ;;  %v3700_v22 = vld [vmem:[#allocation9 + $0x1088] sm:$0xff]  ;;  %v3750_v0 = vld [vmem:[#allocation9 + $0x1218] sm:$0xff] }
 0x350   : > { %3814 = vmatpush1.msra.mxu0 %v3711_v39  ;;  %3906 = vmatprep.subr.mxu1 %v3760_v47  ;;  %v3749_v39 = vld [vmem:[#allocation9 + $0x1210] sm:$0xff]  ;;  %v3696_v47 = vld [vmem:[#allocation9 + $0x1068] sm:$0xff] }
 0x351   : > { %3530 = vmatmul.mubr.f32.gmra.mxu0 %v3316_v13  ;;  %3815 = vmatprep.subr.mxu0 %v3710_v26  ;;  %v3747_v26 = vld [vmem:[#allocation9 + $0x1200] sm:$0xff]  ;;  %v3810_v13 = vld [vmem:[#allocation9 + $0x13f8] sm:$0xff] }
 0x352   : > { %3816 = vmatpush1.msra.mxu0 %v3709_v34  ;;  %3875 = vmatprep.mubr.f32.mxu0 %v3647_v30  ;;  %v3695_v34 = vld [vmem:[#allocation9 + $0x1060] sm:$0xff]  ;;  %v3693_v30 = vld [vmem:[#allocation9 + $0x1050] sm:$0xff] }
 0x353   : > { %3817 = vmatprep.subr.mxu0 %v3708_v35  ;;  %3907 = vmatpush1.msra.mxu1 %v3759_v31  ;;  %v3694_v35 = vld [vmem:[#allocation9 + $0x1058] sm:$0xff]  ;;  %v3809_v31 = vld [vmem:[#allocation9 + $0x13f0] sm:$0xff] }
 0x354   : > { %3818 = vmatpush1.msra.mxu0 %v3707_v16  ;;  %3908 = vmatprep.subr.mxu1 %v3758_v63  ;;  %v3808_v16 = vld [vmem:[#allocation9 + $0x13e8] sm:$0xff] }
 0x355   : > { %3819 = vmatprep.subr.mxu0 %v3706_v42  ;;  %3909 = vmatpush1.msra.mxu1 %v3757_v48  ;;  %v3692_v63 = vld [vmem:[#allocation9 + $0x1048] sm:$0xff]  ;;  %v3807_v42 = vld [vmem:[#allocation9 + $0x13e0] sm:$0xff] }
 0x356   : > { %3820 = vmatpush1.msra.mxu0 %v3705_v2  ;;  %3910 = vmatprep.subr.mxu1 %v3756_v15  ;;  %v3691_v48 = vld [vmem:[#allocation9 + $0x1040] sm:$0xff]  ;;  %v3806_v2 = vld [vmem:[#allocation9 + $0x13d8] sm:$0xff] }
 0x357   : > { %3821 = vmatprep.subr.mxu0 %v3704_v28  ;;  %3911 = vmatpush1.msra.mxu1 %v3755_v19  ;;  %v3690_v15 = vld [vmem:[#allocation9 + $0x1038] sm:$0xff]  ;;  %v3805_v28 = vld [vmem:[#allocation9 + $0x13d0] sm:$0xff] }
 0x358   : > { %3822 = vmatpush1.msra.mxu0 %v3703_v45  ;;  %3912 = vmatprep.subr.mxu1 %v3754_v32  ;;  %v3689_v19 = vld [vmem:[#allocation9 + $0x1030] sm:$0xff]  ;;  %v3804_v45 = vld [vmem:[#allocation9 + $0x13c8] sm:$0xff] }
 0x359   : > { %3823 = vmatprep.subr.mxu0 %v3702_v11  ;;  %3913 = vmatpush1.msra.mxu1 %v3753_v54  ;;  %v3688_v32 = vld [vmem:[#allocation9 + $0x1028] sm:$0xff]  ;;  %v3803_v11 = vld [vmem:[#allocation9 + $0x13c0] sm:$0xff] }
 0x35a   : > { %3824 = vmatpush1.msra.mxu0 %v3701_v17  ;;  %3914 = vmatprep.subr.mxu1 %v3752_v59  ;;  %v3687_v54 = vld [vmem:[#allocation9 + $0x1020] sm:$0xff]  ;;  %v3802_v17 = vld [vmem:[#allocation9 + $0x13b8] sm:$0xff] }
 0x35b   : > { %3825 = vmatprep.subr.mxu0 %v3700_v22  ;;  %3915 = vmatpush1.msra.mxu1 %v3751_v56  ;;  %v3686_v59 = vld [vmem:[#allocation9 + $0x1018] sm:$0xff]  ;;  %v3801_v22 = vld [vmem:[#allocation9 + $0x13b0] sm:$0xff] }
 0x35c   : > { %3826 = vmatpush1.msra.mxu0 %v3699_v41  ;;  %3916 = vmatprep.subr.mxu1 %v3750_v0  ;;  %v3685_v56 = vld [vmem:[#allocation9 + $0x1010] sm:$0xff]  ;;  %v3800_v41 = vld [vmem:[#allocation9 + $0x13a8] sm:$0xff] }
 0x35d   : > { %3827 = vmatprep.subr.mxu0 %v3698_v57  ;;  %3917 = vmatpush1.msra.mxu1 %v3749_v39  ;;  %v3684_v0 = vld [vmem:[#allocation9 + $0x1008] sm:$0xff]  ;;  %v3799_v57 = vld [vmem:[#allocation9 + $0x13a0] sm:$0xff] }
 0x35e   : > { %3828 = vmatpush1.msra.mxu0 %v3697_v38  ;;  %3918 = vmatprep.subr.mxu1 %v3748_v60  ;;  %v3683_v39 = vld [vmem:[#allocation9 + $0x1000] sm:$0xff]  ;;  %v3798_v38 = vld [vmem:[#allocation9 + $0x1398] sm:$0xff] }
 0x35f   : > { %3829 = vmatprep.subr.mxu0 %v3696_v47  ;;  %3919 = vmatpush1.msra.mxu1 %v3747_v26  ;;  %v3746_v60 = vld [vmem:[#allocation9 + $0x11f8] sm:$0xff]  ;;  %v3797_v47 = vld [vmem:[#allocation9 + $0x1390] sm:$0xff] }
 0x360   : > { %3830 = vmatpush1.msra.mxu0 %v3695_v34  ;;  %3920 = vmatprep.subr.mxu1 %v3810_v13  ;;  %v3745_v26 = vld [vmem:[#allocation9 + $0x11f0] sm:$0xff]  ;;  %v3796_v34 = vld [vmem:[#allocation9 + $0x1388] sm:$0xff] }
 0x361   : > { %3831 = vmatprep.subr.mxu0 %v3694_v35  ;;  %3921 = vmatpush2.msra.mxu1 %v3809_v31  ;;  %v3744_v13 = vld [vmem:[#allocation9 + $0x11e8] sm:$0xff]  ;;  %v3795_v35 = vld [vmem:[#allocation9 + $0x1380] sm:$0xff] }
 0x362   : > { %3832 = vmatpush1.msra.mxu0 %v3693_v30  ;;  %3922 = vmatprep.subr.mxu1 %v3808_v16  ;;  %v3743_v31 = vld [vmem:[#allocation9 + $0x11e0] sm:$0xff]  ;;  %v3794_v30 = vld [vmem:[#allocation9 + $0x1378] sm:$0xff] }
 0x363   : > { %3833 = vmatprep.subr.mxu0 %v3692_v63  ;;  %3923 = vmatpush2.msra.mxu1 %v3807_v42  ;;  %v3742_v16 = vld [vmem:[#allocation9 + $0x11d8] sm:$0xff]  ;;  %v3793_v63 = vld [vmem:[#allocation9 + $0x1370] sm:$0xff] }
 0x364   : > { %3834 = vmatpush1.msra.mxu0 %v3691_v48  ;;  %3924 = vmatprep.subr.mxu1 %v3806_v2  ;;  %v3741_v42 = vld [vmem:[#allocation9 + $0x11d0] sm:$0xff]  ;;  %v3792_v48 = vld [vmem:[#allocation9 + $0x1368] sm:$0xff] }
 0x365   : > { %3835 = vmatprep.subr.mxu0 %v3690_v15  ;;  %3925 = vmatpush2.msra.mxu1 %v3805_v28  ;;  %v3740_v2 = vld [vmem:[#allocation9 + $0x11c8] sm:$0xff]  ;;  %v3791_v15 = vld [vmem:[#allocation9 + $0x1360] sm:$0xff] }
 0x366   : > { %3836 = vmatpush1.msra.mxu0 %v3689_v19  ;;  %3926 = vmatprep.subr.mxu1 %v3804_v45  ;;  %v3739_v28 = vld [vmem:[#allocation9 + $0x11c0] sm:$0xff]  ;;  %v3790_v19 = vld [vmem:[#allocation9 + $0x1358] sm:$0xff] }
 0x367   : > { %3837 = vmatprep.subr.mxu0 %v3688_v32  ;;  %3927 = vmatpush2.msra.mxu1 %v3803_v11  ;;  %v3738_v45 = vld [vmem:[#allocation9 + $0x11b8] sm:$0xff]  ;;  %v3789_v32 = vld [vmem:[#allocation9 + $0x1350] sm:$0xff] }
 0x368   : > { %3838 = vmatpush1.msra.mxu0 %v3687_v54  ;;  %3928 = vmatprep.subr.mxu1 %v3802_v17  ;;  %v3737_v11 = vld [vmem:[#allocation9 + $0x11b0] sm:$0xff]  ;;  %v3788_v54 = vld [vmem:[#allocation9 + $0x1348] sm:$0xff] }
 0x369   : > { %3839 = vmatprep.subr.mxu0 %v3686_v59  ;;  %3929 = vmatpush2.msra.mxu1 %v3801_v22  ;;  %v3736_v17 = vld [vmem:[#allocation9 + $0x11a8] sm:$0xff]  ;;  %v3787_v59 = vld [vmem:[#allocation9 + $0x1340] sm:$0xff] }
 0x36a   : > { %3840 = vmatpush1.msra.mxu0 %v3685_v56  ;;  %3930 = vmatprep.subr.mxu1 %v3800_v41  ;;  %v3735_v22 = vld [vmem:[#allocation9 + $0x11a0] sm:$0xff]  ;;  %v3786_v56 = vld [vmem:[#allocation9 + $0x1338] sm:$0xff] }
 0x36b   : > { %3841 = vmatprep.subr.mxu0 %v3684_v0  ;;  %3931 = vmatpush2.msra.mxu1 %v3799_v57  ;;  %v3734_v41 = vld [vmem:[#allocation9 + $0x1198] sm:$0xff]  ;;  %v3785_v0 = vld [vmem:[#allocation9 + $0x1330] sm:$0xff] }
 0x36c   : > { %3842 = vmatpush1.msra.mxu0 %v3683_v39  ;;  %3932 = vmatprep.subr.mxu1 %v3798_v38  ;;  %v3733_v57 = vld [vmem:[#allocation9 + $0x1190] sm:$0xff]  ;;  %v3784_v39 = vld [vmem:[#allocation9 + $0x1328] sm:$0xff] }
 0x36d   : > { %3843 = vmatprep.subr.mxu0 %v3746_v60  ;;  %3933 = vmatpush2.msra.mxu1 %v3797_v47  ;;  %v3619_v38 = vld [vmem:[#allocation2 + $0x10] sm:$0xf0]  ;;  %v3732_v60 = vld [vmem:[#allocation9 + $0x1188] sm:$0xff]  ;;  %v3783_v47 = vld [vmem:[#allocation9 + $0x1320] sm:$0xff] }
 0x36e   : > { %3844 = vmatpush2.msra.mxu0 %v3745_v26  ;;  %3934 = vmatprep.subr.mxu1 %v3796_v34  ;;  %v3623_v26 = vld [vmem:[#allocation2 + $0x30] sm:$0xf]  ;;  %v3731_v34 = vld [vmem:[#allocation9 + $0x1180] sm:$0xff] }
 0x36f   : > { %3845 = vmatprep.subr.mxu0 %v3744_v13  ;;  %3935 = vmatpush2.msra.mxu1 %v3795_v35  ;;  %v3782_v13 = vld [vmem:[#allocation9 + $0x1318] sm:$0xff] }
 0x370   : > { %3846 = vmatpush2.msra.mxu0 %v3743_v31  ;;  %3936 = vmatprep.subr.mxu1 %v3794_v30  ;;  %v3628_v35 = vld [vmem:[#allocation2 + $0x58] sm:$0xfc]  ;;  %v3781_v30 = vld [vmem:[#allocation9 + $0x1310] sm:$0xff] }
 0x371   : > { %3847 = vmatprep.subr.mxu0 %v3742_v16  ;;  %3937 = vmatpush2.msra.mxu1 %v3793_v63  ;;  %v3730_v31 = vld [vmem:[#allocation9 + $0x1178] sm:$0xff]  ;;  %v3729_v63 = vld [vmem:[#allocation9 + $0x1170] sm:$0xff] }
 0x372   : > { %3848 = vmatpush2.msra.mxu0 %v3741_v42  ;;  %3938 = vmatprep.subr.mxu1 %v3792_v48  ;;  %v3632_v16 = vld [vmem:[#allocation2 + $0x78] sm:$0x3]  ;;  %v3780_v42 = vld [vmem:[#allocation9 + $0x1308] sm:$0xff]  ;;  %v3648_v48 = vrot.slane %v3619_v38, 4 }
 0x373   : > { %3849 = vmatprep.subr.mxu0 %v3740_v2  ;;  %3939 = vmatpush2.msra.mxu1 %v3791_v15  ;;  %v3649_v2 = vrot.slane %v3623_v26, 4  ;;  %v3728_v15 = vld [vmem:[#allocation9 + $0x1168] sm:$0xff] }
 0x374   : > { %3850 = vmatpush2.msra.mxu0 %v3739_v28  ;;  %3940 = vmatprep.subr.mxu1 %v3790_v19  ;;  %v3779_v28 = vld [vmem:[#allocation9 + $0x1300] sm:$0xff] }
 0x375   : > { %3851 = vmatprep.subr.mxu0 %v3738_v45  ;;  %3941 = vmatpush2.msra.mxu1 %v3789_v32  ;;  %v3727_v19 = vld [vmem:[#allocation9 + $0x1160] sm:$0xff]  ;;  %v3675_v45 = vrot.slane %v3628_v35, 2  ;;  %v3676_v32 = vrot.slane %v3632_v16, 2 }
 0x376   : > { %3852 = vmatpush2.msra.mxu0 %v3737_v11  ;;  %3942 = vmatprep.subr.mxu1 %v3788_v54  ;;  %v3627_v11 = vld [vmem:[#allocation2 + $0x50] sm:$0xfc]  ;;  %v3726_v54 = vld [vmem:[#allocation9 + $0x1158] sm:$0xff]  ;;  %v4127_v35 = vld [vmem:[#allocation9 + $0x16e0] sm:$0xff] }
 0x377   : > { %3853 = vmatprep.subr.mxu0 %v3736_v17  ;;  %3943 = vmatpush2.msra.mxu1 %v3787_v59  ;;  %v4130_v17 = vld [vmem:[#allocation9 + $0x16f8] sm:$0xff]  ;;  %v3631_v59 = vld [vmem:[#allocation2 + $0x70] sm:$0x3]  ;;  %v3677_v38 = vsel %vm2961_vm5, %v3675_v45, %v3676_v32  ;;  %v3617_v16 = vld [vmem:[#allocation2] sm:$0xf0] }
 0x378   : > { %3854 = vmatpush2.msra.mxu0 %v3735_v22  ;;  %3944 = vmatprep.subr.mxu1 %v3786_v56  ;;  %v3725_v22 = vld [vmem:[#allocation9 + $0x1150] sm:$0xff]  ;;  %v3650_v56 = vsel %vm3641_vm7, %v3648_v48, %v3649_v2  ;;  %v3673_v26 = vrot.slane %v3631_v59, 2  ;;  %v3719_v2 = vld [vmem:[#allocation9 + $0x1120] sm:$0xff]  ;;  %v3718_v45 = vld [vmem:[#allocation9 + $0x1118] sm:$0xff] }
 0x379   : > { %3855 = vmatprep.subr.mxu0 %v3734_v41  ;;  %3945 = vmatpush2.msra.mxu1 %v3785_v0  ;;  %v3724_v41 = vld [vmem:[#allocation9 + $0x1148] sm:$0xff]  ;;  %v4129_v0 = vld [vmem:[#allocation9 + $0x16f0] sm:$0xff] }
 0x37a   : > { %3856 = vmatpush2.msra.mxu0 %v3733_v57  ;;  %3946 = vmatprep.subr.mxu1 %v3784_v39  ;;  %v3972_v57 = vld [vmem:[#allocation2 + $0x18] sm:$0xe0]  ;;  %v3723_v39 = vld [vmem:[#allocation9 + $0x1140] sm:$0xff]  ;;  %v3626_v32 = vld [vmem:[#allocation2 + $0x48] sm:$0xfc] }
 0x37b   : > { %3857 = vmatprep.subr.mxu0 %v3732_v60  ;;  %3947 = vmatpush2.msra.mxu1 %v3783_v47  ;;  %v4128_v60 = vld [vmem:[#allocation9 + $0x16e8] sm:$0xff]  ;;  %v3672_v47 = vrot.slane %v3627_v11, 2 }
 0x37c   : > { %3858 = vmatpush2.msra.mxu0 %v3731_v34  ;;  %3948 = vmatprep.subr.mxu1 %v3782_v13  ;;  %v3976_v34 = vld [vmem:[#allocation2 + $0x38] sm:$0x1f]  ;;  %v3630_v11 = vld [vmem:[#allocation2 + $0x68] sm:$0x3] }
 0x37d   : > { %3859 = vmatprep.subr.mxu0 %v3730_v31  ;;  %3949 = vmatpush2.msra.mxu1 %v3781_v30  ;;  %v3722_v13 = vld [vmem:[#allocation9 + $0x1138] sm:$0xff]  ;;  %v3721_v31 = vld [vmem:[#allocation9 + $0x1130] sm:$0xff]  ;;  %v3720_v30 = vld [vmem:[#allocation9 + $0x1128] sm:$0xff]  ;;  %v4004_v48 = vrot.slane %v3976_v34, 5 }
 0x37e   : > { %3860 = vmatpush2.msra.mxu0 %v3729_v63  ;;  %3950 = vmatprep.subr.mxu1 %v3780_v42  ;;  %v4126_v63 = vld [vmem:[#allocation9 + $0x16d8] sm:$0xff]  ;;  %v4003_v42 = vrot.slane %v3972_v57, 5  ;;  %v3716_v59 = vld [vmem:[#allocation9 + $0x1108] sm:$0xff]  ;;  %v4123_v57 = vld [vmem:[#allocation9 + $0x16c0] sm:$0xff] }
 0x37f   : > { %3861 = vmatprep.subr.mxu0 %v3728_v15  ;;  %3951 = vmatpush2.msra.mxu1 %v3779_v28  ;;  %v3621_v15 = vld [vmem:[#allocation2 + $0x20] sm:$0xf]  ;;  %v3674_v28 = vsel %vm2961_vm5, %v3672_v47, %v3673_v26  ;;  %v4122_v26 = vld [vmem:[#allocation9 + $0x16b8] sm:$0xff] }
 0x380   : > { %3862 = vmatpush2.msra.mxu0 %v3727_v19  ;;  %3953 = vmatmul.mubr.f32.vlgmr.msra.gmra.mxu1 %v3650_v56  ;;  %v4125_v19 = vld [vmem:[#allocation9 + $0x16d0] sm:$0xff]  ;;  %v3643_v56 = vrot.slane %v3621_v15, 4  ;;  %v3629_v47 = vld [vmem:[#allocation2 + $0x60] sm:$0x3]  ;;  %v4066_v34 = vld [vmem:[#allocation9 + $0x14f8] sm:$0xff] }
 0x381   : > { %3863 = vmatprep.subr.mxu0 %v3726_v54  ;;  %4240 = vmatprep.subr.mxu1 %v4130_v17  ;;  %v3717_v54 = vld [vmem:[#allocation9 + $0x1110] sm:$0xff]  ;;  %v4124_v17 = vld [vmem:[#allocation9 + $0x16c8] sm:$0xff]  ;;  %v4063_v15 = vld [vmem:[#allocation9 + $0x14e0] sm:$0xff] }
 0x382   : > { %3864 = vmatpush2.msra.mxu0 %v3725_v22  ;;  %3958 = vmatprep.mubr.f32.mxu1 %v3677_v38  ;;  %v3642_v22 = vrot.slane %v3617_v16, 4  ;;  %v3669_v38 = vrot.slane %v3626_v32, 2  ;;  %v4064_v16 = vld [vmem:[#allocation9 + $0x14e8] sm:$0xff]  ;;  %v4062_v32 = vld [vmem:[#allocation9 + $0x14d8] sm:$0xff] }
 0x383   : > { %3865 = vmatprep.subr.mxu0 %v3724_v41  ;;  %4241 = vmatpush1.msra.mxu1 %v4129_v0  ;;  %v4005_v41 = vsel %vm3993_vm8, %v4003_v42, %v4004_v48  ;;  %v3625_v0 = vld [vmem:[#allocation2 + $0x40] sm:$0xfc]  ;;  %v3667_v42 = vrot.slane %v3629_v47, 2  ;;  %v4121_v48 = vld [vmem:[#allocation9 + $0x16b0] sm:$0xff] }
 0x384   : > { %3866 = vmatpush2.msra.mxu0 %v3723_v39  ;;  %4242 = vmatprep.subr.mxu1 %v4128_v60  ;;  %v3715_v39 = vld [vmem:[#allocation9 + $0x1100] sm:$0xff]  ;;  %v3670_v60 = vrot.slane %v3630_v11, 2  ;;  %v4061_v11 = vld [vmem:[#allocation9 + $0x14d0] sm:$0xff] }
 0x385   : > { %3867 = vmatprep.subr.mxu0 %v3722_v13  ;;  %4243 = vmatpush1.msra.mxu1 %v4127_v35  ;;  %v3970_v13 = vld [vmem:[#allocation2 + $0x8] sm:$0xe0]  ;;  %v3974_v35 = vld [vmem:[#allocation2 + $0x28] sm:$0x1f]  ;;  %v4115_v47 = vld [vmem:[#allocation9 + $0x1680] sm:$0xff] }
 0x386   : > { %3868 = vmatpush2.msra.mxu0 %v3721_v31  ;;  %3959 = vmatmul.mubr.f32.gmra.mxu1 %v3674_v28  ;;  %v4065_v31 = vld [vmem:[#allocation9 + $0x14f0] sm:$0xff]  ;;  %v3997_v28 = vrot.slane %v3970_v13, 5  ;;  %v4054_v13 = vld [vmem:[#allocation9 + $0x1498] sm:$0xff] }
 0x387   : > { %3869 = vmatprep.subr.mxu0 %v3720_v30  ;;  %4244 = vmatprep.subr.mxu1 %v4126_v63  ;;  %v3644_v30 = vsel %vm3641_vm7, %v3642_v22, %v3643_v56  ;;  %v3666_v63 = vrot.slane %v3625_v0, 2  ;;  %v4059_v56 = vld [vmem:[#allocation9 + $0x14c0] sm:$0xff]  ;;  %v4058_v0 = vld [vmem:[#allocation9 + $0x14b8] sm:$0xff] }
 0x388   : > { %3870 = vmatpush2.msra.mxu0 %v3719_v2  ;;  %4245 = vmatpush1.msra.mxu1 %v4125_v19  ;;  %v3671_v2 = vsel %vm2961_vm5, %v3669_v38, %v3670_v60  ;;  %v3998_v19 = vrot.slane %v3974_v35, 5  ;;  %v4116_v38 = vld [vmem:[#allocation9 + $0x1688] sm:$0xff]  ;;  %v4113_v35 = vld [vmem:[#allocation9 + $0x1670] sm:$0xff] }
 0x389   : > { %3871 = vmatprep.subr.mxu0 %v3718_v45  ;;  %4304 = vmatprep.mubr.f32.mxu1 %v4005_v41  ;;  %v4120_v45 = vld [vmem:[#allocation9 + $0x16a8] sm:$0xff]  ;;  %v4118_v41 = vld [vmem:[#allocation9 + $0x1698] sm:$0xff] }
 0x38a   : > { %3872 = vmatpush2.msra.mxu0 %v3717_v54  ;;  %4246 = vmatprep.subr.mxu1 %v4124_v17  ;;  %v3668_v54 = vsel %vm2961_vm5, %v3666_v63, %v3667_v42  ;;  %v4060_v17 = vld [vmem:[#allocation9 + $0x14c8] sm:$0xff]  ;;  %v3999_v22 = vsel %vm3993_vm8, %v3997_v28, %v3998_v19  ;;  %v4111_v63 = vld [vmem:[#allocation9 + $0x1660] sm:$0xff]  ;;  %v4049_v28 = vld [vmem:[#allocation9 + $0x1470] sm:$0xff] }
 0x38b   : > { %3873 = vmatprep.subr.mxu0 %v3716_v59  ;;  %4247 = vmatpush1.msra.mxu1 %v4123_v57  ;;  %v4119_v59 = vld [vmem:[#allocation9 + $0x16a0] sm:$0xff]  ;;  %v4117_v57 = vld [vmem:[#allocation9 + $0x1690] sm:$0xff]  ;;  %v4056_v60 = vld [vmem:[#allocation9 + $0x14a8] sm:$0xff] }
 0x38c   : > { %3874 = vmatpush2.msra.mxu0 %v3715_v39  ;;  %4248 = vmatprep.subr.mxu1 %v4122_v26  ;;  %v4057_v39 = vld [vmem:[#allocation9 + $0x14b0] sm:$0xff]  ;;  %v4055_v26 = vld [vmem:[#allocation9 + $0x14a0] sm:$0xff]  ;;  %v4108_v19 = vld [vmem:[#allocation9 + $0x1648] sm:$0xff] }
 0x38d   : > { %3876 = vmatmul.mubr.f32.vlgmr.msra.gmra.mxu0 %v3644_v30  ;;  %4163 = vmatprep.subr.mxu0 %v4066_v34  ;;  %v4114_v34 = vld [vmem:[#allocation9 + $0x1678] sm:$0xff]  ;;  %v4112_v30 = vld [vmem:[#allocation9 + $0x1668] sm:$0xff]  ;;  %v4051_v42 = vld [vmem:[#allocation9 + $0x1480] sm:$0xff] }
 0x38e   : > { %3881 = vmatprep.mubr.f32.mxu0 %v3671_v2  ;;  %4164 = vmatpush1.msra.mxu0 %v4065_v31  ;;  %v4053_v31 = vld [vmem:[#allocation9 + $0x1490] sm:$0xff]  ;;  %v4050_v2 = vld [vmem:[#allocation9 + $0x1478] sm:$0xff] }
 0x38f   : > { %4165 = vmatprep.subr.mxu0 %v4064_v16  ;;  %4249 = vmatpush1.msra.mxu1 %v4121_v48  ;;  %v4052_v16 = vld [vmem:[#allocation9 + $0x1488] sm:$0xff]  ;;  %v4110_v48 = vld [vmem:[#allocation9 + $0x1658] sm:$0xff] }
 0x390   : > { %4166 = vmatpush1.msra.mxu0 %v4063_v15  ;;  %4250 = vmatprep.subr.mxu1 %v4120_v45  ;;  %v4109_v15 = vld [vmem:[#allocation9 + $0x1650] sm:$0xff]  ;;  %v4048_v45 = vld [vmem:[#allocation9 + $0x1468] sm:$0xff] }
 0x391   : > { %3882 = vmatmul.mubr.f32.gmra.mxu0 %v3668_v54  ;;  %4167 = vmatprep.subr.mxu0 %v4062_v32  ;;  %v4107_v32 = vld [vmem:[#allocation9 + $0x1640] sm:$0xff]  ;;  %v4106_v54 = vld [vmem:[#allocation9 + $0x1638] sm:$0xff] }
 0x392   : > { %4168 = vmatpush1.msra.mxu0 %v4061_v11  ;;  %4227 = vmatprep.mubr.f32.mxu0 %v3999_v22  ;;  %v4047_v11 = vld [vmem:[#allocation9 + $0x1460] sm:$0xff]  ;;  %v4045_v22 = vld [vmem:[#allocation9 + $0x1450] sm:$0xff] }
 0x393   : > { %4169 = vmatprep.subr.mxu0 %v4060_v17  ;;  %4251 = vmatpush1.msra.mxu1 %v4119_v59  ;;  %v4046_v17 = vld [vmem:[#allocation9 + $0x1458] sm:$0xff]  ;;  %v4105_v59 = vld [vmem:[#allocation9 + $0x1630] sm:$0xff] }
 0x394   : > { %4170 = vmatpush1.msra.mxu0 %v4059_v56  ;;  %4252 = vmatprep.subr.mxu1 %v4118_v41  ;;  %v4104_v56 = vld [vmem:[#allocation9 + $0x1628] sm:$0xff] }
 0x395   : > { %4171 = vmatprep.subr.mxu0 %v4058_v0  ;;  %4253 = vmatpush1.msra.mxu1 %v4117_v57  ;;  %v4044_v41 = vld [vmem:[#allocation9 + $0x1448] sm:$0xff]  ;;  %v4103_v0 = vld [vmem:[#allocation9 + $0x1620] sm:$0xff] }
 0x396   : > { %4172 = vmatpush1.msra.mxu0 %v4057_v39  ;;  %4254 = vmatprep.subr.mxu1 %v4116_v38  ;;  %v4043_v57 = vld [vmem:[#allocation9 + $0x1440] sm:$0xff]  ;;  %v4102_v39 = vld [vmem:[#allocation9 + $0x1618] sm:$0xff] }
 0x397   : > { %4173 = vmatprep.subr.mxu0 %v4056_v60  ;;  %4255 = vmatpush1.msra.mxu1 %v4115_v47  ;;  %v4042_v38 = vld [vmem:[#allocation9 + $0x1438] sm:$0xff]  ;;  %v4101_v60 = vld [vmem:[#allocation9 + $0x1610] sm:$0xff] }
 0x398   : > { %4174 = vmatpush1.msra.mxu0 %v4055_v26  ;;  %4256 = vmatprep.subr.mxu1 %v4114_v34  ;;  %v4041_v47 = vld [vmem:[#allocation9 + $0x1430] sm:$0xff]  ;;  %v4100_v26 = vld [vmem:[#allocation9 + $0x1608] sm:$0xff] }
 0x399   : > { %4175 = vmatprep.subr.mxu0 %v4054_v13  ;;  %4257 = vmatpush1.msra.mxu1 %v4113_v35  ;;  %v4040_v34 = vld [vmem:[#allocation9 + $0x1428] sm:$0xff]  ;;  %v4099_v13 = vld [vmem:[#allocation9 + $0x1600] sm:$0xff] }
 0x39a   : > { %4176 = vmatpush1.msra.mxu0 %v4053_v31  ;;  %4258 = vmatprep.subr.mxu1 %v4112_v30  ;;  %v4039_v35 = vld [vmem:[#allocation9 + $0x1420] sm:$0xff]  ;;  %v4162_v31 = vld [vmem:[#allocation9 + $0x17f8] sm:$0xff] }
 0x39b   : > { %4177 = vmatprep.subr.mxu0 %v4052_v16  ;;  %4259 = vmatpush1.msra.mxu1 %v4111_v63  ;;  %v4038_v30 = vld [vmem:[#allocation9 + $0x1418] sm:$0xff]  ;;  %v4161_v16 = vld [vmem:[#allocation9 + $0x17f0] sm:$0xff] }
 0x39c   : > { %4178 = vmatpush1.msra.mxu0 %v4051_v42  ;;  %4260 = vmatprep.subr.mxu1 %v4110_v48  ;;  %v4037_v63 = vld [vmem:[#allocation9 + $0x1410] sm:$0xff]  ;;  %v4160_v42 = vld [vmem:[#allocation9 + $0x17e8] sm:$0xff] }
 0x39d   : > { %4179 = vmatprep.subr.mxu0 %v4050_v2  ;;  %4261 = vmatpush1.msra.mxu1 %v4109_v15  ;;  %v4036_v48 = vld [vmem:[#allocation9 + $0x1408] sm:$0xff]  ;;  %v4159_v2 = vld [vmem:[#allocation9 + $0x17e0] sm:$0xff] }
 0x39e   : > { %4180 = vmatpush1.msra.mxu0 %v4049_v28  ;;  %4262 = vmatprep.subr.mxu1 %v4108_v19  ;;  %v4035_v15 = vld [vmem:[#allocation9 + $0x1400] sm:$0xff]  ;;  %v4158_v28 = vld [vmem:[#allocation9 + $0x17d8] sm:$0xff] }
 0x39f   : > { %4181 = vmatprep.subr.mxu0 %v4048_v45  ;;  %4263 = vmatpush1.msra.mxu1 %v4107_v32  ;;  %v4098_v19 = vld [vmem:[#allocation9 + $0x15f8] sm:$0xff]  ;;  %v4157_v45 = vld [vmem:[#allocation9 + $0x17d0] sm:$0xff] }
 0x3a0   : > { %4182 = vmatpush1.msra.mxu0 %v4047_v11  ;;  %4264 = vmatprep.subr.mxu1 %v4106_v54  ;;  %v4097_v32 = vld [vmem:[#allocation9 + $0x15f0] sm:$0xff]  ;;  %v4156_v11 = vld [vmem:[#allocation9 + $0x17c8] sm:$0xff] }
 0x3a1   : > { %4183 = vmatprep.subr.mxu0 %v4046_v17  ;;  %4265 = vmatpush1.msra.mxu1 %v4105_v59  ;;  %v4096_v54 = vld [vmem:[#allocation9 + $0x15e8] sm:$0xff]  ;;  %v4155_v17 = vld [vmem:[#allocation9 + $0x17c0] sm:$0xff] }
 0x3a2   : > { %4184 = vmatpush1.msra.mxu0 %v4045_v22  ;;  %4266 = vmatprep.subr.mxu1 %v4104_v56  ;;  %v4095_v59 = vld [vmem:[#allocation9 + $0x15e0] sm:$0xff]  ;;  %v4154_v22 = vld [vmem:[#allocation9 + $0x17b8] sm:$0xff] }
 0x3a3   : > { %4185 = vmatprep.subr.mxu0 %v4044_v41  ;;  %4267 = vmatpush1.msra.mxu1 %v4103_v0  ;;  %v4094_v56 = vld [vmem:[#allocation9 + $0x15d8] sm:$0xff]  ;;  %v4153_v41 = vld [vmem:[#allocation9 + $0x17b0] sm:$0xff] }
 0x3a4   : > { %4186 = vmatpush1.msra.mxu0 %v4043_v57  ;;  %4268 = vmatprep.subr.mxu1 %v4102_v39  ;;  %v4093_v0 = vld [vmem:[#allocation9 + $0x15d0] sm:$0xff]  ;;  %v4152_v57 = vld [vmem:[#allocation9 + $0x17a8] sm:$0xff] }
 0x3a5   : > { %4187 = vmatprep.subr.mxu0 %v4042_v38  ;;  %4269 = vmatpush1.msra.mxu1 %v4101_v60  ;;  %v4092_v39 = vld [vmem:[#allocation9 + $0x15c8] sm:$0xff]  ;;  %v4151_v38 = vld [vmem:[#allocation9 + $0x17a0] sm:$0xff] }
 0x3a6   : > { %4188 = vmatpush1.msra.mxu0 %v4041_v47  ;;  %4270 = vmatprep.subr.mxu1 %v4100_v26  ;;  %v4091_v60 = vld [vmem:[#allocation9 + $0x15c0] sm:$0xff]  ;;  %v4150_v47 = vld [vmem:[#allocation9 + $0x1798] sm:$0xff] }
 0x3a7   : > { %4189 = vmatprep.subr.mxu0 %v4040_v34  ;;  %4271 = vmatpush1.msra.mxu1 %v4099_v13  ;;  %v4090_v26 = vld [vmem:[#allocation9 + $0x15b8] sm:$0xff]  ;;  %v4149_v34 = vld [vmem:[#allocation9 + $0x1790] sm:$0xff] }
 0x3a8   : > { %4190 = vmatpush1.msra.mxu0 %v4039_v35  ;;  %4272 = vmatprep.subr.mxu1 %v4162_v31  ;;  %v4089_v13 = vld [vmem:[#allocation9 + $0x15b0] sm:$0xff]  ;;  %v4148_v35 = vld [vmem:[#allocation9 + $0x1788] sm:$0xff] }
 0x3a9   : > { %4191 = vmatprep.subr.mxu0 %v4038_v30  ;;  %4273 = vmatpush2.msra.mxu1 %v4161_v16  ;;  %v4088_v31 = vld [vmem:[#allocation9 + $0x15a8] sm:$0xff]  ;;  %v4147_v30 = vld [vmem:[#allocation9 + $0x1780] sm:$0xff] }
 0x3aa   : > { %4192 = vmatpush1.msra.mxu0 %v4037_v63  ;;  %4274 = vmatprep.subr.mxu1 %v4160_v42  ;;  %v4087_v16 = vld [vmem:[#allocation9 + $0x15a0] sm:$0xff]  ;;  %v4146_v63 = vld [vmem:[#allocation9 + $0x1778] sm:$0xff] }
 0x3ab   : > { %4193 = vmatprep.subr.mxu0 %v4036_v48  ;;  %4275 = vmatpush2.msra.mxu1 %v4159_v2  ;;  %v4086_v42 = vld [vmem:[#allocation9 + $0x1598] sm:$0xff]  ;;  %v4145_v48 = vld [vmem:[#allocation9 + $0x1770] sm:$0xff] }
 0x3ac   : > { %4194 = vmatpush1.msra.mxu0 %v4035_v15  ;;  %4276 = vmatprep.subr.mxu1 %v4158_v28  ;;  %v4085_v2 = vld [vmem:[#allocation9 + $0x1590] sm:$0xff]  ;;  %v4144_v15 = vld [vmem:[#allocation9 + $0x1768] sm:$0xff] }
 0x3ad   : > { %4195 = vmatprep.subr.mxu0 %v4098_v19  ;;  %4277 = vmatpush2.msra.mxu1 %v4157_v45  ;;  %v4084_v28 = vld [vmem:[#allocation9 + $0x1588] sm:$0xff]  ;;  %v4143_v19 = vld [vmem:[#allocation9 + $0x1760] sm:$0xff] }
 0x3ae   : > { %4196 = vmatpush2.msra.mxu0 %v4097_v32  ;;  %4278 = vmatprep.subr.mxu1 %v4156_v11  ;;  %v4083_v45 = vld [vmem:[#allocation9 + $0x1580] sm:$0xff]  ;;  %v4142_v32 = vld [vmem:[#allocation9 + $0x1758] sm:$0xff] }
 0x3af   : > { %4197 = vmatprep.subr.mxu0 %v4096_v54  ;;  %4279 = vmatpush2.msra.mxu1 %v4155_v17  ;;  %v4082_v11 = vld [vmem:[#allocation9 + $0x1578] sm:$0xff]  ;;  %v4141_v54 = vld [vmem:[#allocation9 + $0x1750] sm:$0xff] }
 0x3b0   : > { %4198 = vmatpush2.msra.mxu0 %v4095_v59  ;;  %4280 = vmatprep.subr.mxu1 %v4154_v22  ;;  %v4081_v17 = vld [vmem:[#allocation9 + $0x1570] sm:$0xff]  ;;  %v4140_v59 = vld [vmem:[#allocation9 + $0x1748] sm:$0xff] }
 0x3b1   : > { %4199 = vmatprep.subr.mxu0 %v4094_v56  ;;  %4281 = vmatpush2.msra.mxu1 %v4153_v41  ;;  %v4080_v22 = vld [vmem:[#allocation9 + $0x1568] sm:$0xff]  ;;  %v4139_v56 = vld [vmem:[#allocation9 + $0x1740] sm:$0xff] }
 0x3b2   : > { %4200 = vmatpush2.msra.mxu0 %v4093_v0  ;;  %4282 = vmatprep.subr.mxu1 %v4152_v57  ;;  %v4079_v41 = vld [vmem:[#allocation9 + $0x1560] sm:$0xff]  ;;  %v4138_v0 = vld [vmem:[#allocation9 + $0x1738] sm:$0xff] }
 0x3b3   : > { %4201 = vmatprep.subr.mxu0 %v4092_v39  ;;  %4283 = vmatpush2.msra.mxu1 %v4151_v38  ;;  %v4078_v57 = vld [vmem:[#allocation9 + $0x1558] sm:$0xff]  ;;  %v4137_v39 = vld [vmem:[#allocation9 + $0x1730] sm:$0xff] }
 0x3b4   : > { %4202 = vmatpush2.msra.mxu0 %v4091_v60  ;;  %4284 = vmatprep.subr.mxu1 %v4150_v47  ;;  %v4077_v38 = vld [vmem:[#allocation9 + $0x1550] sm:$0xff]  ;;  %v4136_v60 = vld [vmem:[#allocation9 + $0x1728] sm:$0xff] }
 0x3b5   : > { %4203 = vmatprep.subr.mxu0 %v4090_v26  ;;  %4285 = vmatpush2.msra.mxu1 %v4149_v34  ;;  %v3971_v47 = vld [vmem:[#allocation2 + $0x10] sm:$0xe0]  ;;  %v4076_v26 = vld [vmem:[#allocation9 + $0x1548] sm:$0xff]  ;;  %v4135_v34 = vld [vmem:[#allocation9 + $0x1720] sm:$0xff] }
 0x3b6   : > { %4204 = vmatpush2.msra.mxu0 %v4089_v13  ;;  %4286 = vmatprep.subr.mxu1 %v4148_v35  ;;  %v3975_v13 = vld [vmem:[#allocation2 + $0x30] sm:$0x1f]  ;;  %v4075_v35 = vld [vmem:[#allocation9 + $0x1540] sm:$0xff] }
 0x3b7   : > { %4205 = vmatprep.subr.mxu0 %v4088_v31  ;;  %4287 = vmatpush2.msra.mxu1 %v4147_v30  ;;  %v4134_v31 = vld [vmem:[#allocation9 + $0x1718] sm:$0xff] }
 0x3b8   : > { %4206 = vmatpush2.msra.mxu0 %v4087_v16  ;;  %4288 = vmatprep.subr.mxu1 %v4146_v63  ;;  %v3980_v30 = vld [vmem:[#allocation2 + $0x58] sm:$0xf8]  ;;  %v4133_v63 = vld [vmem:[#allocation9 + $0x1710] sm:$0xff] }
 0x3b9   : > { %4207 = vmatprep.subr.mxu0 %v4086_v42  ;;  %4289 = vmatpush2.msra.mxu1 %v4145_v48  ;;  %v4074_v16 = vld [vmem:[#allocation9 + $0x1538] sm:$0xff]  ;;  %v4073_v48 = vld [vmem:[#allocation9 + $0x1530] sm:$0xff] }
 0x3ba   : > { %4208 = vmatpush2.msra.mxu0 %v4085_v2  ;;  %4290 = vmatprep.subr.mxu1 %v4144_v15  ;;  %v3984_v42 = vld [vmem:[#allocation2 + $0x78] sm:$0x7]  ;;  %v4132_v2 = vld [vmem:[#allocation9 + $0x1708] sm:$0xff]  ;;  %v4000_v15 = vrot.slane %v3971_v47, 5 }
 0x3bb   : > { %4209 = vmatprep.subr.mxu0 %v4084_v28  ;;  %4291 = vmatpush2.msra.mxu1 %v4143_v19  ;;  %v4001_v28 = vrot.slane %v3975_v13, 5  ;;  %v4072_v19 = vld [vmem:[#allocation9 + $0x1528] sm:$0xff] }
 0x3bc   : > { %4210 = vmatpush2.msra.mxu0 %v4083_v45  ;;  %4292 = vmatprep.subr.mxu1 %v4142_v32  ;;  %v4131_v45 = vld [vmem:[#allocation9 + $0x1700] sm:$0xff]  ;;  %v4027_v32 = vrot.slane %v3980_v30, 3  ;;  %v4068_v47 = vld [vmem:[#allocation9 + $0x1508] sm:$0xff] }
 0x3bd   : > { %4211 = vmatprep.subr.mxu0 %v4082_v11  ;;  %4293 = vmatpush2.msra.mxu1 %v4141_v54  ;;  %v3969_v11 = vld [vmem:[#allocation2] sm:$0xe0] }
 0x3be   : > { %4212 = vmatpush2.msra.mxu0 %v4081_v17  ;;  %4294 = vmatprep.subr.mxu1 %v4140_v59  ;;  %v4071_v54 = vld [vmem:[#allocation9 + $0x1520] sm:$0xff]  ;;  %v4028_v17 = vrot.slane %v3984_v42, 3 }
 0x3bf   : > { %4213 = vmatprep.subr.mxu0 %v4080_v22  ;;  %4295 = vmatpush2.msra.mxu1 %v4139_v56  ;;  %v3973_v59 = vld [vmem:[#allocation2 + $0x20] sm:$0x1f]  ;;  %v3978_v22 = vld [vmem:[#allocation2 + $0x48] sm:$0xf8]  ;;  %v4070_v56 = vld [vmem:[#allocation9 + $0x1518] sm:$0xff] }
 0x3c0   : > { %4214 = vmatpush2.msra.mxu0 %v4079_v41  ;;  %4296 = vmatprep.subr.mxu1 %v4138_v0  ;;  %v4481_v41 = vld [vmem:[#allocation9 + $0x1af8] sm:$0xff]  ;;  %v3982_v0 = vld [vmem:[#allocation2 + $0x68] sm:$0x7]  ;;  %v3995_v13 = vrot.slane %v3973_v59, 5  ;;  %v4029_v30 = vsel %vm3289_vm6, %v4027_v32, %v4028_v17  ;;  %v4478_v32 = vld [vmem:[#allocation9 + $0x1ae0] sm:$0xff] }
 0x3c1   : > { %4215 = vmatprep.subr.mxu0 %v4078_v57  ;;  %4297 = vmatpush2.msra.mxu1 %v4137_v39  ;;  %v4069_v57 = vld [vmem:[#allocation9 + $0x1510] sm:$0xff]  ;;  %v4002_v39 = vsel %vm3993_vm8, %v4000_v15, %v4001_v28  ;;  %v4022_v42 = vrot.slane %v3982_v0, 3  ;;  %v3977_v15 = vld [vmem:[#allocation2 + $0x40] sm:$0xf8]  ;;  %v3981_v28 = vld [vmem:[#allocation2 + $0x60] sm:$0x7] }
 0x3c2   : > { %4216 = vmatpush2.msra.mxu0 %v4077_v38  ;;  %4298 = vmatprep.subr.mxu1 %v4136_v60  ;;  %v3979_v38 = vld [vmem:[#allocation2 + $0x50] sm:$0xf8]  ;;  %v4324_v60 = vld [vmem:[#allocation2 + $0x18] sm:$0xc0]  ;;  %v4415_v17 = vld [vmem:[#allocation9 + $0x18e8] sm:$0xff] }
 0x3c3   : > { %4217 = vmatprep.subr.mxu0 %v4076_v26  ;;  %4299 = vmatpush2.msra.mxu1 %v4135_v34  ;;  %v4480_v26 = vld [vmem:[#allocation9 + $0x1af0] sm:$0xff]  ;;  %v3994_v34 = vrot.slane %v3969_v11, 5  ;;  %v4477_v0 = vld [vmem:[#allocation9 + $0x1ad8] sm:$0xff] }
 0x3c4   : > { %4218 = vmatpush2.msra.mxu0 %v4075_v35  ;;  %4300 = vmatprep.subr.mxu1 %v4134_v31  ;;  %v3983_v35 = vld [vmem:[#allocation2 + $0x70] sm:$0x7]  ;;  %v4067_v31 = vld [vmem:[#allocation9 + $0x1500] sm:$0xff] }
 0x3c5   : > { %4219 = vmatprep.subr.mxu0 %v4074_v16  ;;  %4301 = vmatpush2.msra.mxu1 %v4133_v63  ;;  %v4479_v16 = vld [vmem:[#allocation9 + $0x1ae8] sm:$0xff]  ;;  %v4021_v63 = vrot.slane %v3978_v22, 3  ;;  %v4025_v11 = vrot.slane %v3983_v35, 3  ;;  %v3996_v59 = vsel %vm3993_vm8, %v3994_v34, %v3995_v13  ;;  %v4354_v22 = vrot.slane %v4324_v60, 6  ;;  %v4413_v60 = vld [vmem:[#allocation9 + $0x18d8] sm:$0xff] }
 0x3c6   : > { %4220 = vmatpush2.msra.mxu0 %v4073_v48  ;;  %4302 = vmatprep.subr.mxu1 %v4132_v2  ;;  %v4328_v48 = vld [vmem:[#allocation2 + $0x38] sm:$0x3f] }
 0x3c7   : > { %4221 = vmatprep.subr.mxu0 %v4072_v19  ;;  %4303 = vmatpush2.msra.mxu1 %v4131_v45  ;;  %v4417_v2 = vld [vmem:[#allocation9 + $0x18f8] sm:$0xff]  ;;  %v4416_v19 = vld [vmem:[#allocation9 + $0x18f0] sm:$0xff]  ;;  %v4024_v45 = vrot.slane %v3979_v38, 3  ;;  %v4414_v38 = vld [vmem:[#allocation9 + $0x18e0] sm:$0xff] }
 0x3c8   : > { %4222 = vmatpush2.msra.mxu0 %v4071_v54  ;;  %4305 = vmatmul.mubr.f32.vlgmr.msra.gmra.mxu1 %v4002_v39  ;;  %v4322_v54 = vld [vmem:[#allocation2 + $0x8] sm:$0xc0]  ;;  %v4018_v39 = vrot.slane %v3977_v15, 3  ;;  %v4473_v15 = vld [vmem:[#allocation9 + $0x1ab8] sm:$0xff] }
 0x3c9   : > { %4223 = vmatprep.subr.mxu0 %v4070_v56  ;;  %4591 = vmatprep.subr.mxu1 %v4481_v41  ;;  %v4326_v56 = vld [vmem:[#allocation2 + $0x28] sm:$0x3f]  ;;  %v4023_v41 = vsel %vm3289_vm6, %v4021_v63, %v4022_v42  ;;  %v4026_v34 = vsel %vm3289_vm6, %v4024_v45, %v4025_v11  ;;  %v4348_v13 = vrot.slane %v4322_v54, 6  ;;  %v4412_v63 = vld [vmem:[#allocation9 + $0x18d0] sm:$0xff]  ;;  %v4474_v42 = vld [vmem:[#allocation9 + $0x1ac0] sm:$0xff] }
 0x3ca   : > { %4224 = vmatpush2.msra.mxu0 %v4069_v57  ;;  %4310 = vmatprep.mubr.f32.mxu1 %v4029_v30  ;;  %v4355_v57 = vrot.slane %v4328_v48, 6  ;;  %v4349_v35 = vrot.slane %v4326_v56, 6  ;;  %v4411_v48 = vld [vmem:[#allocation9 + $0x18c8] sm:$0xff]  ;;  %v4409_v45 = vld [vmem:[#allocation9 + $0x18b8] sm:$0xff]  ;;  %v4408_v54 = vld [vmem:[#allocation9 + $0x18b0] sm:$0xff] }
 0x3cb   : > { %4225 = vmatprep.subr.mxu0 %v4068_v47  ;;  %4592 = vmatpush1.msra.mxu1 %v4480_v26  ;;  %v4019_v47 = vrot.slane %v3981_v28, 3  ;;  %v4476_v26 = vld [vmem:[#allocation9 + $0x1ad0] sm:$0xff]  ;;  %v4410_v28 = vld [vmem:[#allocation9 + $0x18c0] sm:$0xff]  ;;  %v4471_v11 = vld [vmem:[#allocation9 + $0x1aa8] sm:$0xff] }
 0x3cc   : > { %4226 = vmatpush2.msra.mxu0 %v4067_v31  ;;  %4593 = vmatprep.subr.mxu1 %v4479_v16  ;;  %v4475_v31 = vld [vmem:[#allocation9 + $0x1ac8] sm:$0xff]  ;;  %v4356_v30 = vsel %vm2293_vm4, %v4354_v22, %v4355_v57  ;;  %v4406_v22 = vld [vmem:[#allocation9 + $0x18a0] sm:$0xff]  ;;  %v4468_v56 = vld [vmem:[#allocation9 + $0x1a90] sm:$0xff] }
 0x3cd   : > { %4228 = vmatmul.mubr.f32.vlgmr.msra.gmra.mxu0 %v3996_v59  ;;  %4514 = vmatprep.subr.mxu0 %v4417_v2  ;;  %v4020_v16 = vsel %vm3289_vm6, %v4018_v39, %v4019_v47  ;;  %v4350_v2 = vsel %vm2293_vm4, %v4348_v13, %v4349_v35  ;;  %v4470_v59 = vld [vmem:[#allocation9 + $0x1aa0] sm:$0xff]  ;;  %v4404_v57 = vld [vmem:[#allocation9 + $0x1890] sm:$0xff]  ;;  %v4403_v47 = vld [vmem:[#allocation9 + $0x1888] sm:$0xff] }
 0x3ce   : > { %4233 = vmatprep.mubr.f32.mxu0 %v4023_v41  ;;  %4515 = vmatpush1.msra.mxu0 %v4416_v19  ;;  %v4472_v19 = vld [vmem:[#allocation9 + $0x1ab0] sm:$0xff]  ;;  %v4405_v41 = vld [vmem:[#allocation9 + $0x1898] sm:$0xff]  ;;  %v4466_v39 = vld [vmem:[#allocation9 + $0x1a80] sm:$0xff] }
 0x3cf   : > { %4594 = vmatpush1.msra.mxu1 %v4478_v32  ;;  %4516 = vmatprep.subr.mxu0 %v4415_v17  ;;  %v4407_v32 = vld [vmem:[#allocation9 + $0x18a8] sm:$0xff]  ;;  %v4469_v17 = vld [vmem:[#allocation9 + $0x1a98] sm:$0xff] }
 0x3d0   : > { %4311 = vmatmul.mubr.f32.gmra.mxu1 %v4026_v34  ;;  %4595 = vmatprep.subr.mxu1 %v4477_v0  ;;  %v4467_v0 = vld [vmem:[#allocation9 + $0x1a88] sm:$0xff]  ;;  %v4464_v34 = vld [vmem:[#allocation9 + $0x1a70] sm:$0xff]  ;;  %v4401_v13 = vld [vmem:[#allocation9 + $0x1878] sm:$0xff] }
 0x3d1   : > { %4517 = vmatpush1.msra.mxu0 %v4414_v38  ;;  %4596 = vmatpush1.msra.mxu1 %v4476_v26  ;;  %v4465_v38 = vld [vmem:[#allocation9 + $0x1a78] sm:$0xff]  ;;  %v4402_v26 = vld [vmem:[#allocation9 + $0x1880] sm:$0xff]  ;;  %v4463_v35 = vld [vmem:[#allocation9 + $0x1a68] sm:$0xff] }
 0x3d2   : > { %4655 = vmatprep.mubr.f32.mxu1 %v4356_v30  ;;  %4234 = vmatmul.mubr.f32.gmra.mxu0 %v4020_v16  ;;  %v4399_v30 = vld [vmem:[#allocation9 + $0x1868] sm:$0xff]  ;;  %v4461_v16 = vld [vmem:[#allocation9 + $0x1a58] sm:$0xff] }
 0x3d3   : > { %4518 = vmatprep.subr.mxu0 %v4413_v60  ;;  %4597 = vmatprep.subr.mxu1 %v4475_v31  ;;  %v4400_v60 = vld [vmem:[#allocation9 + $0x1870] sm:$0xff]  ;;  %v4462_v31 = vld [vmem:[#allocation9 + $0x1a60] sm:$0xff] }
 0x3d4   : > { %4519 = vmatpush1.msra.mxu0 %v4412_v63  ;;  %4578 = vmatprep.mubr.f32.mxu0 %v4350_v2  ;;  %v4398_v63 = vld [vmem:[#allocation9 + $0x1860] sm:$0xff]  ;;  %v4459_v2 = vld [vmem:[#allocation9 + $0x1a48] sm:$0xff] }
 0x3d5   : > { %4598 = vmatpush1.msra.mxu1 %v4474_v42  ;;  %4520 = vmatprep.subr.mxu0 %v4411_v48  ;;  %v4460_v42 = vld [vmem:[#allocation9 + $0x1a50] sm:$0xff]  ;;  %v4397_v48 = vld [vmem:[#allocation9 + $0x1858] sm:$0xff] }
 0x3d6   : > { %4599 = vmatprep.subr.mxu1 %v4473_v15  ;;  %4521 = vmatpush1.msra.mxu0 %v4410_v28  ;;  %v4396_v15 = vld [vmem:[#allocation9 + $0x1850] sm:$0xff]  ;;  %v4458_v28 = vld [vmem:[#allocation9 + $0x1a40] sm:$0xff] }
 0x3d7   : > { %4600 = vmatpush1.msra.mxu1 %v4472_v19  ;;  %4522 = vmatprep.subr.mxu0 %v4409_v45  ;;  %v4395_v19 = vld [vmem:[#allocation9 + $0x1848] sm:$0xff]  ;;  %v4457_v45 = vld [vmem:[#allocation9 + $0x1a38] sm:$0xff] }
 0x3d8   : > { %4601 = vmatprep.subr.mxu1 %v4471_v11  ;;  %4523 = vmatpush1.msra.mxu0 %v4408_v54  ;;  %v4394_v11 = vld [vmem:[#allocation9 + $0x1840] sm:$0xff]  ;;  %v4456_v54 = vld [vmem:[#allocation9 + $0x1a30] sm:$0xff] }
 0x3d9   : > { %4602 = vmatpush1.msra.mxu1 %v4470_v59  ;;  %4524 = vmatprep.subr.mxu0 %v4407_v32  ;;  %v4393_v59 = vld [vmem:[#allocation9 + $0x1838] sm:$0xff]  ;;  %v4455_v32 = vld [vmem:[#allocation9 + $0x1a28] sm:$0xff] }
 0x3da   : > { %4603 = vmatprep.subr.mxu1 %v4469_v17  ;;  %4525 = vmatpush1.msra.mxu0 %v4406_v22  ;;  %v4392_v17 = vld [vmem:[#allocation9 + $0x1830] sm:$0xff]  ;;  %v4454_v22 = vld [vmem:[#allocation9 + $0x1a20] sm:$0xff] }
 0x3db   : > { %4604 = vmatpush1.msra.mxu1 %v4468_v56  ;;  %4526 = vmatprep.subr.mxu0 %v4405_v41  ;;  %v4391_v56 = vld [vmem:[#allocation9 + $0x1828] sm:$0xff]  ;;  %v4453_v41 = vld [vmem:[#allocation9 + $0x1a18] sm:$0xff] }
 0x3dc   : > { %4605 = vmatprep.subr.mxu1 %v4467_v0  ;;  %4527 = vmatpush1.msra.mxu0 %v4404_v57  ;;  %v4390_v0 = vld [vmem:[#allocation9 + $0x1820] sm:$0xff]  ;;  %v4452_v57 = vld [vmem:[#allocation9 + $0x1a10] sm:$0xff] }
 0x3dd   : > { %4606 = vmatpush1.msra.mxu1 %v4466_v39  ;;  %4528 = vmatprep.subr.mxu0 %v4403_v47  ;;  %v4389_v39 = vld [vmem:[#allocation9 + $0x1818] sm:$0xff]  ;;  %v4451_v47 = vld [vmem:[#allocation9 + $0x1a08] sm:$0xff] }
 0x3de   : > { %4607 = vmatprep.subr.mxu1 %v4465_v38  ;;  %4529 = vmatpush1.msra.mxu0 %v4402_v26  ;;  %v4388_v38 = vld [vmem:[#allocation9 + $0x1810] sm:$0xff]  ;;  %v4450_v26 = vld [vmem:[#allocation9 + $0x1a00] sm:$0xff] }
 0x3df   : > { %4608 = vmatpush1.msra.mxu1 %v4464_v34  ;;  %4530 = vmatprep.subr.mxu0 %v4401_v13  ;;  %v4387_v34 = vld [vmem:[#allocation9 + $0x1808] sm:$0xff]  ;;  %v4513_v13 = vld [vmem:[#allocation9 + $0x1bf8] sm:$0xff] }
 0x3e0   : > { %4609 = vmatprep.subr.mxu1 %v4463_v35  ;;  %4531 = vmatpush1.msra.mxu0 %v4400_v60  ;;  %v4386_v35 = vld [vmem:[#allocation9 + $0x1800] sm:$0xff]  ;;  %v4512_v60 = vld [vmem:[#allocation9 + $0x1bf0] sm:$0xff] }
 0x3e1   : > { %4610 = vmatpush1.msra.mxu1 %v4462_v31  ;;  %4532 = vmatprep.subr.mxu0 %v4399_v30  ;;  %v4449_v31 = vld [vmem:[#allocation9 + $0x19f8] sm:$0xff]  ;;  %v4511_v30 = vld [vmem:[#allocation9 + $0x1be8] sm:$0xff] }
 0x3e2   : > { %4611 = vmatprep.subr.mxu1 %v4461_v16  ;;  %4533 = vmatpush1.msra.mxu0 %v4398_v63  ;;  %v4448_v16 = vld [vmem:[#allocation9 + $0x19f0] sm:$0xff]  ;;  %v4510_v63 = vld [vmem:[#allocation9 + $0x1be0] sm:$0xff] }
 0x3e3   : > { %4612 = vmatpush1.msra.mxu1 %v4460_v42  ;;  %4534 = vmatprep.subr.mxu0 %v4397_v48  ;;  %v4447_v42 = vld [vmem:[#allocation9 + $0x19e8] sm:$0xff]  ;;  %v4509_v48 = vld [vmem:[#allocation9 + $0x1bd8] sm:$0xff] }
 0x3e4   : > { %4613 = vmatprep.subr.mxu1 %v4459_v2  ;;  %4535 = vmatpush1.msra.mxu0 %v4396_v15  ;;  %v4446_v2 = vld [vmem:[#allocation9 + $0x19e0] sm:$0xff]  ;;  %v4508_v15 = vld [vmem:[#allocation9 + $0x1bd0] sm:$0xff] }
 0x3e5   : > { %4614 = vmatpush1.msra.mxu1 %v4458_v28  ;;  %4536 = vmatprep.subr.mxu0 %v4395_v19  ;;  %v4445_v28 = vld [vmem:[#allocation9 + $0x19d8] sm:$0xff]  ;;  %v4507_v19 = vld [vmem:[#allocation9 + $0x1bc8] sm:$0xff] }
 0x3e6   : > { %4615 = vmatprep.subr.mxu1 %v4457_v45  ;;  %4537 = vmatpush1.msra.mxu0 %v4394_v11  ;;  %v4444_v45 = vld [vmem:[#allocation9 + $0x19d0] sm:$0xff]  ;;  %v4506_v11 = vld [vmem:[#allocation9 + $0x1bc0] sm:$0xff] }
 0x3e7   : > { %4616 = vmatpush1.msra.mxu1 %v4456_v54  ;;  %4538 = vmatprep.subr.mxu0 %v4393_v59  ;;  %v4443_v54 = vld [vmem:[#allocation9 + $0x19c8] sm:$0xff]  ;;  %v4505_v59 = vld [vmem:[#allocation9 + $0x1bb8] sm:$0xff] }
 0x3e8   : > { %4617 = vmatprep.subr.mxu1 %v4455_v32  ;;  %4539 = vmatpush1.msra.mxu0 %v4392_v17  ;;  %v4442_v32 = vld [vmem:[#allocation9 + $0x19c0] sm:$0xff]  ;;  %v4504_v17 = vld [vmem:[#allocation9 + $0x1bb0] sm:$0xff] }
 0x3e9   : > { %4618 = vmatpush1.msra.mxu1 %v4454_v22  ;;  %4540 = vmatprep.subr.mxu0 %v4391_v56  ;;  %v4441_v22 = vld [vmem:[#allocation9 + $0x19b8] sm:$0xff]  ;;  %v4503_v56 = vld [vmem:[#allocation9 + $0x1ba8] sm:$0xff] }
 0x3ea   : > { %4619 = vmatprep.subr.mxu1 %v4453_v41  ;;  %4541 = vmatpush1.msra.mxu0 %v4390_v0  ;;  %v4440_v41 = vld [vmem:[#allocation9 + $0x19b0] sm:$0xff]  ;;  %v4502_v0 = vld [vmem:[#allocation9 + $0x1ba0] sm:$0xff] }
 0x3eb   : > { %4620 = vmatpush1.msra.mxu1 %v4452_v57  ;;  %4542 = vmatprep.subr.mxu0 %v4389_v39  ;;  %v4439_v57 = vld [vmem:[#allocation9 + $0x19a8] sm:$0xff]  ;;  %v4501_v39 = vld [vmem:[#allocation9 + $0x1b98] sm:$0xff] }
 0x3ec   : > { %4621 = vmatprep.subr.mxu1 %v4451_v47  ;;  %4543 = vmatpush1.msra.mxu0 %v4388_v38  ;;  %v4438_v47 = vld [vmem:[#allocation9 + $0x19a0] sm:$0xff]  ;;  %v4500_v38 = vld [vmem:[#allocation9 + $0x1b90] sm:$0xff] }
 0x3ed   : > { %4622 = vmatpush1.msra.mxu1 %v4450_v26  ;;  %4544 = vmatprep.subr.mxu0 %v4387_v34  ;;  %v4437_v26 = vld [vmem:[#allocation9 + $0x1998] sm:$0xff]  ;;  %v4499_v34 = vld [vmem:[#allocation9 + $0x1b88] sm:$0xff] }
 0x3ee   : > { %4623 = vmatprep.subr.mxu1 %v4513_v13  ;;  %4545 = vmatpush1.msra.mxu0 %v4386_v35  ;;  %v4436_v13 = vld [vmem:[#allocation9 + $0x1990] sm:$0xff]  ;;  %v4498_v35 = vld [vmem:[#allocation9 + $0x1b80] sm:$0xff] }
 0x3ef   : > { %4624 = vmatpush2.msra.mxu1 %v4512_v60  ;;  %4546 = vmatprep.subr.mxu0 %v4449_v31  ;;  %v4435_v60 = vld [vmem:[#allocation9 + $0x1988] sm:$0xff]  ;;  %v4497_v31 = vld [vmem:[#allocation9 + $0x1b78] sm:$0xff] }
 0x3f0   : > { %4625 = vmatprep.subr.mxu1 %v4511_v30  ;;  %4547 = vmatpush2.msra.mxu0 %v4448_v16  ;;  %v4434_v30 = vld [vmem:[#allocation9 + $0x1980] sm:$0xff]  ;;  %v4496_v16 = vld [vmem:[#allocation9 + $0x1b70] sm:$0xff] }
 0x3f1   : > { %4626 = vmatpush2.msra.mxu1 %v4510_v63  ;;  %4548 = vmatprep.subr.mxu0 %v4447_v42  ;;  %v4433_v63 = vld [vmem:[#allocation9 + $0x1978] sm:$0xff]  ;;  %v4495_v42 = vld [vmem:[#allocation9 + $0x1b68] sm:$0xff] }
 0x3f2   : > { %4627 = vmatprep.subr.mxu1 %v4509_v48  ;;  %4549 = vmatpush2.msra.mxu0 %v4446_v2  ;;  %v4432_v48 = vld [vmem:[#allocation9 + $0x1970] sm:$0xff]  ;;  %v4494_v2 = vld [vmem:[#allocation9 + $0x1b60] sm:$0xff] }
 0x3f3   : > { %4628 = vmatpush2.msra.mxu1 %v4508_v15  ;;  %4550 = vmatprep.subr.mxu0 %v4445_v28  ;;  %v4431_v15 = vld [vmem:[#allocation9 + $0x1968] sm:$0xff]  ;;  %v4493_v28 = vld [vmem:[#allocation9 + $0x1b58] sm:$0xff] }
 0x3f4   : > { %4629 = vmatprep.subr.mxu1 %v4507_v19  ;;  %4551 = vmatpush2.msra.mxu0 %v4444_v45  ;;  %v4430_v19 = vld [vmem:[#allocation9 + $0x1960] sm:$0xff]  ;;  %v4492_v45 = vld [vmem:[#allocation9 + $0x1b50] sm:$0xff] }
 0x3f5   : > { %4630 = vmatpush2.msra.mxu1 %v4506_v11  ;;  %4552 = vmatprep.subr.mxu0 %v4443_v54  ;;  %v4429_v11 = vld [vmem:[#allocation9 + $0x1958] sm:$0xff]  ;;  %v4491_v54 = vld [vmem:[#allocation9 + $0x1b48] sm:$0xff] }
 0x3f6   : > { %4631 = vmatprep.subr.mxu1 %v4505_v59  ;;  %4553 = vmatpush2.msra.mxu0 %v4442_v32  ;;  %v4428_v59 = vld [vmem:[#allocation9 + $0x1950] sm:$0xff]  ;;  %v4490_v32 = vld [vmem:[#allocation9 + $0x1b40] sm:$0xff] }
 0x3f7   : > { %4632 = vmatpush2.msra.mxu1 %v4504_v17  ;;  %4554 = vmatprep.subr.mxu0 %v4441_v22  ;;  %v4427_v17 = vld [vmem:[#allocation9 + $0x1948] sm:$0xff]  ;;  %v4489_v22 = vld [vmem:[#allocation9 + $0x1b38] sm:$0xff] }
 0x3f8   : > { %4633 = vmatprep.subr.mxu1 %v4503_v56  ;;  %4555 = vmatpush2.msra.mxu0 %v4440_v41  ;;  %v4426_v56 = vld [vmem:[#allocation9 + $0x1940] sm:$0xff]  ;;  %v4323_v41 = vld [vmem:[#allocation2 + $0x10] sm:$0xc0] }
 0x3f9   : > { %4634 = vmatpush2.msra.mxu1 %v4502_v0  ;;  %4556 = vmatprep.subr.mxu0 %v4439_v57  ;;  %v4327_v0 = vld [vmem:[#allocation2 + $0x30] sm:$0x3f] }
 0x3fa   : > { %4635 = vmatprep.subr.mxu1 %v4501_v39  ;;  %4557 = vmatpush2.msra.mxu0 %v4438_v47  ;;  %v4488_v57 = vld [vmem:[#allocation9 + $0x1b30] sm:$0xff]  ;;  %v4425_v39 = vld [vmem:[#allocation9 + $0x1938] sm:$0xff] }
 0x3fb   : > { %4636 = vmatpush2.msra.mxu1 %v4500_v38  ;;  %4558 = vmatprep.subr.mxu0 %v4437_v26  ;;  %v4332_v47 = vld [vmem:[#allocation2 + $0x58] sm:$0xf0]  ;;  %v4321_v38 = vld [vmem:[#allocation2] sm:$0xc0]  ;;  %v4487_v26 = vld [vmem:[#allocation9 + $0x1b28] sm:$0xff] }
 0x3fc   : > { %4637 = vmatprep.subr.mxu1 %v4499_v34  ;;  %4559 = vmatpush2.msra.mxu0 %v4436_v13  ;;  %v4424_v34 = vld [vmem:[#allocation9 + $0x1930] sm:$0xff]  ;;  %v4325_v13 = vld [vmem:[#allocation2 + $0x20] sm:$0x3f] }
 0x3fd   : > { %4638 = vmatpush2.msra.mxu1 %v4498_v35  ;;  %4560 = vmatprep.subr.mxu0 %v4435_v60  ;;  %v4486_v35 = vld [vmem:[#allocation9 + $0x1b20] sm:$0xff]  ;;  %v4423_v60 = vld [vmem:[#allocation9 + $0x1928] sm:$0xff] }
 0x3fe   : > { %4639 = vmatprep.subr.mxu1 %v4497_v31  ;;  %4561 = vmatpush2.msra.mxu0 %v4434_v30  ;;  %v4330_v31 = vld [vmem:[#allocation2 + $0x48] sm:$0xf0]  ;;  %v4485_v30 = vld [vmem:[#allocation9 + $0x1b18] sm:$0xff] }
 0x3ff   : > { %4640 = vmatpush2.msra.mxu1 %v4496_v16  ;;  %4562 = vmatprep.subr.mxu0 %v4433_v63  ;;  %v4422_v16 = vld [vmem:[#allocation9 + $0x1920] sm:$0xff]  ;;  %v4336_v63 = vld [vmem:[#allocation2 + $0x78] sm:$0xf] }
 0x400   : > { %4641 = vmatprep.subr.mxu1 %v4495_v42  ;;  %4563 = vmatpush2.msra.mxu0 %v4432_v48  ;;  %v4484_v42 = vld [vmem:[#allocation9 + $0x1b10] sm:$0xff]  ;;  %v4421_v48 = vld [vmem:[#allocation9 + $0x1918] sm:$0xff] }
 0x401   : > { %4642 = vmatpush2.msra.mxu1 %v4494_v2  ;;  %4564 = vmatprep.subr.mxu0 %v4431_v15  ;;  %v4351_v2 = vrot.slane %v4323_v41, 6  ;;  %v4352_v15 = vrot.slane %v4327_v0, 6  ;;  %v4418_v41 = vld [vmem:[#allocation9 + $0x1900] sm:$0xff]  ;;  %v4372_v0 = vrot.slane %v4330_v31, 4 }
 0x402   : > { %4643 = vmatprep.subr.mxu1 %v4493_v28  ;;  %4565 = vmatpush2.msra.mxu0 %v4430_v19  ;;  %v4334_v28 = vld [vmem:[#allocation2 + $0x68] sm:$0xf]  ;;  %v4331_v19 = vld [vmem:[#allocation2 + $0x50] sm:$0xf0] }
 0x403   : > { %4644 = vmatpush2.msra.mxu1 %v4492_v45  ;;  %4566 = vmatprep.subr.mxu0 %v4429_v11  ;;  %v4483_v45 = vld [vmem:[#allocation9 + $0x1b08] sm:$0xff]  ;;  %v4420_v11 = vld [vmem:[#allocation9 + $0x1910] sm:$0xff] }
 0x404   : > { %4645 = vmatprep.subr.mxu1 %v4491_v54  ;;  %4567 = vmatpush2.msra.mxu0 %v4428_v59  ;;  %v4378_v54 = vrot.slane %v4332_v47, 4  ;;  %v4345_v59 = vrot.slane %v4321_v38, 6  ;;  %v4353_v47 = vsel %vm2293_vm4, %v4351_v2, %v4352_v15  ;;  %v4375_v38 = vrot.slane %v4331_v19, 4  ;;  %v2776_v2 = vpop.f32.mrf.mxu1  ;;  %v2699_v15 = vpop.f32.mrf.mxu0 }
 0x405   : > { %4646 = vmatpush2.msra.mxu1 %v4490_v32  ;;  %4568 = vmatprep.subr.mxu0 %v4427_v17  ;;  %v4329_v32 = vld [vmem:[#allocation2 + $0x40] sm:$0xf0]  ;;  %v2777_v55 = vadd.f32 %v2776_v2, %v2699_v15 }
 0x406   : > { %4647 = vmatprep.subr.mxu1 %v4489_v22  ;;  %4569 = vmatpush2.msra.mxu0 %v4426_v56  ;;  %v4482_v17 = vld [vmem:[#allocation9 + $0x1b00] sm:$0xff]  ;;  %v4419_v22 = vld [vmem:[#allocation9 + $0x1908] sm:$0xff]  ;;  %v4379_v56 = vrot.slane %v4336_v63, 4  ;;  %v2701_v19 = vpop.f32.mrf.mxu0 }
 0x407   : > { %4648 = vmatpush2.msra.mxu1 %v4488_v57  ;;  %4570 = vmatprep.subr.mxu0 %v4425_v39  ;;  %v4346_v57 = vrot.slane %v4325_v13, 6  ;;  %v4335_v39 = vld [vmem:[#allocation2 + $0x70] sm:$0xf] }
 0x408   : > { %4649 = vmatprep.subr.mxu1 %v4487_v26  ;;  %4571 = vmatpush2.msra.mxu0 %v4424_v34  ;;  %v4373_v26 = vrot.slane %v4334_v28, 4  ;;  %v4333_v34 = vld [vmem:[#allocation2 + $0x60] sm:$0xf]  ;;  %v2778_v28 = vpop.f32.mrf.mxu1 }
 0x409   : > { %4650 = vmatpush2.msra.mxu1 %v4486_v35  ;;  %4572 = vmatprep.subr.mxu0 %v4423_v60  ;;  %v4376_v35 = vrot.slane %v4335_v39, 4  ;;  %v4380_v60 = vsel %vm3641_vm7, %v4378_v54, %v4379_v56  ;;  %v4347_v13 = vsel %vm2293_vm4, %v4345_v59, %v4346_v57  ;;  %v2779_v61 = vadd.f32 %v2778_v28, %v2701_v19 }
 0x40a   : > { %4651 = vmatprep.subr.mxu1 %v4485_v30  ;;  %4573 = vmatpush2.msra.mxu0 %v4422_v16  ;;  %v4369_v30 = vrot.slane %v4329_v32, 4  ;;  %v4370_v16 = vrot.slane %v4333_v34, 4  ;;  %v4374_v31 = vsel %vm3641_vm7, %v4372_v0, %v4373_v26 }
 0x40b   : > { %4652 = vmatpush2.msra.mxu1 %v4484_v42  ;;  %4574 = vmatprep.subr.mxu0 %v4421_v48  ;;  %v4377_v63 = vsel %vm3641_vm7, %v4375_v38, %v4376_v35  ;;  %v10748_v48 = vmov 0.0  }
 0x40c   : > { %4653 = vmatprep.subr.mxu1 %v4483_v45  ;;  %4575 = vmatpush2.msra.mxu0 %v4420_v11  ;;  %v4371_v42 = vsel %vm3641_vm7, %v4369_v30, %v4370_v16  ;;  %v2782_v45 = vpop.f32.mrf.mxu1  ;;  %v2705_v11 = vpop.f32.mrf.mxu0 }
 0x40d   : > { %4654 = vmatpush2.msra.mxu1 %v4482_v17  ;;  %4576 = vmatprep.subr.mxu0 %v4419_v22  ;;  %v2783_v23 = vadd.f32 %v2782_v45, %v2705_v11 }
 0x40e   : > { %4656 = vmatmul.mubr.f32.vlgmr.msra.gmra.mxu1 %v4353_v47  ;;  %4577 = vmatpush2.msra.mxu0 %v4418_v41  ;;  %v2784_v54 = vpop.f32.mrf.mxu1  ;;  %v2707_v59 = vpop.f32.mrf.mxu0 }
 0x40f   : > { %4661 = vmatprep.mubr.f32.mxu1 %v4380_v60  ;;  %4579 = vmatmul.mubr.f32.vlgmr.msra.gmra.mxu0 %v4347_v13  ;;  %v2785_v6 = vadd.f32 %v2784_v54, %v2707_v59 }
 0x410   : > { %4584 = vmatprep.mubr.f32.mxu0 %v4374_v31  ;;  %v2930_v32 = vpop.f32.mrf.mxu1  ;;  %v2853_v17 = vpop.f32.mrf.mxu0 }
 0x411   : > { %v2854_v37 = vadd.f32 %v2853_v17, %v2777_v55 }
 0x412   : > { %4662 = vmatmul.mubr.f32.gmra.mxu1 %v4377_v63  ;;  %v2932_v22 = vpop.f32.mrf.mxu1  ;;  %v2855_v56 = vpop.f32.mrf.mxu0 }
 0x413   : > { %4585 = vmatmul.mubr.f32.gmra.mxu0 %v4371_v42  ;;  %5316 = vmatprep.mubr.f32.mxu1 %v10748_v48  ;;  %v2856_v4 = vadd.f32 %v2855_v56, %v2779_v61  ;;  %v2931_v10 = vadd.f32 %v2930_v32, %v2854_v37 }
 0x414   : > { %5227 = vmatprep.mubr.f32.mxu0 %v10748_v48  ;;  %v2936_v57 = vpop.f32.mrf.mxu1  ;;  %v2859_v39 = vpop.f32.mrf.mxu0 }
 0x415   : > { %v2860_v29 = vadd.f32 %v2859_v39, %v2783_v23  ;;  %v2933_v58 = vadd.f32 %v2932_v22, %v2856_v4 }
 0x416   : > { %v2938_v41 = vpop.f32.mrf.mxu1  ;;  %v2861_v0 = vpop.f32.mrf.mxu0 }
 0x417   : > { %v2862_v27 = vadd.f32 %v2861_v0, %v2785_v6  ;;  %v2937_v15 = vadd.f32 %v2936_v57, %v2860_v29 }
 0x418   : > { %v3250_v26 = vpop.f32.mrf.mxu1  ;;  %v3173_v34 = vpop.f32.mrf.mxu0 }
 0x419   : > { %v3251_v18 = vadd.f32 %v3250_v26, %v3173_v34  ;;  %v2939_v23 = vadd.f32 %v2938_v41, %v2862_v27 }
 0x41a   : > { %v3252_v47 = vpop.f32.mrf.mxu1  ;;  %v3175_v38 = vpop.f32.mrf.mxu0 }
 0x41b   : > { %v3253_v50 = vadd.f32 %v3252_v47, %v3175_v38  ;;  %v3261_v62 = vadd.f32 %v3251_v18, %v2931_v10 }
 0x41c   : > { %v3256_v35 = vpop.f32.mrf.mxu1  ;;  %v3179_v60 = vpop.f32.mrf.mxu0 }
 0x41d   : > { %v3257_v40 = vadd.f32 %v3256_v35, %v3179_v60  ;;  %v3262_v19 = vadd.f32 %v3253_v50, %v2933_v58 }
 0x41e   : > { %v3258_v13 = vpop.f32.mrf.mxu1  ;;  %v3181_v30 = vpop.f32.mrf.mxu0 }
 0x41f   : > { %v3259_v55 = vadd.f32 %v3258_v13, %v3181_v30  ;;  %v3263_v37 = vadd.f32 %v3257_v40, %v2937_v15 }
 0x420   : > { %v3602_v16 = vpop.f32.mrf.mxu1  ;;  %v3525_v31 = vpop.f32.mrf.mxu0 }
 0x421   : > { %v3603_v53 = vadd.f32 %v3602_v16, %v3525_v31  ;;  %v3264_v10 = vadd.f32 %v3259_v55, %v2939_v23 }
 0x422   : > { %v3604_v63 = vpop.f32.mrf.mxu1  ;;  %v3527_v42 = vpop.f32.mrf.mxu0 }
 0x423   : > { %v3605_v49 = vadd.f32 %v3604_v63, %v3527_v42  ;;  %v3613_v45 = vadd.f32 %v3603_v53, %v3261_v62 }
 0x424   : > { %v3608_v51 = vpop.f32.mrf.mxu1  ;;  %v3531_v36 = vpop.f32.mrf.mxu0 }
 0x425   : > { %v3609_v28 = vadd.f32 %v3608_v51, %v3531_v36  ;;  %v3614_v17 = vadd.f32 %v3605_v49, %v3262_v19 }
 0x426   : > { %v3610_v1 = vpop.f32.mrf.mxu1  ;;  %v3533_v43 = vpop.f32.mrf.mxu0 }
 0x427   : > { %v3611_v59 = vadd.f32 %v3610_v1, %v3533_v43  ;;  %v3615_v18 = vadd.f32 %v3609_v28, %v3263_v37 }
 0x429   : > { %v3616_v53 = vadd.f32 %v3611_v59, %v3264_v10 }
 0x440   : > { %v3954_v7 = vpop.f32.mrf.mxu1 }
 0x442   : > { %v3956_v5 = vpop.f32.mrf.mxu1 }
 0x446   : > { %v3960_v12 = vpop.f32.mrf.mxu1 }
 0x448   : > { %v3962_v9 = vpop.f32.mrf.mxu1 }
 0x44d   : > { %v3877_v21 = vpop.f32.mrf.mxu0 }
 0x44e   : > { %v3955_v2 = vadd.f32 %v3954_v7, %v3877_v21 }
 0x44f   : > { %v3879_v8 = vpop.f32.mrf.mxu0 }
 0x450   : > { %v3957_v61 = vadd.f32 %v3956_v5, %v3879_v8  ;;  %v3965_v6 = vadd.f32 %v3955_v2, %v3613_v45 }
 0x451   : > { %v3883_v33 = vpop.f32.mrf.mxu0 }
 0x452   : > { %v3961_v56 = vadd.f32 %v3960_v12, %v3883_v33  ;;  %v3966_v21 = vadd.f32 %v3957_v61, %v3614_v17 }
 0x453   : > { %v3885_v20 = vpop.f32.mrf.mxu0 }
 0x454   : > { %v3963_v7 = vadd.f32 %v3962_v9, %v3885_v20  ;;  %v3967_v40 = vadd.f32 %v3961_v56, %v3615_v18 }
 0x456   : > { %v3968_v12 = vadd.f32 %v3963_v7, %v3616_v53 }
 0x488   : > { %v4306_v25 = vpop.f32.mrf.mxu1 }
 0x48a   : > { %v4308_v52 = vpop.f32.mrf.mxu1 }
 0x48d   : > { %v4229_v24 = vpop.f32.mrf.mxu0 }
 0x48e   : > { %v4307_v11 = vadd.f32 %v4306_v25, %v4229_v24 }
 0x48f   : > { %v4231_v48 = vpop.f32.mrf.mxu0 }
 0x490   : > { %v4312_v3 = vpop.f32.mrf.mxu1  ;;  %v4309_v39 = vadd.f32 %v4308_v52, %v4231_v48  ;;  %v4317_v51 = vadd.f32 %v4307_v11, %v3965_v6 }
 0x492   : > { %v4235_v44 = vpop.f32.mrf.mxu0  ;;  %v4314_v54 = vpop.f32.mrf.mxu1  ;;  %v4318_v25 = vadd.f32 %v4309_v39, %v3966_v21 }
 0x493   : > { %v4313_v58 = vadd.f32 %v4312_v3, %v4235_v44 }
 0x494   : > { %v4237_v32 = vpop.f32.mrf.mxu0 }
 0x495   : > { %v4315_v5 = vadd.f32 %v4314_v54, %v4237_v32  ;;  %v4319_v8 = vadd.f32 %v4313_v58, %v3967_v40 }
 0x497   : > { %v4320_v20 = vadd.f32 %v4315_v5, %v3968_v12 }
 0x4ce   : > { %v4657_v4 = vpop.f32.mrf.mxu1 }
 0x4cf   : > { %v4580_v29 = vpop.f32.mrf.mxu0 }
 0x4d0   : > { %v4658_v62 = vadd.f32 %v4657_v4, %v4580_v29  ;;  %v4659_v50 = vpop.f32.mrf.mxu1 }
 0x4d1   : > { %v4582_v27 = vpop.f32.mrf.mxu0 }
 0x4d2   : > { %v4668_v36 = vadd.f32 %v4658_v62, %v4317_v51  ;;  %v4660_v49 = vadd.f32 %v4659_v50, %v4582_v27  ;;  %v4663_v1 = vpop.f32.mrf.mxu1 }
 0x4d3   : > { %v4586_v43 = vpop.f32.mrf.mxu0 }
 0x4d4   : > { %v7117_v33 = vmul.f32 -1.442695, %v4668_v36  ;;  %v4669_v24 = vadd.f32 %v4660_v49, %v4318_v25  ;;  %v4664_v9 = vadd.f32 %v4663_v1, %v4586_v43  ;;  %v4665_v52 = vpop.f32.mrf.mxu1 }
 0x4d5   : > { %v4588_v48 = vpop.f32.mrf.mxu0 }
 0x4d6   : > { %7300 = vpow2.f32 %v7117_v33  ;;  %v7118_v3 = vmul.f32 -1.442695, %v4669_v24  ;;  %v4670_v44 = vadd.f32 %v4664_v9, %v4319_v8  ;;  %v4666_v22 = vadd.f32 %v4665_v52, %v4588_v48  ;;  %v10750_v8 = vld [vmem:[#allocation116_spill] sm:$0xff]  ;;  %v10751_v24 = vld [vmem:[#allocation118_spill] sm:$0xff]  ;;  %v10753_v48 = vld [vmem:[#allocation117_spill] sm:$0xff] }
 0x4d8   : > { %7302 = vpow2.f32 %v7118_v3  ;;  %v7119_v57 = vmul.f32 -1.442695, %v4670_v44  ;;  %v4671_v41 = vadd.f32 %v4666_v22, %v4320_v20  ;;  %v10752_v20 = vld [vmem:[#allocation115_spill] sm:$0xff]  ;;  %v10754_v44 = vld [vmem:[#allocation104_spill] sm:$0xff] }
 0x4da   : > { %7304 = vpow2.f32 %v7119_v57  ;;  %v7120_v0 = vmul.f32 -1.442695, %v4671_v41  ;;  %v10755_v57 = vld [vmem:[#allocation106_spill] sm:$0xff] }
 0x4dc   : > { %7306 = vpow2.f32 %v7120_v0 }
 0x4e3   : > { %v7301_v26 = vpop.eup %7300 }
 0x4e4   : > { %v4684_v34 = vadd.f32 1.0, %v7301_v26  ;;  %v10756_v26 = vld [vmem:[#allocation103_spill] sm:$0xff] }
 0x4e5   : > { %v7303_v47 = vpop.eup %7302 }
 0x4e6   : > { %v4685_v38 = vadd.f32 1.0, %v7303_v47  ;;  %7308 = vrcp.f32 %v4684_v34  ;;  %v10757_v47 = vld [vmem:[#allocation105_spill] sm:$0xff] }
 0x4e7   : > { %v7305_v35 = vpop.eup %7304 }
 0x4e8   : > { %7310 = vrcp.f32 %v4685_v38  ;;  %v4686_v13 = vadd.f32 1.0, %v7305_v35 }
 0x4e9   : > { %v7307_v60 = vpop.eup %7306 }
 0x4ea   : > { %v4687_v30 = vadd.f32 1.0, %v7307_v60  ;;  %v10758_v60 = vld [vmem:[#allocation92_spill] sm:$0xff] }
 0x4ec   : > { %7312 = vrcp.f32 %v4687_v30  ;;  %v10759_v30 = vld [vmem:[#allocation94_spill] sm:$0xff] }
 0x4ed   : > { %7314 = vrcp.f32 %v4686_v13 }
 0x4f3   : > { %v7309_v16 = vpop.eup %7308 }
 0x4f5   : > { %v7311_v31 = vpop.eup %7310 }
 0x4f6   : > { %v4698_v63 = vcombine.low %v7309_v16, %v7311_v31  ;;  %v4773_v42 = vcombine.high %v7309_v16, %v7311_v31 }
 0x4f8   : > { %v4705_v2 = vrot.slane %v4698_v63, %v8161_v46  ;;  %v4780_v15 = vrot.slane %v4773_v42, %v8161_v46  ;;  %v10760_v63 = vld [vmem:[#allocation91_spill] sm:$0xff] }
 0x4f9   : > { %v7313_v55 = vpop.eup %7312 }
 0x4fa   : > { %v7315_v28 = vpop.eup %7314  ;;  %v4712_v19 = vrot.slane %v4705_v2, %v8161_v46  ;;  %v4735_v45 = vcombine.high %v4705_v2, %v4705_v2  ;;  %v4787_v61 = vrot.slane %v4780_v15, %v8161_v46  ;;  %v4809_v11 = vcombine.high %v4780_v15, %v4780_v15  ;;  %v10761_v2 = vld [vmem:[#allocation93_spill] sm:$0xff] }
 0x4fb   : > { %v4717_v54 = vcombine.low %v7315_v28, %v7313_v55  ;;  %v4791_v23 = vcombine.high %v7315_v28, %v7313_v55  ;;  %v10762_v28 = vld [vmem:[#allocation80_spill] sm:$0xff] }
 0x4fc   : > { %4714 = vst.msk [vmem:[#allocation3] ss:$2 sm:$0x3] %vm8402_vm1, %v4712_v19  ;;  %v4742_v37 = vrot.slane %v4735_v45, %v8161_v46  ;;  %v4757_v59 = vcombine.high %v4712_v19, %v4712_v19  ;;  %4790 = vst.msk [vmem:[#allocation3 + $0x10] ss:$2 sm:$0x3] %vm8402_vm1, %v4787_v61  ;;  %v4816_v32 = vrot.slane %v4809_v11, %v8161_v46 }
 0x4fd   : > { %v4831_v17 = vcombine.high %v4787_v61, %v4787_v61  ;;  %v4724_v6 = vrot.slane %v4717_v54, %v8161_v46  ;;  %v4798_v56 = vrot.slane %v4791_v23, %v8161_v46  ;;  %v10763_v45 = vld [vmem:[#allocation82_spill] sm:$0xff]  ;;  %v10764_v11 = vld [vmem:[#allocation79_spill] sm:$0xff]  ;;  %v10765_v23 = vld [vmem:[#allocation81_spill] sm:$0xff] }
 0x4fe   : > { %4745 = vst.msk [vmem:[#allocation3 + $0x4] ss:$2 sm:$0x3] %vm8402_vm1, %v4742_v37  ;;  %4760 = vst.msk [vmem:[#allocation3 + $0x8] ss:$2 sm:$0x3] %vm8402_vm1, %v4757_v59  ;;  %v4765_v39 = vcombine.high %v4742_v37, %v4742_v37  ;;  %v4839_v4 = vcombine.high %v4816_v32, %v4816_v32 }
 0x4ff   : > { %4819 = vst.msk [vmem:[#allocation3 + $0x14] ss:$2 sm:$0x3] %vm8402_vm1, %v4816_v32  ;;  %4834 = vst.msk [vmem:[#allocation3 + $0x18] ss:$2 sm:$0x3] %vm8402_vm1, %v4831_v17  ;;  %v4731_v10 = vrot.slane %v4724_v6, %v8161_v46  ;;  %v4746_v18 = vcombine.high %v4724_v6, %v4724_v6  ;;  %v4805_v7 = vrot.slane %v4798_v56, %v8161_v46 }
 0x500   : > { %v4820_v29 = vcombine.high %v4798_v56, %v4798_v56  ;;  %4768 = vst.msk [vmem:[#allocation3 + $0xc] ss:$2 sm:$0x3] %vm8402_vm1, %v4765_v39  ;;  %4842 = vst.msk [vmem:[#allocation3 + $0x1c] ss:$2 sm:$0x3] %vm8402_vm1, %v4839_v4 }
 0x501   : > { %4734 = vst.msk [vmem:[#allocation3 + $0x1] ss:$2 sm:$0x3] %vm8402_vm1, %v4731_v10  ;;  %v4753_v21 = vrot.slane %v4746_v18, %v8161_v46  ;;  %v4761_v51 = vcombine.high %v4731_v10, %v4731_v10  ;;  %4808 = vst.msk [vmem:[#allocation3 + $0x11] ss:$2 sm:$0x3] %vm8402_vm1, %v4805_v7  ;;  %v4835_v62 = vcombine.high %v4805_v7, %v4805_v7 }
 0x502   : > { %v4827_v58 = vrot.slane %v4820_v29, %v8161_v46  ;;  %v10749_v46 = vld [vmem:[#allocation21_spill] sm:$0xff]  ;;  %v10766_v59 = vld [vmem:[#allocation63_spill] sm:$0xff]  ;;  %v10768_v56 = vld [vmem:[#allocation62_spill] sm:$0xff] }
 0x503   : > { %4756 = vst.msk [vmem:[#allocation3 + $0x5] ss:$2 sm:$0x3] %vm8402_vm1, %v4753_v21  ;;  %4764 = vst.msk [vmem:[#allocation3 + $0x9] ss:$2 sm:$0x3] %vm8402_vm1, %v4761_v51  ;;  %v4769_v50 = vcombine.high %v4753_v21, %v4753_v21 }
 0x504   : > { %4830 = vst.msk [vmem:[#allocation3 + $0x15] ss:$2 sm:$0x3] %vm8402_vm1, %v4827_v58  ;;  %4838 = vst.msk [vmem:[#allocation3 + $0x19] ss:$2 sm:$0x3] %vm8402_vm1, %v4835_v62  ;;  %v4843_v53 = vcombine.high %v4827_v58, %v4827_v58 }
 0x505   : > { %4772 = vst.msk [vmem:[#allocation3 + $0xd] ss:$2 sm:$0x3] %vm8402_vm1, %v4769_v50  ;;  %v9240_v5 = vsub.s32 1, %v10749_v46  ;;  %v9243_v27 = vsub.s32 3, %v10749_v46  ;;  %v9246_v40 = vsub.s32 0, %v10749_v46 }
 0x506   : > { %4846 = vst.msk [vmem:[#allocation3 + $0x1d] ss:$2 sm:$0x3] %vm8402_vm1, %v4843_v53  ;;  %v9249_v25 = vsub.s32 2, %v10749_v46  ;;  %v10767_v17 = vld [vmem:[#allocation65_spill] sm:$0xff]  ;;  %v10769_v4 = vld [vmem:[#allocation64_spill] sm:$0xff] }
 0x507   : > { %v9261_v43 = vld [vmem:[#allocation3] ss:$2 sm:$0xff]  ;;  %v10770_v18 = vld [vmem:[#allocation50_spill] sm:$0xff]  ;;  %v10771_v29 = vld [vmem:[#allocation53_spill] sm:$0xff]  ;;  %v9294_v51 = vsub.s32 5, %v10749_v46  ;;  %v9297_v58 = vsub.s32 7, %v10749_v46 }
 0x508   : > { %v4859_v0 = vrot.slane %v9261_v43, %v9240_v5  ;;  %v4867_v35 = vrot.slane %v9261_v43, %v9243_v27  ;;  %v4855_v31 = vrot.slane %v9261_v43, %v9246_v40  ;;  %v4863_v55 = vrot.slane %v9261_v43, %v9249_v25  ;;  %v10772_v62 = vld [vmem:[#allocation49_spill] sm:$0xff]  ;;  %v10773_v53 = vld [vmem:[#allocation51_spill] sm:$0xff] }
 0x50a   : > { %v4981_v32 = vmul.f32 %v4859_v0, %v10766_v59  ;;  %v4983_v6 = vmul.f32 %v4867_v35, %v10767_v17  ;;  %v4980_v39 = vmul.f32 %v4855_v31, %v10768_v56  ;;  %v4982_v10 = vmul.f32 %v4863_v55, %v10769_v4  ;;  %v10791_v59 = vld [vmem:[#allocation96_spill] sm:$0xff]  ;;  %v10792_v17 = vld [vmem:[#allocation98_spill] sm:$0xff]  ;;  %v10793_v56 = vld [vmem:[#allocation95_spill] sm:$0xff] }
 0x50b   : > { %v4965_v7 = vmul.f32 %v4859_v0, %v10770_v18  ;;  %v4967_v21 = vmul.f32 %v4867_v35, %v10771_v29  ;;  %v4964_v50 = vmul.f32 %v4855_v31, %v10772_v62  ;;  %v10794_v4 = vld [vmem:[#allocation97_spill] sm:$0xff]  ;;  %v4875_v18 = vrot.slane %v9261_v43, %v9294_v51 }
 0x50c   : > { %v9251_v36 = vld [vmem:[#allocation3 + $0x1] ss:$2 sm:$0xff] }
 0x50d   : > { %v5009_v49 = vrot.slane %v9251_v36, %v9240_v5  ;;  %v5017_v14 = vrot.slane %v9251_v36, %v9243_v27  ;;  %v5005_v1 = vrot.slane %v9251_v36, %v9246_v40  ;;  %v5013_v12 = vrot.slane %v9251_v36, %v9249_v25 }
 0x50f   : > { %v5131_v33 = vmul.f32 %v5009_v49, %v10750_v8  ;;  %v5133_v9 = vmul.f32 %v5017_v14, %v10751_v24  ;;  %v5130_v52 = vmul.f32 %v5005_v1, %v10752_v20  ;;  %v5132_v3 = vmul.f32 %v5013_v12, %v10753_v48  ;;  %v10775_v8 = vld [vmem:[#allocation27_spill] sm:$0xff]  ;;  %v10776_v24 = vld [vmem:[#allocation24_spill] sm:$0xff]  ;;  %v10777_v48 = vld [vmem:[#allocation26_spill] sm:$0xff] }
 0x510   : > { %v5115_v22 = vmul.f32 %v5009_v49, %v10754_v44  ;;  %v5117_v41 = vmul.f32 %v5017_v14, %v10755_v57  ;;  %v5114_v34 = vmul.f32 %v5005_v1, %v10756_v26  ;;  %v5116_v38 = vmul.f32 %v5013_v12, %v10757_v47  ;;  %v10778_v44 = vld [vmem:[#allocation29_spill] sm:$0xff]  ;;  %v10780_v47 = vld [vmem:[#allocation28_spill] sm:$0xff] }
 0x511   : > { %5179 = vmatprep.subr.mxu0 %v5131_v33  ;;  %5268 = vmatprep.subr.mxu1 %v5133_v9  ;;  %v5099_v13 = vmul.f32 %v5009_v49, %v10758_v60  ;;  %v5101_v16 = vmul.f32 %v5017_v14, %v10759_v30  ;;  %v5098_v42 = vmul.f32 %v5005_v1, %v10760_v63  ;;  %v10781_v60 = vld [vmem:[#allocation30_spill] sm:$0xff]  ;;  %v10782_v30 = vld [vmem:[#allocation120_spill] sm:$0xff] }
 0x512   : > { %5180 = vmatpush1.msra.mxu0 %v5130_v52  ;;  %5269 = vmatpush1.msra.mxu1 %v5132_v3  ;;  %v5100_v15 = vmul.f32 %v5013_v12, %v10761_v2  ;;  %v5083_v19 = vmul.f32 %v5009_v49, %v10762_v28  ;;  %v5085_v61 = vmul.f32 %v5017_v14, %v10763_v45  ;;  %v10774_v14 = vld [vmem:[#allocation25_spill] sm:$0xff]  ;;  %v9310_v52 = vsub.s32 6, %v10749_v46  ;;  %v10787_v28 = vld [vmem:[#allocation110_spill] sm:$0xff]  ;;  %v10788_v45 = vld [vmem:[#allocation107_spill] sm:$0xff] }
 0x513   : > { %5181 = vmatprep.subr.mxu0 %v5115_v22  ;;  %5270 = vmatprep.subr.mxu1 %v5117_v41  ;;  %v5082_v54 = vmul.f32 %v5005_v1, %v10764_v11  ;;  %v5084_v37 = vmul.f32 %v5013_v12, %v10765_v23  ;;  %v4966_v49 = vmul.f32 %v4863_v55, %v10773_v53  ;;  %v9303_v12 = vsub.s32 4, %v10749_v46  ;;  %v10779_v41 = vld [vmem:[#allocation31_spill] sm:$0xff]  ;;  %v9336_v11 = vld [vmem:[#allocation10 + $0x8] sm:$0xff] }
 0x514   : > { %5182 = vmatpush1.msra.mxu0 %v5114_v34  ;;  %5271 = vmatpush1.msra.mxu1 %v5116_v38  ;;  %v4949_v1 = vmul.f32 %v4859_v0, %v10774_v14  ;;  %v4951_v33 = vmul.f32 %v4867_v35, %v10775_v8  ;;  %v4948_v9 = vmul.f32 %v4855_v31, %v10776_v24  ;;  %v10797_v53 = vld [vmem:[#allocation83_spill] sm:$0xff]  ;;  %v9356_v14 = vld [vmem:[#allocation10 + $0x10] sm:$0xff] }
 0x515   : > { %5183 = vmatprep.subr.mxu0 %v5099_v13  ;;  %5272 = vmatprep.subr.mxu1 %v5101_v16  ;;  %v5025_v20 = vrot.slane %v9251_v36, %v9294_v51  ;;  %v4950_v3 = vmul.f32 %v4863_v55, %v10777_v48  ;;  %v4933_v22 = vmul.f32 %v4859_v0, %v10778_v44  ;;  %v9323_v0 = vld [vmem:[#allocation10] sm:$0xff]  ;;  %v10800_v48 = vld [vmem:[#allocation69_spill] sm:$0xff]  ;;  %v10801_v44 = vld [vmem:[#allocation66_spill] sm:$0xff] }
 0x516   : > { %5184 = vmatpush1.msra.mxu0 %v5098_v42  ;;  %5273 = vmatpush1.msra.mxu1 %v5100_v15  ;;  %v5033_v57 = vrot.slane %v9251_v36, %v9297_v58  ;;  %v4935_v26 = vmul.f32 %v4867_v35, %v10779_v41  ;;  %v5021_v34 = vrot.slane %v9251_v36, %v9303_v12  ;;  %v10783_v35 = vld [vmem:[#allocation122_spill] sm:$0xff]  ;;  %v10786_v15 = vld [vmem:[#allocation108_spill] sm:$0xff]  ;;  %v10803_v41 = vld [vmem:[#allocation55_spill] sm:$0xff] }
 0x517   : > { %5185 = vmatprep.subr.mxu0 %v5083_v19  ;;  %5274 = vmatprep.subr.mxu1 %v5085_v61  ;;  %v5029_v46 = vrot.slane %v9251_v36, %v9310_v52  ;;  %v4932_v38 = vmul.f32 %v4855_v31, %v10780_v47  ;;  %v4934_v13 = vmul.f32 %v4863_v55, %v10781_v60  ;;  %v10784_v36 = vld [vmem:[#allocation119_spill] sm:$0xff]  ;;  %v10785_v31 = vld [vmem:[#allocation121_spill] sm:$0xff]  ;;  %v10805_v47 = vld [vmem:[#allocation54_spill] sm:$0xff] }
 0x518   : > { %5186 = vmatpush1.msra.mxu0 %v5082_v54  ;;  %5275 = vmatpush1.msra.mxu1 %v5084_v37  ;;  %v5135_v16 = vmul.f32 %v5025_v20, %v10782_v30  ;;  %v5137_v63 = vmul.f32 %v5033_v57, %v10783_v35  ;;  %v5134_v42 = vmul.f32 %v5021_v34, %v10784_v36  ;;  %v10789_v54 = vld [vmem:[#allocation109_spill] sm:$0xff]  ;;  %v10790_v37 = vmov 0.0   ;;  %v9376_v60 = vld [vmem:[#allocation10 + $0x18] sm:$0xff]  ;;  %v10808_v36 = vld [vmem:[#allocation44_spill] sm:$0xff] }
 0x519   : > { %5187 = vmatprep.subr.mxu0 %v4981_v32  ;;  %5276 = vmatprep.subr.mxu1 %v4983_v6  ;;  %v5136_v2 = vmul.f32 %v5029_v46, %v10785_v31  ;;  %v5119_v55 = vmul.f32 %v5025_v20, %v10786_v15  ;;  %v5121_v19 = vmul.f32 %v5033_v57, %v10787_v28  ;;  %v10807_v35 = vld [vmem:[#allocation42_spill] sm:$0xff]  ;;  %v10809_v31 = vld [vmem:[#allocation41_spill] sm:$0xff]  ;;  %v10810_v15 = vld [vmem:[#allocation43_spill] sm:$0xff] }
 0x51a   : > { %5188 = vmatpush1.msra.mxu0 %v4980_v39  ;;  %5277 = vmatpush1.msra.mxu1 %v4982_v10  ;;  %v5118_v61 = vmul.f32 %v5021_v34, %v10788_v45  ;;  %v5120_v23 = vmul.f32 %v5029_v46, %v10789_v54  ;;  %v5103_v32 = vmul.f32 %v5025_v20, %v10791_v59  ;;  %v10813_v59 = vld [vmem:[#allocation32_spill] sm:$0xff] }
 0x51b   : > { %5189 = vmatprep.subr.mxu0 %v4965_v7  ;;  %5278 = vmatprep.subr.mxu1 %v4967_v21  ;;  %v5105_v6 = vmul.f32 %v5033_v57, %v10792_v17  ;;  %v5102_v39 = vmul.f32 %v5021_v34, %v10793_v56  ;;  %v5104_v10 = vmul.f32 %v5029_v46, %v10794_v4  ;;  %v10795_v7 = vld [vmem:[#allocation84_spill] sm:$0xff]  ;;  %v10796_v21 = vld [vmem:[#allocation86_spill] sm:$0xff] }
 0x51c   : > { %5190 = vmatpush1.msra.mxu0 %v4964_v50  ;;  %5279 = vmatpush1.msra.mxu1 %v4966_v49  ;;  %v5087_v29 = vmul.f32 %v5025_v20, %v10795_v7  ;;  %v5089_v62 = vmul.f32 %v5033_v57, %v10796_v21  ;;  %v4883_v50 = vrot.slane %v9261_v43, %v9297_v58  ;;  %v10814_v56 = vld [vmem:[#allocation34_spill] sm:$0xff]  ;;  %v10815_v4 = vld [vmem:[#allocation124_spill] sm:$0xff] }
 0x51d   : > { %5191 = vmatprep.subr.mxu0 %v4949_v1  ;;  %5280 = vmatprep.subr.mxu1 %v4951_v33  ;;  %v5086_v49 = vmul.f32 %v5021_v34, %v10797_v53  ;;  %v4871_v1 = vrot.slane %v9261_v43, %v9303_v12  ;;  %v4879_v8 = vrot.slane %v9261_v43, %v9310_v52  ;;  %v10798_v33 = vld [vmem:[#allocation85_spill] sm:$0xff]  ;;  %v10819_v53 = vld [vmem:[#allocation112_spill] sm:$0xff] }
 0x51e   : > { %5192 = vmatpush1.msra.mxu0 %v4948_v9  ;;  %5281 = vmatpush1.msra.mxu1 %v4950_v3  ;;  %v5088_v24 = vmul.f32 %v5029_v46, %v10798_v33  ;;  %v10799_v9 = vld [vmem:[#allocation67_spill] sm:$0xff]  ;;  %v4987_v3 = vmul.f32 %v4883_v50, %v10800_v48  ;;  %v10804_v34 = vld [vmem:[#allocation57_spill] sm:$0xff] }
 0x51f   : > { %5193 = vmatprep.subr.mxu0 %v4933_v22  ;;  %5282 = vmatprep.subr.mxu1 %v4935_v26  ;;  %v4985_v20 = vmul.f32 %v4875_v18, %v10799_v9  ;;  %v4984_v43 = vmul.f32 %v4871_v1, %v10801_v44  ;;  %v10802_v22 = vld [vmem:[#allocation68_spill] sm:$0xff]  ;;  %v4969_v26 = vmul.f32 %v4875_v18, %v10803_v41  ;;  %v10821_v33 = vld [vmem:[#allocation111_spill] sm:$0xff]  ;;  %v10822_v9 = vld [vmem:[#allocation113_spill] sm:$0xff] }
 0x520   : > { %5194 = vmatpush1.msra.mxu0 %v4932_v38  ;;  %5283 = vmatpush1.msra.mxu1 %v4934_v13  ;;  %v4986_v57 = vmul.f32 %v4879_v8, %v10802_v22  ;;  %v4971_v46 = vmul.f32 %v4883_v50, %v10804_v34  ;;  %v4968_v38 = vmul.f32 %v4871_v1, %v10805_v47  ;;  %v10806_v13 = vld [vmem:[#allocation56_spill] sm:$0xff]  ;;  %v9417_v48 = vld [vmem:[#allocation3 + $0x10] ss:$2 sm:$0xff] }
 0x521   : > { %7121 = vmatmul.mubr.msk.f32.vlgmr.msra.gmra.mxu0 %vm5150_vm9, %v9323_v0  ;;  %5357 = vmatprep.subr.mxu0 %v5135_v16  ;;  %v4970_v30 = vmul.f32 %v4879_v8, %v10806_v13  ;;  %v9379_v16 = vld [vmem:[#allocation3 + $0x11] ss:$2 sm:$0xff]  ;;  %v10827_v47 = vld [vmem:[#allocation88_spill] sm:$0xff] }
 0x522   : > { %5446 = vmatprep.subr.mxu1 %v5137_v63  ;;  %7125 = vmatmul.mubr.msk.f32.vlgmr.msra.gmra.mxu1 %vm5150_vm9, %v9323_v0  ;;  %v4953_v63 = vmul.f32 %v4875_v18, %v10807_v35  ;;  %v5041_v28 = vrot.slane %v9379_v16, %v9240_v5  ;;  %v5037_v17 = vrot.slane %v9379_v16, %v9246_v40  ;;  %v10828_v13 = vld [vmem:[#allocation90_spill] sm:$0xff] }
 0x523   : > { %5358 = vmatpush1.msra.mxu0 %v5134_v42  ;;  %5447 = vmatpush1.msra.mxu1 %v5136_v2  ;;  %v4955_v42 = vmul.f32 %v4883_v50, %v10808_v36  ;;  %v4952_v2 = vmul.f32 %v4871_v1, %v10809_v31  ;;  %v4899_v35 = vrot.slane %v9417_v48, %v9243_v27  ;;  %v10830_v31 = vld [vmem:[#allocation89_spill] sm:$0xff] }
 0x524   : > { %5359 = vmatprep.subr.mxu0 %v5119_v55  ;;  %5448 = vmatprep.subr.mxu1 %v5121_v19  ;;  %v4954_v55 = vmul.f32 %v4879_v8, %v10810_v15  ;;  %v10811_v19 = vld [vmem:[#allocation33_spill] sm:$0xff]  ;;  %v10831_v15 = vld [vmem:[#allocation71_spill] sm:$0xff] }
 0x525   : > { %5233 = vmatprep.mubr.f32.mxu0 %v10790_v37  ;;  %5360 = vmatpush1.msra.mxu0 %v5118_v61  ;;  %v4937_v45 = vmul.f32 %v4875_v18, %v10811_v19  ;;  %v10812_v61 = vld [vmem:[#allocation35_spill] sm:$0xff]  ;;  %v10816_v18 = vld [vmem:[#allocation126_spill] sm:$0xff]  ;;  %v10834_v19 = vld [vmem:[#allocation72_spill] sm:$0xff] }
 0x526   : > { %5449 = vmatpush1.msra.mxu1 %v5120_v23  ;;  %7122 = vmatmul.mubr.msk.f32.gmra.mxu0 %vm5150_vm9, %v9336_v11  ;;  %v4939_v54 = vmul.f32 %v4883_v50, %v10812_v61  ;;  %v5049_v23 = vrot.slane %v9379_v16, %v9243_v27  ;;  %v10832_v27 = vld [vmem:[#allocation73_spill] sm:$0xff]  ;;  %v10835_v61 = vld [vmem:[#allocation59_spill] sm:$0xff] }
 0x527   : > { %5322 = vmatprep.mubr.f32.mxu1 %v10790_v37  ;;  %5361 = vmatprep.subr.mxu0 %v5103_v32  ;;  %v4936_v32 = vmul.f32 %v4871_v1, %v10813_v59  ;;  %v10820_v1 = vld [vmem:[#allocation114_spill] sm:$0xff] }
 0x528   : > { %5450 = vmatprep.subr.mxu1 %v5105_v6  ;;  %7126 = vmatmul.mubr.msk.f32.gmra.mxu1 %vm5150_vm9, %v9336_v11  ;;  %v5045_v6 = vrot.slane %v9379_v16, %v9249_v25  ;;  %v5141_v7 = vmul.f32 %v5049_v23, %v10816_v18 }
 0x529   : > { %5362 = vmatpush1.msra.mxu0 %v5102_v39  ;;  %5451 = vmatpush1.msra.mxu1 %v5104_v10  ;;  %v4938_v39 = vmul.f32 %v4879_v8, %v10814_v56  ;;  %v5139_v10 = vmul.f32 %v5041_v28, %v10815_v4  ;;  %v5125_v8 = vmul.f32 %v5049_v23, %v10820_v1  ;;  %v10844_v1 = vld [vmem:[#allocation39_spill] sm:$0xff] }
 0x52a   : > { %5363 = vmatprep.subr.mxu0 %v5087_v29  ;;  %5452 = vmatprep.subr.mxu1 %v5089_v62  ;;  %v10817_v29 = vld [vmem:[#allocation123_spill] sm:$0xff]  ;;  %v10818_v62 = vld [vmem:[#allocation125_spill] sm:$0xff] }
 0x52b   : > { %5239 = vmatprep.mubr.f32.mxu0 %v10790_v37  ;;  %5364 = vmatpush1.msra.mxu0 %v5086_v49  ;;  %v5138_v21 = vmul.f32 %v5037_v17, %v10817_v29  ;;  %v5140_v50 = vmul.f32 %v5045_v6, %v10818_v62  ;;  %v5123_v49 = vmul.f32 %v5041_v28, %v10819_v53  ;;  %v10843_v53 = vld [vmem:[#allocation37_spill] sm:$0xff] }
 0x52c   : > { %5453 = vmatpush1.msra.mxu1 %v5088_v24  ;;  %7123 = vmatmul.mubr.msk.f32.gmra.mxu0 %vm5150_vm9, %v9356_v14  ;;  %v5122_v24 = vmul.f32 %v5037_v17, %v10821_v33  ;;  %v5065_v33 = vrot.slane %v9379_v16, %v9297_v58 }
 0x52d   : > { %5328 = vmatprep.mubr.f32.mxu1 %v10790_v37  ;;  %5365 = vmatprep.subr.mxu0 %v4985_v20  ;;  %v5124_v20 = vmul.f32 %v5045_v6, %v10822_v9 }
 0x52e   : > { %5454 = vmatprep.subr.mxu1 %v4987_v3  ;;  %7127 = vmatmul.mubr.msk.f32.gmra.mxu1 %vm5150_vm9, %v9356_v14  ;;  %v10823_v3 = vld [vmem:[#allocation100_spill] sm:$0xff] }
 0x52f   : > { %5366 = vmatpush1.msra.mxu0 %v4984_v43  ;;  %5455 = vmatpush1.msra.mxu1 %v4986_v57  ;;  %v5107_v44 = vmul.f32 %v5041_v28, %v10823_v3  ;;  %v10824_v43 = vld [vmem:[#allocation102_spill] sm:$0xff]  ;;  %v10825_v57 = vld [vmem:[#allocation99_spill] sm:$0xff]  ;;  %v5061_v3 = vrot.slane %v9379_v16, %v9310_v52 }
 0x530   : > { %5367 = vmatprep.subr.mxu0 %v4969_v26  ;;  %5456 = vmatprep.subr.mxu1 %v4971_v46  ;;  %v5109_v22 = vmul.f32 %v5049_v23, %v10824_v43  ;;  %v5106_v41 = vmul.f32 %v5037_v17, %v10825_v57  ;;  %v10826_v26 = vld [vmem:[#allocation101_spill] sm:$0xff]  ;;  %v4891_v46 = vrot.slane %v9417_v48, %v9240_v5 }
 0x531   : > { %5245 = vmatprep.mubr.f32.mxu0 %v10790_v37  ;;  %5368 = vmatpush1.msra.mxu0 %v4968_v38  ;;  %v5108_v34 = vmul.f32 %v5045_v6, %v10826_v26  ;;  %v5091_v38 = vmul.f32 %v5041_v28, %v10827_v47  ;;  %v4895_v5 = vrot.slane %v9417_v48, %v9249_v25 }
 0x532   : > { %5457 = vmatpush1.msra.mxu1 %v4970_v30  ;;  %7124 = vmatmul.mubr.msk.f32.gmra.mxu0 %vm5150_vm9, %v9376_v60  ;;  %v5093_v30 = vmul.f32 %v5049_v23, %v10828_v13  ;;  %v4991_v28 = vmul.f32 %v4899_v35, %v10832_v27  ;;  %v10836_v23 = vld [vmem:[#allocation61_spill] sm:$0xff]  ;;  %v10857_v27 = vld [vmem:[#allocation75_spill] sm:$0xff] }
 0x533   : > { %5334 = vmatprep.mubr.f32.mxu1 %v10790_v37  ;;  %5369 = vmatprep.subr.mxu0 %v4953_v63  ;;  %v10829_v63 = vld [vmem:[#allocation87_spill] sm:$0xff]  ;;  %v4975_v59 = vmul.f32 %v4899_v35, %v10836_v23 }
 0x534   : > { %5458 = vmatprep.subr.mxu1 %v4955_v42  ;;  %7128 = vmatmul.mubr.msk.f32.gmra.mxu1 %vm5150_vm9, %v9376_v60  ;;  %v5090_v36 = vmul.f32 %v5037_v17, %v10829_v63  ;;  %v4887_v42 = vrot.slane %v9417_v48, %v9246_v40  ;;  %v10833_v40 = vld [vmem:[#allocation70_spill] sm:$0xff]  ;;  %v10853_v63 = vld [vmem:[#allocation76_spill] sm:$0xff]  ;;  %v10860_v23 = vld [vmem:[#allocation143_spill] sm:$0xff] }
 0x535   : > { %5370 = vmatpush1.msra.mxu0 %v4952_v2  ;;  %5459 = vmatpush1.msra.mxu1 %v4954_v55  ;;  %v5092_v2 = vmul.f32 %v5045_v6, %v10830_v31  ;;  %v4989_v55 = vmul.f32 %v4891_v46, %v10831_v15  ;;  %v10838_v6 = vld [vmem:[#allocation60_spill] sm:$0xff]  ;;  %v10855_v31 = vld [vmem:[#allocation131_spill] sm:$0xff]  ;;  %v10856_v15 = vld [vmem:[#allocation145_spill] sm:$0xff] }
 0x536   : > { %5371 = vmatprep.subr.mxu0 %v4937_v45  ;;  %5460 = vmatprep.subr.mxu1 %v4939_v54  ;;  %v4988_v25 = vmul.f32 %v4887_v42, %v10833_v40  ;;  %v4990_v45 = vmul.f32 %v4895_v5, %v10834_v19  ;;  %v4973_v54 = vmul.f32 %v4891_v46, %v10835_v61  ;;  %v10858_v40 = vld [vmem:[#allocation144_spill] sm:$0xff]  ;;  %v10859_v19 = vld [vmem:[#allocation130_spill] sm:$0xff] }
 0x537   : > { %5372 = vmatpush1.msra.mxu0 %v4936_v32  ;;  %5405 = vmatprep.mubr.f32.mxu0 %v10790_v37  ;;  %v10837_v32 = vld [vmem:[#allocation58_spill] sm:$0xff]  ;;  %v4974_v56 = vmul.f32 %v4895_v5, %v10838_v6  ;;  %v4907_v61 = vrot.slane %v9417_v48, %v9294_v51 }
 0x538   : > { %5461 = vmatpush1.msra.mxu1 %v4938_v39  ;;  %7129 = vmatmul.mubr.msk.f32.vlgmr.msra.gmra.mxu0 %vm5150_vm9, %v9323_v0  ;;  %v4972_v17 = vmul.f32 %v4887_v42, %v10837_v32  ;;  %v10839_v39 = vld [vmem:[#allocation46_spill] sm:$0xff]  ;;  %v4903_v32 = vrot.slane %v9417_v48, %v9303_v12 }
 0x539   : > { %5494 = vmatprep.mubr.f32.mxu1 %v10790_v37  ;;  %5535 = vmatprep.subr.mxu0 %v5139_v10  ;;  %v4957_v4 = vmul.f32 %v4891_v46, %v10839_v39  ;;  %v10840_v10 = vld [vmem:[#allocation48_spill] sm:$0xff]  ;;  %v10863_v39 = vld [vmem:[#allocation129_spill] sm:$0xff] }
 0x53a   : > { %5624 = vmatprep.subr.mxu1 %v5141_v7  ;;  %7133 = vmatmul.mubr.msk.f32.vlgmr.msra.gmra.mxu1 %vm5150_vm9, %v9323_v0  ;;  %v4959_v18 = vmul.f32 %v4899_v35, %v10840_v10  ;;  %v10841_v7 = vld [vmem:[#allocation45_spill] sm:$0xff] }
 0x53b   : > { %5536 = vmatpush1.msra.mxu0 %v5138_v21  ;;  %5625 = vmatpush1.msra.mxu1 %v5140_v50  ;;  %v4956_v29 = vmul.f32 %v4887_v42, %v10841_v7  ;;  %v10842_v21 = vld [vmem:[#allocation47_spill] sm:$0xff]  ;;  %v5057_v50 = vrot.slane %v9379_v16, %v9294_v51  ;;  %v10862_v51 = vld [vmem:[#allocation142_spill] sm:$0xff]  ;;  %v10864_v10 = vld [vmem:[#allocation141_spill] sm:$0xff] }
 0x53c   : > { %5537 = vmatprep.subr.mxu0 %v5123_v49  ;;  %5626 = vmatprep.subr.mxu1 %v5125_v8  ;;  %v4958_v62 = vmul.f32 %v4895_v5, %v10842_v21  ;;  %v4941_v49 = vmul.f32 %v4891_v46, %v10843_v53  ;;  %v4943_v8 = vmul.f32 %v4899_v35, %v10844_v1  ;;  %v10850_v46 = vld [vmem:[#allocation148_spill] sm:$0xff]  ;;  %v10870_v1 = vld [vmem:[#allocation138_spill] sm:$0xff] }
 0x53d   : > { %5411 = vmatprep.mubr.f32.mxu0 %v10790_v37  ;;  %5538 = vmatpush1.msra.mxu0 %v5122_v24  ;;  %v10845_v24 = vld [vmem:[#allocation36_spill] sm:$0xff]  ;;  %v5144_v47 = vmul.f32 %v5061_v3, %v10850_v46 }
 0x53e   : > { %5627 = vmatpush1.msra.mxu1 %v5124_v20  ;;  %7130 = vmatmul.mubr.msk.f32.gmra.mxu0 %vm5150_vm9, %v9336_v11  ;;  %v4940_v9 = vmul.f32 %v4887_v42, %v10845_v24  ;;  %v5053_v20 = vrot.slane %v9379_v16, %v9303_v12  ;;  %v10854_v42 = vld [vmem:[#allocation146_spill] sm:$0xff]  ;;  %v10869_v53 = vld [vmem:[#allocation40_spill] sm:$0xff] }
 0x53f   : > { %5500 = vmatprep.mubr.f32.mxu1 %v10790_v37  ;;  %5539 = vmatprep.subr.mxu0 %v5107_v44  ;;  %v10846_v44 = vld [vmem:[#allocation38_spill] sm:$0xff] }
 0x540   : > { %5628 = vmatprep.subr.mxu1 %v5109_v22  ;;  %7134 = vmatmul.mubr.msk.f32.gmra.mxu1 %vm5150_vm9, %v9336_v11  ;;  %v4942_v43 = vmul.f32 %v4895_v5, %v10846_v44  ;;  %v10847_v22 = vld [vmem:[#allocation133_spill] sm:$0xff]  ;;  %v5128_v5 = vmul.f32 %v5061_v3, %v10854_v42 }
 0x541   : > { %5540 = vmatpush1.msra.mxu0 %v5106_v41  ;;  %5629 = vmatpush1.msra.mxu1 %v5108_v34  ;;  %v5143_v57 = vmul.f32 %v5057_v50, %v10847_v22  ;;  %v10848_v41 = vld [vmem:[#allocation149_spill] sm:$0xff] }
 0x542   : > { %5541 = vmatprep.subr.mxu0 %v5091_v38  ;;  %5630 = vmatprep.subr.mxu1 %v5093_v30  ;;  %v5145_v26 = vmul.f32 %v5065_v33, %v10848_v41  ;;  %v10849_v34 = vld [vmem:[#allocation77_spill] sm:$0xff]  ;;  %v10851_v38 = vld [vmem:[#allocation132_spill] sm:$0xff]  ;;  %v10852_v30 = vld [vmem:[#allocation147_spill] sm:$0xff] }
 0x543   : > { %5417 = vmatprep.mubr.f32.mxu0 %v10790_v37  ;;  %5542 = vmatpush1.msra.mxu0 %v5090_v36  ;;  %v5142_v16 = vmul.f32 %v5053_v20, %v10849_v34  ;;  %v5127_v13 = vmul.f32 %v5057_v50, %v10851_v38  ;;  %v5129_v35 = vmul.f32 %v5065_v33, %v10852_v30 }
 0x544   : > { %5631 = vmatpush1.msra.mxu1 %v5092_v2  ;;  %7131 = vmatmul.mubr.msk.f32.gmra.mxu0 %vm5150_vm9, %v9356_v14  ;;  %v5126_v36 = vmul.f32 %v5053_v20, %v10853_v63  ;;  %v5111_v2 = vmul.f32 %v5057_v50, %v10855_v31 }
 0x545   : > { %5506 = vmatprep.mubr.f32.mxu1 %v10790_v37  ;;  %5543 = vmatprep.subr.mxu0 %v4989_v55  ;;  %v5113_v55 = vmul.f32 %v5065_v33, %v10856_v15 }
 0x546   : > { %5632 = vmatprep.subr.mxu1 %v4991_v28  ;;  %7135 = vmatmul.mubr.msk.f32.gmra.mxu1 %vm5150_vm9, %v9356_v14  ;;  %v5110_v28 = vmul.f32 %v5053_v20, %v10857_v27 }
 0x547   : > { %5544 = vmatpush1.msra.mxu0 %v4988_v25  ;;  %5633 = vmatpush1.msra.mxu1 %v4990_v45  ;;  %v5112_v25 = vmul.f32 %v5061_v3, %v10858_v40  ;;  %v5095_v45 = vmul.f32 %v5057_v50, %v10859_v19 }
 0x548   : > { %5545 = vmatprep.subr.mxu0 %v4973_v54  ;;  %5634 = vmatprep.subr.mxu1 %v4975_v59  ;;  %v4915_v54 = vrot.slane %v9417_v48, %v9297_v58  ;;  %v5097_v59 = vmul.f32 %v5065_v33, %v10860_v23  ;;  %v5096_v58 = vmul.f32 %v5061_v3, %v10862_v51  ;;  %v10871_v33 = vld [vmem:[#allocation127_spill] sm:$0xff]  ;;  %v10873_v3 = vld [vmem:[#allocation22_spill] sm:$0xff] }
 0x549   : > { %5423 = vmatprep.mubr.f32.mxu0 %v10790_v37  ;;  %5546 = vmatpush1.msra.mxu0 %v4972_v17  ;;  %v10861_v17 = vld [vmem:[#allocation74_spill] sm:$0xff]  ;;  %v4961_v24 = vmul.f32 %v4907_v61, %v10871_v33  ;;  %v4960_v44 = vmul.f32 %v4903_v32, %v10873_v3 }
 0x54a   : > { %5635 = vmatpush1.msra.mxu1 %v4974_v56  ;;  %7132 = vmatmul.mubr.msk.f32.gmra.mxu0 %vm5150_vm9, %v9376_v60  ;;  %v5094_v6 = vmul.f32 %v5053_v20, %v10861_v17  ;;  %v4911_v56 = vrot.slane %v9417_v48, %v9310_v52  ;;  %v4995_v12 = vmul.f32 %v4915_v54, %v10864_v10  ;;  %v10866_v52 = vld [vmem:[#allocation140_spill] sm:$0xff] }
 0x54b   : > { %5512 = vmatprep.mubr.f32.mxu1 %v10790_v37  ;;  %5547 = vmatprep.subr.mxu0 %v4957_v4  ;;  %v4993_v4 = vmul.f32 %v4907_v61, %v10863_v39 }
 0x54c   : > { %5636 = vmatprep.subr.mxu1 %v4959_v18  ;;  %7136 = vmatmul.mubr.msk.f32.gmra.mxu1 %vm5150_vm9, %v9376_v60  ;;  %v10865_v18 = vld [vmem:[#allocation52_spill] sm:$0xff]  ;;  %v4994_v48 = vmul.f32 %v4911_v56, %v10866_v52 }
 0x54d   : > { %5548 = vmatpush1.msra.mxu0 %v4956_v29  ;;  %5637 = vmatpush1.msra.mxu1 %v4958_v62  ;;  %v4992_v7 = vmul.f32 %v4903_v32, %v10865_v18  ;;  %v10867_v29 = vld [vmem:[#allocation128_spill] sm:$0xff]  ;;  %v10868_v62 = vld [vmem:[#allocation139_spill] sm:$0xff] }
 0x54e   : > { %5549 = vmatprep.subr.mxu0 %v4941_v49  ;;  %5638 = vmatprep.subr.mxu1 %v4943_v8  ;;  %v4977_v21 = vmul.f32 %v4907_v61, %v10867_v29  ;;  %v4979_v50 = vmul.f32 %v4915_v54, %v10868_v62  ;;  %v4976_v49 = vmul.f32 %v4903_v32, %v10869_v53 }
 0x54f   : > { %5550 = vmatpush1.msra.mxu0 %v4940_v9  ;;  %5583 = vmatprep.mubr.f32.mxu0 %v10790_v37  ;;  %v4978_v8 = vmul.f32 %v4911_v56, %v10870_v1  ;;  %v10872_v9 = vld [vmem:[#allocation137_spill] sm:$0xff] }
 0x550   : > { %5639 = vmatpush1.msra.mxu1 %v4942_v43  ;;  %7137 = vmatmul.mubr.msk.f32.vlgmr.msra.gmra.mxu0 %vm5150_vm9, %v9323_v0  ;;  %v4963_v20 = vmul.f32 %v4915_v54, %v10872_v9  ;;  %v10874_v43 = vld [vmem:[#allocation136_spill] sm:$0xff] }
 0x551   : > { %5672 = vmatprep.mubr.f32.mxu1 %v10790_v37  ;;  %5713 = vmatprep.subr.mxu0 %v5143_v57  ;;  %v4962_v22 = vmul.f32 %v4911_v56, %v10874_v43  ;;  %v10875_v57 = vld [vmem:[#allocation23_spill] sm:$0xff] }
 0x552   : > { %5802 = vmatprep.subr.mxu1 %v5145_v26  ;;  %7141 = vmatmul.mubr.msk.f32.vlgmr.msra.gmra.mxu1 %vm5150_vm9, %v9323_v0  ;;  %v4945_v41 = vmul.f32 %v4907_v61, %v10875_v57  ;;  %v10876_v26 = vld [vmem:[#allocation135_spill] sm:$0xff] }
 0x553   : > { %5714 = vmatpush1.msra.mxu0 %v5142_v16  ;;  %5803 = vmatpush1.msra.mxu1 %v5144_v47  ;;  %v4947_v34 = vmul.f32 %v4915_v54, %v10876_v26  ;;  %v10877_v16 = vld [vmem:[#allocation78_spill] sm:$0xff] }
 0x554   : > { %5715 = vmatprep.subr.mxu0 %v5127_v13  ;;  %5804 = vmatprep.subr.mxu1 %v5129_v35  ;;  %v4944_v46 = vmul.f32 %v4903_v32, %v10877_v16  ;;  %v10878_v47 = vld [vmem:[#allocation134_spill] sm:$0xff] }
 0x555   : > { %5589 = vmatprep.mubr.f32.mxu0 %v10790_v37  ;;  %5716 = vmatpush1.msra.mxu0 %v5126_v36  ;;  %v4946_v38 = vmul.f32 %v4911_v56, %v10878_v47 }
 0x556   : > { %5805 = vmatpush1.msra.mxu1 %v5128_v5  ;;  %7138 = vmatmul.mubr.msk.f32.gmra.mxu0 %vm5150_vm9, %v9336_v11 }
 0x557   : > { %5717 = vmatprep.subr.mxu0 %v5111_v2  ;;  %5806 = vmatprep.subr.mxu1 %v5113_v55 }
 0x558   : > { %5678 = vmatprep.mubr.f32.mxu1 %v10790_v37  ;;  %5718 = vmatpush1.msra.mxu0 %v5110_v28 }
 0x559   : > { %5807 = vmatpush1.msra.mxu1 %v5112_v25  ;;  %5719 = vmatprep.subr.mxu0 %v5095_v45 }
 0x55a   : > { %7142 = vmatmul.mubr.msk.f32.gmra.mxu1 %vm5150_vm9, %v9336_v11  ;;  %5808 = vmatprep.subr.mxu1 %v5097_v59 }
 0x55b   : > { %5595 = vmatprep.mubr.f32.mxu0 %v10790_v37  ;;  %5720 = vmatpush1.msra.mxu0 %v5094_v6 }
 0x55c   : > { %5809 = vmatpush1.msra.mxu1 %v5096_v58  ;;  %7139 = vmatmul.mubr.msk.f32.gmra.mxu0 %vm5150_vm9, %v9356_v14 }
 0x55d   : > { %5721 = vmatprep.subr.mxu0 %v4993_v4  ;;  %5810 = vmatprep.subr.mxu1 %v4995_v12 }
 0x55e   : > { %5684 = vmatprep.mubr.f32.mxu1 %v10790_v37  ;;  %5722 = vmatpush1.msra.mxu0 %v4992_v7 }
 0x55f   : > { %5811 = vmatpush1.msra.mxu1 %v4994_v48  ;;  %5723 = vmatprep.subr.mxu0 %v4977_v21 }
 0x560   : > { %7143 = vmatmul.mubr.msk.f32.gmra.mxu1 %vm5150_vm9, %v9356_v14  ;;  %5812 = vmatprep.subr.mxu1 %v4979_v50 }
 0x561   : > { %5601 = vmatprep.mubr.f32.mxu0 %v10790_v37  ;;  %5724 = vmatpush1.msra.mxu0 %v4976_v49 }
 0x562   : > { %5813 = vmatpush1.msra.mxu1 %v4978_v8  ;;  %7140 = vmatmul.mubr.msk.f32.gmra.mxu0 %vm5150_vm9, %v9376_v60 }
 0x563   : > { %5725 = vmatprep.subr.mxu0 %v4961_v24  ;;  %5814 = vmatprep.subr.mxu1 %v4963_v20 }
 0x564   : > { %5690 = vmatprep.mubr.f32.mxu1 %v10790_v37  ;;  %5726 = vmatpush1.msra.mxu0 %v4960_v44 }
 0x565   : > { %5815 = vmatpush1.msra.mxu1 %v4962_v22  ;;  %5727 = vmatprep.subr.mxu0 %v4945_v41 }
 0x566   : > { %7144 = vmatmul.mubr.msk.f32.gmra.mxu1 %vm5150_vm9, %v9376_v60  ;;  %5816 = vmatprep.subr.mxu1 %v4947_v34 }
 0x567   : > { %5728 = vmatpush1.msra.mxu0 %v4944_v46  ;;  %5761 = vmatprep.mubr.f32.mxu0 %v10790_v37 }
 0x568   : > { %5817 = vmatpush1.msra.mxu1 %v4946_v38  ;;  %7145 = vmatmul.mubr.msk.f32.vlgmr.msra.gmra.mxu0 %vm5150_vm9, %v9323_v0 }
 0x569   : > { %5850 = vmatprep.mubr.f32.mxu1 %v10790_v37  ;;  %5767 = vmatprep.mubr.f32.mxu0 %v10790_v37 }
 0x56a   : > { %7149 = vmatmul.mubr.msk.f32.vlgmr.msra.gmra.mxu1 %vm5150_vm9, %v9323_v0 }
 0x56b   : > { %5856 = vmatprep.mubr.f32.mxu1 %v10790_v37 }
 0x56c   : > { %7146 = vmatmul.mubr.msk.f32.gmra.mxu0 %vm5150_vm9, %v9336_v11 }
 0x56d   : > { %5773 = vmatprep.mubr.f32.mxu0 %v10790_v37 }
 0x56e   : > { %7150 = vmatmul.mubr.msk.f32.gmra.mxu1 %vm5150_vm9, %v9336_v11 }
 0x56f   : > { %5862 = vmatprep.mubr.f32.mxu1 %v10790_v37 }
 0x570   : > { %7147 = vmatmul.mubr.msk.f32.gmra.mxu0 %vm5150_vm9, %v9356_v14 }
 0x571   : > { %5779 = vmatprep.mubr.f32.mxu0 %v10790_v37 }
 0x572   : > { %7151 = vmatmul.mubr.msk.f32.gmra.mxu1 %vm5150_vm9, %v9356_v14 }
 0x573   : > { %5868 = vmatprep.mubr.f32.mxu1 %v10790_v37 }
 0x574   : > { %7148 = vmatmul.mubr.msk.f32.gmra.mxu0 %vm5150_vm9, %v9376_v60 }
 0x575   : > { %6368 = vmatprep.mubr.f32.mxu0 %v10790_v37 }
 0x576   : > { %7152 = vmatmul.mubr.msk.f32.gmra.mxu1 %vm5150_vm9, %v9376_v60 }
 0x577   : > { %6445 = vmatprep.mubr.f32.mxu1 %v10790_v37 }
 0x5e1   : > { %v9567_v0 = vpop.f32.mrf.mxu0 }
 0x5e2   : > { %v9569_v11 = vpop.f32.mrf.mxu1  ;;  %v5947_v51 = vmul.f32 %v9567_v0, %v9567_v0 }
 0x5e3   : > { %v9571_v13 = vpop.f32.mrf.mxu0  ;;  %v5949_v12 = vmul.f32 %v9569_v11, %v9569_v11 }
 0x5e4   : > { %v9573_v30 = vpop.f32.mrf.mxu1  ;;  %v5948_v32 = vmul.f32 %v9571_v13, %v9571_v13  ;;  %v5875_v39 = vadd.f32 %v9571_v13, %v9567_v0 }
 0x5e5   : > { %v5950_v57 = vmul.f32 %v9573_v30, %v9573_v30 }
 0x5e6   : > { %v9575_v14 = vpop.f32.mrf.mxu0  ;;  %v6011_v10 = vadd.f32 %v5948_v32, %v5947_v51  ;;  %v5876_v49 = vadd.f32 %v5875_v39, %v9569_v11 }
 0x5e7   : > { %v5963_v9 = vmul.f32 %v9575_v14, %v9575_v14 }
 0x5e8   : > { %v9577_v35 = vpop.f32.mrf.mxu0  ;;  %v9579_v63 = vpop.f32.mrf.mxu1  ;;  %v6012_v24 = vadd.f32 %v6011_v10, %v5949_v12  ;;  %v5877_v16 = vadd.f32 %v5876_v49, %v9573_v30 }
 0x5e9   : > { %v5892_v56 = vadd.f32 %v9577_v35, %v9575_v14  ;;  %v5964_v21 = vmul.f32 %v9577_v35, %v9577_v35  ;;  %v5965_v26 = vmul.f32 %v9579_v63, %v9579_v63 }
 0x5ea   : > { %v9581_v36 = vpop.f32.mrf.mxu1  ;;  %v6013_v32 = vadd.f32 %v6012_v24, %v5950_v57 }
 0x5eb   : > { %v5893_v52 = vadd.f32 %v5892_v56, %v9579_v63  ;;  %v6028_v41 = vadd.f32 %v5964_v21, %v5963_v9 }
 0x5ec   : > { %v9583_v42 = vpop.f32.mrf.mxu0 }
 0x5ed   : > { %v5979_v48 = vmul.f32 %v9583_v42, %v9583_v42  ;;  %v5894_v43 = vadd.f32 %v5893_v52, %v9581_v36 }
 0x5ee   : > { %v9585_v60 = vpop.f32.mrf.mxu0  ;;  %v9587_v5 = vpop.f32.mrf.mxu1 }
 0x5ef   : > { %v5980_v4 = vmul.f32 %v9585_v60, %v9585_v60  ;;  %v5909_v29 = vadd.f32 %v9585_v60, %v9583_v42  ;;  %v5981_v8 = vmul.f32 %v9587_v5, %v9587_v5 }
 0x5f0   : > { %v9589_v31 = vpop.f32.mrf.mxu1 }
 0x5f1   : > { %v6045_v1 = vadd.f32 %v5980_v4, %v5979_v48  ;;  %v5910_v22 = vadd.f32 %v5909_v29, %v9587_v5  ;;  %v5982_v12 = vmul.f32 %v9589_v31, %v9589_v31  ;;  %v6029_v48 = vadd.f32 %v6028_v41, %v5965_v26 }
 0x5f2   : > { %v9591_v2 = vpop.f32.mrf.mxu0  ;;  %v5966_v29 = vmul.f32 %v9581_v36, %v9581_v36 }
 0x5f3   : > { %v5995_v62 = vmul.f32 %v9591_v2, %v9591_v2  ;;  %v6046_v46 = vadd.f32 %v6045_v1, %v5981_v8  ;;  %v5911_v10 = vadd.f32 %v5910_v22, %v9589_v31 }
 0x5f4   : > { %v9593_v15 = vpop.f32.mrf.mxu0  ;;  %v9595_v55 = vpop.f32.mrf.mxu1 }
 0x5f5   : > { %v5996_v18 = vmul.f32 %v9593_v15, %v9593_v15  ;;  %v5926_v33 = vadd.f32 %v9593_v15, %v9591_v2  ;;  %v5997_v3 = vmul.f32 %v9595_v55, %v9595_v55  ;;  %v6047_v49 = vadd.f32 %v6046_v46, %v5982_v12 }
 0x5f6   : > { %v9597_v27 = vpop.f32.mrf.mxu1 }
 0x5f7   : > { %v6062_v20 = vadd.f32 %v5996_v18, %v5995_v62  ;;  %v5927_v47 = vadd.f32 %v5926_v33, %v9595_v55  ;;  %v5998_v21 = vmul.f32 %v9597_v27, %v9597_v27 }
 0x5f8   : > { %v9599_v28 = vpop.f32.mrf.mxu0 }
 0x5f9   : > { %10879 = vst [vmem:[#allocation21_spill] sm:$0xff] %v9599_v28  ;;  %v6063_v56 = vadd.f32 %v6062_v20, %v5997_v3  ;;  %v5951_v51 = vmul.f32 %v9599_v28, %v9599_v28  ;;  %v5878_v18 = vadd.f32 %v5877_v16, %v9599_v28  ;;  %v5928_v1 = vadd.f32 %v5927_v47, %v9597_v27 }
 0x5fa   : > { %v9601_v40 = vpop.f32.mrf.mxu0  ;;  %v9603_v25 = vpop.f32.mrf.mxu1  ;;  %v6030_v16 = vadd.f32 %v6029_v48, %v5966_v29 }
 0x5fb   : > { %10880 = vst [vmem:[#allocation116_spill] sm:$0xff] %v9601_v40  ;;  %10881 = vst [vmem:[#allocation118_spill] sm:$0xff] %v9603_v25  ;;  %v6064_v24 = vadd.f32 %v6063_v56, %v5998_v21  ;;  %v6014_v9 = vadd.f32 %v6013_v32, %v5951_v51  ;;  %v5952_v20 = vmul.f32 %v9601_v40, %v9601_v40 }
 0x5fc   : > { %v9605_v19 = vpop.f32.mrf.mxu1  ;;  %v5879_v57 = vadd.f32 %v5878_v18, %v9601_v40  ;;  %v5953_v12 = vmul.f32 %v9603_v25, %v9603_v25 }
 0x5fd   : > { %10882 = vst [vmem:[#allocation115_spill] sm:$0xff] %v9605_v19 }
 0x5fe   : > { %v9607_v45 = vpop.f32.mrf.mxu0  ;;  %v5880_v29 = vadd.f32 %v5879_v57, %v9603_v25 }
 0x5ff   : > { %v5895_v38 = vadd.f32 %v5894_v43, %v9607_v45  ;;  %v5967_v3 = vmul.f32 %v9607_v45, %v9607_v45 }
 0x600   : > { %v9609_v61 = vpop.f32.mrf.mxu0  ;;  %v9611_v54 = vpop.f32.mrf.mxu1 }
 0x601   : > { %v5896_v8 = vadd.f32 %v5895_v38, %v9609_v61  ;;  %v6031_v18 = vadd.f32 %v6030_v16, %v5967_v3  ;;  %v5881_v16 = vadd.f32 %v5880_v29, %v9605_v19 }
 0x602   : > { %v9613_v23 = vpop.f32.mrf.mxu1 }
 0x603   : > { %v5897_v56 = vadd.f32 %v5896_v8, %v9611_v54 }
 0x604   : > { %v9615_v59 = vpop.f32.mrf.mxu0 }
 0x605   : > { %v5983_v52 = vmul.f32 %v9615_v59, %v9615_v59  ;;  %v5912_v33 = vadd.f32 %v5911_v10, %v9615_v59  ;;  %v6015_v10 = vadd.f32 %v6014_v9, %v5952_v20  ;;  %v5898_v9 = vadd.f32 %v5897_v56, %v9613_v23 }
 0x606   : > { %v9619_v17 = vpop.f32.mrf.mxu0  ;;  %v9621_v6 = vpop.f32.mrf.mxu1 }
 0x607   : > { %v6048_v41 = vadd.f32 %v6047_v49, %v5983_v52  ;;  %v5984_v26 = vmul.f32 %v9619_v17, %v9619_v17  ;;  %v5913_v51 = vadd.f32 %v5912_v33, %v9619_v17  ;;  %v5968_v52 = vmul.f32 %v9609_v61, %v9609_v61 }
 0x608   : > { %v9627_v58 = vpop.f32.mrf.mxu1  ;;  %v6016_v3 = vadd.f32 %v6015_v10, %v5953_v12 }
 0x609   : > { %v6049_v21 = vadd.f32 %v6048_v41, %v5984_v26  ;;  %v5914_v20 = vadd.f32 %v5913_v51, %v9621_v6  ;;  %v6032_v57 = vadd.f32 %v6031_v18, %v5968_v52  ;;  %v5969_v41 = vmul.f32 %v9611_v54, %v9611_v54 }
 0x60a   : > { %v9637_v7 = vpop.f32.mrf.mxu0  ;;  %v5986_v18 = vmul.f32 %v9627_v58, %v9627_v58 }
 0x60b   : > { %v5999_v62 = vmul.f32 %v9637_v7, %v9637_v7  ;;  %v5929_v46 = vadd.f32 %v5928_v1, %v9637_v7  ;;  %v5915_v12 = vadd.f32 %v5914_v20, %v9627_v58 }
 0x60c   : > { %v9648_v50 = vpop.f32.mrf.mxu0  ;;  %v9650_v53 = vpop.f32.mrf.mxu1 }
 0x60d   : > { %10883 = vst [vmem:[#allocation117_spill] sm:$0xff] %v9650_v53  ;;  %v6065_v47 = vadd.f32 %v6064_v24, %v5999_v62  ;;  %v6000_v38 = vmul.f32 %v9648_v50, %v9648_v50  ;;  %v5985_v62 = vmul.f32 %v9621_v6, %v9621_v6  ;;  %v5930_v49 = vadd.f32 %v5929_v46, %v9648_v50 }
 0x60e   : > { %v9661_v44 = vpop.f32.mrf.mxu1  ;;  %v6001_v8 = vmul.f32 %v9650_v53, %v9650_v53 }
 0x60f   : > { %v6066_v1 = vadd.f32 %v6065_v47, %v6000_v38  ;;  %v6050_v46 = vadd.f32 %v6049_v21, %v5985_v62  ;;  %v5954_v38 = vmul.f32 %v9605_v19, %v9605_v19  ;;  %v5931_v37 = vadd.f32 %v5930_v49, %v9650_v53 }
 0x610   : > { %v9669_v34 = vpop.f32.mrf.mxu0  ;;  %v6033_v62 = vadd.f32 %v6032_v57, %v5969_v41  ;;  %v5970_v49 = vmul.f32 %v9613_v23, %v9613_v23 }
 0x611   : > { %10884 = vst [vmem:[#allocation104_spill] sm:$0xff] %v9669_v34  ;;  %v6067_v56 = vadd.f32 %v6066_v1, %v6001_v8  ;;  %v5955_v51 = vmul.f32 %v9669_v34, %v9669_v34  ;;  %v5882_v52 = vadd.f32 %v5881_v16, %v9669_v34  ;;  %v6017_v21 = vadd.f32 %v6016_v3, %v5954_v38 }
 0x612   : > { %v9676_v39 = vpop.f32.mrf.mxu0  ;;  %v9678_v4 = vpop.f32.mrf.mxu1  ;;  %v6002_v1 = vmul.f32 %v9661_v44, %v9661_v44  ;;  %v6051_v20 = vadd.f32 %v6050_v46, %v5986_v18  ;;  %v5932_v3 = vadd.f32 %v5931_v37, %v9661_v44 }
 0x613   : > { %10885 = vst [vmem:[#allocation106_spill] sm:$0xff] %v9676_v39  ;;  %10886 = vst [vmem:[#allocation103_spill] sm:$0xff] %v9678_v4  ;;  %v6018_v41 = vadd.f32 %v6017_v21, %v5955_v51  ;;  %v5956_v38 = vmul.f32 %v9676_v39, %v9676_v39  ;;  %v5883_v19 = vadd.f32 %v5882_v52, %v9676_v39 }
 0x614   : > { %v9701_v22 = vpop.f32.mrf.mxu1  ;;  %v6068_v57 = vadd.f32 %v6067_v56, %v6002_v1  ;;  %v6034_v51 = vadd.f32 %v6033_v62, %v5970_v49 }
 0x615   : > { %10887 = vst [vmem:[#allocation105_spill] sm:$0xff] %v9701_v22  ;;  %v6019_v1 = vadd.f32 %v6018_v41, %v5956_v38 }
 0x616   : > { %v9699_v43 = vpop.f32.mrf.mxu0 }
 0x617   : > { %v5899_v47 = vadd.f32 %v5898_v9, %v9699_v43  ;;  %v5971_v46 = vmul.f32 %v9699_v43, %v9699_v43 }
 0x618   : > { %v9709_v32 = vpop.f32.mrf.mxu0 }
 0x619   : > { %v5900_v25 = vadd.f32 %v5899_v47, %v9709_v32 }
 0x61a   : > { %v9717_v48 = vpop.f32.mrf.mxu1 }
 0x61b   : > { %v5901_v21 = vadd.f32 %v5900_v25, %v9717_v48  ;;  %v5972_v25 = vmul.f32 %v9709_v32, %v9709_v32  ;;  %v5973_v40 = vmul.f32 %v9717_v48, %v9717_v48 }
 0x61c   : > { %v9725_v33 = vpop.f32.mrf.mxu0  ;;  %v9727_v24 = vpop.f32.mrf.mxu1 }
 0x61d   : > { %10888 = vst [vmem:[#allocation92_spill] sm:$0xff] %v9725_v33  ;;  %v5987_v29 = vmul.f32 %v9725_v33, %v9725_v33  ;;  %v5916_v16 = vadd.f32 %v5915_v12, %v9725_v33 }
 0x61e   : > { %v9733_v26 = vpop.f32.mrf.mxu0 }
 0x61f   : > { %v6052_v47 = vadd.f32 %v6051_v20, %v5987_v29  ;;  %v5988_v12 = vmul.f32 %v9733_v26, %v9733_v26  ;;  %v5917_v52 = vadd.f32 %v5916_v16, %v9733_v26  ;;  %v5957_v29 = vmul.f32 %v9678_v4, %v9678_v4 }
 0x620   : > { %v9742_v10 = vpop.f32.mrf.mxu1 }
 0x621   : > { %10889 = vst [vmem:[#allocation94_spill] sm:$0xff] %v9742_v10 }
 0x622   : > { %v9754_v8 = vpop.f32.mrf.mxu0  ;;  %v9756_v9 = vpop.f32.mrf.mxu1 }
 0x623   : > { %10890 = vst [vmem:[#allocation91_spill] sm:$0xff] %v9754_v8  ;;  %v6003_v34 = vmul.f32 %v9754_v8, %v9754_v8  ;;  %v5933_v18 = vadd.f32 %v5932_v3, %v9754_v8  ;;  %v6035_v3 = vadd.f32 %v6034_v51, %v5971_v46  ;;  %v5989_v8 = vmul.f32 %v9742_v10, %v9742_v10 }
 0x624   : > { %v9765_v28 = vpop.f32.mrf.mxu0  ;;  %v5918_v46 = vadd.f32 %v5917_v52, %v9742_v10 }
 0x625   : > { %10891 = vst [vmem:[#allocation93_spill] sm:$0xff] %v9765_v28  ;;  %v6069_v33 = vadd.f32 %v6068_v57, %v6003_v34  ;;  %v6004_v37 = vmul.f32 %v9765_v28, %v9765_v28  ;;  %v5884_v34 = vadd.f32 %v5883_v19, %v9678_v4  ;;  %v6053_v57 = vadd.f32 %v6052_v47, %v5988_v12 }
 0x626   : > { %v9775_v56 = vpop.f32.mrf.mxu1  ;;  %v5934_v62 = vadd.f32 %v5933_v18, %v9765_v28  ;;  %v5902_v19 = vadd.f32 %v5901_v21, %v9727_v24  ;;  %v6020_v47 = vadd.f32 %v6019_v1, %v5957_v29  ;;  %v6036_v28 = vadd.f32 %v6035_v3, %v5972_v25 }
 0x627   : > { %10892 = vst [vmem:[#allocation80_spill] sm:$0xff] %v9775_v56  ;;  %v6070_v49 = vadd.f32 %v6069_v33, %v6004_v37  ;;  %v6005_v16 = vmul.f32 %v9775_v56, %v9775_v56  ;;  %v5885_v4 = vadd.f32 %v5884_v34, %v9701_v22  ;;  %v5958_v33 = vmul.f32 %v9701_v22, %v9701_v22 }
 0x628   : > { %v9781_v20 = vpop.f32.mrf.mxu1  ;;  %v9783_v39 = vpop.f32.mrf.mxu0  ;;  %v6054_v18 = vadd.f32 %v6053_v57, %v5989_v8  ;;  %v5935_v21 = vadd.f32 %v5934_v62, %v9775_v56  ;;  %v5919_v10 = vadd.f32 %v5918_v46, %v9756_v9  ;;  %v5990_v34 = vmul.f32 %v9756_v9, %v9756_v9 }
 0x629   : > { %10893 = vst [vmem:[#allocation82_spill] sm:$0xff] %v9781_v20  ;;  %10894 = vst [vmem:[#allocation79_spill] sm:$0xff] %v9783_v39  ;;  %v6071_v52 = vadd.f32 %v6070_v49, %v6005_v16  ;;  %v5886_v8 = vadd.f32 %v5885_v4, %v9783_v39  ;;  %v6021_v3 = vadd.f32 %v6020_v47, %v5958_v33 }
 0x62a   : > { %v9793_v41 = vpop.f32.mrf.mxu0  ;;  %v9795_v38 = vpop.f32.mrf.mxu1  ;;  %v6006_v25 = vmul.f32 %v9781_v20, %v9781_v20  ;;  %v5959_v62 = vmul.f32 %v9783_v39, %v9783_v39  ;;  %v5974_v47 = vmul.f32 %v9727_v24, %v9727_v24  ;;  %v5936_v33 = vadd.f32 %v5935_v21, %v9781_v20 }
 0x62b   : > { %10895 = vst [vmem:[#allocation81_spill] sm:$0xff] %v9793_v41  ;;  %10896 = vst [vmem:[#allocation63_spill] sm:$0xff] %v9795_v38 }
 0x62c   : > { %v9799_v12 = vpop.f32.mrf.mxu0  ;;  %v9801_v51 = vpop.f32.mrf.mxu1  ;;  %v6072_v56 = vadd.f32 %v6071_v52, %v6006_v25 }
 0x62d   : > { %10897 = vst [vmem:[#allocation65_spill] sm:$0xff] %v9799_v12  ;;  %v5903_v37 = vadd.f32 %v5902_v19, %v9799_v12  ;;  %v6055_v19 = vadd.f32 %v6054_v18, %v5990_v34  ;;  %v5887_v18 = vadd.f32 %v5886_v8, %v9793_v41  ;;  %v5975_v8 = vmul.f32 %v9799_v12, %v9799_v12 }
 0x62e   : > { %v9810_v1 = vpop.f32.mrf.mxu0  ;;  %v9812_v29 = vpop.f32.mrf.mxu1 }
 0x62f   : > { %v5904_v57 = vadd.f32 %v5903_v37, %v9810_v1  ;;  %v6037_v37 = vadd.f32 %v6036_v28, %v5973_v40  ;;  %v5960_v28 = vmul.f32 %v9793_v41, %v9793_v41 }
 0x630   : > { %v9823_v49 = vpop.f32.mrf.mxu0  ;;  %v9825_v16 = vpop.f32.mrf.mxu1 }
 0x631   : > { %10898 = vst [vmem:[#allocation62_spill] sm:$0xff] %v9823_v49  ;;  %v5920_v46 = vadd.f32 %v5919_v10, %v9823_v49  ;;  %v5991_v22 = vmul.f32 %v9823_v49, %v9823_v49  ;;  %v5905_v4 = vadd.f32 %v5904_v57, %v9812_v29  ;;  %v6022_v57 = vadd.f32 %v6021_v3, %v5959_v62 }
 0x632   : > { %v9834_v39 = vpop.f32.mrf.mxu0  ;;  %v9836_v53 = vpop.f32.mrf.mxu1  ;;  %v6038_v62 = vadd.f32 %v6037_v37, %v5974_v47 }
 0x633   : > { %10899 = vst [vmem:[#allocation64_spill] sm:$0xff] %v9834_v39  ;;  %10900 = vst [vmem:[#allocation50_spill] sm:$0xff] %v9836_v53  ;;  %v6056_v34 = vadd.f32 %v6055_v19, %v5991_v22  ;;  %v5921_v10 = vadd.f32 %v5920_v46, %v9834_v39  ;;  %v5992_v49 = vmul.f32 %v9834_v39, %v9834_v39 }
 0x634   : > { %v5993_v40 = vmul.f32 %v9836_v53, %v9836_v53  ;;  %v9846_v21 = vpop.f32.mrf.mxu0  ;;  %v5906_v52 = vadd.f32 %v5905_v4, %v9825_v16  ;;  %v9854_v19 = vpop.f32.mrf.mxu1  ;;  %v5961_v46 = vmul.f32 %v9795_v38, %v9795_v38 }
 0x635   : > { %10901 = vst [vmem:[#allocation53_spill] sm:$0xff] %v9846_v21  ;;  %v5937_v22 = vadd.f32 %v5936_v33, %v9846_v21  ;;  %v6007_v25 = vmul.f32 %v9846_v21, %v9846_v21  ;;  %v5922_v3 = vadd.f32 %v5921_v10, %v9836_v53  ;;  %v6057_v4 = vadd.f32 %v6056_v34, %v5992_v49 }
 0x636   : > { %5907 = vadd.xlane.f32.xlu1 %v5906_v52  ;;  %v9859_v41 = vpop.f32.mrf.mxu0  ;;  %v9864_v20 = vpop.f32.mrf.mxu1  ;;  %v5888_v21 = vadd.f32 %v5887_v18, %v9795_v38  ;;  %v5994_v37 = vmul.f32 %v9854_v19, %v9854_v19  ;;  %v6023_v52 = vadd.f32 %v6022_v57, %v5960_v28  ;;  %v6039_v53 = vadd.f32 %v6038_v62, %v5975_v8 }
 0x637   : > { %v6073_v39 = vadd.f32 %v6072_v56, %v6007_v25  ;;  %v5938_v12 = vadd.f32 %v5937_v22, %v9859_v41  ;;  %v6008_v33 = vmul.f32 %v9859_v41, %v9859_v41  ;;  %v5923_v10 = vadd.f32 %v5922_v3, %v9854_v19 }
 0x638   : > { %v6058_v47 = vadd.f32 %v6057_v4, %v5993_v40  ;;  %v5976_v56 = vmul.f32 %v9810_v1, %v9810_v1  ;;  %v6009_v49 = vmul.f32 %v9864_v20, %v9864_v20  ;;  %v9875_v18 = vpop.f32.mrf.mxu1  ;;  %v5889_v3 = vadd.f32 %v5888_v21, %v9801_v51 }
 0x639   : > { %v5939_v22 = vadd.f32 %v5938_v12, %v9864_v20  ;;  %v6074_v25 = vadd.f32 %v6073_v39, %v6008_v33  ;;  %v6024_v38 = vadd.f32 %v6023_v52, %v5961_v46  ;;  %v5977_v57 = vmul.f32 %v9812_v29, %v9812_v29 }
 0x63a   : > { %5924 = vadd.xlane.f32.xlu1 %v5923_v10  ;;  %v6059_v34 = vadd.f32 %v6058_v47, %v5994_v37  ;;  %v5962_v28 = vmul.f32 %v9801_v51, %v9801_v51  ;;  %v6010_v8 = vmul.f32 %v9875_v18, %v9875_v18  ;;  %v6040_v39 = vadd.f32 %v6039_v53, %v5976_v56 }
 0x63b   : > { %v5940_v40 = vadd.f32 %v5939_v22, %v9875_v18  ;;  %v6075_v12 = vadd.f32 %v6074_v25, %v6009_v49  ;;  %v5978_v46 = vmul.f32 %v9825_v16, %v9825_v16 }
 0x63c   : > { %6060 = vadd.xlane.f32.xlu0 %v6059_v34  ;;  %v6025_v62 = vadd.f32 %v6024_v38, %v5962_v28  ;;  %v6041_v21 = vadd.f32 %v6040_v39, %v5977_v57 }
 0x63d   : > { %v6076_v4 = vadd.f32 %v6075_v12, %v6010_v8 }
 0x63e   : > { %5890 = vadd.xlane.f32.xlu1 %v5889_v3  ;;  %v6042_v33 = vadd.f32 %v6041_v21, %v5978_v46 }
 0x640   : > { %5941 = vadd.xlane.f32.xlu0 %v5940_v40 }
 0x642   : > { %6026 = vadd.xlane.f32.xlu1 %v6025_v62 }
 0x644   : > { %6077 = vadd.xlane.f32.xlu0 %v6076_v4 }
 0x648   : > { %6043 = vadd.xlane.f32.xlu0 %v6042_v33 }
 0x6bf   : > { %v5908_v10 = vpop.xlane.xlu1 %5907 }
 0x6c0   : > { %v9897_v39 = vmul.f32 0.00048828125, %v5908_v10 }
 0x6c3   : > { %v5925_v37 = vpop.xlane.xlu1 %5924 }
 0x6c4   : > { %v9887_v47 = vmul.f32 0.00048828125, %v5925_v37 }
 0x6c5   : > { %v6061_v52 = vpop.xlane.xlu0 %6060 }
 0x6c6   : > { %v6081_v34 = vmul.f32 0.00048828125, %v6061_v52  ;;  %v6085_v53 = vmul.f32 %v9887_v47, %v9887_v47 }
 0x6c7   : > { %v5891_v56 = vpop.xlane.xlu1 %5890 }
 0x6c8   : > { %v6089_v38 = vsub.f32 %v6081_v34, %v6085_v53  ;;  %v9891_v49 = vmul.f32 0.00048828125, %v5891_v56  ;;  %v6084_v34 = vmul.f32 %v9897_v39, %v9897_v39 }
 0x6c9   : > { %v5942_v22 = vpop.xlane.xlu0 %5941 }
 0x6ca   : > { %v6093_v25 = vmax.f32 %v6089_v38, 0.0  ;;  %v9893_v3 = vmul.f32 0.00048828125, %v5942_v22  ;;  %v6083_v28 = vmul.f32 %v9891_v49, %v9891_v49 }
 0x6cb   : > { %v6027_v57 = vpop.xlane.xlu1 %6026 }
 0x6cc   : > { %v6079_v40 = vmul.f32 0.00048828125, %v6027_v57  ;;  %v6161_v8 = vadd.f32 1e-05, %v6093_v25  ;;  %v6086_v4 = vmul.f32 %v9893_v3, %v9893_v3  ;;  %v6112_v57 = vsub.f32 %v9577_v35, %v9897_v39 }
 0x6cd   : > { %v6078_v12 = vpop.xlane.xlu0 %6077 }
 0x6ce   : > { %v6087_v62 = vsub.f32 %v6079_v40, %v6083_v28  ;;  %v6082_v21 = vmul.f32 0.00048828125, %v6078_v12  ;;  %7316 = vrsqrt.f32 %v6161_v8  ;;  %v6114_v28 = vsub.f32 %v9581_v36, %v9897_v39 }
 0x6cf   : > { %v6111_v40 = vsub.f32 %v9575_v14, %v9897_v39  ;;  %v6113_v8 = vsub.f32 %v9579_v63, %v9897_v39  ;;  %v6146_v14 = vsub.f32 %v9597_v27, %v9893_v3  ;;  %v6143_v36 = vsub.f32 %v9591_v2, %v9893_v3  ;;  %v10904_v63 = vld [vmem:[#allocation92_spill] sm:$0xff] }
 0x6d0   : > { %v6091_v46 = vmax.f32 %v6087_v62, 0.0  ;;  %v6090_v33 = vsub.f32 %v6082_v21, %v6086_v4  ;;  %v6144_v21 = vsub.f32 %v9593_v15, %v9893_v3  ;;  %v6150_v15 = vsub.f32 %v9661_v44, %v9893_v3 }
 0x6d1   : > { %v6044_v37 = vpop.xlane.xlu0 %6043 }
 0x6d2   : > { %v6094_v52 = vmax.f32 %v6090_v33, 0.0  ;;  %v6080_v53 = vmul.f32 0.00048828125, %v6044_v37  ;;  %v6159_v56 = vadd.f32 1e-05, %v6091_v46  ;;  %v6098_v33 = vsub.f32 %v9573_v30, %v9891_v49 }
 0x6d3   : > { %v6095_v46 = vsub.f32 %v9567_v0, %v9891_v49 }
 0x6d4   : > { %v6162_v38 = vadd.f32 1e-05, %v6094_v52  ;;  %v6088_v22 = vsub.f32 %v6080_v53, %v6084_v34  ;;  %v6128_v52 = vsub.f32 %v9585_v60, %v9887_v47  ;;  %v6130_v34 = vsub.f32 %v9589_v31, %v9887_v47 }
 0x6d5   : > { %v6127_v53 = vsub.f32 %v9583_v42, %v9887_v47  ;;  %v6096_v31 = vsub.f32 %v9571_v13, %v9891_v49  ;;  %v6097_v13 = vsub.f32 %v9569_v11, %v9891_v49  ;;  %v6148_v11 = vsub.f32 %v9648_v50, %v9893_v3  ;;  %v10902_v50 = vld [vmem:[#allocation117_spill] sm:$0xff] }
 0x6d6   : > { %7318 = vrsqrt.f32 %v6162_v38  ;;  %v6092_v10 = vmax.f32 %v6088_v22, 0.0  ;;  %v6129_v38 = vsub.f32 %v9587_v5, %v9887_v47  ;;  %v6132_v22 = vsub.f32 %v9619_v17, %v9887_v47 }
 0x6d7   : > { %7320 = vrsqrt.f32 %v6159_v56  ;;  %v6149_v62 = vsub.f32 %v10902_v50, %v9893_v3  ;;  %v10907_v17 = vsub.f32 %v9621_v6, %v9887_v47  ;;  %v10911_v6 = vsub.f32 %v9609_v61, %v9897_v39  ;;  %v10914_v61 = vld [vmem:[#allocation82_spill] sm:$0xff] }
 0x6d8   : > { %v6160_v25 = vadd.f32 1e-05, %v6092_v10  ;;  %v6134_v10 = vsub.f32 %v9627_v58, %v9887_v47  ;;  %v10908_v58 = vld [vmem:[#allocation115_spill] sm:$0xff] }
 0x6da   : > { %7322 = vrsqrt.f32 %v6160_v25 }
 0x6db   : > { %v9929_v37 = vpop.eup %7316 }
 0x6dc   : > { %v6200_v56 = vmul.f32 %v9929_v37, %v6128_v52  ;;  %v6145_v52 = vsub.f32 %v9595_v55, %v9893_v3  ;;  %v6202_v30 = vmul.f32 %v9929_v37, %v6130_v34  ;;  %v6199_v0 = vmul.f32 %v9929_v37, %v6127_v53 }
 0x6dd   : > { %v6201_v34 = vmul.f32 %v9929_v37, %v6129_v38  ;;  %v6147_v53 = vsub.f32 %v9637_v7, %v9893_v3 }
 0x6de   : > { %v6264_v4 = vmax.f32 %v6200_v56, 0.0  ;;  %v6263_v7 = vmax.f32 %v6199_v0, 0.0 }
 0x6e3   : > { %v9970_v5 = vpop.eup %7318 }
 0x6e4   : > { %v9978_v25 = vpop.eup %7320  ;;  %v6216_v27 = vmul.f32 %v9970_v5, %v6144_v21  ;;  %v6218_v2 = vmul.f32 %v9970_v5, %v6146_v14  ;;  %v6215_v55 = vmul.f32 %v9970_v5, %v6143_v36  ;;  %v6217_v35 = vmul.f32 %v9970_v5, %v6145_v52 }
 0x6e5   : > { %v6266_v14 = vmax.f32 %v6202_v30, 0.0  ;;  %v6168_v36 = vmul.f32 %v9978_v25, %v6096_v31  ;;  %v6170_v56 = vmul.f32 %v9978_v25, %v6098_v33  ;;  %v6167_v38 = vmul.f32 %v9978_v25, %v6095_v46 }
 0x6e6   : > { %v6280_v44 = vmax.f32 %v6216_v27, 0.0  ;;  %v6282_v12 = vmax.f32 %v6218_v2, 0.0  ;;  %v6279_v42 = vmax.f32 %v6215_v55, 0.0  ;;  %v6281_v60 = vmax.f32 %v6217_v35, 0.0 }
 0x6e7   : > { %v9989_v21 = vpop.eup %7322  ;;  %v6265_v35 = vmax.f32 %v6201_v34, 0.0  ;;  %v6169_v33 = vmul.f32 %v9978_v25, %v6097_v13  ;;  %v6220_v46 = vmul.f32 %v9970_v5, %v6148_v11  ;;  %v10905_v13 = vld [vmem:[#allocation94_spill] sm:$0xff]  ;;  %v6234_v11 = vmax.f32 %v6170_v56, 0.0  ;;  %v10020_v56 = vld [vmem:[#allocation12] sm:$0xff] }
 0x6e8   : > { %6328 = vmatprep.subr.mxu0 %v6280_v44  ;;  %6405 = vmatprep.subr.mxu1 %v6282_v12  ;;  %v6184_v52 = vmul.f32 %v9989_v21, %v6112_v57  ;;  %v6186_v27 = vmul.f32 %v9989_v21, %v6114_v28  ;;  %v6183_v2 = vmul.f32 %v9989_v21, %v6111_v40  ;;  %v6231_v34 = vmax.f32 %v6167_v38, 0.0 }
 0x6e9   : > { %6329 = vmatpush1.msra.mxu0 %v6279_v42  ;;  %6406 = vmatpush1.msra.mxu1 %v6281_v60  ;;  %v6185_v31 = vmul.f32 %v9989_v21, %v6113_v8  ;;  %v6222_v28 = vmul.f32 %v9970_v5, %v6150_v15  ;;  %v10903_v60 = vld [vmem:[#allocation116_spill] sm:$0xff]  ;;  %v6135_v8 = vsub.f32 %v10904_v63, %v9887_v47  ;;  %v6233_v50 = vmax.f32 %v6169_v33, 0.0 }
 0x6ea   : > { %6330 = vmatprep.subr.mxu0 %v6264_v4  ;;  %6407 = vmatprep.subr.mxu1 %v6266_v14  ;;  %v6248_v12 = vmax.f32 %v6184_v52, 0.0  ;;  %v6250_v57 = vmax.f32 %v6186_v27, 0.0  ;;  %v6247_v30 = vmax.f32 %v6183_v2, 0.0  ;;  %v6100_v42 = vsub.f32 %v10903_v60, %v9891_v49  ;;  %v10910_v27 = vld [vmem:[#allocation118_spill] sm:$0xff] }
 0x6eb   : > { %6331 = vmatpush1.msra.mxu0 %v6263_v7  ;;  %6408 = vmatpush1.msra.mxu1 %v6265_v35  ;;  %v6249_v40 = vmax.f32 %v6185_v31, 0.0  ;;  %v6137_v0 = vsub.f32 %v10905_v13, %v9887_v47  ;;  %v6232_v4 = vmax.f32 %v6168_v36, 0.0  ;;  %v6219_v55 = vmul.f32 %v9970_v5, %v6147_v53  ;;  %v10909_v7 = vld [vmem:[#allocation21_spill] sm:$0xff] }
 0x6ec   : > { %6332 = vmatprep.subr.mxu0 %v6248_v12  ;;  %6409 = vmatprep.subr.mxu1 %v6250_v57  ;;  %v6221_v15 = vmul.f32 %v9970_v5, %v6149_v62  ;;  %v6204_v44 = vmul.f32 %v9929_v37, %v6132_v22  ;;  %v6206_v14 = vmul.f32 %v9929_v37, %v6134_v10  ;;  %v6284_v36 = vmax.f32 %v6220_v46, 0.0 }
 0x6ed   : > { %6333 = vmatpush1.msra.mxu0 %v6247_v30  ;;  %6410 = vmatpush1.msra.mxu1 %v6249_v40  ;;  %v6286_v53 = vmax.f32 %v6222_v28, 0.0  ;;  %v10906_v62 = vsub.f32 %v9615_v59, %v9887_v47  ;;  %v6205_v22 = vmul.f32 %v9929_v37, %v10907_v17  ;;  %v6102_v10 = vsub.f32 %v10908_v58, %v9891_v49  ;;  %v10913_v30 = vld [vmem:[#allocation93_spill] sm:$0xff] }
 0x6ee   : > { %6334 = vmatprep.subr.mxu0 %v6232_v4  ;;  %6411 = vmatprep.subr.mxu1 %v6234_v11  ;;  %v6099_v52 = vsub.f32 %v10909_v7, %v9891_v49  ;;  %v6101_v2 = vsub.f32 %v10910_v27, %v9891_v49  ;;  %v6283_v59 = vmax.f32 %v6219_v55, 0.0  ;;  %v6285_v35 = vmax.f32 %v6221_v15, 0.0 }
 0x6ef   : > { %v6203_v38 = vmul.f32 %v9929_v37, %v10906_v62  ;;  %6335 = vmatpush1.msra.mxu0 %v6231_v34  ;;  %6412 = vmatpush1.msra.mxu1 %v6233_v50  ;;  %v6188_v31 = vmul.f32 %v9989_v21, %v10911_v6  ;;  %v10912_v33 = vsub.f32 %v9613_v23, %v9897_v39  ;;  %v6268_v12 = vmax.f32 %v6204_v44, 0.0  ;;  %v10917_v44 = vld [vmem:[#allocation91_spill] sm:$0xff] }
 0x6f0   : > { %6482 = vmatprep.subr.mxu0 %v6284_v36  ;;  %6559 = vmatprep.subr.mxu1 %v6286_v53  ;;  %v6270_v57 = vmax.f32 %v6206_v14, 0.0  ;;  %v6152_v28 = vsub.f32 %v10913_v30, %v9893_v3  ;;  %v6154_v40 = vsub.f32 %v10914_v61, %v9893_v3  ;;  %v6269_v23 = vmax.f32 %v6205_v22, 0.0  ;;  %v10064_v53 = vld [vmem:[#allocation12 + $0x8] sm:$0xff]  ;;  %v10920_v22 = vld [vmem:[#allocation106_spill] sm:$0xff] }
 0x6f1   : > { %v6190_v46 = vmul.f32 %v9989_v21, %v10912_v33  ;;  %7153 = vmatmul.mubr.msk.f32.vlgmr.msra.gmra.mxu0 %vm6297_vm10, %v10020_v56  ;;  %7155 = vmatmul.mubr.msk.f32.vlgmr.msra.gmra.mxu1 %vm6297_vm10, %v10020_v56  ;;  %v6267_v60 = vmax.f32 %v6203_v38, 0.0  ;;  %v10915_v4 = vsub.f32 %v9607_v45, %v9897_v39  ;;  %v10916_v55 = vsub.f32 %v9611_v54, %v9897_v39 }
 0x6f2   : > { %6483 = vmatpush1.msra.mxu0 %v6283_v59  ;;  %6560 = vmatpush1.msra.mxu1 %v6285_v35  ;;  %v6172_v34 = vmul.f32 %v9978_v25, %v6100_v42  ;;  %v6174_v50 = vmul.f32 %v9978_v25, %v6102_v10  ;;  %v6151_v14 = vsub.f32 %v10917_v44, %v9893_v3  ;;  %v6252_v36 = vmax.f32 %v6188_v31, 0.0  ;;  %v10919_v42 = vld [vmem:[#allocation80_spill] sm:$0xff]  ;;  %v10921_v10 = vld [vmem:[#allocation105_spill] sm:$0xff] }
 0x6f3   : > { %v6187_v11 = vmul.f32 %v9989_v21, %v10915_v4  ;;  %v6189_v15 = vmul.f32 %v9989_v21, %v10916_v55  ;;  %6484 = vmatprep.subr.mxu0 %v6268_v12  ;;  %6561 = vmatprep.subr.mxu1 %v6270_v57  ;;  %v6254_v45 = vmax.f32 %v6190_v46, 0.0  ;;  %v6171_v62 = vmul.f32 %v9978_v25, %v6099_v52  ;;  %v10922_v31 = vld [vmem:[#allocation104_spill] sm:$0xff]  ;;  %v10923_v46 = vld [vmem:[#allocation103_spill] sm:$0xff] }
 0x6f4   : > { %6485 = vmatpush1.msra.mxu0 %v6267_v60  ;;  %6562 = vmatpush1.msra.mxu1 %v6269_v23  ;;  %v6173_v54 = vmul.f32 %v9978_v25, %v6101_v2  ;;  %v10918_v38 = vmov 0.0   ;;  %v6153_v17 = vsub.f32 %v10919_v42, %v9893_v3  ;;  %v6104_v58 = vsub.f32 %v10920_v22, %v9891_v49 }
 0x6f5   : > { %6374 = vmatprep.mubr.f32.mxu0 %v10918_v38  ;;  %6451 = vmatprep.mubr.f32.mxu1 %v10918_v38  ;;  %v6106_v7 = vsub.f32 %v10921_v10, %v9891_v49  ;;  %v6251_v27 = vmax.f32 %v6187_v11, 0.0  ;;  %v6253_v59 = vmax.f32 %v6189_v15, 0.0  ;;  %v6224_v52 = vmul.f32 %v9970_v5, %v6152_v28 }
 0x6f6   : > { %6486 = vmatprep.subr.mxu0 %v6252_v36  ;;  %6563 = vmatprep.subr.mxu1 %v6254_v45  ;;  %v6226_v2 = vmul.f32 %v9970_v5, %v6154_v40  ;;  %v6236_v35 = vmax.f32 %v6172_v34, 0.0  ;;  %v6238_v6 = vmax.f32 %v6174_v50, 0.0  ;;  %v6103_v33 = vsub.f32 %v10922_v31, %v9891_v49  ;;  %v10929_v36 = vld [vmem:[#allocation64_spill] sm:$0xff] }
 0x6f7   : > { %7154 = vmatmul.mubr.msk.f32.gmra.mxu0 %vm6297_vm10, %v10064_v53  ;;  %7156 = vmatmul.mubr.msk.f32.gmra.mxu1 %vm6297_vm10, %v10064_v53  ;;  %v6105_v12 = vsub.f32 %v10923_v46, %v9891_v49  ;;  %v6235_v57 = vmax.f32 %v6171_v62, 0.0  ;;  %v6237_v30 = vmax.f32 %v6173_v54, 0.0  ;;  %v6223_v28 = vmul.f32 %v9970_v5, %v6151_v14 }
 0x6f8   : > { %6487 = vmatpush1.msra.mxu0 %v6251_v27  ;;  %6564 = vmatpush1.msra.mxu1 %v6253_v59  ;;  %v6225_v61 = vmul.f32 %v9970_v5, %v6153_v17  ;;  %v10924_v40 = vsub.f32 %v9733_v26, %v9887_v47  ;;  %v10925_v23 = vsub.f32 %v9756_v9, %v9887_v47  ;;  %v6288_v55 = vmax.f32 %v6224_v52, 0.0  ;;  %v10932_v27 = vld [vmem:[#allocation62_spill] sm:$0xff] }
 0x6f9   : > { %6488 = vmatprep.subr.mxu0 %v6236_v35  ;;  %6565 = vmatprep.subr.mxu1 %v6238_v6  ;;  %v6156_v11 = vsub.f32 %v9859_v41, %v9893_v3  ;;  %v6290_v15 = vmax.f32 %v6226_v2, 0.0  ;;  %v6207_v34 = vmul.f32 %v9929_v37, %v6135_v8  ;;  %v6209_v26 = vmul.f32 %v9929_v37, %v6137_v0  ;;  %v10926_v41 = vld [vmem:[#allocation53_spill] sm:$0xff] }
 0x6fa   : > { %v6208_v60 = vmul.f32 %v9929_v37, %v10924_v40  ;;  %v6210_v4 = vmul.f32 %v9929_v37, %v10925_v23  ;;  %6489 = vmatpush1.msra.mxu0 %v6235_v57  ;;  %6566 = vmatpush1.msra.mxu1 %v6237_v30  ;;  %v6158_v9 = vsub.f32 %v9875_v18, %v9893_v3  ;;  %v6287_v8 = vmax.f32 %v6223_v28, 0.0  ;;  %v10935_v28 = vld [vmem:[#allocation81_spill] sm:$0xff] }
 0x6fb   : > { %6522 = vmatprep.mubr.f32.mxu0 %v10918_v38  ;;  %6599 = vmatprep.mubr.f32.mxu1 %v10918_v38  ;;  %v6155_v50 = vsub.f32 %v10926_v41, %v9893_v3  ;;  %v6157_v63 = vsub.f32 %v9864_v20, %v9893_v3  ;;  %v6289_v44 = vmax.f32 %v6225_v61, 0.0  ;;  %v10927_v13 = vsub.f32 %v9709_v32, %v9897_v39 }
 0x6fc   : > { %6636 = vmatprep.subr.mxu0 %v6288_v55  ;;  %6713 = vmatprep.subr.mxu1 %v6290_v15  ;;  %v10928_v14 = vsub.f32 %v9727_v24, %v9897_v39  ;;  %v6272_v20 = vmax.f32 %v6208_v60, 0.0  ;;  %v6274_v3 = vmax.f32 %v6210_v4, 0.0  ;;  %v6140_v45 = vsub.f32 %v10929_v36, %v9887_v47  ;;  %v10936_v15 = vld [vmem:[#allocation79_spill] sm:$0xff] }
 0x6fd   : > { %v6192_v0 = vmul.f32 %v9989_v21, %v10927_v13  ;;  %7157 = vmatmul.mubr.msk.f32.vlgmr.msra.gmra.mxu0 %vm6297_vm10, %v10020_v56  ;;  %7159 = vmatmul.mubr.msk.f32.vlgmr.msra.gmra.mxu1 %vm6297_vm10, %v10020_v56  ;;  %v6142_v32 = vsub.f32 %v9854_v19, %v9887_v47  ;;  %v6271_v62 = vmax.f32 %v6207_v34, 0.0  ;;  %v6273_v24 = vmax.f32 %v6209_v26, 0.0 }
 0x6fe   : > { %v6194_v18 = vmul.f32 %v9989_v21, %v10928_v14  ;;  %6637 = vmatpush1.msra.mxu0 %v6287_v8  ;;  %6714 = vmatpush1.msra.mxu1 %v6289_v44  ;;  %v10930_v54 = vsub.f32 %v9699_v43, %v9897_v39  ;;  %v10931_v17 = vsub.f32 %v9717_v48, %v9897_v39  ;;  %v10933_v48 = vld [vmem:[#allocation50_spill] sm:$0xff]  ;;  %v10939_v44 = vld [vmem:[#allocation63_spill] sm:$0xff] }
 0x6ff   : > { %6638 = vmatprep.subr.mxu0 %v6272_v20  ;;  %6715 = vmatprep.subr.mxu1 %v6274_v3  ;;  %v6176_v10 = vmul.f32 %v9978_v25, %v6104_v58  ;;  %v6178_v19 = vmul.f32 %v9978_v25, %v6106_v7  ;;  %v6139_v59 = vsub.f32 %v10932_v27, %v9887_v47  ;;  %v6256_v52 = vmax.f32 %v6192_v0, 0.0  ;;  %v10934_v7 = vld [vmem:[#allocation65_spill] sm:$0xff] }
 0x700   : > { %v6191_v42 = vmul.f32 %v9989_v21, %v10930_v54  ;;  %v6193_v22 = vmul.f32 %v9989_v21, %v10931_v17  ;;  %6639 = vmatpush1.msra.mxu0 %v6271_v62  ;;  %6716 = vmatpush1.msra.mxu1 %v6273_v24  ;;  %v6258_v43 = vmax.f32 %v6194_v18, 0.0  ;;  %v6175_v2 = vmul.f32 %v9978_v25, %v6103_v33 }
 0x701   : > { %v6177_v35 = vmul.f32 %v9978_v25, %v6105_v12  ;;  %6528 = vmatprep.mubr.f32.mxu0 %v10918_v38  ;;  %6605 = vmatprep.mubr.f32.mxu1 %v10918_v38  ;;  %v6141_v58 = vsub.f32 %v10933_v48, %v9887_v47  ;;  %v6123_v6 = vsub.f32 %v10934_v7, %v9897_v39  ;;  %v6240_v47 = vmax.f32 %v6176_v10, 0.0 }
 0x702   : > { %v6125_v31 = vsub.f32 %v9812_v29, %v9897_v39  ;;  %6640 = vmatprep.subr.mxu0 %v6256_v52  ;;  %6717 = vmatprep.subr.mxu1 %v6258_v43  ;;  %v6255_v46 = vmax.f32 %v6191_v42, 0.0  ;;  %v6257_v57 = vmax.f32 %v6193_v22, 0.0  ;;  %v6228_v33 = vmul.f32 %v9970_v5, %v6156_v11 }
 0x703   : > { %v6230_v12 = vmul.f32 %v9970_v5, %v6158_v9  ;;  %7158 = vmatmul.mubr.msk.f32.gmra.mxu0 %vm6297_vm10, %v10064_v53  ;;  %7160 = vmatmul.mubr.msk.f32.gmra.mxu1 %vm6297_vm10, %v10064_v53  ;;  %v6242_v30 = vmax.f32 %v6178_v19, 0.0  ;;  %v6108_v61 = vsub.f32 %v10935_v28, %v9891_v49  ;;  %v6110_v29 = vsub.f32 %v9801_v51, %v9891_v49 }
 0x704   : > { %6641 = vmatpush1.msra.mxu0 %v6255_v46  ;;  %6718 = vmatpush1.msra.mxu1 %v6257_v57  ;;  %v6239_v40 = vmax.f32 %v6175_v2, 0.0  ;;  %v6241_v60 = vmax.f32 %v6177_v35, 0.0  ;;  %v6227_v23 = vmul.f32 %v9970_v5, %v6155_v50  ;;  %v6229_v4 = vmul.f32 %v9970_v5, %v6157_v63 }
 0x705   : > { %6642 = vmatprep.subr.mxu0 %v6240_v47  ;;  %6719 = vmatprep.subr.mxu1 %v6242_v30  ;;  %v6212_v11 = vmul.f32 %v9929_v37, %v6140_v45  ;;  %v6214_v55 = vmul.f32 %v9929_v37, %v6142_v32  ;;  %v6107_v34 = vsub.f32 %v10936_v15, %v9891_v49  ;;  %v6292_v51 = vmax.f32 %v6228_v33, 0.0 }
 0x706   : > { %6643 = vmatpush1.msra.mxu0 %v6239_v40  ;;  %6720 = vmatpush1.msra.mxu1 %v6241_v60  ;;  %v6294_v26 = vmax.f32 %v6230_v12, 0.0  ;;  %v6211_v9 = vmul.f32 %v9929_v37, %v6139_v59  ;;  %v6213_v41 = vmul.f32 %v9929_v37, %v6141_v58  ;;  %v10937_v5 = vsub.f32 %v9810_v1, %v9897_v39 }
 0x707   : > { %6676 = vmatprep.mubr.f32.mxu0 %v10918_v38  ;;  %6753 = vmatprep.mubr.f32.mxu1 %v10918_v38  ;;  %v10938_v63 = vsub.f32 %v9825_v16, %v9897_v39  ;;  %v6109_v13 = vsub.f32 %v10939_v44, %v9891_v49  ;;  %v6291_v37 = vmax.f32 %v6227_v23, 0.0  ;;  %v6293_v0 = vmax.f32 %v6229_v4, 0.0 }
 0x708   : > { %v6196_v50 = vmul.f32 %v9989_v21, %v10937_v5  ;;  %6790 = vmatprep.subr.mxu0 %v6292_v51  ;;  %6867 = vmatprep.subr.mxu1 %v6294_v26  ;;  %v6195_v14 = vmul.f32 %v9989_v21, %v6123_v6  ;;  %v6197_v18 = vmul.f32 %v9989_v21, %v6125_v31  ;;  %v6276_v1 = vmax.f32 %v6212_v11, 0.0 }
 0x709   : > { %v6198_v8 = vmul.f32 %v9989_v21, %v10938_v63  ;;  %7161 = vmatmul.mubr.msk.f32.vlgmr.msra.gmra.mxu0 %vm6297_vm10, %v10020_v56  ;;  %7163 = vmatmul.mubr.msk.f32.vlgmr.msra.gmra.mxu1 %vm6297_vm10, %v10020_v56  ;;  %v6278_v16 = vmax.f32 %v6214_v55, 0.0  ;;  %v6180_v39 = vmul.f32 %v9978_v25, %v6108_v61  ;;  %v6182_v49 = vmul.f32 %v9978_v25, %v6110_v29 }
 0x70a   : > { %6791 = vmatpush1.msra.mxu0 %v6291_v37  ;;  %6868 = vmatpush1.msra.mxu1 %v6293_v0  ;;  %v6275_v20 = vmax.f32 %v6211_v9, 0.0  ;;  %v6277_v3 = vmax.f32 %v6213_v41, 0.0  ;;  %v6179_v36 = vmul.f32 %v9978_v25, %v6107_v34  ;;  %v6181_v21 = vmul.f32 %v9978_v25, %v6109_v13 }
 0x70b   : > { %6792 = vmatprep.subr.mxu0 %v6276_v1  ;;  %6869 = vmatprep.subr.mxu1 %v6278_v16  ;;  %v6260_v45 = vmax.f32 %v6196_v50, 0.0  ;;  %v6262_v32 = vmax.f32 %v6198_v8, 0.0  ;;  %v6259_v62 = vmax.f32 %v6195_v14, 0.0  ;;  %v6261_v24 = vmax.f32 %v6197_v18, 0.0 }
 0x70c   : > { %6793 = vmatpush1.msra.mxu0 %v6275_v20  ;;  %6870 = vmatpush1.msra.mxu1 %v6277_v3  ;;  %v6244_v54 = vmax.f32 %v6180_v39, 0.0  ;;  %v6246_v42 = vmax.f32 %v6182_v49, 0.0  ;;  %v6243_v17 = vmax.f32 %v6179_v36, 0.0  ;;  %v6245_v22 = vmax.f32 %v6181_v21, 0.0 }
 0x70d   : > { %6794 = vmatprep.subr.mxu0 %v6260_v45  ;;  %6871 = vmatprep.subr.mxu1 %v6262_v32 }
 0x70e   : > { %6795 = vmatpush1.msra.mxu0 %v6259_v62  ;;  %6872 = vmatpush1.msra.mxu1 %v6261_v24 }
 0x70f   : > { %6796 = vmatprep.subr.mxu0 %v6244_v54  ;;  %6873 = vmatprep.subr.mxu1 %v6246_v42 }
 0x710   : > { %6797 = vmatpush1.msra.mxu0 %v6243_v17  ;;  %6874 = vmatpush1.msra.mxu1 %v6245_v22 }
 0x711   : > { %6682 = vmatprep.mubr.f32.mxu0 %v10918_v38  ;;  %6759 = vmatprep.mubr.f32.mxu1 %v10918_v38 }
 0x712   : > { %7162 = vmatmul.mubr.msk.f32.gmra.mxu0 %vm6297_vm10, %v10064_v53  ;;  %7164 = vmatmul.mubr.msk.f32.gmra.mxu1 %vm6297_vm10, %v10064_v53 }
 0x713   : > { %6830 = vmatprep.mubr.f32.mxu0 %v10918_v38  ;;  %6907 = vmatprep.mubr.f32.mxu1 %v10918_v38 }
 0x716   : > { %7165 = vmatmul.mubr.msk.f32.vlgmr.msra.gmra.mxu0 %vm6297_vm10, %v10020_v56  ;;  %7167 = vmatmul.mubr.msk.f32.vlgmr.msra.gmra.mxu1 %vm6297_vm10, %v10020_v56 }
 0x717   : > { %6836 = vmatprep.mubr.f32.mxu0 %v10918_v38  ;;  %6913 = vmatprep.mubr.f32.mxu1 %v10918_v38 }
 0x71a   : > { %7166 = vmatmul.mubr.msk.f32.gmra.mxu0 %vm6297_vm10, %v10064_v53  ;;  %7168 = vmatmul.mubr.msk.f32.gmra.mxu1 %vm6297_vm10, %v10064_v53 }
 0x7b1   : > { %v6370_v25 = vpop.f32.mrf.mxu0  ;;  %v6447_v10 = vpop.f32.mrf.mxu1 }
 0x7b2   : > { %6920 = vst [vmem:[%s10211_s20] sm:$0xff] %v6370_v25  ;;  %6922 = vst [vmem:[%s10211_s20 + $0x10] sm:$0xff] %v6447_v10 }
 0x7b3   : > { %v6372_v56 = vpop.f32.mrf.mxu0  ;;  %v6449_v38 = vpop.f32.mrf.mxu1 }
 0x7b4   : > { %6921 = vst [vmem:[%s10211_s20 + $0x8] sm:$0xff] %v6372_v56  ;;  %6923 = vst [vmem:[%s10211_s20 + $0x18] sm:$0xff] %v6449_v38 }
 0x7b7   : > { %v6376_v53 = vpop.f32.mrf.mxu0  ;;  %v6453_v19 = vpop.f32.mrf.mxu1 }
 0x7b8   : > { %6936 = vst [vmem:[%s10211_s20 + $0x80] sm:$0xff] %v6376_v53  ;;  %6938 = vst [vmem:[%s10211_s20 + $0x90] sm:$0xff] %v6453_v19 }
 0x7b9   : > { %v6378_v27 = vpop.f32.mrf.mxu0  ;;  %v6455_v59 = vpop.f32.mrf.mxu1 }
 0x7ba   : > { %6937 = vst [vmem:[%s10211_s20 + $0x88] sm:$0xff] %v6378_v27  ;;  %6939 = vst [vmem:[%s10211_s20 + $0x98] sm:$0xff] %v6455_v59 }
 0x7bd   : > { %v6524_v52 = vpop.f32.mrf.mxu0  ;;  %v6601_v43 = vpop.f32.mrf.mxu1 }
 0x7be   : > { %6924 = vst [vmem:[%s10211_s20 + $0x20] sm:$0xff] %v6524_v52  ;;  %6926 = vst [vmem:[%s10211_s20 + $0x30] sm:$0xff] %v6601_v43 }
 0x7bf   : > { %v6526_v2 = vpop.f32.mrf.mxu0  ;;  %v6603_v35 = vpop.f32.mrf.mxu1 }
 0x7c0   : > { %6925 = vst [vmem:[%s10211_s20 + $0x28] sm:$0xff] %v6526_v2  ;;  %6927 = vst [vmem:[%s10211_s20 + $0x38] sm:$0xff] %v6603_v35 }
 0x7c3   : > { %v6530_v48 = vpop.f32.mrf.mxu0  ;;  %v6607_v58 = vpop.f32.mrf.mxu1 }
 0x7c4   : > { %6940 = vst [vmem:[%s10211_s20 + $0xa0] sm:$0xff] %v6530_v48  ;;  %6942 = vst [vmem:[%s10211_s20 + $0xb0] sm:$0xff] %v6607_v58 }
 0x7c5   : > { %v6532_v7 = vpop.f32.mrf.mxu0  ;;  %v6609_v6 = vpop.f32.mrf.mxu1 }
 0x7c6   : > { %6941 = vst [vmem:[%s10211_s20 + $0xa8] sm:$0xff] %v6532_v7  ;;  %6943 = vst [vmem:[%s10211_s20 + $0xb8] sm:$0xff] %v6609_v6 }
 0x7c9   : > { %v6678_v31 = vpop.f32.mrf.mxu0  ;;  %v6755_v46 = vpop.f32.mrf.mxu1 }
 0x7ca   : > { %6928 = vst [vmem:[%s10211_s20 + $0x40] sm:$0xff] %v6678_v31  ;;  %6930 = vst [vmem:[%s10211_s20 + $0x50] sm:$0xff] %v6755_v46 }
 0x7cb   : > { %v6680_v57 = vpop.f32.mrf.mxu0  ;;  %v6757_v33 = vpop.f32.mrf.mxu1 }
 0x7cc   : > { %6929 = vst [vmem:[%s10211_s20 + $0x48] sm:$0xff] %v6680_v57  ;;  %6931 = vst [vmem:[%s10211_s20 + $0x58] sm:$0xff] %v6757_v33 }
 0x7d2   : > { %v6684_v12 = vpop.f32.mrf.mxu0  ;;  %v6761_v47 = vpop.f32.mrf.mxu1 }
 0x7d3   : > { %6944 = vst [vmem:[%s10211_s20 + $0xc0] sm:$0xff] %v6684_v12  ;;  %6946 = vst [vmem:[%s10211_s20 + $0xd0] sm:$0xff] %v6761_v47 }
 0x7d4   : > { %v6686_v30 = vpop.f32.mrf.mxu0  ;;  %v6763_v28 = vpop.f32.mrf.mxu1 }
 0x7d5   : > { %6945 = vst [vmem:[%s10211_s20 + $0xc8] sm:$0xff] %v6686_v30  ;;  %6947 = vst [vmem:[%s10211_s20 + $0xd8] sm:$0xff] %v6763_v28 }
 0x7d6   : > { %v6832_v61 = vpop.f32.mrf.mxu0  ;;  %v6909_v29 = vpop.f32.mrf.mxu1 }
 0x7d7   : > { %6932 = vst [vmem:[%s10211_s20 + $0x60] sm:$0xff] %v6832_v61  ;;  %6934 = vst [vmem:[%s10211_s20 + $0x70] sm:$0xff] %v6909_v29 }
 0x7d8   : > { %v6834_v40 = vpop.f32.mrf.mxu0  ;;  %v6911_v60 = vpop.f32.mrf.mxu1 }
 0x7d9   : > { %6933 = vst [vmem:[%s10211_s20 + $0x68] sm:$0xff] %v6834_v40  ;;  %6935 = vst [vmem:[%s10211_s20 + $0x78] sm:$0xff] %v6911_v60 }
 0x7da   : > { %v6838_v23 = vpop.f32.mrf.mxu0  ;;  %v6915_v4 = vpop.f32.mrf.mxu1 }
 0x7db   : > { %6948 = vst [vmem:[%s10211_s20 + $0xe0] sm:$0xff] %v6838_v23  ;;  %6950 = vst [vmem:[%s10211_s20 + $0xf0] sm:$0xff] %v6915_v4 }
 0x7dc   : > { %v6840_v11 = vpop.f32.mrf.mxu0  ;;  %v6917_v55 = vpop.f32.mrf.mxu1 }
 0x7dd   : > { %6949 = vst [vmem:[%s10211_s20 + $0xe8] sm:$0xff] %v6840_v11  ;;  %6951 = vst [vmem:[%s10211_s20 + $0xf8] sm:$0xff] %v6917_v55 }
 0x7de   : > { %7599 = shalt.err (!%p7596_p6)
}
 0x7df   : > { %s7600_s29 = scalar_lea.hbm %s10246_s26, 4096  ;;  %s7604_s17 = scalar_lea.hbm %s10304_s9, 8192 }
 0x7e0   : > { %p7601_p0 = scmp.ne.s32.totalorder %s10246_s26, %s7600_s29  ;;  %p7605_p11 = scmp.lt.s32.totalorder %s10246_s26, %s10304_s9 }
 0x7e1   : > { %p7606_p13 = scmp.lt.s32.totalorder %s7604_s17, %s7600_s29 }
 0x7e2   : > { %p7602_p7 = pnand %p7601_p0, %p10940_p1 }
 0x7e3   : > { %p7607_p5 = por %p7606_p13, %p7605_p11 }
 0x7e4   : > { %p7603_p8 = pneg %p7602_p7 }
 0x7e6   : > { %p7608_p10 = pnand %p7607_p5, %p7603_p8 }
 0x7e8   : > { %7611 = shalt.err (!%p7608_p10)
}
 0x7e9   : > { %s7677_s27 = smov 2048   ;;  %s7678_s20 = smov 128  }
 0x7ea   : > { %7193 = dma.vmem_to_hbm [thread:$0]  (%p10940_p1), %s10248_s19, 4096, %s10246_s26, %s6953_s13, %s7677_s27, %s7677_s27, %s7678_s20  }
 0x7eb PF: > { %s6981_s7 = sand.u32 1, %s7650_s30   ;;  %p10941_p2 = scmp.ne.s32.totalorder %s10534_s16, 0 }
 0x7ec   : > { %p10942_p3 = scmp.ge.s32.totalorder %s7662_s12, 2  ;;  %s6982_s23 = scalar_lea.sflag [#allocation6], %s6981_s7 }
 0x7ee   : > { %p7213_p9 = pnand %p10942_p3, %p10941_p2 }
 0x7f0   : > { %p7214_p12 = pneg %p7213_p9 }
 0x7f2   : > { %7645 = dma.done.wait (%p7214_p12), %s6982_s23, 4096  }
 0x7f3   : > { %7647 = vsyncadd (%p7214_p12), %s6982_s23, 4294963200  ;;  %s10943_s21 = sld [smem:[#allocation19_spill]]  ;;  %p26_p4 = scmp.ge.s32.totalorder %s7803_s24, 4  }
 0x7f4   : > { %s10944_s11 = sld [smem:[#allocation20_spill]]  ;;  %s10945_s30 = smov %s7654_s10 }
 0x7f5   : > { %s10947_s12 = smov %s7803_s24  ;;  %28 = sbr.rel (!%p26_p4) target bundleno = 13 (0xd), region = 182 }
 0x7f9   : > { %s10946_s10 = smov %s10943_s21 }
 0x7fa   :  { %6987 = vsyncpa [#allocation5], 1 }
 0x7fb   :  { %6989 = vsyncpa [#allocation5 + $0x1], 1 }
 0x7fc   :  { %6990 = vsyncpa [#allocation8], 1 }
 0x7fd   :  { %6992 = vsyncpa [#allocation8 + $0x1], 1 }
 0x7fe   :  { %6993 = vsyncpa [#allocation11], 1 }
 0x7ff   :  { %6994 = vsyncpa [#allocation6], 1 }
 0x800   :  { %6996 = vsyncpa [#allocation6 + $0x1], 1 }

</bundles_post_ra>
